<compile_context>
chip_gen: v6e
topology: v6e:2x2x1
jax: 0.10.0
libtpu: 0.0.40
codegen_flags: <defaults>
</compile_context>

<pallas_src>
import functools

import jax
import jax.numpy as jnp
from jax import lax
from jax.experimental import pallas as pl
from jax.experimental.pallas import tpu as pltpu

EPS = 1e-5   # PyTorch default eps for BatchNorm2d / InstanceNorm2d
LANE = 128


def _instnorm(a):
    # InstanceNorm2d (affine=False, biased var) over spatial rows of (HW, C).
    m = jnp.mean(a, axis=0, keepdims=True)
    v = jnp.mean((a - m) ** 2, axis=0, keepdims=True)
    return (a - m) * lax.rsqrt(v + EPS)


def _resblk_kernel(*refs, H, W, Cin, Co, Cp, has_bias):
    if has_bias:
        (xp_ref, bns_ref, bnt_ref, wcb_ref, bcb_ref, w2_ref, b2_ref, badd_ref,
         wqkv_ref, bqkv_ref, wo_ref, bo_ref, o_ref) = refs
    else:
        (xp_ref, bns_ref, bnt_ref, wcb_ref, bcb_ref, w2_ref, b2_ref,
         wqkv_ref, bqkv_ref, wo_ref, bo_ref, o_ref) = refs
        badd_ref = None

    HW = H * W
    f32, bf16 = jnp.float32, jnp.bfloat16

    # ---- BatchNorm2d: batch stats precomputed wrapper-side ----------------
    # Per-channel affine applied to this sample's reflection-padded tile
    # (reflection padding commutes with per-channel affine maps).
    xbn = xp_ref[0] * bns_ref[...] + bnt_ref[...]          # (H+2, W+2, Cin) f32

    # ---- conv1 + shortcut conv: one im2col, one (HW,9Cin)@(9Cin,2Cp) dot ---
    im1 = jnp.concatenate(
        [xbn[dy:dy + H, dx:dx + W, :].reshape(HW, Cin)
         for dy in range(3) for dx in range(3)], axis=-1)  # (HW, 9*Cin)
    acc = jnp.dot(im1.astype(bf16), wcb_ref[...],
                  preferred_element_type=f32) + bcb_ref[...]       # (HW, 2*Cp)

    h1 = jnp.maximum(_instnorm(acc[:, :Cp]), 0.0)          # main branch
    sc = _instnorm(acc[:, Cp:])                            # shortcut (no ReLU)

    # ---- reflection-pad h1 as a value (no scratch round-trip), conv2 ------
    h1_3d = h1.reshape(H, W, Cp)
    hw_pad = jnp.concatenate(
        [h1_3d[:, 1:2, :], h1_3d, h1_3d[:, W - 2:W - 1, :]], axis=1)
    hp = jnp.concatenate(
        [hw_pad[1:2], hw_pad, hw_pad[H - 2:H - 1]], axis=0)  # (H+2, W+2, Cp)

    im2 = jnp.concatenate(
        [hp[dy:dy + H, dx:dx + W, :].reshape(HW, Cp)
         for dy in range(3) for dx in range(3)], axis=-1)    # (HW, 9*Cp)
    acc2 = jnp.dot(im2.astype(bf16), w2_ref[...],
                   preferred_element_type=f32) + b2_ref[...]
    h2 = jnp.maximum(_instnorm(acc2), 0.0)                   # (HW, Cp)

    # time/class embedding bias is added AFTER the conv stack
    # (matches `out = self.conv(x); out += ...` in the reference module).
    if has_bias:
        h2 = h2 + badd_ref[0]

    # ---- AttentionBlock (+ its residual) + ResBlk shortcut -----------------
    xn = _instnorm(h2).astype(bf16)
    q = jnp.dot(xn, wqkv_ref[0], preferred_element_type=f32) + bqkv_ref[0]
    k = jnp.dot(xn, wqkv_ref[1], preferred_element_type=f32) + bqkv_ref[1]
    v = jnp.dot(xn, wqkv_ref[2], preferred_element_type=f32) + bqkv_ref[2]

    # s = q @ k.T without materializing an explicit transpose.
    s = lax.dot_general(q.astype(bf16), k.astype(bf16),
                        dimension_numbers=(((1,), (1,)), ((), ())),
                        preferred_element_type=f32) * (float(Co) ** -0.5)
    s = s - jnp.max(s, axis=-1, keepdims=True)
    e = jnp.exp(s)
    att = e / jnp.sum(e, axis=-1, keepdims=True)             # exact divide
    av = jnp.dot(att.astype(bf16), v.astype(bf16), preferred_element_type=f32)
    attn = jnp.dot(av.astype(bf16), wo_ref[...],
                   preferred_element_type=f32) + bo_ref[...]

    o_ref[0] = (attn + h2 + sc).astype(o_ref.dtype)


# ------------------------------ wrapper --------------------------------------

def _pad_last(a, n):
    return jnp.pad(a, [(0, 0)] * (a.ndim - 1) + [(0, n - a.shape[-1])])


def _pad_last2(a, n0, n1):
    return jnp.pad(a, [(0, 0)] * (a.ndim - 2)
                   + [(0, n0 - a.shape[-2]), (0, n1 - a.shape[-1])])


def init_params(key, ch_in, ch_out, time_emb_dim, num_classes):
    ks = jax.random.split(key, 15)
    s = 0.1
    n = jax.random.normal
    return dict(
        bn_gamma=1.0 + s * n(ks[0], (ch_in,), jnp.float32),
        bn_beta=s * n(ks[1], (ch_in,), jnp.float32),
        w_conv1=s * n(ks[2], (3, 3, ch_in, ch_out), jnp.float32),
        b_conv1=s * n(ks[3], (ch_out,), jnp.float32),
        w_conv2=s * n(ks[4], (3, 3, ch_out, ch_out), jnp.float32),
        b_conv2=s * n(ks[5], (ch_out,), jnp.float32),
        w_sc=s * n(ks[6], (3, 3, ch_in, ch_out), jnp.float32),
        b_sc=s * n(ks[7], (ch_out,), jnp.float32),
        w_time=s * n(ks[8], (time_emb_dim, ch_out), jnp.float32),
        b_time=s * n(ks[9], (ch_out,), jnp.float32),
        class_emb=s * n(ks[10], (num_classes, ch_out), jnp.float32),
        w_qkv=s * n(ks[11], (ch_out, 3 * ch_out), jnp.float32),
        b_qkv=s * n(ks[12], (3 * ch_out,), jnp.float32),
        w_out=s * n(ks[13], (ch_out, ch_out), jnp.float32),
        b_out=s * n(ks[14], (ch_out,), jnp.float32),
    )


def resblk_forward(params, x_nchw, time_emb=None, y=None):
    B, Cin, H, W = x_nchw.shape
    Co = params["w_conv1"].shape[-1]
    Cp = pl.cdiv(Co, LANE) * LANE            # lane-dense padded channel count
    HW, Hp, Wp = H * W, H + 2, W + 2
    f32, bf16 = jnp.float32, jnp.bfloat16

    # NCHW -> NHWC; reflection pad; BatchNorm batch stats (training mode) as a
    # tiny wrapper-side XLA reduce, folded into per-channel scale/shift.
    x = jnp.transpose(x_nchw, (0, 2, 3, 1)).astype(f32)
    bmean = jnp.mean(x, axis=(0, 1, 2))                               # (Cin,)
    bvar = jnp.mean((x - bmean) ** 2, axis=(0, 1, 2))                 # biased
    bn_scale = (params["bn_gamma"].astype(f32) * lax.rsqrt(bvar + EPS))
    bn_shift = params["bn_beta"].astype(f32) - bmean * bn_scale
    bn_scale, bn_shift = bn_scale[None], bn_shift[None]               # (1, Cin)
    xp = jnp.pad(x, ((0, 0), (1, 1), (1, 1), (0, 0)), mode="reflect")

    # ---- pack / lane-pad parameters in im2col layout, weights -> bf16 ------
    w1 = _pad_last(params["w_conv1"].reshape(9, Cin, Co).astype(f32), Cp)
    wsc = _pad_last(params["w_sc"].reshape(9, Cin, Co).astype(f32), Cp)
    wcombo = jnp.concatenate([w1, wsc], axis=-1)          # (9, Cin, 2Cp)
    wcombo = wcombo.reshape(9 * Cin, 2 * Cp).astype(bf16)
    bcombo = jnp.concatenate(
        [_pad_last(params["b_conv1"][None].astype(f32), Cp),
         _pad_last(params["b_sc"][None].astype(f32), Cp)], axis=-1)   # (1, 2Cp)
    w2 = _pad_last2(params["w_conv2"].reshape(9, Co, Co).astype(f32), Cp, Cp)
    w2 = w2.reshape(9 * Cp, Cp).astype(bf16)
    b2 = _pad_last(params["b_conv2"][None].astype(f32), Cp)           # (1, Cp)

    wqkv_raw = params["w_qkv"].astype(f32)
    wqkv = jnp.stack([_pad_last2(wqkv_raw[:, i * Co:(i + 1) * Co], Cp, Cp)
                      for i in range(3)]).astype(bf16)                # (3, Cp, Cp)
    bqkv_raw = params["b_qkv"].astype(f32)
    bqkv = jnp.stack([_pad_last(bqkv_raw[None, i * Co:(i + 1) * Co], Cp)
                      for i in range(3)])                             # (3, 1, Cp)
    wo = _pad_last2(params["w_out"].astype(f32), Cp, Cp).astype(bf16)
    bo = _pad_last(params["b_out"][None].astype(f32), Cp)

    has_bias = (time_emb is not None) or (y is not None)
    args = [xp, bn_scale, bn_shift, wcombo, bcombo, w2, b2]
    in_specs = [
        pl.BlockSpec((1, Hp, Wp, Cin), lambda b: (b, 0, 0, 0)),  # per-sample
        pl.BlockSpec((1, Cin), lambda b: (0, 0)),
        pl.BlockSpec((1, Cin), lambda b: (0, 0)),
        pl.BlockSpec((9 * Cin, 2 * Cp), lambda b: (0, 0)),
        pl.BlockSpec((1, 2 * Cp), lambda b: (0, 0)),
        pl.BlockSpec((9 * Cp, Cp), lambda b: (0, 0)),
        pl.BlockSpec((1, Cp), lambda b: (0, 0)),
    ]
    if has_bias:
        bias = jnp.zeros((B, Co), f32)
        if time_emb is not None:
            bias = bias + time_emb.astype(f32) @ params["w_time"] + params["b_time"]
        if y is not None:
            bias = bias + params["class_emb"][y]
        args.append(_pad_last(bias, Cp).reshape(B, 1, Cp))
        in_specs.append(pl.BlockSpec((1, 1, Cp), lambda b: (b, 0, 0)))
    args += [wqkv, bqkv, wo, bo]
    in_specs += [
        pl.BlockSpec((3, Cp, Cp), lambda b: (0, 0, 0)),
        pl.BlockSpec((3, 1, Cp), lambda b: (0, 0, 0)),
        pl.BlockSpec((Cp, Cp), lambda b: (0, 0)),
        pl.BlockSpec((1, Cp), lambda b: (0, 0)),
    ]

    # ---- cost estimate + explicit VMEM limit sized from the working set ----
    def _nbytes(a):
        return a.size * a.dtype.itemsize
    weight_bytes = sum(_nbytes(a) for a in (wcombo, bcombo, w2, b2,
                                            wqkv, bqkv, wo, bo))
    xp_block_bytes = Hp * Wp * Cin * 4
    out_block_bytes = HW * Cp * 4
    act_bytes = (HW * 9 * Cin * 6 + HW * 2 * Cp * 4        # im1 + conv1/sc acc
                 + Hp * Wp * Cp * 4 + HW * 9 * Cp * 6       # padded h1 + im2
                 + HW * HW * 4 * 2                          # scores + softmax
                 + 8 * HW * Cp * 4)                         # misc (HW, Cp) temps
    vmem_limit = int(min(max(2 * (xp_block_bytes + out_block_bytes)
                             + weight_bytes + act_bytes + (4 << 20),
                             32 << 20), 64 << 20))

    flops = int(2 * B * HW * (9 * Cin * 2 * Cp + 9 * Cp * Cp + 4 * Cp * Cp)
                + 4 * B * HW * HW * Cp)
    transcendentals = int(B * HW * (HW + 16))
    bytes_accessed = int(B * (xp_block_bytes + out_block_bytes) + weight_bytes)

    out = pl.pallas_call(
        functools.partial(_resblk_kernel, H=H, W=W, Cin=Cin, Co=Co,
                          Cp=Cp, has_bias=has_bias),
        out_shape=jax.ShapeDtypeStruct((B, HW, Cp), f32),
        grid=(B,),
        in_specs=in_specs,
        out_specs=pl.BlockSpec((1, HW, Cp), lambda b: (b, 0, 0)),
        compiler_params=pltpu.CompilerParams(
            dimension_semantics=("parallel",),
            vmem_limit_bytes=vmem_limit),
        cost_estimate=pl.CostEstimate(flops=flops,
                                      transcendentals=transcendentals,
                                      bytes_accessed=bytes_accessed),
    )(*args)

    out = out[:, :, :Co].reshape(B, H, W, Co)
    return jnp.transpose(out, (0, 3, 1, 2))                 # NHWC -> NCHW


# --------------------------------- main ---------------------------------------

if __name__ == "__main__":
    key = jax.random.PRNGKey(0)
    kx, kt, ky, kp = jax.random.split(key, 4)

    B, Cin, H, W = 2, 4, 16, 16
    Cout, Tdim, NCls = 8, 32, 10

    x = jax.random.normal(kx, (B, Cin, H, W), jnp.float32)
    time_emb = jax.random.normal(kt, (B, Tdim), jnp.float32)
    y = jax.random.randint(ky, (B,), 0, NCls)

    params = init_params(kp, Cin, Cout, Tdim, NCls)

    fwd = jax.jit(resblk_forward)
    out = fwd(params, x, time_emb, y)
    out = jax.block_until_ready(out)

    assert out.shape == (B, Cout, H, W), out.shape
    assert bool(jnp.all(jnp.isfinite(out)))
    print("KERNEL_OK")
</pallas_src>

<mosaic_0001>
module attributes {stable_mosaic.version = 11 : i64} {
  func.func @_resblk_kernel(%arg0: i32, %arg1: memref<1x18x18x4xf32, #tpu.memory_space<vmem>>, %arg2: memref<1x4xf32, #tpu.memory_space<vmem>>, %arg3: memref<1x4xf32, #tpu.memory_space<vmem>>, %arg4: memref<36x256xbf16, #tpu.memory_space<vmem>>, %arg5: memref<1x256xf32, #tpu.memory_space<vmem>>, %arg6: memref<1152x128xbf16, #tpu.memory_space<vmem>>, %arg7: memref<1x128xf32, #tpu.memory_space<vmem>>, %arg8: memref<1x1x128xf32, #tpu.memory_space<vmem>>, %arg9: memref<3x128x128xbf16, #tpu.memory_space<vmem>>, %arg10: memref<3x1x128xf32, #tpu.memory_space<vmem>>, %arg11: memref<128x128xbf16, #tpu.memory_space<vmem>>, %arg12: memref<1x128xf32, #tpu.memory_space<vmem>>, %arg13: memref<1x256x128xf32, #tpu.memory_space<vmem>>) attributes {dimension_semantics = [#tpu.dimension_semantics<parallel>], iteration_bounds = array<i64: 2>, scalar_prefetch = 0 : i64, scratch_operands = 0 : i64, tpu.core_type = #tpu.core_type<tc>, window_params = [{transform_indices = @transform_0, window_bounds = array<i64: 1, 18, 18, 4>}, {pipeline_mode = #tpu.pipeline_mode<synchronous>, transform_indices = @transform_1, window_bounds = array<i64: 1, 4>}, {pipeline_mode = #tpu.pipeline_mode<synchronous>, transform_indices = @transform_2, window_bounds = array<i64: 1, 4>}, {pipeline_mode = #tpu.pipeline_mode<synchronous>, transform_indices = @transform_3, window_bounds = array<i64: 36, 256>}, {pipeline_mode = #tpu.pipeline_mode<synchronous>, transform_indices = @transform_4, window_bounds = array<i64: 1, 256>}, {pipeline_mode = #tpu.pipeline_mode<synchronous>, transform_indices = @transform_5, window_bounds = array<i64: 1152, 128>}, {pipeline_mode = #tpu.pipeline_mode<synchronous>, transform_indices = @transform_6, window_bounds = array<i64: 1, 128>}, {transform_indices = @transform_7, window_bounds = array<i64: 1, 1, 128>}, {pipeline_mode = #tpu.pipeline_mode<synchronous>, transform_indices = @transform_8, window_bounds = array<i64: 3, 128, 128>}, {pipeline_mode = #tpu.pipeline_mode<synchronous>, transform_indices = @transform_9, window_bounds = array<i64: 3, 1, 128>}, {pipeline_mode = #tpu.pipeline_mode<synchronous>, transform_indices = @transform_10, window_bounds = array<i64: 128, 128>}, {pipeline_mode = #tpu.pipeline_mode<synchronous>, transform_indices = @transform_11, window_bounds = array<i64: 1, 128>}, {transform_indices = @transform_12, window_bounds = array<i64: 1, 256, 128>}]} {
    %c0 = arith.constant 0 : index
    %c0_0 = arith.constant 0 : index
    %c0_1 = arith.constant 0 : index
    %c0_2 = arith.constant 0 : index
    %0 = vector.load %arg1[%c0, %c0_0, %c0_1, %c0_2] : memref<1x18x18x4xf32, #tpu.memory_space<vmem>>, vector<1x18x18x4xf32>
    %1 = vector.shape_cast %0 : vector<1x18x18x4xf32> to vector<18x18x4xf32>
    %c0_3 = arith.constant 0 : index
    %c0_4 = arith.constant 0 : index
    %2 = vector.load %arg2[%c0_3, %c0_4] : memref<1x4xf32, #tpu.memory_space<vmem>>, vector<1x4xf32>
    %3 = vector.shape_cast %2 : vector<1x4xf32> to vector<1x1x4xf32>
    %4 = vector.broadcast %3 : vector<1x1x4xf32> to vector<18x18x4xf32>
    %5 = arith.mulf %1, %4 : vector<18x18x4xf32>
    %c0_5 = arith.constant 0 : index
    %c0_6 = arith.constant 0 : index
    %6 = vector.load %arg3[%c0_5, %c0_6] : memref<1x4xf32, #tpu.memory_space<vmem>>, vector<1x4xf32>
    %7 = vector.shape_cast %6 : vector<1x4xf32> to vector<1x1x4xf32>
    %8 = vector.broadcast %7 : vector<1x1x4xf32> to vector<18x18x4xf32>
    %9 = arith.addf %5, %8 : vector<18x18x4xf32>
    %10 = vector.extract_strided_slice %9 {offsets = [0, 0, 0], sizes = [16, 16, 4], strides = [1, 1, 1]} : vector<18x18x4xf32> to vector<16x16x4xf32>
    %11 = vector.shape_cast %10 : vector<16x16x4xf32> to vector<256x4xf32>
    %12 = vector.extract_strided_slice %9 {offsets = [0, 1, 0], sizes = [16, 16, 4], strides = [1, 1, 1]} : vector<18x18x4xf32> to vector<16x16x4xf32>
    %13 = vector.shape_cast %12 : vector<16x16x4xf32> to vector<256x4xf32>
    %14 = vector.extract_strided_slice %9 {offsets = [0, 2, 0], sizes = [16, 16, 4], strides = [1, 1, 1]} : vector<18x18x4xf32> to vector<16x16x4xf32>
    %15 = vector.shape_cast %14 : vector<16x16x4xf32> to vector<256x4xf32>
    %16 = vector.extract_strided_slice %9 {offsets = [1, 0, 0], sizes = [16, 16, 4], strides = [1, 1, 1]} : vector<18x18x4xf32> to vector<16x16x4xf32>
    %17 = vector.shape_cast %16 : vector<16x16x4xf32> to vector<256x4xf32>
    %18 = vector.extract_strided_slice %9 {offsets = [1, 1, 0], sizes = [16, 16, 4], strides = [1, 1, 1]} : vector<18x18x4xf32> to vector<16x16x4xf32>
    %19 = vector.shape_cast %18 : vector<16x16x4xf32> to vector<256x4xf32>
    %20 = vector.extract_strided_slice %9 {offsets = [1, 2, 0], sizes = [16, 16, 4], strides = [1, 1, 1]} : vector<18x18x4xf32> to vector<16x16x4xf32>
    %21 = vector.shape_cast %20 : vector<16x16x4xf32> to vector<256x4xf32>
    %22 = vector.extract_strided_slice %9 {offsets = [2, 0, 0], sizes = [16, 16, 4], strides = [1, 1, 1]} : vector<18x18x4xf32> to vector<16x16x4xf32>
    %23 = vector.shape_cast %22 : vector<16x16x4xf32> to vector<256x4xf32>
    %24 = vector.extract_strided_slice %9 {offsets = [2, 1, 0], sizes = [16, 16, 4], strides = [1, 1, 1]} : vector<18x18x4xf32> to vector<16x16x4xf32>
    %25 = vector.shape_cast %24 : vector<16x16x4xf32> to vector<256x4xf32>
    %26 = vector.extract_strided_slice %9 {offsets = [2, 2, 0], sizes = [16, 16, 4], strides = [1, 1, 1]} : vector<18x18x4xf32> to vector<16x16x4xf32>
    %27 = vector.shape_cast %26 : vector<16x16x4xf32> to vector<256x4xf32>
    %28 = tpu.concatenate %11, %13, %15, %17, %19, %21, %23, %25, %27 in 1 : vector<256x4xf32>, vector<256x4xf32>, vector<256x4xf32>, vector<256x4xf32>, vector<256x4xf32>, vector<256x4xf32>, vector<256x4xf32>, vector<256x4xf32>, vector<256x4xf32> -> vector<256x36xf32>
    %29 = arith.truncf %28 : vector<256x36xf32> to vector<256x36xbf16>
    %c0_7 = arith.constant 0 : index
    %c0_8 = arith.constant 0 : index
    %30 = vector.load %arg4[%c0_7, %c0_8] : memref<36x256xbf16, #tpu.memory_space<vmem>>, vector<36x256xbf16>
    %cst = arith.constant dense<0.000000e+00> : vector<256x256xf32>
    %31 = tpu.matmul %29, %30, %cst {dimension_numbers = #tpu.dot_dimension_numbers<[1], [0], [0], [1], [0, 0, 1, 1], [], []>} : vector<256x36xbf16>, vector<36x256xbf16>, vector<256x256xf32> -> vector<256x256xf32>
    %c0_9 = arith.constant 0 : index
    %c0_10 = arith.constant 0 : index
    %32 = vector.load %arg5[%c0_9, %c0_10] : memref<1x256xf32, #tpu.memory_space<vmem>>, vector<1x256xf32>
    %33 = vector.broadcast %32 : vector<1x256xf32> to vector<256x256xf32>
    %34 = arith.addf %31, %33 : vector<256x256xf32>
    %35 = vector.extract_strided_slice %34 {offsets = [0, 0], sizes = [256, 128], strides = [1, 1]} : vector<256x256xf32> to vector<256x128xf32>
    %cst_11 = arith.constant dense<0.000000e+00> : vector<128xf32>
    %36 = vector.multi_reduction <add>, %35, %cst_11 [0] : vector<256x128xf32> to vector<128xf32>
    %37 = vector.shape_cast %36 : vector<128xf32> to vector<1x128xf32>
    %cst_12 = arith.constant 2.560000e+02 : f32
    %38 = vector.broadcast %cst_12 : f32 to vector<1x128xf32>
    %39 = arith.divf %37, %38 : vector<1x128xf32>
    %40 = vector.broadcast %39 : vector<1x128xf32> to vector<256x128xf32>
    %41 = arith.subf %35, %40 : vector<256x128xf32>
    %42 = arith.mulf %41, %41 : vector<256x128xf32>
    %cst_13 = arith.constant dense<0.000000e+00> : vector<128xf32>
    %43 = vector.multi_reduction <add>, %42, %cst_13 [0] : vector<256x128xf32> to vector<128xf32>
    %44 = vector.shape_cast %43 : vector<128xf32> to vector<1x128xf32>
    %cst_14 = arith.constant 2.560000e+02 : f32
    %45 = vector.broadcast %cst_14 : f32 to vector<1x128xf32>
    %46 = arith.divf %44, %45 : vector<1x128xf32>
    %47 = vector.broadcast %39 : vector<1x128xf32> to vector<256x128xf32>
    %48 = arith.subf %35, %47 : vector<256x128xf32>
    %cst_15 = arith.constant 9.99999974E-6 : f32
    %49 = vector.broadcast %cst_15 : f32 to vector<1x128xf32>
    %50 = arith.addf %46, %49 : vector<1x128xf32>
    %51 = math.rsqrt %50 : vector<1x128xf32>
    %52 = vector.broadcast %51 : vector<1x128xf32> to vector<256x128xf32>
    %53 = arith.mulf %48, %52 : vector<256x128xf32>
    %cst_16 = arith.constant 0.000000e+00 : f32
    %54 = vector.broadcast %cst_16 : f32 to vector<256x128xf32>
    %55 = arith.maximumf %53, %54 : vector<256x128xf32>
    %56 = vector.extract_strided_slice %34 {offsets = [0, 128], sizes = [256, 128], strides = [1, 1]} : vector<256x256xf32> to vector<256x128xf32>
    %cst_17 = arith.constant dense<0.000000e+00> : vector<128xf32>
    %57 = vector.multi_reduction <add>, %56, %cst_17 [0] : vector<256x128xf32> to vector<128xf32>
    %58 = vector.shape_cast %57 : vector<128xf32> to vector<1x128xf32>
    %cst_18 = arith.constant 2.560000e+02 : f32
    %59 = vector.broadcast %cst_18 : f32 to vector<1x128xf32>
    %60 = arith.divf %58, %59 : vector<1x128xf32>
    %61 = vector.broadcast %60 : vector<1x128xf32> to vector<256x128xf32>
    %62 = arith.subf %56, %61 : vector<256x128xf32>
    %63 = arith.mulf %62, %62 : vector<256x128xf32>
    %cst_19 = arith.constant dense<0.000000e+00> : vector<128xf32>
    %64 = vector.multi_reduction <add>, %63, %cst_19 [0] : vector<256x128xf32> to vector<128xf32>
    %65 = vector.shape_cast %64 : vector<128xf32> to vector<1x128xf32>
    %cst_20 = arith.constant 2.560000e+02 : f32
    %66 = vector.broadcast %cst_20 : f32 to vector<1x128xf32>
    %67 = arith.divf %65, %66 : vector<1x128xf32>
    %68 = vector.broadcast %60 : vector<1x128xf32> to vector<256x128xf32>
    %69 = arith.subf %56, %68 : vector<256x128xf32>
    %cst_21 = arith.constant 9.99999974E-6 : f32
    %70 = vector.broadcast %cst_21 : f32 to vector<1x128xf32>
    %71 = arith.addf %67, %70 : vector<1x128xf32>
    %72 = math.rsqrt %71 : vector<1x128xf32>
    %73 = vector.broadcast %72 : vector<1x128xf32> to vector<256x128xf32>
    %74 = arith.mulf %69, %73 : vector<256x128xf32>
    %75 = vector.shape_cast %55 : vector<256x128xf32> to vector<16x16x128xf32>
    %76 = vector.extract_strided_slice %75 {offsets = [0, 1, 0], sizes = [16, 1, 128], strides = [1, 1, 1]} : vector<16x16x128xf32> to vector<16x1x128xf32>
    %77 = vector.extract_strided_slice %75 {offsets = [0, 14, 0], sizes = [16, 1, 128], strides = [1, 1, 1]} : vector<16x16x128xf32> to vector<16x1x128xf32>
    %78 = tpu.concatenate %76, %75, %77 in 1 : vector<16x1x128xf32>, vector<16x16x128xf32>, vector<16x1x128xf32> -> vector<16x18x128xf32>
    %79 = vector.extract_strided_slice %78 {offsets = [1, 0, 0], sizes = [1, 18, 128], strides = [1, 1, 1]} : vector<16x18x128xf32> to vector<1x18x128xf32>
    %80 = vector.extract_strided_slice %78 {offsets = [14, 0, 0], sizes = [1, 18, 128], strides = [1, 1, 1]} : vector<16x18x128xf32> to vector<1x18x128xf32>
    %81 = tpu.concatenate %79, %78, %80 in 0 : vector<1x18x128xf32>, vector<16x18x128xf32>, vector<1x18x128xf32> -> vector<18x18x128xf32>
    %82 = vector.extract_strided_slice %81 {offsets = [0, 0, 0], sizes = [16, 16, 128], strides = [1, 1, 1]} : vector<18x18x128xf32> to vector<16x16x128xf32>
    %83 = vector.shape_cast %82 : vector<16x16x128xf32> to vector<256x128xf32>
    %84 = vector.extract_strided_slice %81 {offsets = [0, 1, 0], sizes = [16, 16, 128], strides = [1, 1, 1]} : vector<18x18x128xf32> to vector<16x16x128xf32>
    %85 = vector.shape_cast %84 : vector<16x16x128xf32> to vector<256x128xf32>
    %86 = vector.extract_strided_slice %81 {offsets = [0, 2, 0], sizes = [16, 16, 128], strides = [1, 1, 1]} : vector<18x18x128xf32> to vector<16x16x128xf32>
    %87 = vector.shape_cast %86 : vector<16x16x128xf32> to vector<256x128xf32>
    %88 = vector.extract_strided_slice %81 {offsets = [1, 0, 0], sizes = [16, 16, 128], strides = [1, 1, 1]} : vector<18x18x128xf32> to vector<16x16x128xf32>
    %89 = vector.shape_cast %88 : vector<16x16x128xf32> to vector<256x128xf32>
    %90 = vector.extract_strided_slice %81 {offsets = [1, 1, 0], sizes = [16, 16, 128], strides = [1, 1, 1]} : vector<18x18x128xf32> to vector<16x16x128xf32>
    %91 = vector.shape_cast %90 : vector<16x16x128xf32> to vector<256x128xf32>
    %92 = vector.extract_strided_slice %81 {offsets = [1, 2, 0], sizes = [16, 16, 128], strides = [1, 1, 1]} : vector<18x18x128xf32> to vector<16x16x128xf32>
    %93 = vector.shape_cast %92 : vector<16x16x128xf32> to vector<256x128xf32>
    %94 = vector.extract_strided_slice %81 {offsets = [2, 0, 0], sizes = [16, 16, 128], strides = [1, 1, 1]} : vector<18x18x128xf32> to vector<16x16x128xf32>
    %95 = vector.shape_cast %94 : vector<16x16x128xf32> to vector<256x128xf32>
    %96 = vector.extract_strided_slice %81 {offsets = [2, 1, 0], sizes = [16, 16, 128], strides = [1, 1, 1]} : vector<18x18x128xf32> to vector<16x16x128xf32>
    %97 = vector.shape_cast %96 : vector<16x16x128xf32> to vector<256x128xf32>
    %98 = vector.extract_strided_slice %81 {offsets = [2, 2, 0], sizes = [16, 16, 128], strides = [1, 1, 1]} : vector<18x18x128xf32> to vector<16x16x128xf32>
    %99 = vector.shape_cast %98 : vector<16x16x128xf32> to vector<256x128xf32>
    %100 = tpu.concatenate %83, %85, %87, %89, %91, %93, %95, %97, %99 in 1 : vector<256x128xf32>, vector<256x128xf32>, vector<256x128xf32>, vector<256x128xf32>, vector<256x128xf32>, vector<256x128xf32>, vector<256x128xf32>, vector<256x128xf32>, vector<256x128xf32> -> vector<256x1152xf32>
    %101 = arith.truncf %100 : vector<256x1152xf32> to vector<256x1152xbf16>
    %c0_22 = arith.constant 0 : index
    %c0_23 = arith.constant 0 : index
    %102 = vector.load %arg6[%c0_22, %c0_23] : memref<1152x128xbf16, #tpu.memory_space<vmem>>, vector<1152x128xbf16>
    %cst_24 = arith.constant dense<0.000000e+00> : vector<256x128xf32>
    %103 = tpu.matmul %101, %102, %cst_24 {dimension_numbers = #tpu.dot_dimension_numbers<[1], [0], [0], [1], [0, 0, 1, 1], [], []>} : vector<256x1152xbf16>, vector<1152x128xbf16>, vector<256x128xf32> -> vector<256x128xf32>
    %c0_25 = arith.constant 0 : index
    %c0_26 = arith.constant 0 : index
    %104 = vector.load %arg7[%c0_25, %c0_26] : memref<1x128xf32, #tpu.memory_space<vmem>>, vector<1x128xf32>
    %105 = vector.broadcast %104 : vector<1x128xf32> to vector<256x128xf32>
    %106 = arith.addf %103, %105 : vector<256x128xf32>
    %cst_27 = arith.constant dense<0.000000e+00> : vector<128xf32>
    %107 = vector.multi_reduction <add>, %106, %cst_27 [0] : vector<256x128xf32> to vector<128xf32>
    %108 = vector.shape_cast %107 : vector<128xf32> to vector<1x128xf32>
    %cst_28 = arith.constant 2.560000e+02 : f32
    %109 = vector.broadcast %cst_28 : f32 to vector<1x128xf32>
    %110 = arith.divf %108, %109 : vector<1x128xf32>
    %111 = vector.broadcast %110 : vector<1x128xf32> to vector<256x128xf32>
    %112 = arith.subf %106, %111 : vector<256x128xf32>
    %113 = arith.mulf %112, %112 : vector<256x128xf32>
    %cst_29 = arith.constant dense<0.000000e+00> : vector<128xf32>
    %114 = vector.multi_reduction <add>, %113, %cst_29 [0] : vector<256x128xf32> to vector<128xf32>
    %115 = vector.shape_cast %114 : vector<128xf32> to vector<1x128xf32>
    %cst_30 = arith.constant 2.560000e+02 : f32
    %116 = vector.broadcast %cst_30 : f32 to vector<1x128xf32>
    %117 = arith.divf %115, %116 : vector<1x128xf32>
    %118 = vector.broadcast %110 : vector<1x128xf32> to vector<256x128xf32>
    %119 = arith.subf %106, %118 : vector<256x128xf32>
    %cst_31 = arith.constant 9.99999974E-6 : f32
    %120 = vector.broadcast %cst_31 : f32 to vector<1x128xf32>
    %121 = arith.addf %117, %120 : vector<1x128xf32>
    %122 = math.rsqrt %121 : vector<1x128xf32>
    %123 = vector.broadcast %122 : vector<1x128xf32> to vector<256x128xf32>
    %124 = arith.mulf %119, %123 : vector<256x128xf32>
    %cst_32 = arith.constant 0.000000e+00 : f32
    %125 = vector.broadcast %cst_32 : f32 to vector<256x128xf32>
    %126 = arith.maximumf %124, %125 : vector<256x128xf32>
    %c0_33 = arith.constant 0 : index
    %c0_34 = arith.constant 0 : index
    %c0_35 = arith.constant 0 : index
    %127 = vector.load %arg8[%c0_33, %c0_34, %c0_35] : memref<1x1x128xf32, #tpu.memory_space<vmem>>, vector<1x1x128xf32>
    %128 = vector.shape_cast %127 : vector<1x1x128xf32> to vector<1x128xf32>
    %129 = vector.broadcast %128 : vector<1x128xf32> to vector<256x128xf32>
    %130 = arith.addf %126, %129 : vector<256x128xf32>
    %cst_36 = arith.constant dense<0.000000e+00> : vector<128xf32>
    %131 = vector.multi_reduction <add>, %130, %cst_36 [0] : vector<256x128xf32> to vector<128xf32>
    %132 = vector.shape_cast %131 : vector<128xf32> to vector<1x128xf32>
    %cst_37 = arith.constant 2.560000e+02 : f32
    %133 = vector.broadcast %cst_37 : f32 to vector<1x128xf32>
    %134 = arith.divf %132, %133 : vector<1x128xf32>
    %135 = vector.broadcast %134 : vector<1x128xf32> to vector<256x128xf32>
    %136 = arith.subf %130, %135 : vector<256x128xf32>
    %137 = arith.mulf %136, %136 : vector<256x128xf32>
    %cst_38 = arith.constant dense<0.000000e+00> : vector<128xf32>
    %138 = vector.multi_reduction <add>, %137, %cst_38 [0] : vector<256x128xf32> to vector<128xf32>
    %139 = vector.shape_cast %138 : vector<128xf32> to vector<1x128xf32>
    %cst_39 = arith.constant 2.560000e+02 : f32
    %140 = vector.broadcast %cst_39 : f32 to vector<1x128xf32>
    %141 = arith.divf %139, %140 : vector<1x128xf32>
    %142 = vector.broadcast %134 : vector<1x128xf32> to vector<256x128xf32>
    %143 = arith.subf %130, %142 : vector<256x128xf32>
    %cst_40 = arith.constant 9.99999974E-6 : f32
    %144 = vector.broadcast %cst_40 : f32 to vector<1x128xf32>
    %145 = arith.addf %141, %144 : vector<1x128xf32>
    %146 = math.rsqrt %145 : vector<1x128xf32>
    %147 = vector.broadcast %146 : vector<1x128xf32> to vector<256x128xf32>
    %148 = arith.mulf %143, %147 : vector<256x128xf32>
    %149 = arith.truncf %148 : vector<256x128xf32> to vector<256x128xbf16>
    %c0_41 = arith.constant 0 : index
    %c0_42 = arith.constant 0 : index
    %c0_43 = arith.constant 0 : index
    %150 = vector.load %arg9[%c0_41, %c0_42, %c0_43] : memref<3x128x128xbf16, #tpu.memory_space<vmem>>, vector<1x128x128xbf16>
    %151 = vector.shape_cast %150 : vector<1x128x128xbf16> to vector<128x128xbf16>
    %cst_44 = arith.constant dense<0.000000e+00> : vector<256x128xf32>
    %152 = tpu.matmul %149, %151, %cst_44 {dimension_numbers = #tpu.dot_dimension_numbers<[1], [0], [0], [1], [0, 0, 1, 1], [], []>} : vector<256x128xbf16>, vector<128x128xbf16>, vector<256x128xf32> -> vector<256x128xf32>
    %c0_45 = arith.constant 0 : index
    %c0_46 = arith.constant 0 : index
    %c0_47 = arith.constant 0 : index
    %153 = vector.load %arg10[%c0_45, %c0_46, %c0_47] : memref<3x1x128xf32, #tpu.memory_space<vmem>>, vector<1x1x128xf32>
    %154 = vector.shape_cast %153 : vector<1x1x128xf32> to vector<1x128xf32>
    %155 = vector.broadcast %154 : vector<1x128xf32> to vector<256x128xf32>
    %156 = arith.addf %152, %155 : vector<256x128xf32>
    %c1 = arith.constant 1 : index
    %c0_48 = arith.constant 0 : index
    %c0_49 = arith.constant 0 : index
    %157 = vector.load %arg9[%c1, %c0_48, %c0_49] : memref<3x128x128xbf16, #tpu.memory_space<vmem>>, vector<1x128x128xbf16>
    %158 = vector.shape_cast %157 : vector<1x128x128xbf16> to vector<128x128xbf16>
    %cst_50 = arith.constant dense<0.000000e+00> : vector<256x128xf32>
    %159 = tpu.matmul %149, %158, %cst_50 {dimension_numbers = #tpu.dot_dimension_numbers<[1], [0], [0], [1], [0, 0, 1, 1], [], []>} : vector<256x128xbf16>, vector<128x128xbf16>, vector<256x128xf32> -> vector<256x128xf32>
    %c1_51 = arith.constant 1 : index
    %c0_52 = arith.constant 0 : index
    %c0_53 = arith.constant 0 : index
    %160 = vector.load %arg10[%c1_51, %c0_52, %c0_53] : memref<3x1x128xf32, #tpu.memory_space<vmem>>, vector<1x1x128xf32>
    %161 = vector.shape_cast %160 : vector<1x1x128xf32> to vector<1x128xf32>
    %162 = vector.broadcast %161 : vector<1x128xf32> to vector<256x128xf32>
    %163 = arith.addf %159, %162 : vector<256x128xf32>
    %c2 = arith.constant 2 : index
    %c0_54 = arith.constant 0 : index
    %c0_55 = arith.constant 0 : index
    %164 = vector.load %arg9[%c2, %c0_54, %c0_55] : memref<3x128x128xbf16, #tpu.memory_space<vmem>>, vector<1x128x128xbf16>
    %165 = vector.shape_cast %164 : vector<1x128x128xbf16> to vector<128x128xbf16>
    %cst_56 = arith.constant dense<0.000000e+00> : vector<256x128xf32>
    %166 = tpu.matmul %149, %165, %cst_56 {dimension_numbers = #tpu.dot_dimension_numbers<[1], [0], [0], [1], [0, 0, 1, 1], [], []>} : vector<256x128xbf16>, vector<128x128xbf16>, vector<256x128xf32> -> vector<256x128xf32>
    %c2_57 = arith.constant 2 : index
    %c0_58 = arith.constant 0 : index
    %c0_59 = arith.constant 0 : index
    %167 = vector.load %arg10[%c2_57, %c0_58, %c0_59] : memref<3x1x128xf32, #tpu.memory_space<vmem>>, vector<1x1x128xf32>
    %168 = vector.shape_cast %167 : vector<1x1x128xf32> to vector<1x128xf32>
    %169 = vector.broadcast %168 : vector<1x128xf32> to vector<256x128xf32>
    %170 = arith.addf %166, %169 : vector<256x128xf32>
    %171 = arith.truncf %156 : vector<256x128xf32> to vector<256x128xbf16>
    %172 = arith.truncf %163 : vector<256x128xf32> to vector<256x128xbf16>
    %cst_60 = arith.constant dense<0.000000e+00> : vector<256x256xf32>
    %173 = tpu.matmul %171, %172, %cst_60 {dimension_numbers = #tpu.dot_dimension_numbers<[1], [1], [0], [0], [0, 0, 1, 0], [], []>} : vector<256x128xbf16>, vector<256x128xbf16>, vector<256x256xf32> -> vector<256x256xf32>
    %cst_61 = arith.constant 0.353553385 : f32
    %174 = vector.broadcast %cst_61 : f32 to vector<256x256xf32>
    %175 = arith.mulf %173, %174 : vector<256x256xf32>
    %cst_62 = arith.constant dense<0xFF800000> : vector<256xf32>
    %176 = vector.multi_reduction <maximumf>, %175, %cst_62 [1] : vector<256x256xf32> to vector<256xf32>
    %177 = vector.shape_cast %176 : vector<256xf32> to vector<256x1xf32>
    %178 = vector.broadcast %177 : vector<256x1xf32> to vector<256x256xf32>
    %179 = arith.subf %175, %178 : vector<256x256xf32>
    %180 = math.exp %179 : vector<256x256xf32>
    %cst_63 = arith.constant dense<0.000000e+00> : vector<256xf32>
    %181 = vector.multi_reduction <add>, %180, %cst_63 [1] : vector<256x256xf32> to vector<256xf32>
    %182 = vector.shape_cast %181 : vector<256xf32> to vector<256x1xf32>
    %183 = vector.broadcast %182 : vector<256x1xf32> to vector<256x256xf32>
    %184 = arith.divf %180, %183 : vector<256x256xf32>
    %185 = arith.truncf %184 : vector<256x256xf32> to vector<256x256xbf16>
    %186 = arith.truncf %170 : vector<256x128xf32> to vector<256x128xbf16>
    %cst_64 = arith.constant dense<0.000000e+00> : vector<256x128xf32>
    %187 = tpu.matmul %185, %186, %cst_64 {dimension_numbers = #tpu.dot_dimension_numbers<[1], [0], [0], [1], [0, 0, 1, 1], [], []>} : vector<256x256xbf16>, vector<256x128xbf16>, vector<256x128xf32> -> vector<256x128xf32>
    %188 = arith.truncf %187 : vector<256x128xf32> to vector<256x128xbf16>
    %c0_65 = arith.constant 0 : index
    %c0_66 = arith.constant 0 : index
    %189 = vector.load %arg11[%c0_65, %c0_66] : memref<128x128xbf16, #tpu.memory_space<vmem>>, vector<128x128xbf16>
    %cst_67 = arith.constant dense<0.000000e+00> : vector<256x128xf32>
    %190 = tpu.matmul %188, %189, %cst_67 {dimension_numbers = #tpu.dot_dimension_numbers<[1], [0], [0], [1], [0, 0, 1, 1], [], []>} : vector<256x128xbf16>, vector<128x128xbf16>, vector<256x128xf32> -> vector<256x128xf32>
    %c0_68 = arith.constant 0 : index
    %c0_69 = arith.constant 0 : index
    %191 = vector.load %arg12[%c0_68, %c0_69] : memref<1x128xf32, #tpu.memory_space<vmem>>, vector<1x128xf32>
    %192 = vector.broadcast %191 : vector<1x128xf32> to vector<256x128xf32>
    %193 = arith.addf %190, %192 : vector<256x128xf32>
    %194 = arith.addf %193, %130 : vector<256x128xf32>
    %195 = arith.addf %194, %74 : vector<256x128xf32>
    %c0_70 = arith.constant 0 : index
    %c0_71 = arith.constant 0 : index
    %c0_72 = arith.constant 0 : index
    %196 = vector.load %arg13[%c0_70, %c0_71, %c0_72] : memref<1x256x128xf32, #tpu.memory_space<vmem>>, vector<1x256x128xf32>
    %197 = vector.shape_cast %196 : vector<1x256x128xf32> to vector<256x128xf32>
    %198 = vector.shape_cast %195 : vector<256x128xf32> to vector<1x256x128xf32>
    tpu.vector_store %arg13[%c0_70, %c0_71, %c0_72], %198 {strides = array<i32>} : memref<1x256x128xf32, #tpu.memory_space<vmem>>, vector<1x256x128xf32>,
    return
  }
  func.func @transform_0(%arg0: i32) -> (i32, i32, i32, i32) {
    %c0_i32 = arith.constant 0 : i32
    %c0_i32_0 = arith.constant 0 : i32
    %c0_i32_1 = arith.constant 0 : i32
    %c0_i32_2 = arith.constant 0 : i32
    return %arg0, %c0_i32, %c0_i32_0, %c0_i32_1 : i32, i32, i32, i32
  }
  func.func @transform_1(%arg0: i32) -> (i32, i32) {
    %c0_i32 = arith.constant 0 : i32
    %c0_i32_0 = arith.constant 0 : i32
    %c0_i32_1 = arith.constant 0 : i32
    return %c0_i32, %c0_i32_0 : i32, i32
  }
  func.func @transform_2(%arg0: i32) -> (i32, i32) {
    %c0_i32 = arith.constant 0 : i32
    %c0_i32_0 = arith.constant 0 : i32
    %c0_i32_1 = arith.constant 0 : i32
    return %c0_i32, %c0_i32_0 : i32, i32
  }
  func.func @transform_3(%arg0: i32) -> (i32, i32) {
    %c0_i32 = arith.constant 0 : i32
    %c0_i32_0 = arith.constant 0 : i32
    %c0_i32_1 = arith.constant 0 : i32
    return %c0_i32, %c0_i32_0 : i32, i32
  }
  func.func @transform_4(%arg0: i32) -> (i32, i32) {
    %c0_i32 = arith.constant 0 : i32
    %c0_i32_0 = arith.constant 0 : i32
    %c0_i32_1 = arith.constant 0 : i32
    return %c0_i32, %c0_i32_0 : i32, i32
  }
  func.func @transform_5(%arg0: i32) -> (i32, i32) {
    %c0_i32 = arith.constant 0 : i32
    %c0_i32_0 = arith.constant 0 : i32
    %c0_i32_1 = arith.constant 0 : i32
    return %c0_i32, %c0_i32_0 : i32, i32
  }
  func.func @transform_6(%arg0: i32) -> (i32, i32) {
    %c0_i32 = arith.constant 0 : i32
    %c0_i32_0 = arith.constant 0 : i32
    %c0_i32_1 = arith.constant 0 : i32
    return %c0_i32, %c0_i32_0 : i32, i32
  }
  func.func @transform_7(%arg0: i32) -> (i32, i32, i32) {
    %c0_i32 = arith.constant 0 : i32
    %c0_i32_0 = arith.constant 0 : i32
    %c0_i32_1 = arith.constant 0 : i32
    return %arg0, %c0_i32, %c0_i32_0 : i32, i32, i32
  }
  func.func @transform_8(%arg0: i32) -> (i32, i32, i32) {
    %c0_i32 = arith.constant 0 : i32
    %c0_i32_0 = arith.constant 0 : i32
    %c0_i32_1 = arith.constant 0 : i32
    %c0_i32_2 = arith.constant 0 : i32
    return %c0_i32, %c0_i32_0, %c0_i32_1 : i32, i32, i32
  }
  func.func @transform_9(%arg0: i32) -> (i32, i32, i32) {
    %c0_i32 = arith.constant 0 : i32
    %c0_i32_0 = arith.constant 0 : i32
    %c0_i32_1 = arith.constant 0 : i32
    %c0_i32_2 = arith.constant 0 : i32
    return %c0_i32, %c0_i32_0, %c0_i32_1 : i32, i32, i32
  }
  func.func @transform_10(%arg0: i32) -> (i32, i32) {
    %c0_i32 = arith.constant 0 : i32
    %c0_i32_0 = arith.constant 0 : i32
    %c0_i32_1 = arith.constant 0 : i32
    return %c0_i32, %c0_i32_0 : i32, i32
  }
  func.func @transform_11(%arg0: i32) -> (i32, i32) {
    %c0_i32 = arith.constant 0 : i32
    %c0_i32_0 = arith.constant 0 : i32
    %c0_i32_1 = arith.constant 0 : i32
    return %c0_i32, %c0_i32_0 : i32, i32
  }
  func.func @transform_12(%arg0: i32) -> (i32, i32, i32) {
    %c0_i32 = arith.constant 0 : i32
    %c0_i32_0 = arith.constant 0 : i32
    %c0_i32_1 = arith.constant 0 : i32
    return %arg0, %c0_i32, %c0_i32_0 : i32, i32, i32
  }
}

</mosaic_0001>

<bundles_post_ra>
// kernel: resblk_forward.1
= control target key start
LH: loop header
LB: loop body
LE: loop exit
PB: predicated region body
PF: predicated region fallthrough
CT: control target
= control target key end

     0   :  { %s9210_s21 = smov 0   ;;  %s14218_s0 = inlined_call_operand.vmem [shape: f32[2,18,18,4], index: 0, kind: input, shape index: {}]   ;;  %s14219_s1 = inlined_call_operand.vmem [shape: f32[1,4], index: 1, kind: input, shape index: {}]   ;;  %s14220_s2 = inlined_call_operand.vmem [shape: f32[1,4], index: 2, kind: input, shape index: {}]   ;;  %s14221_s3 = inlined_call_operand.vmem [shape: bf16[36,256], index: 3, kind: input, shape index: {}]   ;;  %s14222_s4 = inlined_call_operand.vmem [shape: f32[1,256], index: 4, kind: input, shape index: {}]   ;;  %s14223_s5 = inlined_call_operand.vmem [shape: bf16[1152,128], index: 5, kind: input, shape index: {}]   ;;  %s14224_s6 = inlined_call_operand.vmem [shape: f32[1,128], index: 6, kind: input, shape index: {}]   ;;  %s14225_s7 = inlined_call_operand.vmem [shape: f32[2,1,128], index: 7, kind: input, shape index: {}]   ;;  %s14226_s8 = inlined_call_operand.vmem [shape: bf16[3,128,128], index: 8, kind: input, shape index: {}]   ;;  %s14227_s9 = inlined_call_operand.vmem [shape: f32[3,1,128], index: 9, kind: input, shape index: {}]   ;;  %s14228_s10 = inlined_call_operand.vmem [shape: bf16[128,128], index: 10, kind: input, shape index: {}]   ;;  %s14229_s11 = inlined_call_operand.vmem [shape: f32[1,128], index: 11, kind: input, shape index: {}]   ;;  %s14230_s12 = inlined_call_operand.vmem [shape: f32[2,256,128], index: 12, kind: output, shape index: {}]  }
   0x1 LB: > { %s6999_s22 = sadd.s32 4294967295, %s9134_s21   ;;  %p7003_p0 = scmp.ge.s32.totalorder %s9134_s21, 1  ;;  %s9134_s21 = sphi %s9210_s21, %s22_s21  }
   0x2   : > { %p370_p1 = scmp.lt.s32.totalorder %s9134_s21, 3 }
   0x4   : > { %p371_p2 = pnand %p7003_p0, %p370_p1 }
   0x6   : > { %374 = sbr.rel (%p371_p2) target bundleno = 3011 (0xbc3), region = 68 }
   0xb   : > { %p415_p3 = scmp.lt.s32.totalorder %s6999_s22, 1  ;;  %v9223_v0 = vld [vmem:[%s14219_s1] ss:$0 sm:$0xff]  ;;  %vm653_vm0 = vcmask 1046528   ;;  %vm734_vm1 = vcmask 1045504   ;;  %s9136_s13 = smov 12  }
   0xc   : > { %v9229_v1 = vld [vmem:[%s14220_s2] ss:$0 sm:$0xff]  ;;  %s9137_s14 = smov 4   ;;  %s9138_s15 = smov 24   ;;  %vm1980_vm2 = vcmask 1041408   ;;  %vm1609_vm3 = vcmask 31744  }
   0xd   : > { %s14642_s22 = smov (!%p415_p3, %s6999_s22), 1  ;;  %s9139_s16 = smov 8   ;;  %vm1642_vm4 = vcmask 64512   ;;  %vm1675_vm5 = vcmask 97280   ;;  %vm1708_vm6 = vcmask 130048   ;;  %vm1741_vm7 = vcmask 162816  }
   0xe   : > { %s8153_s25 = smul.u32 432, %s14642_s22  ;;  %s9140_s17 = smov 16   ;;  %vm1774_vm8 = vcmask 195584   ;;  %vm1807_vm9 = vcmask 228352   ;;  %vm1840_vm10 = vcmask 261120   ;;  %vm1931_vm11 = vcmask 293888  }
   0xf   : > { %s9141_s18 = smov 20   ;;  %s9142_s19 = smov 32   ;;  %vm2625_vm12 = vcmask 1040384  }
  0x10   : > { %s9234_s30 = scalar_lea.vmem %s14218_s0, %s8153_s25  ;;  %s9143_s20 = smov 28  }
  0x11   : > { %v432_v2 = vld [vmem:[%s9234_s30 + $0x18] sm:$0xff]  ;;  %v433_v3 = vld [vmem:[%s9234_s30 + $0x20] sm:$0xff]  ;;  %v430_v7 = vld [vmem:[%s9234_s30 + $0x8] sm:$0xff]  ;;  %s7178_s28 = sshll.u32 %s14642_s22, 8 }
  0x12   : > { %v429_v4 = vld [vmem:[%s9234_s30] sm:$0xff]  ;;  %v493_v5 = vmul.f32 %v9223_v0, %v432_v2  ;;  %v494_v6 = vmul.f32 %v9223_v0, %v433_v3  ;;  %v431_v8 = vld [vmem:[%s9234_s30 + $0x10] sm:$0x3]  ;;  %v491_v11 = vmul.f32 %v9223_v0, %v430_v7  ;;  %v436_v13 = vld [vmem:[%s9234_s30 + $0x38] sm:$0xff] }
  0x13   : > { %v490_v9 = vmul.f32 %v9223_v0, %v429_v4  ;;  %v435_v10 = vld [vmem:[%s9234_s30 + $0x30] sm:$0xff]  ;;  %v492_v12 = vmul.f32 %v9223_v0, %v431_v8  ;;  %v434_v15 = vld [vmem:[%s9234_s30 + $0x28] sm:$0x3]  ;;  %v497_v19 = vmul.f32 %v9223_v0, %v436_v13  ;;  %v437_v36 = vld [vmem:[%s9234_s30 + $0x40] sm:$0x3] }
  0x14   : > { %v496_v14 = vmul.f32 %v9223_v0, %v435_v10  ;;  %v9251_v16 = vadd.f32 %v9229_v1, %v493_v5  ;;  %v9254_v17 = vadd.f32 %v9229_v1, %v494_v6  ;;  %v9261_v20 = vadd.f32 %v9229_v1, %v491_v11  ;;  %v438_v57 = vld [vmem:[%s9234_s30 + $0x48] sm:$0xff]  ;;  %v439_v58 = vld [vmem:[%s9234_s30 + $0x50] sm:$0xff]  ;;  %v440_v60 = vld [vmem:[%s9234_s30 + $0x58] sm:$0x3] }
  0x15   : > { %v9257_v18 = vadd.f32 %v9229_v1, %v490_v9  ;;  %v553_v21 = vadd.f32 %v9229_v1, %v492_v12  ;;  %v495_v23 = vmul.f32 %v9223_v0, %v434_v15  ;;  %v9272_v26 = vadd.f32 %v9229_v1, %v497_v19 }
  0x16   : > { %v9265_v22 = vadd.f32 %v9229_v1, %v496_v14  ;;  %v8171_v24 = vpack.i.bf16 %v9254_v17, %v9251_v16  ;;  %v655_v28 = vrot.slane %v9261_v20, 1  ;;  %v736_v30 = vrot.slane %v9261_v20, 2 }
  0x17   : > { %v654_v25 = vrot.slane %v9257_v18, 1  ;;  %v735_v27 = vrot.slane %v9257_v18, 2  ;;  %v657_v29 = vrot.slane %v553_v21, 1  ;;  %v738_v31 = vrot.slane %v553_v21, 2  ;;  %v441_v21 = vld [vmem:[%s9234_s30 + $0x60] sm:$0xff] }
  0x18   : > { %8172 = vrot.lane.b32.xlu1 %v8171_v24, %s9136_s13  ;;  %v9280_v32 = vpack.i.bf16 %v9272_v26, %v9265_v22  ;;  %v556_v33 = vadd.f32 %v9229_v1, %v495_v23  ;;  %v659_v34 = vrot.slane %v9251_v16, 1  ;;  %v660_v35 = vrot.slane %v9254_v17, 1  ;;  %v443_v23 = vld [vmem:[%s9234_s30 + $0x70] sm:$0x3] }
  0x19   : > { %v656_v37 = vsel %vm653_vm0, %v654_v25, %v655_v28  ;;  %v658_v38 = vsel %vm653_vm0, %v655_v28, %v657_v29  ;;  %v737_v39 = vsel %vm734_vm1, %v735_v27, %v736_v30  ;;  %v739_v40 = vsel %vm734_vm1, %v736_v30, %v738_v31  ;;  %v442_v29 = vld [vmem:[%s9234_s30 + $0x68] sm:$0xff] }
  0x1a   : > { %v8181_v41 = vpack.i.bf16 %v658_v38, %v656_v37  ;;  %v8186_v42 = vpack.i.bf16 %v739_v40, %v737_v39  ;;  %v661_v43 = vsel %vm653_vm0, %v659_v34, %v660_v35  ;;  %v662_v44 = vrot.slane %v556_v33, 1 }
  0x1b   : > { %v740_v45 = vrot.slane %v9251_v16, 2  ;;  %v741_v46 = vrot.slane %v9254_v17, 2  ;;  %v743_v47 = vrot.slane %v556_v33, 2  ;;  %v498_v48 = vmul.f32 %v9223_v0, %v437_v36 }
  0x1c   : > { %8182 = vrot.lane.b32.xlu0 %v8181_v41, %s9137_s14  ;;  %8177 = vrot.lane.b32.xlu1 %v9280_v32, %s9138_s15  ;;  %v663_v49 = vsel %vm653_vm0, %v660_v35, %v662_v44  ;;  %v745_v50 = vrot.slane %v9265_v22, 2  ;;  %v746_v51 = vrot.slane %v9272_v26, 2  ;;  %v664_v52 = vrot.slane %v9265_v22, 1 }
  0x1d   : > { %v8191_v53 = vpack.i.bf16 %v663_v49, %v661_v43  ;;  %v742_v54 = vsel %vm734_vm1, %v740_v45, %v741_v46  ;;  %v744_v55 = vsel %vm734_vm1, %v741_v46, %v743_v47  ;;  %v559_v56 = vadd.f32 %v9229_v1, %v498_v48  ;;  %v444_v45 = vld [vmem:[%s9234_s30 + $0x78] sm:$0xff]  ;;  %v445_v48 = vld [vmem:[%s9234_s30 + $0x80] sm:$0xff] }
  0x1e   : > { %v665_v59 = vrot.slane %v9272_v26, 1  ;;  %v747_v61 = vsel %vm734_vm1, %v745_v50, %v746_v51  ;;  %v8196_v2 = vpack.i.bf16 %v744_v55, %v742_v54  ;;  %v499_v3 = vmul.f32 %v9223_v0, %v438_v57 }
  0x1f   : > { %v748_v62 = vrot.slane %v559_v56, 2  ;;  %v667_v63 = vrot.slane %v559_v56, 1  ;;  %v500_v4 = vmul.f32 %v9223_v0, %v439_v58  ;;  %v501_v8 = vmul.f32 %v9223_v0, %v440_v60  ;;  %v1893_v60 = vld [vmem:[%s14221_s3 + $0x20] sm:$0x33] }
  0x20   : > { %8187 = vrot.lane.b32.xlu0 %v8186_v42, %s9139_s16  ;;  %8192 = vrot.lane.b32.xlu1 %v8191_v53, %s9140_s17  ;;  %v666_v6 = vsel %vm653_vm0, %v664_v52, %v665_v59  ;;  %v9318_v10 = vadd.f32 %v9229_v1, %v499_v3  ;;  %v502_v33 = vmul.f32 %v9223_v0, %v441_v21 }
  0x21   : > { %v749_v5 = vsel %vm734_vm1, %v746_v51, %v748_v62  ;;  %v668_v7 = vsel %vm653_vm0, %v665_v59, %v667_v63  ;;  %v9323_v12 = vadd.f32 %v9229_v1, %v500_v4  ;;  %v562_v13 = vadd.f32 %v9229_v1, %v501_v8 }
  0x22   : > { %v8206_v9 = vpack.i.bf16 %v749_v5, %v747_v61  ;;  %v8201_v11 = vpack.i.bf16 %v668_v7, %v666_v6  ;;  %v750_v14 = vrot.slane %v9318_v10, 2  ;;  %v669_v25 = vrot.slane %v9318_v10, 1  ;;  %v8813_v6 = vld [vmem:[%s14221_s3 + $0x14] ss:$8 sps:$4 sm:$0xff]  }
  0x23   : > { %v751_v15 = vrot.slane %v9323_v12, 2  ;;  %v753_v19 = vrot.slane %v562_v13, 2  ;;  %v8236_v24 = vpack.i.bf16 %v9323_v12, %v9318_v10  ;;  %v670_v27 = vrot.slane %v9323_v12, 1 }
  0x24   : > { %8197 = vrot.lane.b32.xlu0 %v8196_v2, %s9141_s18  ;;  %8207 = vrot.lane.b32.xlu1 %v8206_v9, %s9142_s19  ;;  %v672_v28 = vrot.slane %v562_v13, 1  ;;  %v503_v35 = vmul.f32 %v9223_v0, %v442_v29  ;;  %v504_v36 = vmul.f32 %v9223_v0, %v443_v23  ;;  %v9350_v39 = vadd.f32 %v9229_v1, %v502_v33  ;;  %v8815_v13 = vld [vmem:[%s14221_s3 + $0x10] ss:$8 sps:$4 sm:$0xff]  }
  0x25   : > { %v752_v30 = vsel %vm734_vm1, %v750_v14, %v751_v15  ;;  %v754_v31 = vsel %vm734_vm1, %v751_v15, %v753_v19  ;;  %v671_v37 = vsel %vm653_vm0, %v669_v25, %v670_v27  ;;  %v505_v55 = vmul.f32 %v9223_v0, %v444_v45  ;;  %v448_v14 = vld [vmem:[%s9234_s30 + $0x98] sm:$0xff]  ;;  %v449_v15 = vld [vmem:[%s9234_s30 + $0xa0] sm:$0x3]  ;;  %v8816_v19 = vld [vmem:[%s14221_s3 + $0x4] ss:$8 sps:$4 sm:$0xff]  }
  0x26   : > { %v8246_v34 = vpack.i.bf16 %v754_v31, %v752_v30  ;;  %v673_v38 = vsel %vm653_vm0, %v670_v27, %v672_v28  ;;  %v9355_v40 = vadd.f32 %v9229_v1, %v503_v35  ;;  %v565_v41 = vadd.f32 %v9229_v1, %v504_v36  ;;  %v8818_v31 = vld [vmem:[%s14221_s3] ss:$8 sps:$4 sm:$0xff]  }
  0x27   : > { %v755_v42 = vrot.slane %v9350_v39, 2  ;;  %v674_v47 = vrot.slane %v9350_v39, 1  ;;  %v506_v58 = vmul.f32 %v9223_v0, %v445_v48  ;;  %v9391_v62 = vadd.f32 %v9229_v1, %v505_v55 }
  0x28   : > { %8202 = vrot.lane.b32.xlu0 %v8201_v11, %s9143_s20  ;;  %8217 = vrot.lane.b32.xlu1 %v8196_v2, %s9139_s16  ;;  %v756_v43 = vrot.slane %v9355_v40, 2  ;;  %v758_v44 = vrot.slane %v565_v41, 2  ;;  %v8276_v46 = vpack.i.bf16 %v9355_v40, %v9350_v39  ;;  %v675_v51 = vrot.slane %v9355_v40, 1 }
  0x29   : > { %v677_v52 = vrot.slane %v565_v41, 1  ;;  %v9394_v63 = vadd.f32 %v9229_v1, %v506_v58  ;;  %v7014_v3 = vcombine.high %v1893_v60, %v1893_v60  ;;  %v7013_v4 = vcombine.low %v1893_v60, %v1893_v60 }
  0x2a   : > { %v757_v49 = vsel %vm734_vm1, %v755_v42, %v756_v43  ;;  %v759_v50 = vsel %vm734_vm1, %v756_v43, %v758_v44  ;;  %v676_v56 = vsel %vm653_vm0, %v674_v47, %v675_v51  ;;  %v760_v5 = vrot.slane %v9391_v62, 2  ;;  %v450_v47 = vld [vmem:[%s9234_s30 + $0xa8] sm:$0xff] }
  0x2b   : > { %v9375_v54 = vpack.i.bf16 %v759_v50, %v757_v49  ;;  %v678_v57 = vsel %vm653_vm0, %v675_v51, %v677_v52  ;;  %v761_v7 = vrot.slane %v9394_v63, 2  ;;  %7015 = vmatprep.subr.msk.bf16.mxu0 %vm1980_vm2, %v7014_v3  ;;  %8147 = vmatprep.subr.msk.bf16.mxu1 %vm1980_vm2, %v7014_v3  ;;  %v8316_v21 = vpack.i.bf16 %v9394_v63, %v9391_v62  ;;  %v451_v50 = vld [vmem:[%s9234_s30 + $0xb0] sm:$0xff]  ;;  %v452_v52 = vld [vmem:[%s9234_s30 + $0xb8] sm:$0x3] }
  0x2c   : > { %8212 = vrot.lane.b32.xlu0 %v8191_v53, %s9137_s14  ;;  %8227 = vrot.lane.b32.xlu1 %v8201_v11, %s9140_s17  ;;  %v446_v53 = vld [vmem:[%s9234_s30 + $0x88] sm:$0x3]  ;;  %v9388_v61 = vpack.i.bf16 %v678_v57, %v676_v56  ;;  %v679_v23 = vrot.slane %v9391_v62, 1  ;;  %v680_v27 = vrot.slane %v9394_v63, 1  ;;  %v9144_v29 = vmov 0  }
  0x2d   : > { %v507_v59 = vmul.f32 %v9223_v0, %v446_v53  ;;  %2019 = vmatprep.mubr.bf16.mxu0 %v9144_v29  ;;  %v510_v35 = vmul.f32 %v9223_v0, %v449_v15  ;;  %2139 = vmatprep.mubr.bf16.mxu1 %v9144_v29  ;;  %v511_v57 = vmul.f32 %v9223_v0, %v450_v47  ;;  %v456_v47 = vld [vmem:[%s9234_s30 + $0xd8] sm:$0xff] }
  0x2e   : > { %v681_v36 = vsel %vm653_vm0, %v679_v23, %v680_v27  ;;  %v513_v60 = vmul.f32 %v9223_v0, %v452_v52 }
  0x2f   : > { %v568_v2 = vadd.f32 %v9229_v1, %v507_v59  ;;  %v571_v42 = vadd.f32 %v9229_v1, %v510_v35  ;;  %v512_v59 = vmul.f32 %v9223_v0, %v451_v50 }
  0x30   : > { %8222 = vrot.lane.b32.xlu0 %v9280_v32, %s9136_s13  ;;  %8237 = vrot.lane.b32.xlu1 %v8236_v24, %s9138_s15  ;;  %v8241_v32 = vpack.i.bf16 %v673_v38, %v671_v37 }
  0x31   : > { %v763_v8 = vrot.slane %v568_v2, 2  ;;  %v682_v28 = vrot.slane %v568_v2, 1  ;;  %v768_v45 = vrot.slane %v571_v42, 2  ;;  %v687_v49 = vrot.slane %v571_v42, 1 }
  0x32   : > { %v9472_v2 = vadd.f32 %v9229_v1, %v511_v57  ;;  %v9475_v3 = vadd.f32 %v9229_v1, %v512_v59 }
  0x33   : > { %v764_v25 = vsel %vm734_vm1, %v761_v7, %v763_v8  ;;  %v683_v37 = vsel %vm653_vm0, %v680_v27, %v682_v28 }
  0x34   : > { %8232 = vrot.lane.b32.xlu0 %v8206_v9, %s9141_s18  ;;  %8247 = vrot.lane.b32.xlu1 %v8246_v34, %s9142_s19  ;;  %v689_v8 = vrot.slane %v9472_v2, 1  ;;  %v690_v15 = vrot.slane %v9475_v3, 1 }
  0x38   : > { %8242 = vrot.lane.b32.xlu0 %v8241_v32, %s9143_s20  ;;  %8257 = vrot.lane.b32.xlu1 %v8206_v9, %s9139_s16  ;;  %v447_v9 = vld [vmem:[%s9234_s30 + $0x90] sm:$0xff] }
  0x39   : > { %v508_v30 = vmul.f32 %v9223_v0, %v447_v9  ;;  %v453_v9 = vld [vmem:[%s9234_s30 + $0xc0] sm:$0xff] }
  0x3b   : > { %v9436_v38 = vadd.f32 %v9229_v1, %v508_v30 }
  0x3c   : > { %8252 = vrot.lane.b32.xlu0 %v8201_v11, %s9137_s14  ;;  %8267 = vrot.lane.b32.xlu1 %v8241_v32, %s9140_s17  ;;  %v1982_v11 = vsel %vm1980_vm2, %v7013_v4, 0  ;;  %v574_v4 = vadd.f32 %v9229_v1, %v513_v60 }
  0x3d   : > { %1998 = vmatpush1.bf16.msra.mxu0 %v1982_v11  ;;  %8150 = vmatpush1.bf16.msra.mxu1 %v1982_v11  ;;  %v765_v43 = vrot.slane %v9436_v38, 2  ;;  %v454_v11 = vld [vmem:[%s9234_s30 + $0xc8] sm:$0xff] }
  0x3e   : > { %1999 = vmatprep.subr.bf16.mxu0 %v8813_v6  ;;  %8148 = vmatprep.subr.bf16.mxu1 %v8813_v6  ;;  %v771_v6 = vrot.slane %v9475_v3, 2 }
  0x40   : > { %8262 = vrot.lane.b32.xlu0 %v8236_v24, %s9136_s13  ;;  %8277 = vrot.lane.b32.xlu1 %v8276_v46, %s9138_s15  ;;  %v762_v24 = vsel %vm734_vm1, %v760_v5, %v761_v7  ;;  %v770_v5 = vrot.slane %v9472_v2, 2  ;;  %v773_v7 = vrot.slane %v574_v4, 2 }
  0x41   : > { %2000 = vmatpush1.bf16.msra.mxu0 %v8815_v13  ;;  %8151 = vmatpush1.bf16.msra.mxu1 %v8815_v13  ;;  %v8326_v33 = vpack.i.bf16 %v764_v25, %v762_v24  ;;  %v455_v13 = vld [vmem:[%s9234_s30 + $0xd0] sm:$0x3]  ;;  %v515_v25 = vmul.f32 %v9223_v0, %v454_v11 }
  0x42   : > { %2001 = vmatprep.subr.bf16.mxu0 %v8816_v19  ;;  %8149 = vmatprep.subr.bf16.mxu1 %v8816_v19  ;;  %v692_v19 = vrot.slane %v574_v4, 1  ;;  %v772_v23 = vsel %vm734_vm1, %v770_v5, %v771_v6  ;;  %v774_v24 = vsel %vm734_vm1, %v771_v6, %v773_v7  ;;  %v516_v30 = vmul.f32 %v9223_v0, %v455_v13  ;;  %v459_v4 = vld [vmem:[%s9234_s30 + $0xf0] sm:$0xff] }
  0x43   : > { %v8406_v27 = vpack.i.bf16 %v774_v24, %v772_v23  ;;  %v9506_v35 = vadd.f32 %v9229_v1, %v515_v25 }
  0x44   : > { %8272 = vrot.lane.b32.xlu0 %v8246_v34, %s9141_s18  ;;  %8287 = vrot.lane.b32.xlu1 %v9375_v54, %s9142_s19 }
  0x45   : > { %2002 = vmatpush1.bf16.msra.mxu0 %v8818_v31  ;;  %8152 = vmatpush1.bf16.msra.mxu1 %v8818_v31  ;;  %v691_v31 = vsel %vm653_vm0, %v689_v8, %v690_v15 }
  0x48   : > { %8282 = vrot.lane.b32.xlu0 %v9388_v61, %s9143_s20  ;;  %8297 = vrot.lane.b32.xlu1 %v8246_v34, %s9139_s16  ;;  %v509_v34 = vmul.f32 %v9223_v0, %v448_v14  ;;  %v8396_v14 = vpack.i.bf16 %v9475_v3, %v9472_v2 }
  0x4a   : > { %v9442_v41 = vadd.f32 %v9229_v1, %v509_v34 }
  0x4c   : > { %8292 = vrot.lane.b32.xlu0 %v8241_v32, %s9137_s14  ;;  %8307 = vrot.lane.b32.xlu1 %v9388_v61, %s9140_s17  ;;  %v8321_v32 = vpack.i.bf16 %v683_v37, %v681_v36  ;;  %v766_v44 = vrot.slane %v9442_v41, 2  ;;  %v685_v48 = vrot.slane %v9442_v41, 1  ;;  %v8356_v51 = vpack.i.bf16 %v9442_v41, %v9436_v38 }
  0x4d   : > { %v577_v36 = vadd.f32 %v9229_v1, %v516_v30 }
  0x4e   : > { %v767_v53 = vsel %vm734_vm1, %v765_v43, %v766_v44  ;;  %v688_v56 = vsel %vm653_vm0, %v685_v48, %v687_v49  ;;  %v458_v49 = vld [vmem:[%s9234_s30 + $0xe8] sm:$0x3] }
  0x50   : > { %8302 = vrot.lane.b32.xlu0 %v8276_v46, %s9136_s13  ;;  %8317 = vrot.lane.b32.xlu1 %v8316_v21, %s9138_s15  ;;  %v684_v46 = vrot.slane %v9436_v38, 1 }
  0x52   : > { %v686_v55 = vsel %vm653_vm0, %v684_v46, %v685_v48  ;;  %v697_v46 = vrot.slane %v577_v36, 1  ;;  %v457_v48 = vld [vmem:[%s9234_s30 + $0xe0] sm:$0xff] }
  0x54   : > { %8312 = vrot.lane.b32.xlu0 %v9375_v54, %s9141_s18  ;;  %8327 = vrot.lane.b32.xlu1 %v8326_v33, %s9142_s19 }
  0x58   : > { %8322 = vrot.lane.b32.xlu0 %v8321_v32, %s9143_s20  ;;  %8337 = vrot.lane.b32.xlu1 %v9375_v54, %s9139_s16  ;;  %v769_v54 = vsel %vm734_vm1, %v766_v44, %v768_v45  ;;  %v695_v45 = vrot.slane %v9506_v35, 1 }
  0x59   : > { %v8366_v58 = vpack.i.bf16 %v769_v54, %v767_v53 }
  0x5a   : > { %v698_v54 = vsel %vm653_vm0, %v695_v45, %v697_v46 }
  0x5c   : > { %8332 = vrot.lane.b32.xlu0 %v9388_v61, %s9137_s14  ;;  %8347 = vrot.lane.b32.xlu1 %v8321_v32, %s9140_s17  ;;  %v8361_v61 = vpack.i.bf16 %v688_v56, %v686_v55 }
  0x60   : > { %8342 = vrot.lane.b32.xlu0 %v8316_v21, %s9136_s13  ;;  %8357 = vrot.lane.b32.xlu1 %v8356_v51, %s9138_s15  ;;  %v514_v21 = vmul.f32 %v9223_v0, %v453_v9  ;;  %v776_v0 = vrot.slane %v9506_v35, 2 }
  0x62   : > { %v9498_v28 = vadd.f32 %v9229_v1, %v514_v21 }
  0x64   : > { %8352 = vrot.lane.b32.xlu0 %v8326_v33, %s9141_s18  ;;  %8367 = vrot.lane.b32.xlu1 %v8366_v58, %s9142_s19  ;;  %v775_v37 = vrot.slane %v9498_v28, 2  ;;  %v8436_v42 = vpack.i.bf16 %v9506_v35, %v9498_v28  ;;  %v694_v43 = vrot.slane %v9498_v28, 1 }
  0x66   : > { %v777_v1 = vsel %vm734_vm1, %v775_v37, %v776_v0  ;;  %v696_v53 = vsel %vm653_vm0, %v694_v43, %v695_v45 }
  0x67   : > { %v9541_v57 = vpack.i.bf16 %v698_v54, %v696_v53 }
  0x68   : > { %8362 = vrot.lane.b32.xlu0 %v8361_v61, %s9143_s20  ;;  %8377 = vrot.lane.b32.xlu1 %v8326_v33, %s9139_s16  ;;  %v693_v33 = vsel %vm653_vm0, %v690_v15, %v692_v19  ;;  %v460_v15 = vld [vmem:[%s9234_s30 + $0xf8] sm:$0xff] }
  0x69   : > { %v8401_v34 = vpack.i.bf16 %v693_v33, %v691_v31 }
  0x6c   : > { %8372 = vrot.lane.b32.xlu0 %v8321_v32, %s9137_s14  ;;  %8387 = vrot.lane.b32.xlu1 %v8361_v61, %s9140_s17  ;;  %v778_v32 = vrot.slane %v577_v36, 2 }
  0x6e   : > { %v779_v44 = vsel %vm734_vm1, %v776_v0, %v778_v32 }
  0x6f   : > { %v9526_v50 = vpack.i.bf16 %v779_v44, %v777_v1 }
  0x70   : > { %8382 = vrot.lane.b32.xlu0 %v8356_v51, %s9136_s13  ;;  %8397 = vrot.lane.b32.xlu1 %v8396_v14, %s9138_s15  ;;  %v9531_v51 = vld [vmem:[%s14219_s1] ss:$0 sm:$0xff] }
  0x71   : > { %v517_v52 = vmul.f32 %v9531_v51, %v456_v47  ;;  %v518_v55 = vmul.f32 %v9531_v51, %v457_v48  ;;  %v519_v56 = vmul.f32 %v9531_v51, %v458_v49  ;;  %v521_v31 = vmul.f32 %v9531_v51, %v460_v15 }
  0x74   : > { %8392 = vrot.lane.b32.xlu0 %v8366_v58, %s9141_s18  ;;  %8407 = vrot.lane.b32.xlu1 %v8406_v27, %s9142_s19 }
  0x78   : > { %8402 = vrot.lane.b32.xlu0 %v8401_v34, %s9143_s20  ;;  %8417 = vrot.lane.b32.xlu1 %v8366_v58, %s9139_s16  ;;  %v9546_v58 = vld [vmem:[%s14220_s2] ss:$0 sm:$0xff] }
  0x79   : > { %v9549_v59 = vadd.f32 %v9546_v58, %v517_v52  ;;  %v9552_v60 = vadd.f32 %v9546_v58, %v518_v55  ;;  %v9592_v45 = vadd.f32 %v9546_v58, %v521_v31 }
  0x7b   : > { %v780_v5 = vrot.slane %v9549_v59, 2  ;;  %v781_v6 = vrot.slane %v9552_v60, 2  ;;  %v699_v9 = vrot.slane %v9549_v59, 1  ;;  %v700_v11 = vrot.slane %v9552_v60, 1 }
  0x7c   : > { %8412 = vrot.lane.b32.xlu0 %v8361_v61, %s9137_s14  ;;  %8427 = vrot.lane.b32.xlu1 %v8401_v34, %s9140_s17  ;;  %v580_v61 = vadd.f32 %v9546_v58, %v519_v56  ;;  %v9570_v19 = vpack.i.bf16 %v9552_v60, %v9549_v59 }
  0x7d   : > { %v782_v21 = vsel %vm734_vm1, %v780_v5, %v781_v6 }
  0x7e   : > { %v783_v7 = vrot.slane %v580_v61, 2  ;;  %v702_v13 = vrot.slane %v580_v61, 1 }
  0x80   : > { %8422 = vrot.lane.b32.xlu0 %v8396_v14, %s9136_s13  ;;  %8437 = vrot.lane.b32.xlu1 %v8436_v42, %s9138_s15  ;;  %v520_v14 = vmul.f32 %v9531_v51, %v459_v4  ;;  %v784_v23 = vsel %vm734_vm1, %v781_v6, %v783_v7  ;;  %v703_v30 = vsel %vm653_vm0, %v700_v11, %v702_v13  ;;  %v462_v6 = vld [vmem:[%s9234_s30 + $0x108] sm:$0xff]  ;;  %v463_v7 = vld [vmem:[%s9234_s30 + $0x110] sm:$0xff] }
  0x81   : > { %v9586_v0 = vpack.i.bf16 %v784_v23, %v782_v21  ;;  %v464_v13 = vld [vmem:[%s9234_s30 + $0x118] sm:$0x3]  ;;  %v524_v31 = vmul.f32 %v9531_v51, %v463_v7 }
  0x82   : > { %v9580_v33 = vadd.f32 %v9546_v58, %v520_v14 }
  0x84   : > { %8432 = vrot.lane.b32.xlu0 %v8406_v27, %s9141_s18  ;;  %8447 = vrot.lane.b32.xlu1 %v9526_v50, %s9142_s19  ;;  %v785_v46 = vrot.slane %v9580_v33, 2 }
  0x88   : > { %8442 = vrot.lane.b32.xlu0 %v9541_v57, %s9143_s20  ;;  %8457 = vrot.lane.b32.xlu1 %v8406_v27, %s9139_s16  ;;  %v701_v27 = vsel %vm653_vm0, %v699_v9, %v700_v11  ;;  %v9613_v11 = vpack.i.bf16 %v9592_v45, %v9580_v33 }
  0x89   : > { %v9588_v32 = vpack.i.bf16 %v703_v30, %v701_v27  ;;  %v705_v27 = vrot.slane %v9592_v45, 1  ;;  %v523_v30 = vmul.f32 %v9531_v51, %v462_v6 }
  0x8a   : > { %v8173_v8 = vpop.permute.xlu1 %8172 }
  0x8b   : > { %v8175_v53 = vunpack.i.h.bf16 %v8173_v8  ;;  %v8174_v54 = vunpack.i.l.bf16 %v8173_v8  ;;  %v9642_v6 = vadd.f32 %v9546_v58, %v523_v30 }
  0x8c   : > { %8452 = vrot.lane.b32.xlu0 %v8401_v34, %s9137_s14  ;;  %8467 = vrot.lane.b32.xlu1 %v9541_v57, %s9140_s17  ;;  %v461_v34 = vld [vmem:[%s9234_s30 + $0x100] sm:$0x3] }
  0x8d   : > { %v522_v43 = vmul.f32 %v9531_v51, %v461_v34 }
  0x8e   : > { %v8183_v24 = vpop.permute.xlu0 %8182  ;;  %v9574_v25 = vpop.permute.xlu1 %8177 }
  0x8f   : > { %v8185_v36 = vunpack.i.h.bf16 %v8183_v24  ;;  %v8184_v37 = vunpack.i.l.bf16 %v8183_v24  ;;  %v583_v5 = vadd.f32 %v9546_v58, %v522_v43  ;;  %v786_v24 = vrot.slane %v9592_v45, 2 }
  0x90   : > { %8462 = vrot.lane.b32.xlu0 %v8436_v42, %s9136_s13  ;;  %8477 = vrot.lane.b32.xlu1 %v9570_v19, %s9138_s15  ;;  %v704_v42 = vrot.slane %v9580_v33, 1  ;;  %v525_v43 = vmul.f32 %v9531_v51, %v464_v13  ;;  %v466_v13 = vld [vmem:[%s9234_s30 + $0x128] sm:$0xff] }
  0x91   : > { %v1611_v55 = vsel %vm1609_vm3, %v9261_v20, %v8185_v36  ;;  %v1610_v56 = vsel %vm1609_vm3, %v9257_v18, %v8184_v37  ;;  %v788_v37 = vrot.slane %v583_v5, 2 }
  0x92   : > { %v8188_v1 = vpop.permute.xlu0 %8187  ;;  %v8193_v44 = vpop.permute.xlu1 %8192 }
  0x93   : > { %v8190_v47 = vunpack.i.h.bf16 %v8188_v1  ;;  %v8189_v48 = vunpack.i.l.bf16 %v8188_v1  ;;  %v8195_v49 = vunpack.i.h.bf16 %v8193_v44  ;;  %v8194_v52 = vunpack.i.l.bf16 %v8193_v44 }
  0x94   : > { %8472 = vrot.lane.b32.xlu0 %v9526_v50, %s9141_s18  ;;  %8487 = vrot.lane.b32.xlu1 %v9586_v0, %s9142_s19  ;;  %v8180_v1 = vunpack.i.h.bf16 %v9574_v25  ;;  %v8179_v44 = vunpack.i.l.bf16 %v9574_v25  ;;  %v787_v25 = vsel %vm734_vm1, %v785_v46, %v786_v24  ;;  %v9650_v46 = vadd.f32 %v9546_v58, %v525_v43 }
  0x95   : > { %v1643_v61 = vsel %vm1642_vm4, %v1610_v56, %v8189_v48  ;;  %v1644_v4 = vsel %vm1642_vm4, %v1611_v55, %v8190_v47  ;;  %v527_v43 = vmul.f32 %v9531_v51, %v466_v13 }
  0x96   : > { %v1676_v8 = vsel %vm1675_vm5, %v1643_v61, %v8174_v54  ;;  %v1677_v20 = vsel %vm1675_vm5, %v1644_v4, %v8175_v53  ;;  %v8198_v9 = vpop.permute.xlu0 %8197  ;;  %v8208_v18 = vpop.permute.xlu1 %8207  ;;  %v707_v54 = vrot.slane %v583_v5, 1  ;;  %v789_v5 = vsel %vm734_vm1, %v786_v24, %v788_v37 }
  0x97   : > { %v1709_v14 = vsel %vm1708_vm6, %v1676_v8, %v8194_v52  ;;  %v1710_v15 = vsel %vm1708_vm6, %v1677_v20, %v8195_v49  ;;  %v8200_v21 = vunpack.i.h.bf16 %v8198_v9  ;;  %v8199_v23 = vunpack.i.l.bf16 %v8198_v9 }
  0x98   : > { %8482 = vrot.lane.b32.xlu0 %v9588_v32, %s9143_s20  ;;  %8497 = vrot.lane.b32.xlu1 %v9526_v50, %s9139_s16  ;;  %v8210_v50 = vunpack.i.h.bf16 %v8208_v18  ;;  %v8209_v47 = vunpack.i.l.bf16 %v8208_v18  ;;  %v9647_v9 = vadd.f32 %v9546_v58, %v524_v31  ;;  %v465_v18 = vld [vmem:[%s9234_s30 + $0x120] sm:$0xff] }
  0x99   : > { %v1742_v34 = vsel %vm1741_vm7, %v1709_v14, %v8199_v23  ;;  %v1743_v36 = vsel %vm1741_vm7, %v1710_v15, %v8200_v21  ;;  %v706_v21 = vsel %vm653_vm0, %v704_v42, %v705_v27  ;;  %v708_v23 = vsel %vm653_vm0, %v705_v27, %v707_v54 }
  0x9a   : > { %v8203_v48 = vpop.permute.xlu0 %8202  ;;  %v8218_v49 = vpop.permute.xlu1 %8217  ;;  %v1775_v55 = vsel %vm1774_vm8, %v1742_v34, %v8179_v44  ;;  %v1776_v56 = vsel %vm1774_vm8, %v1743_v36, %v8180_v1  ;;  %v9662_v34 = vpack.i.bf16 %v789_v5, %v787_v25  ;;  %v467_v36 = vld [vmem:[%s9234_s30 + $0x130] sm:$0x3]  ;;  %v526_v27 = vmul.f32 %v9531_v51, %v465_v18 }
  0x9b   : > { %v8205_v52 = vunpack.i.h.bf16 %v8203_v48  ;;  %v8204_v53 = vunpack.i.l.bf16 %v8203_v48  ;;  %v8220_v24 = vunpack.i.h.bf16 %v8218_v49  ;;  %v8219_v30 = vunpack.i.l.bf16 %v8218_v49 }
  0x9c   : > { %8492 = vrot.lane.b32.xlu0 %v9541_v57, %s9137_s14  ;;  %8507 = vrot.lane.b32.xlu1 %v9588_v32, %s9140_s17  ;;  %v9672_v44 = vpack.i.bf16 %v708_v23, %v706_v21  ;;  %v793_v48 = vrot.slane %v9650_v46, 2  ;;  %v9693_v18 = vadd.f32 %v9546_v58, %v526_v27 }
  0x9d   : > { %v1808_v61 = vsel %vm1807_vm9, %v1775_v55, %v8204_v53  ;;  %v1809_v4 = vsel %vm1807_vm9, %v1776_v56, %v8205_v52 }
  0x9e   : > { %v8213_v7 = vpop.permute.xlu0 %8212  ;;  %v8228_v8 = vpop.permute.xlu1 %8227  ;;  %v1841_v20 = vsel %vm1840_vm10, %v1808_v61, %v8209_v47  ;;  %v1842_v57 = vsel %vm1840_vm10, %v1809_v4, %v8210_v50  ;;  %v790_v50 = vrot.slane %v9642_v6, 2  ;;  %v791_v47 = vrot.slane %v9647_v9, 2 }
  0x9f   : > { %v8215_v14 = vunpack.i.h.bf16 %v8213_v7  ;;  %v8214_v15 = vunpack.i.l.bf16 %v8213_v7  ;;  %v1873_v31 = vpack.c.bf16 %v1842_v57, %v1841_v20  ;;  %v8230_v52 = vunpack.i.h.bf16 %v8228_v8 }
  0xa0   : > { %8502 = vrot.lane.b32.xlu0 %v9570_v19, %s9136_s13  ;;  %8517 = vrot.lane.b32.xlu1 %v9613_v11, %s9138_s15  ;;  %v8229_v53 = vunpack.i.l.bf16 %v8228_v8  ;;  %v709_v61 = vrot.slane %v9642_v6, 1  ;;  %v710_v4 = vrot.slane %v9647_v9, 1  ;;  %v792_v8 = vsel %vm734_vm1, %v790_v50, %v791_v47 }
  0xa1   : > { %v1613_v37 = vsel %vm1609_vm3, %v9254_v17, %v8215_v14  ;;  %v1612_v42 = vsel %vm1609_vm3, %v9251_v16, %v8214_v15  ;;  %7016 = vmatmul.mubr.msk.bf16.vlgmr.msra.gmra.mxu0 %vm1931_vm11, %v1873_v31  ;;  %v528_v16 = vmul.f32 %v9531_v51, %v467_v36  ;;  %v794_v20 = vsel %vm734_vm1, %v791_v47, %v793_v48 }
  0xa2   : > { %v8223_v19 = vpop.permute.xlu0 %8222  ;;  %v8238_v1 = vpop.permute.xlu1 %8237  ;;  %2029 = vmatprep.mubr.bf16.mxu0 %v9144_v29  ;;  %v1645_v54 = vsel %vm1642_vm4, %v1612_v42, %v8219_v30  ;;  %v1646_v55 = vsel %vm1642_vm4, %v1613_v37, %v8220_v24  ;;  %v712_v57 = vrot.slane %v9650_v46, 1  ;;  %v9696_v15 = vadd.f32 %v9546_v58, %v527_v43 }
  0xa3   : > { %v8225_v17 = vunpack.i.h.bf16 %v8223_v19  ;;  %v8224_v49 = vunpack.i.l.bf16 %v8223_v19  ;;  %v9699_v21 = vadd.f32 %v9546_v58, %v528_v16  ;;  %v8240_v23 = vunpack.i.h.bf16 %v8238_v1  ;;  %v469_v16 = vld [vmem:[%s9234_s30 + $0x140] sm:$0xff] }
  0xa4   : > { %8512 = vrot.lane.b32.xlu0 %v9586_v0, %s9141_s18  ;;  %8527 = vrot.lane.b32.xlu1 %v9662_v34, %s9142_s19  ;;  %v8239_v24 = vunpack.i.l.bf16 %v8238_v1  ;;  %v9711_v37 = vpack.i.bf16 %v9647_v9, %v9642_v6  ;;  %v9713_v1 = vpack.i.bf16 %v794_v20, %v792_v8  ;;  %v711_v50 = vsel %vm653_vm0, %v709_v61, %v710_v4 }
  0xa5   : > { %v1678_v56 = vsel %vm1675_vm5, %v1645_v54, %v8224_v49  ;;  %v1679_v25 = vsel %vm1675_vm5, %v1646_v55, %v8225_v17  ;;  %v715_v17 = vrot.slane %v9696_v15, 1  ;;  %v468_v49 = vld [vmem:[%s9234_s30 + $0x138] sm:$0xff]  ;;  %v713_v54 = vsel %vm653_vm0, %v710_v4, %v712_v57  ;;  %v470_v57 = vld [vmem:[%s9234_s30 + $0x148] sm:$0x3] }
  0xa6   : > { %v8233_v5 = vpop.permute.xlu0 %8232  ;;  %v8248_v7 = vpop.permute.xlu1 %8247  ;;  %v1711_v30 = vsel %vm1708_vm6, %v1678_v56, %v8229_v53  ;;  %v1712_v31 = vsel %vm1708_vm6, %v1679_v25, %v8230_v52  ;;  %v717_v55 = vrot.slane %v9699_v21, 1  ;;  %v795_v61 = vrot.slane %v9693_v18, 2 }
  0xa7   : > { %v8235_v13 = vunpack.i.h.bf16 %v8233_v5  ;;  %v8234_v14 = vunpack.i.l.bf16 %v8233_v5  ;;  %v8250_v42 = vunpack.i.h.bf16 %v8248_v7  ;;  %v8249_v27 = vunpack.i.l.bf16 %v8248_v7 }
  0xa8   : > { %8522 = vrot.lane.b32.xlu0 %v9672_v44, %s9143_s20  ;;  %8537 = vrot.lane.b32.xlu1 %v9586_v0, %s9139_s16  ;;  %v714_v0 = vrot.slane %v9693_v18, 1  ;;  %v796_v5 = vrot.slane %v9696_v15, 2  ;;  %v530_v4 = vmul.f32 %v9531_v51, %v469_v16 }
  0xa9   : > { %v1744_v46 = vsel %vm1741_vm7, %v1711_v30, %v8234_v14  ;;  %v1745_v36 = vsel %vm1741_vm7, %v1712_v31, %v8235_v13  ;;  %v529_v13 = vmul.f32 %v9531_v51, %v468_v49  ;;  %v798_v30 = vrot.slane %v9699_v21, 2 }
  0xaa   : > { %v8243_v43 = vpop.permute.xlu0 %8242  ;;  %v8258_v19 = vpop.permute.xlu1 %8257  ;;  %v1777_v52 = vsel %vm1774_vm8, %v1744_v46, %v8239_v24  ;;  %v1778_v53 = vsel %vm1774_vm8, %v1745_v36, %v8240_v23  ;;  %v716_v24 = vsel %vm653_vm0, %v714_v0, %v715_v17 }
  0xab   : > { %v8245_v47 = vunpack.i.h.bf16 %v8243_v43  ;;  %v8244_v48 = vunpack.i.l.bf16 %v8243_v43  ;;  %v8260_v31 = vunpack.i.h.bf16 %v8258_v19  ;;  %v8259_v46 = vunpack.i.l.bf16 %v8258_v19 }
  0xac   : > { %8532 = vrot.lane.b32.xlu0 %v9588_v32, %s9137_s14  ;;  %8547 = vrot.lane.b32.xlu1 %v9672_v44, %s9140_s17  ;;  %v9754_v0 = vadd.f32 %v9546_v58, %v529_v13 }
  0xad   : > { %v1810_v56 = vsel %vm1807_vm9, %v1777_v52, %v8244_v48  ;;  %v1811_v25 = vsel %vm1807_vm9, %v1778_v53, %v8245_v47  ;;  %v531_v47 = vmul.f32 %v9531_v51, %v470_v57  ;;  %v9750_v48 = vpack.i.bf16 %v713_v54, %v711_v50  ;;  %v471_v57 = vld [vmem:[%s9234_s30 + $0x150] sm:$0xff] }
  0xae   : > { %v8253_v7 = vpop.permute.xlu0 %8252  ;;  %v8268_v8 = vpop.permute.xlu1 %8267  ;;  %v1843_v20 = vsel %vm1840_vm10, %v1810_v56, %v8249_v27  ;;  %v1844_v32 = vsel %vm1840_vm10, %v1811_v25, %v8250_v42  ;;  %v718_v42 = vsel %vm653_vm0, %v715_v17, %v717_v55  ;;  %v9757_v17 = vadd.f32 %v9546_v58, %v530_v4 }
  0xaf   : > { %v8255_v14 = vunpack.i.h.bf16 %v8253_v7  ;;  %v8254_v23 = vunpack.i.l.bf16 %v8253_v7  ;;  %v1874_v36 = vpack.c.bf16 %v1844_v32, %v1843_v20  ;;  %v9759_v16 = vpack.i.bf16 %v718_v42, %v716_v24 }
  0xb0   : > { %8542 = vrot.lane.b32.xlu0 %v9613_v11, %s9136_s13  ;;  %8557 = vrot.lane.b32.xlu1 %v9711_v37, %s9138_s15  ;;  %v797_v11 = vsel %vm734_vm1, %v795_v61, %v796_v5  ;;  %v8270_v52 = vunpack.i.h.bf16 %v8268_v8  ;;  %v8269_v53 = vunpack.i.l.bf16 %v8268_v8  ;;  %v592_v25 = vadd.f32 %v9546_v58, %v531_v47 }
  0xb1   : > { %v1615_v27 = vsel %vm1609_vm3, %v9272_v26, %v8255_v14  ;;  %v1614_v43 = vsel %vm1609_vm3, %v9265_v22, %v8254_v23  ;;  %7017 = vmatmul.mubr.msk.bf16.gmra.mxu0 %vm1931_vm11, %v1874_v36  ;;  %v799_v22 = vsel %vm734_vm1, %v796_v5, %v798_v30  ;;  %v9776_v8 = vpack.i.bf16 %v9757_v17, %v9754_v0 }
  0xb2   : > { %v8263_v21 = vpop.permute.xlu0 %8262  ;;  %v8278_v19 = vpop.permute.xlu1 %8277  ;;  %2039 = vmatprep.mubr.bf16.mxu0 %v9144_v29  ;;  %v1647_v50 = vsel %vm1642_vm4, %v1614_v43, %v8259_v46  ;;  %v1648_v54 = vsel %vm1642_vm4, %v1615_v27, %v8260_v31  ;;  %v9772_v7 = vpack.i.bf16 %v799_v22, %v797_v11  ;;  %v719_v13 = vrot.slane %v9754_v0, 1  ;;  %v472_v31 = vld [vmem:[%s9234_s30 + $0x158] sm:$0xff] }
  0xb3   : > { %v8265_v26 = vunpack.i.h.bf16 %v8263_v21  ;;  %v8264_v49 = vunpack.i.l.bf16 %v8263_v21  ;;  %v720_v4 = vrot.slane %v9757_v17, 1  ;;  %v8280_v14 = vunpack.i.h.bf16 %v8278_v19 }
  0xb4   : > { %8552 = vrot.lane.b32.xlu0 %v9662_v34, %s9141_s18  ;;  %8567 = vrot.lane.b32.xlu1 %v9713_v1, %s9142_s19  ;;  %v8279_v23 = vunpack.i.l.bf16 %v8278_v19  ;;  %v722_v42 = vrot.slane %v592_v25, 1  ;;  %v800_v27 = vrot.slane %v9754_v0, 2  ;;  %v801_v11 = vrot.slane %v9757_v17, 2 }
  0xb5   : > { %v1680_v55 = vsel %vm1675_vm5, %v1647_v50, %v8264_v49  ;;  %v1681_v56 = vsel %vm1675_vm5, %v1648_v54, %v8265_v26  ;;  %v532_v26 = vmul.f32 %v9531_v51, %v471_v57  ;;  %v473_v49 = vld [vmem:[%s9234_s30 + $0x160] sm:$0x3]  ;;  %v533_v50 = vmul.f32 %v9531_v51, %v472_v31 }
  0xb6   : > { %v8273_v61 = vpop.permute.xlu0 %8272  ;;  %v8288_v5 = vpop.permute.xlu1 %8287  ;;  %v1713_v24 = vsel %vm1708_vm6, %v1680_v55, %v8269_v53  ;;  %v1714_v30 = vsel %vm1708_vm6, %v1681_v56, %v8270_v52  ;;  %v803_v53 = vrot.slane %v592_v25, 2  ;;  %v721_v56 = vsel %vm653_vm0, %v719_v13, %v720_v4 }
  0xb7   : > { %v8275_v20 = vunpack.i.h.bf16 %v8273_v61  ;;  %v8274_v32 = vunpack.i.l.bf16 %v8273_v61  ;;  %v8290_v43 = vunpack.i.h.bf16 %v8288_v5  ;;  %v8289_v47 = vunpack.i.l.bf16 %v8288_v5 }
  0xb8   : > { %8562 = vrot.lane.b32.xlu0 %v9750_v48, %s9143_s20  ;;  %8577 = vrot.lane.b32.xlu1 %v9759_v16, %s9137_s14  ;;  %v723_v25 = vsel %vm653_vm0, %v720_v4, %v722_v42  ;;  %v804_v13 = vsel %vm734_vm1, %v801_v11, %v803_v53  ;;  %v9811_v31 = vadd.f32 %v9546_v58, %v532_v26 }
  0xb9   : > { %v1746_v46 = vsel %vm1741_vm7, %v1713_v24, %v8274_v32  ;;  %v1747_v36 = vsel %vm1741_vm7, %v1714_v30, %v8275_v20  ;;  %v534_v20 = vmul.f32 %v9531_v51, %v473_v49  ;;  %v9817_v42 = vpack.i.bf16 %v723_v25, %v721_v56 }
  0xba   : > { %v8283_v21 = vpop.permute.xlu0 %8282  ;;  %v8298_v19 = vpop.permute.xlu1 %8297  ;;  %v1779_v54 = vsel %vm1774_vm8, %v1746_v46, %v8279_v23  ;;  %v1780_v55 = vsel %vm1774_vm8, %v1747_v36, %v8280_v14 }
  0xbb   : > { %v8285_v22 = vunpack.i.h.bf16 %v8283_v21  ;;  %v8284_v52 = vunpack.i.l.bf16 %v8283_v21  ;;  %v8300_v46 = vunpack.i.h.bf16 %v8298_v19  ;;  %v8299_v36 = vunpack.i.l.bf16 %v8298_v19 }
  0xbc   : > { %8572 = vrot.lane.b32.xlu0 %v9672_v44, %s9137_s14  ;;  %8587 = vrot.lane.b32.xlu1 %v9772_v7, %s9139_s16  ;;  %v802_v44 = vsel %vm734_vm1, %v800_v27, %v801_v11  ;;  %v595_v21 = vadd.f32 %v9546_v58, %v534_v20  ;;  %v805_v20 = vrot.slane %v9811_v31, 2 }
  0xbd   : > { %v1812_v61 = vsel %vm1807_vm9, %v1779_v54, %v8284_v52  ;;  %v1813_v5 = vsel %vm1807_vm9, %v1780_v55, %v8285_v22  ;;  %v9828_v49 = vpack.i.bf16 %v804_v13, %v802_v44 }
  0xbe   : > { %v8293_v32 = vpop.permute.xlu0 %8292  ;;  %v8308_v57 = vpop.permute.xlu1 %8307  ;;  %v1845_v14 = vsel %vm1840_vm10, %v1812_v61, %v8289_v47  ;;  %v1846_v23 = vsel %vm1840_vm10, %v1813_v5, %v8290_v43  ;;  %v9824_v47 = vadd.f32 %v9546_v58, %v533_v50  ;;  %v727_v56 = vrot.slane %v595_v21, 1 }
  0xbf   : > { %v8295_v24 = vunpack.i.h.bf16 %v8293_v32  ;;  %v8294_v30 = vunpack.i.l.bf16 %v8293_v32  ;;  %v1875_v4 = vpack.c.bf16 %v1846_v23, %v1845_v14  ;;  %v8310_v22 = vunpack.i.h.bf16 %v8308_v57 }
  0xc0   : > { %8582 = vrot.lane.b32.xlu0 %v9662_v34, %s9139_s16  ;;  %8597 = vrot.lane.b32.xlu1 %v9776_v8, %s9136_s13  ;;  %v8309_v52 = vunpack.i.l.bf16 %v8308_v57  ;;  %v725_v55 = vrot.slane %v9824_v47, 1  ;;  %v9843_v25 = vpack.i.bf16 %v9824_v47, %v9811_v31  ;;  %v806_v57 = vrot.slane %v9824_v47, 2 }
  0xc1   : > { %v1617_v27 = vsel %vm1609_vm3, %v9323_v12, %v8295_v24  ;;  %v1616_v43 = vsel %vm1609_vm3, %v9318_v10, %v8294_v30  ;;  %7018 = vmatmul.mubr.msk.bf16.gmra.mxu0 %vm1931_vm11, %v1875_v4  ;;  %v724_v12 = vrot.slane %v9811_v31, 1  ;;  %v808_v14 = vrot.slane %v595_v21, 2 }
  0xc2   : > { %v8303_v34 = vpop.permute.xlu0 %8302  ;;  %v8318_v19 = vpop.permute.xlu1 %8317  ;;  %2049 = vmatprep.mubr.bf16.mxu0 %v9144_v29  ;;  %v1649_v10 = vsel %vm1642_vm4, %v1616_v43, %v8299_v36  ;;  %v1650_v53 = vsel %vm1642_vm4, %v1617_v27, %v8300_v46  ;;  %v728_v4 = vsel %vm653_vm0, %v725_v55, %v727_v56 }
  0xc3   : > { %v8305_v11 = vunpack.i.h.bf16 %v8303_v34  ;;  %v8304_v26 = vunpack.i.l.bf16 %v8303_v34  ;;  %v8320_v23 = vunpack.i.h.bf16 %v8318_v19  ;;  %v8319_v44 = vunpack.i.l.bf16 %v8318_v19 }
  0xc4   : > { %8592 = vrot.lane.b32.xlu0 %v9711_v37, %s9136_s13  ;;  %8607 = vrot.lane.b32.xlu1 %v9817_v42, %s9140_s17  ;;  %v726_v36 = vsel %vm653_vm0, %v724_v12, %v725_v55 }
  0xc5   : > { %v1682_v50 = vsel %vm1675_vm5, %v1649_v10, %v8304_v26  ;;  %v1683_v54 = vsel %vm1675_vm5, %v1650_v53, %v8305_v11  ;;  %v9859_v26 = vpack.i.bf16 %v9696_v15, %v9693_v18  ;;  %v9867_v12 = vpack.i.bf16 %v728_v4, %v726_v36 }
  0xc6   : > { %v8313_v61 = vpop.permute.xlu0 %8312  ;;  %v8328_v5 = vpop.permute.xlu1 %8327  ;;  %v1715_v24 = vsel %vm1708_vm6, %v1682_v50, %v8309_v52  ;;  %v1716_v30 = vsel %vm1708_vm6, %v1683_v54, %v8310_v22  ;;  %v807_v50 = vsel %vm734_vm1, %v805_v20, %v806_v57  ;;  %v809_v54 = vsel %vm734_vm1, %v806_v57, %v808_v14 }
  0xc7   : > { %v8315_v32 = vunpack.i.h.bf16 %v8313_v61  ;;  %v8314_v37 = vunpack.i.l.bf16 %v8313_v61  ;;  %v8330_v27 = vunpack.i.h.bf16 %v8328_v5  ;;  %v8329_v43 = vunpack.i.l.bf16 %v8328_v5 }
  0xc8   : > { %8602 = vrot.lane.b32.xlu0 %v9750_v48, %s9140_s17  ;;  %8617 = vrot.lane.b32.xlu1 %v9828_v49, %s9141_s18  ;;  %v9879_v20 = vpack.i.bf16 %v809_v54, %v807_v50  ;;  %v474_v54 = vld [vmem:[%s9234_s30 + $0x168] sm:$0xff] }
  0xc9   : > { %v1748_v13 = vsel %vm1741_vm7, %v1715_v24, %v8314_v37  ;;  %v1749_v46 = vsel %vm1741_vm7, %v1716_v30, %v8315_v32 }
  0xca   : > { %v8323_v21 = vpop.permute.xlu0 %8322  ;;  %v8338_v34 = vpop.permute.xlu1 %8337  ;;  %v1781_v22 = vsel %vm1774_vm8, %v1748_v13, %v8319_v44  ;;  %v1782_v52 = vsel %vm1774_vm8, %v1749_v46, %v8320_v23 }
  0xcb   : > { %v8325_v19 = vunpack.i.h.bf16 %v8323_v21  ;;  %v8324_v11 = vunpack.i.l.bf16 %v8323_v21  ;;  %v8340_v23 = vunpack.i.h.bf16 %v8338_v34  ;;  %v8339_v44 = vunpack.i.l.bf16 %v8338_v34 }
  0xcc   : > { %8612 = vrot.lane.b32.xlu0 %v9713_v1, %s9141_s18  ;;  %8627 = vrot.lane.b32.xlu1 %v9843_v25, %s9138_s15 }
  0xcd   : > { %v1814_v10 = vsel %vm1807_vm9, %v1781_v22, %v8324_v11  ;;  %v1815_v53 = vsel %vm1807_vm9, %v1782_v52, %v8325_v19 }
  0xce   : > { %v8333_v55 = vpop.permute.xlu0 %8332  ;;  %v8348_v56 = vpop.permute.xlu1 %8347  ;;  %v1847_v61 = vsel %vm1840_vm10, %v1814_v10, %v8329_v43  ;;  %v1848_v5 = vsel %vm1840_vm10, %v1815_v53, %v8330_v27 }
  0xcf   : > { %v8335_v32 = vunpack.i.h.bf16 %v8333_v55  ;;  %v8334_v37 = vunpack.i.l.bf16 %v8333_v55  ;;  %v1876_v24 = vpack.c.bf16 %v1848_v5, %v1847_v61  ;;  %v8350_v4 = vunpack.i.h.bf16 %v8348_v56  ;;  %v475_v61 = vld [vmem:[%s9234_s30 + $0x170] sm:$0xff] }
  0xd0   : > { %8622 = vrot.lane.b32.xlu0 %v9859_v26, %s9138_s15  ;;  %8637 = vrot.lane.b32.xlu1 %v9867_v12, %s9143_s20  ;;  %v8349_v27 = vunpack.i.l.bf16 %v8348_v56 }
  0xd1   : > { %v1619_v57 = vsel %vm1609_vm3, %v9355_v40, %v8335_v32  ;;  %v1618_v14 = vsel %vm1609_vm3, %v9350_v39, %v8334_v37  ;;  %7019 = vmatmul.mubr.msk.bf16.gmra.mxu0 %vm1931_vm11, %v1876_v24 }
  0xd2   : > { %v8343_v30 = vpop.permute.xlu0 %8342  ;;  %v8358_v13 = vpop.permute.xlu1 %8357  ;;  %2059 = vmatprep.mubr.bf16.mxu0 %v9144_v29  ;;  %v1651_v43 = vsel %vm1642_vm4, %v1618_v14, %v8339_v44  ;;  %v1652_v21 = vsel %vm1642_vm4, %v1619_v57, %v8340_v23  ;;  %v476_v44 = vld [vmem:[%s9234_s30 + $0x178] sm:$0x3]  ;;  %v535_v14 = vmul.f32 %v9531_v51, %v474_v54 }
  0xd3   : > { %v8345_v46 = vunpack.i.h.bf16 %v8343_v30  ;;  %v8344_v36 = vunpack.i.l.bf16 %v8343_v30  ;;  %v8360_v52 = vunpack.i.h.bf16 %v8358_v13  ;;  %v8359_v10 = vunpack.i.l.bf16 %v8358_v13 }
  0xd4   : > { %8632 = vrot.lane.b32.xlu0 %v9759_v16, %s9143_s20  ;;  %8647 = vrot.lane.b32.xlu1 %v9879_v20, %s9142_s19 }
  0xd5   : > { %v1684_v39 = vsel %vm1675_vm5, %v1651_v43, %v8344_v36  ;;  %v1685_v40 = vsel %vm1675_vm5, %v1652_v21, %v8345_v46  ;;  %v536_v46 = vmul.f32 %v9531_v51, %v475_v61  ;;  %v1896_v36 = vlaneseq }
  0xd6   : > { %v8353_v34 = vpop.permute.xlu0 %8352  ;;  %v8368_v19 = vpop.permute.xlu1 %8367  ;;  %v1717_v53 = vsel %vm1708_vm6, %v1684_v39, %v8349_v27  ;;  %v1718_v50 = vsel %vm1708_vm6, %v1685_v40, %v8350_v4  ;;  %v537_v43 = vmul.f32 %v9531_v51, %v476_v44 }
  0xd7   : > { %v8355_v11 = vunpack.i.h.bf16 %v8353_v34  ;;  %v8354_v22 = vunpack.i.l.bf16 %v8353_v34  ;;  %v8370_v5 = vunpack.i.h.bf16 %v8368_v19  ;;  %v8369_v32 = vunpack.i.l.bf16 %v8368_v19 }
  0xd8   : > { %8642 = vrot.lane.b32.xlu0 %v9772_v7, %s9142_s19  ;;  %8657 = vrot.lane.b32.xlu1 %v9817_v42, %s9137_s14 }
  0xd9   : > { %v1750_v55 = vsel %vm1741_vm7, %v1717_v53, %v8354_v22  ;;  %v1751_v56 = vsel %vm1741_vm7, %v1718_v50, %v8355_v11  ;;  %v9920_v11 = vadd.f32 %v9546_v58, %v535_v14  ;;  %v9922_v22 = vshrl.u32 %v1896_v36, 7 }
  0xda   : > { %v8363_v37 = vpop.permute.xlu0 %8362  ;;  %v8378_v23 = vpop.permute.xlu1 %8377  ;;  %v1783_v30 = vsel %vm1774_vm8, %v1750_v55, %v8359_v10  ;;  %v1784_v13 = vsel %vm1774_vm8, %v1751_v56, %v8360_v52  ;;  %v9929_v53 = vadd.f32 %v9546_v58, %v536_v46  ;;  %v598_v55 = vadd.f32 %v9546_v58, %v537_v43 }
  0xdb   : > { %v8365_v24 = vunpack.i.h.bf16 %v8363_v37  ;;  %v8364_v57 = vunpack.i.l.bf16 %v8363_v37  ;;  %v8380_v52 = vunpack.i.h.bf16 %v8378_v23  ;;  %v8379_v10 = vunpack.i.l.bf16 %v8378_v23 }
  0xdc   : > { %8652 = vrot.lane.b32.xlu0 %v9750_v48, %s9137_s14  ;;  %8667 = vrot.lane.b32.xlu1 %v9828_v49, %s9139_s16  ;;  %v1902_v56 = vsub.s32 1, %v9922_v22  ;;  %v729_v37 = vrot.slane %v9920_v11, 1  ;;  %v730_v14 = vrot.slane %v9929_v53, 1  ;;  %v9956_v36 = vpack.i.bf16 %v9929_v53, %v9920_v11 }
  0xdd   : > { %v1816_v4 = vsel %vm1807_vm9, %v1783_v30, %v8364_v57  ;;  %v1817_v27 = vsel %vm1807_vm9, %v1784_v13, %v8365_v24  ;;  %v732_v30 = vrot.slane %v598_v55, 1  ;;  %v811_v43 = vrot.slane %v9929_v53, 2 }
  0xde   : > { %v8373_v21 = vpop.permute.xlu0 %8372  ;;  %v8388_v39 = vpop.permute.xlu1 %8387  ;;  %v1849_v40 = vsel %vm1840_vm10, %v1816_v4, %v8369_v32  ;;  %v1850_v34 = vsel %vm1840_vm10, %v1817_v27, %v8370_v5 }
  0xdf   : > { %v8375_v19 = vunpack.i.h.bf16 %v8373_v21  ;;  %v8374_v48 = vunpack.i.l.bf16 %v8373_v21  ;;  %v1877_v51 = vpack.c.bf16 %v1850_v34, %v1849_v40  ;;  %v8390_v5 = vunpack.i.h.bf16 %v8388_v39 }
  0xe0   : > { %8662 = vrot.lane.b32.xlu0 %v9713_v1, %s9139_s16  ;;  %8677 = vrot.lane.b32.xlu1 %v9843_v25, %s9136_s13  ;;  %v813_v21 = vrot.slane %v598_v55, 2 }
  0xe1   : > { %v1621_v50 = vsel %vm1609_vm3, %v9394_v63, %v8375_v19  ;;  %v1620_v54 = vsel %vm1609_vm3, %v9391_v62, %v8374_v48  ;;  %7020 = vmatmul.mubr.msk.bf16.gmra.mxu0 %vm1931_vm11, %v1877_v51  ;;  %v1894_v63 = vld [vmem:[%s14222_s4] sm:$0x3]  ;;  %v8389_v62 = vunpack.i.l.bf16 %v8388_v39  ;;  %v733_v51 = vsel %vm653_vm0, %v730_v14, %v732_v30  ;;  %v479_v30 = vld [vmem:[%s9234_s30 + $0x190] sm:$0x3] }
  0xe2   : > { %v8383_v1 = vpop.permute.xlu0 %8382  ;;  %v8398_v61 = vpop.permute.xlu1 %8397  ;;  %2069 = vmatprep.mubr.bf16.mxu0 %v9144_v29  ;;  %v1653_v58 = vsel %vm1642_vm4, %v1620_v54, %v8379_v10  ;;  %v1654_v23 = vsel %vm1642_vm4, %v1621_v50, %v8380_v52  ;;  %v9949_v44 = vrot.slane %v1894_v63, %v1902_v56  ;;  %v731_v10 = vsel %vm653_vm0, %v729_v37, %v730_v14  ;;  %v478_v14 = vld [vmem:[%s9234_s30 + $0x188] sm:$0xff] }
  0xe3   : > { %v8385_v25 = vunpack.i.h.bf16 %v8383_v1  ;;  %v8384_v32 = vunpack.i.l.bf16 %v8383_v1  ;;  %v8400_v39 = vunpack.i.h.bf16 %v8398_v61  ;;  %v8399_v40 = vunpack.i.l.bf16 %v8398_v61 }
  0xe4   : > { %8672 = vrot.lane.b32.xlu0 %v9859_v26, %s9136_s13  ;;  %8687 = vrot.lane.b32.xlu1 %v9867_v12, %s9140_s17  ;;  %v810_v26 = vrot.slane %v9920_v11, 2 }
  0xe5   : > { %v1686_v24 = vsel %vm1675_vm5, %v1653_v58, %v8384_v32  ;;  %v1687_v57 = vsel %vm1675_vm5, %v1654_v23, %v8385_v25  ;;  %v9976_v25 = vpack.i.bf16 %v733_v51, %v731_v10  ;;  %v477_v32 = vld [vmem:[%s9234_s30 + $0x180] sm:$0xff]  ;;  %v814_v58 = vsel %vm734_vm1, %v811_v43, %v813_v21 }
  0xe6   : > { %v8393_v13 = vpop.permute.xlu0 %8392  ;;  %v8408_v46 = vpop.permute.xlu1 %8407  ;;  %v1719_v34 = vsel %vm1708_vm6, %v1686_v24, %v8389_v62  ;;  %v1720_v19 = vsel %vm1708_vm6, %v1687_v57, %v8390_v5  ;;  %v812_v62 = vsel %vm734_vm1, %v810_v26, %v811_v43 }
  0xe7   : > { %v8395_v4 = vunpack.i.h.bf16 %v8393_v13  ;;  %v8394_v27 = vunpack.i.l.bf16 %v8393_v13  ;;  %v8410_v50 = vunpack.i.h.bf16 %v8408_v46  ;;  %v8409_v54 = vunpack.i.l.bf16 %v8408_v46 }
  0xe8   : > { %8682 = vrot.lane.b32.xlu0 %v9759_v16, %s9140_s17  ;;  %8697 = vrot.lane.b32.xlu1 %v9879_v20, %s9141_s18  ;;  %v9997_v21 = vpack.i.bf16 %v814_v58, %v812_v62 }
  0xe9   : > { %v1752_v48 = vsel %vm1741_vm7, %v1719_v34, %v8394_v27  ;;  %v1753_v52 = vsel %vm1741_vm7, %v1720_v19, %v8395_v4  ;;  %v9990_v4 = vld [vmem:[%s14219_s1] ss:$0 sm:$0xff] }
  0xea   : > { %v8403_v55 = vpop.permute.xlu0 %8402  ;;  %v8418_v56 = vpop.permute.xlu1 %8417  ;;  %v1785_v16 = vsel %vm1774_vm8, %v1752_v48, %v8399_v40  ;;  %v1786_v5 = vsel %vm1774_vm8, %v1753_v52, %v8400_v39  ;;  %v538_v27 = vmul.f32 %v9990_v4, %v477_v32  ;;  %v539_v19 = vmul.f32 %v9990_v4, %v478_v14 }
  0xeb   : > { %v8405_v1 = vunpack.i.h.bf16 %v8403_v55  ;;  %v8404_v61 = vunpack.i.l.bf16 %v8403_v55  ;;  %v8420_v26 = vunpack.i.h.bf16 %v8418_v56  ;;  %v8419_v39 = vunpack.i.l.bf16 %v8418_v56 }
  0xec   : > { %8692 = vrot.lane.b32.xlu0 %v9772_v7, %s9141_s18  ;;  %8707 = vrot.lane.b32.xlu1 %v9956_v36, %s9138_s15  ;;  %v540_v48 = vmul.f32 %v9990_v4, %v479_v30 }
  0xed   : > { %v1818_v37 = vsel %vm1807_vm9, %v1785_v16, %v8404_v61  ;;  %v1819_v63 = vsel %vm1807_vm9, %v1786_v5, %v8405_v1 }
  0xee   : > { %v8413_v23 = vpop.permute.xlu0 %8412  ;;  %v8428_v24 = vpop.permute.xlu1 %8427  ;;  %v1851_v57 = vsel %vm1840_vm10, %v1818_v37, %v8409_v54  ;;  %v1852_v7 = vsel %vm1840_vm10, %v1819_v63, %v8410_v50  ;;  %v10010_v50 = vld [vmem:[%s14220_s2] ss:$0 sm:$0xff] }
  0xef   : > { %v8415_v13 = vunpack.i.h.bf16 %v8413_v23  ;;  %v8414_v46 = vunpack.i.l.bf16 %v8413_v23  ;;  %v1878_v43 = vpack.c.bf16 %v1852_v7, %v1851_v57  ;;  %v8429_v54 = vunpack.i.l.bf16 %v8428_v24 }
  0xf0   : > { %8702 = vrot.lane.b32.xlu0 %v9776_v8, %s9138_s15  ;;  %8717 = vrot.lane.b32.xlu1 %v9976_v25, %s9143_s20  ;;  %v600_v16 = vadd.f32 %v10010_v50, %v539_v19  ;;  %v601_v5 = vadd.f32 %v10010_v50, %v540_v48 }
  0xf1   : > { %v1623_v40 = vsel %vm1609_vm3, %v9442_v41, %v8415_v13  ;;  %v1622_v34 = vsel %vm1609_vm3, %v9436_v38, %v8414_v46  ;;  %7021 = vmatmul.mubr.msk.bf16.gmra.mxu0 %vm1931_vm11, %v1878_v43  ;;  %v599_v41 = vadd.f32 %v10010_v50, %v538_v27  ;;  %v8430_v38 = vunpack.i.h.bf16 %v8428_v24 }
  0xf2   : > { %v8423_v52 = vpop.permute.xlu0 %8422  ;;  %v8438_v8 = vpop.permute.xlu1 %8437  ;;  %2079 = vmatprep.mubr.bf16.mxu0 %v9144_v29  ;;  %v1655_v55 = vsel %vm1642_vm4, %v1622_v34, %v8419_v39  ;;  %v1656_v56 = vsel %vm1642_vm4, %v1623_v40, %v8420_v26  ;;  %v824_v30 = vrot.slane %v600_v16, 2  ;;  %v826_v13 = vrot.slane %v601_v5, 2 }
  0xf3   : > { %v8425_v10 = vunpack.i.h.bf16 %v8423_v52  ;;  %v8424_v51 = vunpack.i.l.bf16 %v8423_v52  ;;  %v823_v58 = vrot.slane %v599_v41, 2  ;;  %v8440_v23 = vunpack.i.h.bf16 %v8438_v8 }
  0xf4   : > { %8712 = vrot.lane.b32.xlu0 %v9817_v42, %s9143_s20  ;;  %8727 = vrot.lane.b32.xlu1 %v9997_v21, %s9142_s19  ;;  %v8439_v24 = vunpack.i.l.bf16 %v8438_v8  ;;  %v818_v43 = vrot.slane %v599_v41, 1  ;;  %v819_v40 = vrot.slane %v600_v16, 1  ;;  %v821_v48 = vrot.slane %v601_v5, 1  ;;  %v480_v8 = vld [vmem:[%s9234_s30 + $0x198] sm:$0xff]  ;;  %v481_v5 = vld [vmem:[%s9234_s30 + $0x1a0] sm:$0xff] }
  0xf5   : > { %v1688_v1 = vsel %vm1675_vm5, %v1655_v55, %v8424_v51  ;;  %v1689_v61 = vsel %vm1675_vm5, %v1656_v56, %v8425_v10  ;;  %v10037_v52 = vpack.i.bf16 %v600_v16, %v599_v41  ;;  %v482_v41 = vld [vmem:[%s9234_s30 + $0x1a8] sm:$0x3] }
  0xf6   : > { %v8433_v32 = vpop.permute.xlu0 %8432  ;;  %v8448_v37 = vpop.permute.xlu1 %8447  ;;  %v1721_v42 = vsel %vm1708_vm6, %v1688_v1, %v8429_v54  ;;  %v1722_v57 = vsel %vm1708_vm6, %v1689_v61, %v8430_v38  ;;  %v825_v38 = vsel %vm734_vm1, %v823_v58, %v824_v30  ;;  %v827_v54 = vsel %vm734_vm1, %v824_v30, %v826_v13 }
  0xf7   : > { %v8435_v63 = vunpack.i.h.bf16 %v8433_v32  ;;  %v8434_v62 = vunpack.i.l.bf16 %v8433_v32  ;;  %v8450_v46 = vunpack.i.h.bf16 %v8448_v37  ;;  %v8449_v27 = vunpack.i.l.bf16 %v8448_v37 }
  0xf8   : > { %8722 = vrot.lane.b32.xlu0 %v9828_v49, %s9142_s19  ;;  %8737 = vrot.lane.b32.xlu1 %v9879_v20, %s9139_s16  ;;  %v820_v61 = vsel %vm653_vm0, %v818_v43, %v819_v40  ;;  %v822_v37 = vsel %vm653_vm0, %v819_v40, %v821_v48 }
  0xf9   : > { %v1754_v7 = vsel %vm1741_vm7, %v1721_v42, %v8434_v62  ;;  %v1755_v14 = vsel %vm1741_vm7, %v1722_v57, %v8435_v63  ;;  %v541_v63 = vmul.f32 %v9990_v4, %v480_v8  ;;  %v8761_v13 = vpack.i.bf16 %v822_v37, %v820_v61 }
  0xfa   : > { %v8443_v26 = vpop.permute.xlu0 %8442  ;;  %v8458_v39 = vpop.permute.xlu1 %8457  ;;  %v1787_v49 = vsel %vm1774_vm8, %v1754_v7, %v8439_v24  ;;  %v1788_v20 = vsel %vm1774_vm8, %v1755_v14, %v8440_v23  ;;  %v10055_v24 = vpack.i.bf16 %v827_v54, %v825_v38  ;;  %v542_v7 = vmul.f32 %v9990_v4, %v481_v5 }
  0xfb   : > { %v8445_v34 = vunpack.i.h.bf16 %v8443_v26  ;;  %v8444_v19 = vunpack.i.l.bf16 %v8443_v26  ;;  %v8460_v62 = vunpack.i.h.bf16 %v8458_v39  ;;  %v8459_v58 = vunpack.i.l.bf16 %v8458_v39 }
  0xfc   : > { %8732 = vrot.lane.b32.xlu0 %v9867_v12, %s9137_s14  ;;  %8747 = vrot.lane.b32.xlu1 %v9976_v25, %s9140_s17  ;;  %v543_v14 = vmul.f32 %v9990_v4, %v482_v41  ;;  %v602_v26 = vadd.f32 %v10010_v50, %v541_v63 }
  0xfd   : > { %v1820_v10 = vsel %vm1807_vm9, %v1787_v49, %v8444_v19  ;;  %v1821_v51 = vsel %vm1807_vm9, %v1788_v20, %v8445_v34  ;;  %v603_v34 = vadd.f32 %v10010_v50, %v542_v7 }
  0xfe   : > { %v8453_v55 = vpop.permute.xlu0 %8452  ;;  %v8468_v56 = vpop.permute.xlu1 %8467  ;;  %v1853_v1 = vsel %vm1840_vm10, %v1820_v10, %v8449_v27  ;;  %v1854_v12 = vsel %vm1840_vm10, %v1821_v51, %v8450_v46  ;;  %v604_v19 = vadd.f32 %v10010_v50, %v543_v14  ;;  %v836_v10 = vrot.slane %v602_v26, 2 }
  0xff   : > { %v8455_v16 = vunpack.i.h.bf16 %v8453_v55  ;;  %v8454_v32 = vunpack.i.l.bf16 %v8453_v55  ;;  %v1879_v23 = vpack.c.bf16 %v1854_v12, %v1853_v1  ;;  %v8470_v39 = vunpack.i.h.bf16 %v8468_v56 }
 0x100   : > { %8742 = vrot.lane.b32.xlu0 %v9956_v36, %s9136_s13  ;;  %8757 = vrot.lane.b32.xlu1 %v10037_v52, %s9138_s15  ;;  %v837_v1 = vrot.slane %v603_v34, 2  ;;  %v839_v12 = vrot.slane %v604_v19, 2 }
 0x101   : > { %v1625_v42 = vsel %vm1609_vm3, %v9475_v3, %v8455_v16  ;;  %v1624_v57 = vsel %vm1609_vm3, %v9472_v2, %v8454_v32  ;;  %7022 = vmatmul.mubr.msk.bf16.gmra.mxu0 %vm1931_vm11, %v1879_v23  ;;  %v8469_v3 = vunpack.i.l.bf16 %v8468_v56  ;;  %v831_v32 = vrot.slane %v602_v26, 1 }
 0x102   : > { %v8463_v30 = vpop.permute.xlu0 %8462  ;;  %v8478_v36 = vpop.permute.xlu1 %8477  ;;  %2089 = vmatprep.mubr.bf16.mxu0 %v9144_v29  ;;  %v1657_v43 = vsel %vm1642_vm4, %v1624_v57, %v8459_v58  ;;  %v1658_v2 = vsel %vm1642_vm4, %v1625_v42, %v8460_v62  ;;  %v832_v62 = vrot.slane %v603_v34, 1  ;;  %v834_v58 = vrot.slane %v604_v19, 1 }
 0x103   : > { %v8465_v46 = vunpack.i.h.bf16 %v8463_v30  ;;  %v8464_v27 = vunpack.i.l.bf16 %v8463_v30  ;;  %v8480_v51 = vunpack.i.h.bf16 %v8478_v36  ;;  %v8479_v38 = vunpack.i.l.bf16 %v8478_v36 }
 0x104   : > { %8752 = vrot.lane.b32.xlu0 %v9997_v21, %s9141_s18  ;;  %8767 = vrot.lane.b32.xlu1 %v10055_v24, %s9142_s19  ;;  %v838_v14 = vsel %vm734_vm1, %v836_v10, %v837_v1  ;;  %v840_v30 = vsel %vm734_vm1, %v837_v1, %v839_v12 }
 0x105   : > { %v1690_v4 = vsel %vm1675_vm5, %v1657_v43, %v8464_v27  ;;  %v1691_v40 = vsel %vm1675_vm5, %v1658_v2, %v8465_v46 }
 0x106   : > { %v8473_v48 = vpop.permute.xlu0 %8472  ;;  %v8488_v49 = vpop.permute.xlu1 %8487  ;;  %v1723_v54 = vsel %vm1708_vm6, %v1690_v4, %v8469_v3  ;;  %v1724_v55 = vsel %vm1708_vm6, %v1691_v40, %v8470_v39  ;;  %v8806_v40 = vpack.i.bf16 %v840_v30, %v838_v14 }
 0x107   : > { %v8475_v20 = vunpack.i.h.bf16 %v8473_v48  ;;  %v8474_v8 = vunpack.i.l.bf16 %v8473_v48  ;;  %v8490_v61 = vunpack.i.h.bf16 %v8488_v49  ;;  %v8489_v5 = vunpack.i.l.bf16 %v8488_v49 }
 0x108   : > { %8762 = vrot.lane.b32.xlu0 %v8761_v13, %s9143_s20  ;;  %8777 = vrot.lane.b32.xlu1 %v9997_v21, %s9139_s16  ;;  %v8796_v21 = vpack.i.bf16 %v603_v34, %v602_v26 }
 0x109   : > { %v1756_v56 = vsel %vm1741_vm7, %v1723_v54, %v8474_v8  ;;  %v1757_v50 = vsel %vm1741_vm7, %v1724_v55, %v8475_v20 }
 0x10a   : > { %v8483_v41 = vpop.permute.xlu0 %8482  ;;  %v8498_v16 = vpop.permute.xlu1 %8497  ;;  %v1789_v23 = vsel %vm1774_vm8, %v1756_v56, %v8479_v38  ;;  %v1790_v42 = vsel %vm1774_vm8, %v1757_v50, %v8480_v51 }
 0x10b   : > { %v8485_v37 = vunpack.i.h.bf16 %v8483_v41  ;;  %v8484_v63 = vunpack.i.l.bf16 %v8483_v41  ;;  %v8500_v26 = vunpack.i.h.bf16 %v8498_v16  ;;  %v8499_v2 = vunpack.i.l.bf16 %v8498_v16 }
 0x10c   : > { %8772 = vrot.lane.b32.xlu0 %v9976_v25, %s9137_s14  ;;  %8787 = vrot.lane.b32.xlu1 %v8761_v13, %s9140_s17  ;;  %v833_v25 = vsel %vm653_vm0, %v831_v32, %v832_v62  ;;  %v835_v13 = vsel %vm653_vm0, %v832_v62, %v834_v58  ;;  %s14058_s14 = scalar_lea.vmem %s14230_s12, %s7178_s28 }
 0x10d   : > { %v1822_v57 = vsel %vm1807_vm9, %v1789_v23, %v8484_v63  ;;  %v1823_v7 = vsel %vm1807_vm9, %v1790_v42, %v8485_v37  ;;  %v8801_v10 = vpack.i.bf16 %v835_v13, %v833_v25 }
 0x10e   : > { %v8493_v36 = vpop.permute.xlu0 %8492  ;;  %v8508_v46 = vpop.permute.xlu1 %8507  ;;  %v1855_v27 = vsel %vm1840_vm10, %v1822_v57, %v8489_v5  ;;  %v1856_v39 = vsel %vm1840_vm10, %v1823_v7, %v8490_v61 }
 0x10f   : > { %v8495_v3 = vunpack.i.h.bf16 %v8493_v36  ;;  %v8494_v43 = vunpack.i.l.bf16 %v8493_v36  ;;  %v1880_v4 = vpack.c.bf16 %v1856_v39, %v1855_v27  ;;  %v8509_v51 = vunpack.i.l.bf16 %v8508_v46 }
 0x110   : > { %8782 = vrot.lane.b32.xlu0 %v10037_v52, %s9136_s13  ;;  %8797 = vrot.lane.b32.xlu1 %v8796_v21, %s9138_s15  ;;  %v8510_v52 = vunpack.i.h.bf16 %v8508_v46 }
 0x111   : > { %v1627_v34 = vsel %vm1609_vm3, %v9506_v35, %v8495_v3  ;;  %v1626_v19 = vsel %vm1609_vm3, %v9498_v28, %v8494_v43  ;;  %7023 = vmatmul.mubr.msk.bf16.gmra.mxu0 %vm1931_vm11, %v1880_v4 }
 0x112   : > { %v8503_v48 = vpop.permute.xlu0 %8502  ;;  %v8518_v49 = vpop.permute.xlu1 %8517  ;;  %2099 = vmatprep.mubr.bf16.mxu0 %v9144_v29  ;;  %v1659_v38 = vsel %vm1642_vm4, %v1626_v19, %v8499_v2  ;;  %v1660_v54 = vsel %vm1642_vm4, %v1627_v34, %v8500_v26 }
 0x113   : > { %v8505_v20 = vunpack.i.h.bf16 %v8503_v48  ;;  %v8504_v8 = vunpack.i.l.bf16 %v8503_v48  ;;  %v8520_v12 = vunpack.i.h.bf16 %v8518_v49  ;;  %v8519_v61 = vunpack.i.l.bf16 %v8518_v49 }
 0x114   : > { %8792 = vrot.lane.b32.xlu0 %v10055_v24, %s9141_s18  ;;  %8807 = vrot.lane.b32.xlu1 %v8806_v40, %s9142_s19  ;;  %s422_s18 = scalar_lea.vmem %s14225_s7, %s14642_s22 }
 0x115   : > { %v1692_v28 = vsel %vm1675_vm5, %v1659_v38, %v8504_v8  ;;  %v1693_v35 = vsel %vm1675_vm5, %v1660_v54, %v8505_v20 }
 0x116   : > { %v8513_v55 = vpop.permute.xlu0 %8512  ;;  %v8528_v56 = vpop.permute.xlu1 %8527  ;;  %v1725_v5 = vsel %vm1708_vm6, %v1692_v28, %v8509_v51  ;;  %v1726_v41 = vsel %vm1708_vm6, %v1693_v35, %v8510_v52 }
 0x117   : > { %v8515_v50 = vunpack.i.h.bf16 %v8513_v55  ;;  %v8514_v1 = vunpack.i.l.bf16 %v8513_v55  ;;  %v8530_v32 = vunpack.i.h.bf16 %v8528_v56  ;;  %v8529_v37 = vunpack.i.l.bf16 %v8528_v56 }
 0x118   : > { %8802 = vrot.lane.b32.xlu0 %v8801_v10, %s9143_s20 }
 0x119   : > { %v1758_v24 = vsel %vm1741_vm7, %v1725_v5, %v8514_v1  ;;  %v1759_v16 = vsel %vm1741_vm7, %v1726_v41, %v8515_v50 }
 0x11a   : > { %v8523_v63 = vpop.permute.xlu0 %8522  ;;  %v8538_v62 = vpop.permute.xlu1 %8537  ;;  %v1791_v42 = vsel %vm1774_vm8, %v1758_v24, %v8519_v61  ;;  %v1792_v21 = vsel %vm1774_vm8, %v1759_v16, %v8520_v12 }
 0x11b   : > { %v8525_v58 = vunpack.i.h.bf16 %v8523_v63  ;;  %v8524_v23 = vunpack.i.l.bf16 %v8523_v63  ;;  %v8540_v3 = vunpack.i.h.bf16 %v8538_v62  ;;  %v8539_v43 = vunpack.i.l.bf16 %v8538_v62 }
 0x11d   : > { %v1824_v57 = vsel %vm1807_vm9, %v1791_v42, %v8524_v23  ;;  %v1825_v7 = vsel %vm1807_vm9, %v1792_v21, %v8525_v58 }
 0x11e   : > { %v8533_v14 = vpop.permute.xlu0 %8532  ;;  %v8548_v30 = vpop.permute.xlu1 %8547  ;;  %v1857_v36 = vsel %vm1840_vm10, %v1824_v57, %v8529_v37  ;;  %v1858_v46 = vsel %vm1840_vm10, %v1825_v7, %v8530_v32 }
 0x11f   : > { %v8535_v27 = vunpack.i.h.bf16 %v8533_v14  ;;  %v8534_v39 = vunpack.i.l.bf16 %v8533_v14  ;;  %v1881_v25 = vpack.c.bf16 %v1858_v46, %v1857_v36  ;;  %v8550_v19 = vunpack.i.h.bf16 %v8548_v30 }
 0x120   : > { %v8549_v48 = vunpack.i.l.bf16 %v8548_v30 }
 0x121   : > { %v1629_v13 = vsel %vm1609_vm3, %v9552_v60, %v8535_v27  ;;  %v1628_v26 = vsel %vm1609_vm3, %v9549_v59, %v8534_v39  ;;  %7024 = vmatmul.mubr.msk.bf16.gmra.mxu0 %vm1931_vm11, %v1881_v25 }
 0x122   : > { %v8543_v2 = vpop.permute.xlu0 %8542  ;;  %v8558_v4 = vpop.permute.xlu1 %8557  ;;  %2109 = vmatprep.mubr.bf16.mxu0 %v9144_v29  ;;  %v1661_v49 = vsel %vm1642_vm4, %v1628_v26, %v8539_v43  ;;  %v1662_v20 = vsel %vm1642_vm4, %v1629_v13, %v8540_v3 }
 0x123   : > { %v8545_v40 = vunpack.i.h.bf16 %v8543_v2  ;;  %v8544_v34 = vunpack.i.l.bf16 %v8543_v2  ;;  %v8560_v38 = vunpack.i.h.bf16 %v8558_v4  ;;  %v8559_v54 = vunpack.i.l.bf16 %v8558_v4 }
 0x125   : > { %v1694_v8 = vsel %vm1675_vm5, %v1661_v49, %v8544_v34  ;;  %v1695_v60 = vsel %vm1675_vm5, %v1662_v20, %v8545_v40 }
 0x126   : > { %v8553_v10 = vpop.permute.xlu0 %8552  ;;  %v8568_v59 = vpop.permute.xlu1 %8567  ;;  %v1727_v28 = vsel %vm1708_vm6, %v1694_v8, %v8549_v48  ;;  %v1728_v35 = vsel %vm1708_vm6, %v1695_v60, %v8550_v19 }
 0x127   : > { %v8555_v52 = vunpack.i.h.bf16 %v8553_v10  ;;  %v8554_v51 = vunpack.i.l.bf16 %v8553_v10  ;;  %v8570_v50 = vunpack.i.h.bf16 %v8568_v59  ;;  %v8569_v1 = vunpack.i.l.bf16 %v8568_v59 }
 0x129   : > { %v1760_v55 = vsel %vm1741_vm7, %v1727_v28, %v8554_v51  ;;  %v1761_v56 = vsel %vm1741_vm7, %v1728_v35, %v8555_v52 }
 0x12a   : > { %v8563_v12 = vpop.permute.xlu0 %8562  ;;  %v8578_v61 = vpop.permute.xlu1 %8577  ;;  %v1793_v24 = vsel %vm1774_vm8, %v1760_v55, %v8559_v54  ;;  %v1794_v16 = vsel %vm1774_vm8, %v1761_v56, %v8560_v38 }
 0x12b   : > { %v8565_v5 = vunpack.i.h.bf16 %v8563_v12  ;;  %v8564_v41 = vunpack.i.l.bf16 %v8563_v12  ;;  %v8580_v30 = vunpack.i.h.bf16 %v8578_v61  ;;  %v8579_v36 = vunpack.i.l.bf16 %v8578_v61 }
 0x12d   : > { %v1826_v32 = vsel %vm1807_vm9, %v1793_v24, %v8564_v41  ;;  %v1827_v37 = vsel %vm1807_vm9, %v1794_v16, %v8565_v5  ;;  %v1635_v13 = vsel %vm1609_vm3, %v9696_v15, %v8580_v30  ;;  %v1634_v26 = vsel %vm1609_vm3, %v9693_v18, %v8579_v36 }
 0x12e   : > { %v8573_v63 = vpop.permute.xlu0 %8572  ;;  %v8588_v62 = vpop.permute.xlu1 %8587  ;;  %v1859_v58 = vsel %vm1840_vm10, %v1826_v32, %v8569_v1  ;;  %v1860_v23 = vsel %vm1840_vm10, %v1827_v37, %v8570_v50 }
 0x12f   : > { %v1882_v42 = vpack.c.bf16 %v1860_v23, %v1859_v58  ;;  %v8575_v39 = vunpack.i.h.bf16 %v8573_v63  ;;  %v8574_v3 = vunpack.i.l.bf16 %v8573_v63  ;;  %v8590_v43 = vunpack.i.h.bf16 %v8588_v62 }
 0x130   : > { %v8589_v25 = vunpack.i.l.bf16 %v8588_v62 }
 0x131   : > { %7025 = vmatmul.mubr.msk.bf16.gmra.mxu0 %vm1931_vm11, %v1882_v42  ;;  %v1631_v8 = vsel %vm1609_vm3, %v9592_v45, %v8575_v39  ;;  %v1630_v60 = vsel %vm1609_vm3, %v9580_v33, %v8574_v3  ;;  %v1668_v18 = vsel %vm1642_vm4, %v1635_v13, %v8590_v43 }
 0x132   : > { %v8583_v21 = vpop.permute.xlu0 %8582  ;;  %v8598_v57 = vpop.permute.xlu1 %8597  ;;  %2119 = vmatprep.mubr.bf16.mxu0 %v9144_v29  ;;  %v1667_v15 = vsel %vm1642_vm4, %v1634_v26, %v8589_v25 }
 0x133   : > { %v8585_v2 = vunpack.i.h.bf16 %v8583_v21  ;;  %v8584_v4 = vunpack.i.l.bf16 %v8583_v21  ;;  %v8600_v19 = vunpack.i.h.bf16 %v8598_v57  ;;  %v8599_v48 = vunpack.i.l.bf16 %v8598_v57 }
 0x135   : > { %v1663_v38 = vsel %vm1642_vm4, %v1630_v60, %v8584_v4  ;;  %v1664_v54 = vsel %vm1642_vm4, %v1631_v8, %v8585_v2  ;;  %v1700_v45 = vsel %vm1675_vm5, %v1667_v15, %v8599_v48  ;;  %v1701_v33 = vsel %vm1675_vm5, %v1668_v18, %v8600_v19 }
 0x136   : > { %v8593_v7 = vpop.permute.xlu0 %8592  ;;  %v8608_v14 = vpop.permute.xlu1 %8607 }
 0x137   : > { %v8595_v49 = vunpack.i.h.bf16 %v8593_v7  ;;  %v8594_v20 = vunpack.i.l.bf16 %v8593_v7  ;;  %v8610_v10 = vunpack.i.h.bf16 %v8608_v14  ;;  %v8609_v59 = vunpack.i.l.bf16 %v8608_v14 }
 0x139   : > { %v1696_v50 = vsel %vm1675_vm5, %v1663_v38, %v8594_v20  ;;  %v1697_v1 = vsel %vm1675_vm5, %v1664_v54, %v8595_v49  ;;  %v1733_v12 = vsel %vm1708_vm6, %v1700_v45, %v8609_v59  ;;  %v1734_v61 = vsel %vm1708_vm6, %v1701_v33, %v8610_v10 }
 0x13a   : > { %v8603_v46 = vpop.permute.xlu0 %8602  ;;  %v8618_v27 = vpop.permute.xlu1 %8617 }
 0x13b   : > { %v8620_v52 = vunpack.i.h.bf16 %v8618_v27  ;;  %v8619_v51 = vunpack.i.l.bf16 %v8618_v27  ;;  %v8605_v24 = vunpack.i.h.bf16 %v8603_v46  ;;  %v8604_v16 = vunpack.i.l.bf16 %v8603_v46 }
 0x13d   : > { %v1766_v32 = vsel %vm1741_vm7, %v1733_v12, %v8619_v51  ;;  %v1767_v37 = vsel %vm1741_vm7, %v1734_v61, %v8620_v52  ;;  %v1729_v3 = vsel %vm1708_vm6, %v1696_v50, %v8604_v16  ;;  %v1730_v43 = vsel %vm1708_vm6, %v1697_v1, %v8605_v24 }
 0x13e   : > { %v8613_v40 = vpop.permute.xlu0 %8612  ;;  %v8628_v34 = vpop.permute.xlu1 %8627 }
 0x13f   : > { %v8630_v28 = vunpack.i.h.bf16 %v8628_v34  ;;  %v8629_v35 = vunpack.i.l.bf16 %v8628_v34  ;;  %v8615_v63 = vunpack.i.h.bf16 %v8613_v40  ;;  %v8614_v62 = vunpack.i.l.bf16 %v8613_v40 }
 0x141   : > { %v1799_v58 = vsel %vm1774_vm8, %v1766_v32, %v8629_v35  ;;  %v1800_v23 = vsel %vm1774_vm8, %v1767_v37, %v8630_v28  ;;  %v1762_v26 = vsel %vm1741_vm7, %v1729_v3, %v8614_v62  ;;  %v1763_v2 = vsel %vm1741_vm7, %v1730_v43, %v8615_v63 }
 0x142   : > { %v8623_v55 = vpop.permute.xlu0 %8622  ;;  %v8638_v56 = vpop.permute.xlu1 %8637 }
 0x143   : > { %v8640_v5 = vunpack.i.h.bf16 %v8638_v56  ;;  %v8639_v41 = vunpack.i.l.bf16 %v8638_v56  ;;  %v8625_v57 = vunpack.i.h.bf16 %v8623_v55  ;;  %v8624_v7 = vunpack.i.l.bf16 %v8623_v55 }
 0x145   : > { %v1832_v36 = vsel %vm1807_vm9, %v1799_v58, %v8639_v41  ;;  %v1833_v46 = vsel %vm1807_vm9, %v1800_v23, %v8640_v5  ;;  %v1795_v19 = vsel %vm1774_vm8, %v1762_v26, %v8624_v7  ;;  %v1796_v48 = vsel %vm1774_vm8, %v1763_v2, %v8625_v57 }
 0x146   : > { %v8633_v42 = vpop.permute.xlu0 %8632  ;;  %v8648_v21 = vpop.permute.xlu1 %8647 }
 0x147   : > { %v8650_v14 = vunpack.i.h.bf16 %v8648_v21  ;;  %v8649_v30 = vunpack.i.l.bf16 %v8648_v21  ;;  %v8635_v27 = vunpack.i.h.bf16 %v8633_v42  ;;  %v8634_v39 = vunpack.i.l.bf16 %v8633_v42 }
 0x149   : > { %v1865_v25 = vsel %vm1840_vm10, %v1832_v36, %v8649_v30  ;;  %v1866_v13 = vsel %vm1840_vm10, %v1833_v46, %v8650_v14  ;;  %v1828_v8 = vsel %vm1807_vm9, %v1795_v19, %v8634_v39  ;;  %v1829_v60 = vsel %vm1807_vm9, %v1796_v48, %v8635_v27 }
 0x14a   : > { %v1885_v4 = vpack.c.bf16 %v1866_v13, %v1865_v25  ;;  %v8643_v40 = vpop.permute.xlu0 %8642  ;;  %v8658_v34 = vpop.permute.xlu1 %8657 }
 0x14b   : > { %v8645_v49 = vunpack.i.h.bf16 %v8643_v40  ;;  %v8644_v20 = vunpack.i.l.bf16 %v8643_v40  ;;  %v8660_v35 = vunpack.i.h.bf16 %v8658_v34  ;;  %v8659_v55 = vunpack.i.l.bf16 %v8658_v34 }
 0x14c   : > { %7028 = vmatmul.mubr.msk.bf16.vlgmr.msra.gmra.mxu1 %vm1931_vm11, %v1885_v4 }
 0x14d   : > { %v1861_v10 = vsel %vm1840_vm10, %v1828_v8, %v8644_v20  ;;  %v1862_v59 = vsel %vm1840_vm10, %v1829_v60, %v8645_v49  ;;  %2149 = vmatprep.mubr.bf16.mxu1 %v9144_v29  ;;  %v1637_v41 = vsel %vm1609_vm3, %v9757_v17, %v8660_v35  ;;  %v1636_v24 = vsel %vm1609_vm3, %v9754_v0, %v8659_v55 }
 0x14e   : > { %v8653_v15 = vpop.permute.xlu0 %8652  ;;  %v8668_v18 = vpop.permute.xlu1 %8667  ;;  %v1883_v52 = vpack.c.bf16 %v1862_v59, %v1861_v10 }
 0x14f   : > { %v8655_v33 = vunpack.i.h.bf16 %v8653_v15  ;;  %v8654_v50 = vunpack.i.l.bf16 %v8653_v15  ;;  %v8670_v1 = vunpack.i.h.bf16 %v8668_v18  ;;  %v8669_v12 = vunpack.i.l.bf16 %v8668_v18 }
 0x150   : > { %7026 = vmatmul.mubr.msk.bf16.gmra.mxu0 %vm1931_vm11, %v1883_v52 }
 0x151   : > { %2129 = vmatprep.mubr.bf16.mxu0 %v9144_v29  ;;  %v1633_v62 = vsel %vm1609_vm3, %v9647_v9, %v8655_v33  ;;  %v1632_v23 = vsel %vm1609_vm3, %v9642_v6, %v8654_v50  ;;  %v1669_v7 = vsel %vm1642_vm4, %v1636_v24, %v8669_v12  ;;  %v1670_v17 = vsel %vm1642_vm4, %v1637_v41, %v8670_v1 }
 0x152   : > { %v8663_v51 = vpop.permute.xlu0 %8662  ;;  %v8678_v38 = vpop.permute.xlu1 %8677 }
 0x153   : > { %v8665_v61 = vunpack.i.h.bf16 %v8663_v51  ;;  %v8664_v5 = vunpack.i.l.bf16 %v8663_v51  ;;  %v8680_v16 = vunpack.i.h.bf16 %v8678_v38  ;;  %v8679_v32 = vunpack.i.l.bf16 %v8678_v38 }
 0x155   : > { %v1665_v0 = vsel %vm1642_vm4, %v1632_v23, %v8664_v5  ;;  %v1666_v14 = vsel %vm1642_vm4, %v1633_v62, %v8665_v61  ;;  %v1702_v30 = vsel %vm1675_vm5, %v1669_v7, %v8679_v32  ;;  %v1703_v36 = vsel %vm1675_vm5, %v1670_v17, %v8680_v16 }
 0x156   : > { %v8673_v54 = vpop.permute.xlu0 %8672  ;;  %v8688_v28 = vpop.permute.xlu1 %8687 }
 0x157   : > { %v8674_v58 = vunpack.i.l.bf16 %v8673_v54  ;;  %v8675_v42 = vunpack.i.h.bf16 %v8673_v54  ;;  %v8690_v21 = vunpack.i.h.bf16 %v8688_v28  ;;  %v8689_v57 = vunpack.i.l.bf16 %v8688_v28 }
 0x159   : > { %v1698_v39 = vsel %vm1675_vm5, %v1665_v0, %v8674_v58  ;;  %v1699_v26 = vsel %vm1675_vm5, %v1666_v14, %v8675_v42  ;;  %v1735_v2 = vsel %vm1708_vm6, %v1702_v30, %v8689_v57  ;;  %v1736_v4 = vsel %vm1708_vm6, %v1703_v36, %v8690_v21 }
 0x15a   : > { %v8683_v56 = vpop.permute.xlu0 %8682  ;;  %v8698_v45 = vpop.permute.xlu1 %8697 }
 0x15b   : > { %v8700_v9 = vunpack.i.h.bf16 %v8698_v45  ;;  %v8699_v46 = vunpack.i.l.bf16 %v8698_v45  ;;  %v8684_v3 = vunpack.i.l.bf16 %v8683_v56  ;;  %v8685_v40 = vunpack.i.h.bf16 %v8683_v56 }
 0x15d   : > { %v1768_v8 = vsel %vm1741_vm7, %v1735_v2, %v8699_v46  ;;  %v1769_v60 = vsel %vm1741_vm7, %v1736_v4, %v8700_v9  ;;  %v1731_v18 = vsel %vm1708_vm6, %v1698_v39, %v8684_v3  ;;  %v1732_v45 = vsel %vm1708_vm6, %v1699_v26, %v8685_v40 }
 0x15e   : > { %v8693_v37 = vpop.permute.xlu0 %8692  ;;  %v8708_v63 = vpop.permute.xlu1 %8707 }
 0x15f   : > { %v8710_v43 = vunpack.i.h.bf16 %v8708_v63  ;;  %v8709_v25 = vunpack.i.l.bf16 %v8708_v63  ;;  %v8694_v19 = vunpack.i.l.bf16 %v8693_v37  ;;  %v8695_v10 = vunpack.i.h.bf16 %v8693_v37 }
 0x161   : > { %v10199_v27 = vpop.f32.mrf.mxu0  ;;  %v1801_v52 = vsel %vm1774_vm8, %v1768_v8, %v8709_v25  ;;  %v1802_v51 = vsel %vm1774_vm8, %v1769_v60, %v8710_v43  ;;  %v1764_v33 = vsel %vm1741_vm7, %v1731_v18, %v8694_v19  ;;  %v1765_v12 = vsel %vm1741_vm7, %v1732_v45, %v8695_v10 }
 0x162   : > { %v8703_v6 = vpop.permute.xlu0 %8702  ;;  %v8718_v13 = vpop.permute.xlu1 %8717 }
 0x163   : > { %v2023_v34 = vpop.f32.mrf.mxu0  ;;  %v8720_v48 = vunpack.i.h.bf16 %v8718_v13  ;;  %v8719_v49 = vunpack.i.l.bf16 %v8718_v13  ;;  %v8704_v59 = vunpack.i.l.bf16 %v8703_v6  ;;  %v8705_v38 = vunpack.i.h.bf16 %v8703_v6 }
 0x164   : > { %v10206_v20 = vadd.f32 %v2023_v34, %v9949_v44 }
 0x165   : > { %v1834_v50 = vsel %vm1807_vm9, %v1801_v52, %v8719_v49  ;;  %v1835_v1 = vsel %vm1807_vm9, %v1802_v51, %v8720_v48  ;;  %v1797_v61 = vsel %vm1774_vm8, %v1764_v33, %v8704_v59  ;;  %v1798_v16 = vsel %vm1774_vm8, %v1765_v12, %v8705_v38  ;;  %v10222_v58 = vpop.f32.mrf.mxu0 }
 0x166   : > { %14337 = vst [vmem:[#allocation2_spill] sm:$0xff] %v10206_v20  ;;  %v8713_v15 = vpop.permute.xlu0 %8712  ;;  %v8728_v54 = vpop.permute.xlu1 %8727 }
 0x167   : > { %v8715_v28 = vunpack.i.h.bf16 %v8713_v15  ;;  %v8714_v35 = vunpack.i.l.bf16 %v8713_v15  ;;  %v8730_v55 = vunpack.i.h.bf16 %v8728_v54  ;;  %v8729_v56 = vunpack.i.l.bf16 %v8728_v54  ;;  %v10230_v36 = vpop.f32.mrf.mxu0 }
 0x169   : > { %v1867_v5 = vsel %vm1840_vm10, %v1834_v50, %v8729_v56  ;;  %v1868_v41 = vsel %vm1840_vm10, %v1835_v1, %v8730_v55  ;;  %v1830_v23 = vsel %vm1807_vm9, %v1797_v61, %v8714_v35  ;;  %v1831_v42 = vsel %vm1807_vm9, %v1798_v16, %v8715_v28 }
 0x16a   : > { %v8723_v24 = vpop.permute.xlu0 %8722  ;;  %v1886_v32 = vpack.c.bf16 %v1868_v41, %v1867_v5  ;;  %v8738_v62 = vpop.permute.xlu1 %8737 }
 0x16b   : > { %v8725_v37 = vunpack.i.h.bf16 %v8723_v24  ;;  %v8724_v63 = vunpack.i.l.bf16 %v8723_v24  ;;  %v8740_v9 = vunpack.i.h.bf16 %v8738_v62  ;;  %v8739_v46 = vunpack.i.l.bf16 %v8738_v62 }
 0x16c   : > { %7029 = vmatmul.mubr.msk.bf16.gmra.mxu1 %vm1931_vm11, %v1886_v32 }
 0x16d   : > { %v1863_v21 = vsel %vm1840_vm10, %v1830_v23, %v8724_v63  ;;  %v1864_v57 = vsel %vm1840_vm10, %v1831_v42, %v8725_v37  ;;  %2159 = vmatprep.mubr.bf16.mxu1 %v9144_v29 }
 0x16e   : > { %v1884_v7 = vpack.c.bf16 %v1864_v57, %v1863_v21  ;;  %v8733_v17 = vpop.permute.xlu0 %8732  ;;  %v8748_v30 = vpop.permute.xlu1 %8747 }
 0x16f   : > { %v8735_v0 = vunpack.i.h.bf16 %v8733_v17  ;;  %v8734_v14 = vunpack.i.l.bf16 %v8733_v17  ;;  %v8750_v40 = vunpack.i.h.bf16 %v8748_v30  ;;  %v8749_v34 = vunpack.i.l.bf16 %v8748_v30 }
 0x170   : > { %7027 = vmatmul.mubr.msk.bf16.gmra.mxu0 %vm1931_vm11, %v1884_v7 }
 0x171   : > { %v1639_v6 = vsel %vm1609_vm3, %v9824_v47, %v8735_v0  ;;  %v1638_v39 = vsel %vm1609_vm3, %v9811_v31, %v8734_v14  ;;  %v10237_v3 = vpop.f32.mrf.mxu0 }
 0x172   : > { %v8743_v43 = vpop.permute.xlu0 %8742  ;;  %v8758_v26 = vpop.permute.xlu1 %8757  ;;  %v1671_v2 = vsel %vm1642_vm4, %v1638_v39, %v8739_v46  ;;  %v1672_v4 = vsel %vm1642_vm4, %v1639_v6, %v8740_v9 }
 0x173   : > { %v8745_v25 = vunpack.i.h.bf16 %v8743_v43  ;;  %v8744_v13 = vunpack.i.l.bf16 %v8743_v43  ;;  %v2033_v19 = vpop.f32.mrf.mxu0  ;;  %v8760_v18 = vunpack.i.h.bf16 %v8758_v26  ;;  %v8759_v52 = vunpack.i.l.bf16 %v8758_v26 }
 0x174   : > { %v10244_v49 = vadd.f32 %v2033_v19, %v9949_v44 }
 0x175   : > { %v1704_v48 = vsel %vm1675_vm5, %v1671_v2, %v8744_v13  ;;  %v1705_v47 = vsel %vm1675_vm5, %v1672_v4, %v8745_v25  ;;  %v10250_v33 = vpop.f32.mrf.mxu0 }
 0x176   : > { %14338 = vst [vmem:[#allocation3_spill] sm:$0xff] %v10244_v49  ;;  %v8753_v31 = vpop.permute.xlu0 %8752  ;;  %v8768_v10 = vpop.permute.xlu1 %8767  ;;  %v1737_v59 = vsel %vm1708_vm6, %v1704_v48, %v8749_v34  ;;  %v1738_v15 = vsel %vm1708_vm6, %v1705_v47, %v8750_v40 }
 0x177   : > { %v8755_v8 = vunpack.i.h.bf16 %v8753_v31  ;;  %v8754_v60 = vunpack.i.l.bf16 %v8753_v31  ;;  %v8770_v28 = vunpack.i.h.bf16 %v8768_v10  ;;  %v8769_v35 = vunpack.i.l.bf16 %v8768_v10  ;;  %v10258_v62 = vpop.f32.mrf.mxu0 }
 0x179   : > { %v1770_v51 = vsel %vm1741_vm7, %v1737_v59, %v8754_v60  ;;  %v1771_v38 = vsel %vm1741_vm7, %v1738_v15, %v8755_v8 }
 0x17a   : > { %v8763_v54 = vpop.permute.xlu0 %8762  ;;  %v8778_v45 = vpop.permute.xlu1 %8777  ;;  %v1803_v50 = vsel %vm1774_vm8, %v1770_v51, %v8759_v52  ;;  %v1804_v1 = vsel %vm1774_vm8, %v1771_v38, %v8760_v18 }
 0x17b   : > { %v8765_v55 = vunpack.i.h.bf16 %v8763_v54  ;;  %v8764_v56 = vunpack.i.l.bf16 %v8763_v54  ;;  %v8780_v23 = vunpack.i.h.bf16 %v8778_v45  ;;  %v8779_v42 = vunpack.i.l.bf16 %v8778_v45 }
 0x17d   : > { %v1836_v12 = vsel %vm1807_vm9, %v1803_v50, %v8764_v56  ;;  %v1837_v61 = vsel %vm1807_vm9, %v1804_v1, %v8765_v55 }
 0x17e   : > { %v1869_v5 = vsel %vm1840_vm10, %v1836_v12, %v8769_v35  ;;  %v1870_v41 = vsel %vm1840_vm10, %v1837_v61, %v8770_v28  ;;  %v8773_v24 = vpop.permute.xlu0 %8772  ;;  %v8788_v63 = vpop.permute.xlu1 %8787 }
 0x17f   : > { %v1887_v16 = vpack.c.bf16 %v1870_v41, %v1869_v5  ;;  %v8775_v32 = vunpack.i.h.bf16 %v8773_v24  ;;  %v8774_v37 = vunpack.i.l.bf16 %v8773_v24  ;;  %v8790_v6 = vunpack.i.h.bf16 %v8788_v63 }
 0x180   : > { %v8789_v39 = vunpack.i.l.bf16 %v8788_v63 }
 0x181   : > { %v1641_v21 = vsel %vm1609_vm3, %v9929_v53, %v8775_v32  ;;  %v1640_v57 = vsel %vm1609_vm3, %v9920_v11, %v8774_v37  ;;  %7030 = vmatmul.mubr.msk.bf16.gmra.mxu1 %vm1931_vm11, %v1887_v16  ;;  %v10265_v7 = vpop.f32.mrf.mxu0 }
 0x182   : > { %v8783_v17 = vpop.permute.xlu0 %8782  ;;  %2169 = vmatprep.mubr.bf16.mxu1 %v9144_v29  ;;  %v8798_v30 = vpop.permute.xlu1 %8797  ;;  %v1673_v9 = vsel %vm1642_vm4, %v1640_v57, %v8779_v42  ;;  %v1674_v46 = vsel %vm1642_vm4, %v1641_v21, %v8780_v23 }
 0x183   : > { %v8785_v0 = vunpack.i.h.bf16 %v8783_v17  ;;  %v8784_v14 = vunpack.i.l.bf16 %v8783_v17  ;;  %v2043_v53 = vpop.f32.mrf.mxu0  ;;  %v8800_v34 = vunpack.i.h.bf16 %v8798_v30  ;;  %v8799_v19 = vunpack.i.l.bf16 %v8798_v30 }
 0x184   : > { %v10273_v25 = vadd.f32 %v2043_v53, %v9949_v44 }
 0x185   : > { %v1706_v43 = vsel %vm1675_vm5, %v1673_v9, %v8784_v14  ;;  %v1707_v11 = vsel %vm1675_vm5, %v1674_v46, %v8785_v0  ;;  %v10279_v15 = vpop.f32.mrf.mxu0 }
 0x186   : > { %14339 = vst [vmem:[#allocation4_spill] sm:$0xff] %v10273_v25  ;;  %v8793_v13 = vpop.permute.xlu0 %8792  ;;  %v8808_v2 = vpop.permute.xlu1 %8807  ;;  %v1739_v4 = vsel %vm1708_vm6, %v1706_v43, %v8789_v39  ;;  %v1740_v40 = vsel %vm1708_vm6, %v1707_v11, %v8790_v6 }
 0x187   : > { %v8795_v26 = vunpack.i.h.bf16 %v8793_v13  ;;  %v8794_v29 = vunpack.i.l.bf16 %v8793_v13  ;;  %v8810_v8 = vunpack.i.h.bf16 %v8808_v2  ;;  %v8809_v60 = vunpack.i.l.bf16 %v8808_v2  ;;  %v2047_v55 = vpop.f32.mrf.mxu0 }
 0x189   : > { %v1772_v48 = vsel %vm1741_vm7, %v1739_v4, %v8794_v29  ;;  %v1773_v47 = vsel %vm1741_vm7, %v1740_v40, %v8795_v26  ;;  %v10339_v40 = vadd.f32 %v10230_v36, %v9949_v44 }
 0x18a   : > { %v8803_v31 = vpop.permute.xlu0 %8802  ;;  %v1805_v18 = vsel %vm1774_vm8, %v1772_v48, %v8799_v19  ;;  %v1806_v52 = vsel %vm1774_vm8, %v1773_v47, %v8800_v34  ;;  %v1898_v34 = vsub.s32 0, %v9922_v22 }
 0x18b   : > { %v8805_v10 = vunpack.i.h.bf16 %v8803_v31  ;;  %v8804_v59 = vunpack.i.l.bf16 %v8803_v31  ;;  %14347 = vst [vmem:[#allocation12_spill] sm:$0xff] %v10339_v40  ;;  %v2387_v47 = vadd.f32 %v10339_v40, %v10206_v20  ;;  %v10350_v31 = vadd.f32 %v10258_v62, %v9949_v44 }
 0x18d   : > { %v1838_v51 = vsel %vm1807_vm9, %v1805_v18, %v8804_v59  ;;  %v1839_v38 = vsel %vm1807_vm9, %v1806_v52, %v8805_v10  ;;  %14348 = vst [vmem:[#allocation13_spill] sm:$0xff] %v10350_v31  ;;  %v2388_v22 = vadd.f32 %v2387_v47, %v10244_v49 }
 0x18e   : > { %v1871_v54 = vsel %vm1840_vm10, %v1838_v51, %v8809_v60  ;;  %v1872_v28 = vsel %vm1840_vm10, %v1839_v38, %v8810_v8  ;;  %v9127_v8 = vld [vmem:[%s14222_s4] sm:$0x3]  ;;  %v10369_v51 = vadd.f32 %v2047_v55, %v9949_v44 }
 0x18f   : > { %v1888_v35 = vpack.c.bf16 %v1872_v28, %v1871_v54  ;;  %v10355_v60 = vrot.slane %v9127_v8, %v1898_v34  ;;  %v2389_v62 = vadd.f32 %v2388_v22, %v10350_v31 }
 0x190   : > { %14350 = vst [vmem:[#allocation15_spill] sm:$0xff] %v10369_v51 }
 0x191   : > { %7031 = vmatmul.mubr.msk.bf16.gmra.mxu1 %vm1931_vm11, %v1888_v35  ;;  %v10288_v56 = vpop.f32.mrf.mxu0  ;;  %v10363_v18 = vadd.f32 %v10222_v58, %v10355_v60  ;;  %v10373_v38 = vadd.f32 %v10199_v27, %v10355_v60  ;;  %v10377_v54 = vadd.f32 %v10237_v3, %v10355_v60  ;;  %v2390_v35 = vadd.f32 %v2389_v62, %v10273_v25 }
 0x192   : > { %v10387_v55 = vadd.f32 %v10250_v33, %v10355_v60  ;;  %v10411_v34 = vadd.f32 %v10288_v56, %v10355_v60 }
 0x193   : > { %v2053_v45 = vpop.f32.mrf.mxu0  ;;  %v2391_v27 = vadd.f32 %v2390_v35, %v10369_v51 }
 0x194   : > { %v10291_v50 = vadd.f32 %v2053_v45, %v9949_v44  ;;  %v2180_v45 = vadd.f32 %v10363_v18, %v10373_v38 }
 0x195   : > { %v10293_v1 = vpop.f32.mrf.mxu0 }
 0x196   : > { %14340 = vst [vmem:[#allocation5_spill] sm:$0xff] %v10291_v50  ;;  %v2181_v3 = vadd.f32 %v2180_v45, %v10377_v54  ;;  %v10417_v8 = vadd.f32 %v10293_v1, %v10355_v60 }
 0x197   : > { %v2057_v12 = vpop.f32.mrf.mxu0 }
 0x1a1   : > { %v10295_v61 = vpop.f32.mrf.mxu0 }
 0x1a2   : > { %v10426_v22 = vadd.f32 %v10295_v61, %v10355_v60 }
 0x1a3   : > { %v2063_v5 = vpop.f32.mrf.mxu0 }
 0x1a4   : > { %v10298_v41 = vadd.f32 %v2063_v5, %v9949_v44  ;;  %v10391_v5 = vadd.f32 %v2057_v12, %v9949_v44 }
 0x1a5   : > { %v10300_v24 = vpop.f32.mrf.mxu0 }
 0x1a6   : > { %14341 = vst [vmem:[#allocation6_spill] sm:$0xff] %v10298_v41  ;;  %14352 = vst [vmem:[#allocation17_spill] sm:$0xff] %v10391_v5 }
 0x1a7   : > { %v2067_v16 = vpop.f32.mrf.mxu0 }
 0x1b1   : > { %v10302_v32 = vpop.f32.mrf.mxu0 }
 0x1b2   : > { %v10441_v45 = vadd.f32 %v10302_v32, %v10355_v60 }
 0x1b3   : > { %v2073_v37 = vpop.f32.mrf.mxu0 }
 0x1b4   : > { %v10305_v63 = vadd.f32 %v2073_v37, %v9949_v44  ;;  %v10396_v37 = vadd.f32 %v10265_v7, %v10355_v60 }
 0x1b5   : > { %v10307_v23 = vpop.f32.mrf.mxu0 }
 0x1b6   : > { %14342 = vst [vmem:[#allocation7_spill] sm:$0xff] %v10305_v63 }
 0x1b7   : > { %v2077_v42 = vpop.f32.mrf.mxu0 }
 0x1c1   : > { %v10309_v21 = vpop.f32.mrf.mxu0 }
 0x1c3   : > { %v2083_v57 = vpop.f32.mrf.mxu0 }
 0x1c4   : > { %v10312_v17 = vadd.f32 %v2083_v57, %v9949_v44  ;;  %v2392_v57 = vadd.f32 %v2391_v27, %v10291_v50 }
 0x1c5   : > { %v10314_v0 = vpop.f32.mrf.mxu0 }
 0x1c6   : > { %14343 = vst [vmem:[#allocation8_spill] sm:$0xff] %v10312_v17  ;;  %v2393_v33 = vadd.f32 %v2392_v57, %v10391_v5 }
 0x1c7   : > { %v2087_v14 = vpop.f32.mrf.mxu0 }
 0x1c8   : > { %v2394_v7 = vadd.f32 %v2393_v33, %v10298_v41  ;;  %v10436_v35 = vadd.f32 %v2087_v14, %v9949_v44 }
 0x1ca   : > { %14355 = vst [vmem:[#allocation20_spill] sm:$0xff] %v10436_v35 }
 0x1d1   : > { %v10316_v30 = vpop.f32.mrf.mxu0 }
 0x1d3   : > { %v2093_v9 = vpop.f32.mrf.mxu0 }
 0x1d4   : > { %v10319_v46 = vadd.f32 %v2093_v9, %v9949_v44  ;;  %v2182_v9 = vadd.f32 %v2181_v3, %v10387_v55  ;;  %v10447_v3 = vadd.f32 %v10307_v23, %v10355_v60  ;;  %v10464_v23 = vadd.f32 %v10314_v0, %v10355_v60 }
 0x1d5   : > { %v10321_v6 = vpop.f32.mrf.mxu0 }
 0x1d6   : > { %14344 = vst [vmem:[#allocation9_spill] sm:$0xff] %v10319_v46  ;;  %v2183_v12 = vadd.f32 %v2182_v9, %v10396_v37  ;;  %v10456_v9 = vadd.f32 %v10309_v21, %v10355_v60  ;;  %v10474_v21 = vadd.f32 %v10316_v30, %v10355_v60  ;;  %v10480_v0 = vadd.f32 %v10321_v6, %v10355_v60 }
 0x1d7   : > { %v2097_v39 = vpop.f32.mrf.mxu0 }
 0x1d8   : > { %v10451_v57 = vadd.f32 %v2097_v39, %v9949_v44 }
 0x1da   : > { %14356 = vst [vmem:[#allocation21_spill] sm:$0xff] %v10451_v57 }
 0x1e1   : > { %v10323_v53 = vpop.f32.mrf.mxu0 }
 0x1e2   : > { %v10489_v30 = vadd.f32 %v10323_v53, %v10355_v60 }
 0x1e3   : > { %v2103_v43 = vpop.f32.mrf.mxu0 }
 0x1e4   : > { %v10326_v11 = vadd.f32 %v2103_v43, %v9949_v44  ;;  %v10402_v43 = vadd.f32 %v10279_v15, %v10355_v60 }
 0x1e5   : > { %v10328_v13 = vpop.f32.mrf.mxu0 }
 0x1e6   : > { %14345 = vst [vmem:[#allocation10_spill] sm:$0xff] %v10326_v11  ;;  %v2184_v47 = vadd.f32 %v2183_v12, %v10402_v43  ;;  %v10495_v6 = vadd.f32 %v10328_v13, %v10355_v60 }
 0x1e7   : > { %v10330_v26 = vpop.f32.mrf.mxu0 }
 0x1e8   : > { %v10469_v39 = vadd.f32 %v10330_v26, %v9949_v44 }
 0x1ea   : > { %14357 = vst [vmem:[#allocation22_spill] sm:$0xff] %v10469_v39 }
 0x1f1   : > { %v10332_v29 = vpop.f32.mrf.mxu0 }
 0x1f3   : > { %v2113_v2 = vpop.f32.mrf.mxu0 }
 0x1f4   : > { %v10335_v4 = vadd.f32 %v2113_v2, %v9949_v44  ;;  %v10406_v2 = vadd.f32 %v2067_v16, %v9949_v44  ;;  %v2185_v16 = vadd.f32 %v2184_v47, %v10411_v34 }
 0x1f5   : > { %v10342_v19 = vpop.f32.mrf.mxu0 }
 0x1f6   : > { %14346 = vst [vmem:[#allocation11_spill] sm:$0xff] %v10335_v4  ;;  %14353 = vst [vmem:[#allocation18_spill] sm:$0xff] %v10406_v2  ;;  %v2395_v15 = vadd.f32 %v2394_v7, %v10406_v2  ;;  %v2186_v62 = vadd.f32 %v2185_v16, %v10417_v8 }
 0x1f7   : > { %v2117_v36 = vpop.f32.mrf.mxu0 }
 0x1f8   : > { %v2396_v56 = vadd.f32 %v2395_v15, %v10305_v63  ;;  %v10484_v26 = vadd.f32 %v2117_v36, %v9949_v44 }
 0x1fa   : > { %14358 = vst [vmem:[#allocation23_spill] sm:$0xff] %v10484_v26 }
 0x20c   : > { %v10344_v48 = vpop.f32.mrf.mxu1 }
 0x20e   : > { %v2143_v10 = vpop.f32.mrf.mxu1 }
 0x20f   : > { %v10359_v59 = vadd.f32 %v2143_v10, %v9949_v44  ;;  %v10421_v10 = vadd.f32 %v2077_v42, %v9949_v44  ;;  %v2187_v42 = vadd.f32 %v2186_v62, %v10426_v22 }
 0x210   : > { %v10365_v52 = vpop.f32.mrf.mxu0  ;;  %v10459_v33 = vpop.f32.mrf.mxu1 }
 0x211   : > { %14349 = vst [vmem:[#allocation14_spill] sm:$0xff] %v10359_v59  ;;  %14354 = vst [vmem:[#allocation19_spill] sm:$0xff] %v10421_v10  ;;  %v2397_v1 = vadd.f32 %v2396_v56, %v10421_v10 }
 0x212   : > { %v2123_v28 = vpop.f32.mrf.mxu0  ;;  %v2147_v56 = vpop.f32.mrf.mxu1 }
 0x213   : > { %v10381_v58 = vadd.f32 %v2123_v28, %v9949_v44  ;;  %v10432_v28 = vadd.f32 %v10300_v24, %v10355_v60  ;;  %v2398_v61 = vadd.f32 %v2397_v1, %v10312_v17 }
 0x214   : > { %v2125_v15 = vpop.f32.mrf.mxu0 }
 0x215   : > { %14351 = vst [vmem:[#allocation16_spill] sm:$0xff] %v10381_v58  ;;  %v2188_v27 = vadd.f32 %v2187_v42, %v10432_v28  ;;  %v2399_v24 = vadd.f32 %v2398_v61, %v10436_v35 }
 0x217   : > { %v2189_v14 = vadd.f32 %v2188_v27, %v10441_v45  ;;  %v2400_v32 = vadd.f32 %v2399_v24, %v10319_v46  ;;  %v2127_v27 = vpop.f32.mrf.mxu0 }
 0x219   : > { %v2190_v12 = vadd.f32 %v2189_v14, %v10447_v3  ;;  %v2401_v7 = vadd.f32 %v2400_v32, %v10451_v57 }
 0x21b   : > { %v2191_v47 = vadd.f32 %v2190_v12, %v10456_v9  ;;  %v2402_v16 = vadd.f32 %v2401_v7, %v10326_v11 }
 0x21d   : > { %v2192_v62 = vadd.f32 %v2191_v47, %v10464_v23  ;;  %v2403_v1 = vadd.f32 %v2402_v16, %v10469_v39  ;;  %v10502_v47 = vadd.f32 %v2127_v27, %v9949_v44  ;;  %v10507_v16 = vadd.f32 %v10332_v29, %v10355_v60 }
 0x21e   : > { %v10522_v29 = vadd.f32 %v10365_v52, %v10355_v60  ;;  %v10538_v52 = vadd.f32 %v2147_v56, %v9949_v44  ;;  %v10551_v56 = vadd.f32 %v10344_v48, %v10355_v60 }
 0x21f   : > { %v2193_v61 = vadd.f32 %v2192_v62, %v10474_v21  ;;  %v2404_v24 = vadd.f32 %v2403_v1, %v10335_v4  ;;  %14360 = vst [vmem:[#allocation25_spill] sm:$0xff] %v10502_v47 }
 0x220   : > { %14363 = vst [vmem:[#allocation28_spill] sm:$0xff] %v10538_v52 }
 0x221   : > { %v2194_v32 = vadd.f32 %v2193_v61, %v10480_v0  ;;  %v2405_v7 = vadd.f32 %v2404_v24, %v10484_v26  ;;  %v10516_v24 = vadd.f32 %v10342_v19, %v10355_v60  ;;  %v10530_v19 = vadd.f32 %v2125_v15, %v10355_v60 }
 0x223   : > { %v2195_v53 = vadd.f32 %v2194_v32, %v10489_v30  ;;  %v2406_v1 = vadd.f32 %v2405_v7, %v10381_v58 }
 0x225   : > { %v2196_v61 = vadd.f32 %v2195_v53, %v10495_v6 }
 0x227   : > { %v2197_v32 = vadd.f32 %v2196_v61, %v10507_v16 }
 0x229   : > { %v2198_v53 = vadd.f32 %v2197_v32, %v10516_v24 }
 0x22c   : > { %v2151_v42 = vpop.f32.mrf.mxu1 }
 0x22e   : > { %v2153_v14 = vpop.f32.mrf.mxu1 }
 0x22f   : > { %v10498_v36 = vadd.f32 %v2153_v14, %v9949_v44  ;;  %v2407_v14 = vadd.f32 %v2406_v1, %v10502_v47  ;;  %v2199_v1 = vadd.f32 %v2198_v53, %v10522_v29 }
 0x230   : > { %v2131_v12 = vpop.f32.mrf.mxu0  ;;  %v2155_v47 = vpop.f32.mrf.mxu1 }
 0x231   : > { %14359 = vst [vmem:[#allocation24_spill] sm:$0xff] %v10498_v36  ;;  %v10535_v61 = vadd.f32 %v2131_v12, %v10355_v60 }
 0x232   : > { %v2133_v62 = vpop.f32.mrf.mxu0 }
 0x233   : > { %v10511_v13 = vadd.f32 %v2133_v62, %v9949_v44 }
 0x234   : > { %v2135_v27 = vpop.f32.mrf.mxu0 }
 0x235   : > { %14361 = vst [vmem:[#allocation26_spill] sm:$0xff] %v10511_v13  ;;  %v2408_v7 = vadd.f32 %v2407_v14, %v10511_v13  ;;  %v10543_v32 = vadd.f32 %v2135_v27, %v10355_v60 }
 0x236   : > { %v2137_v26 = vpop.f32.mrf.mxu0 }
 0x237   : > { %v10526_v62 = vadd.f32 %v2137_v26, %v9949_v44  ;;  %v2200_v26 = vadd.f32 %v2199_v1, %v10530_v19 }
 0x239   : > { %14362 = vst [vmem:[#allocation27_spill] sm:$0xff] %v10526_v62  ;;  %v2409_v58 = vadd.f32 %v2408_v7, %v10526_v62  ;;  %v2201_v7 = vadd.f32 %v2200_v26, %v10535_v61  ;;  %v2157_v62 = vpop.f32.mrf.mxu1 }
 0x23b   : > { %v2410_v14 = vadd.f32 %v2409_v58, %v10359_v59  ;;  %v2202_v53 = vadd.f32 %v2201_v7, %v10543_v32  ;;  %v10554_v58 = vadd.f32 %v2157_v62, %v9949_v44  ;;  %v10576_v59 = vadd.f32 %v2155_v47, %v10355_v60 }
 0x23d   : > { %v2411_v15 = vadd.f32 %v2410_v14, %v10538_v52  ;;  %v2203_v27 = vadd.f32 %v2202_v53, %v10551_v56  ;;  %v10571_v53 = vadd.f32 %v2151_v42, %v10355_v60 }
 0x23f   : > { %v2412_v12 = vadd.f32 %v2411_v15, %v10498_v36  ;;  %v10563_v15 = vadd.f32 %v10459_v33, %v10355_v60 }
 0x241   : > { %v2161_v13 = vpop.f32.mrf.mxu1  ;;  %v2413_v26 = vadd.f32 %v2412_v12, %v10554_v58  ;;  %v2204_v36 = vadd.f32 %v2203_v27, %v10563_v15 }
 0x242   : > { %v10579_v33 = vadd.f32 %v2161_v13, %v10355_v60 }
 0x243   : > { %v2163_v1 = vpop.f32.mrf.mxu1  ;;  %v2205_v12 = vadd.f32 %v2204_v36, %v10571_v53 }
 0x244   : > { %v10558_v14 = vadd.f32 %v2163_v1, %v9949_v44 }
 0x245   : > { %v2165_v52 = vpop.f32.mrf.mxu1 }
 0x246   : > { %v2414_v7 = vadd.f32 %v2413_v26, %v10558_v14  ;;  %v2206_v26 = vadd.f32 %v2205_v12, %v10576_v59  ;;  %v10583_v27 = vadd.f32 %v2165_v52, %v10355_v60 }
 0x247   : > { %v2167_v48 = vpop.f32.mrf.mxu1 }
 0x248   : > { %v10568_v62 = vadd.f32 %v2167_v48, %v9949_v44  ;;  %v2207_v4 = vadd.f32 %v2206_v26, %v10579_v33 }
 0x24a   : > { %v2415_v1 = vadd.f32 %v2414_v7, %v10568_v62  ;;  %v2208_v36 = vadd.f32 %v2207_v4, %v10583_v27  ;;  %v8819_v4 = vld [vmem:[%s14223_s5 + $0xf8] sm:$0xff]  }
 0x24b   : > { %7291 = vmatprep.subr.bf16.mxu0 %v8819_v4  ;;  %v8826_v4 = vld [vmem:[%s14223_s5 + $0x30] sm:$0xff]  }
 0x251   : > { %v2171_v48 = vpop.f32.mrf.mxu1 }
 0x252   : > { %v10587_v42 = vadd.f32 %v2171_v48, %v10355_v60 }
 0x253   : > { %v2173_v7 = vpop.f32.mrf.mxu1 }
 0x254   : > { %v10591_v47 = vadd.f32 %v2173_v7, %v9949_v44  ;;  %v2209_v13 = vadd.f32 %v2208_v36, %v10587_v42 }
 0x255   : > { %v2175_v39 = vpop.f32.mrf.mxu1 }
 0x256   : > { %v2416_v12 = vadd.f32 %v2415_v1, %v10591_v47  ;;  %v10596_v52 = vadd.f32 %v2175_v39, %v10355_v60  ;;  %v8820_v60 = vld [vmem:[%s14223_s5 + $0x78] sm:$0xff]   ;;  %v8823_v1 = vld [vmem:[%s14223_s5 + $0xf0] sm:$0xff]  }
 0x257   : > { %v2177_v11 = vpop.f32.mrf.mxu1  ;;  %v8821_v39 = vld [vmem:[%s14223_s5 + $0xb8] sm:$0xff]   ;;  %7179 = vmatprep.subr.bf16.mxu1 %v8820_v60  ;;  %v8828_v60 = vld [vmem:[%s14223_s5 + $0x68] sm:$0xff]  }
 0x258   : > { %v2210_v26 = vadd.f32 %v2209_v13, %v10596_v52  ;;  %v10600_v48 = vadd.f32 %v2177_v11, %v9949_v44  ;;  %v8822_v44 = vld [vmem:[%s14223_s5 + $0x38] sm:$0xff]   ;;  %7292 = vmatpush3.bf16.msra.mxu0 %v8821_v39  ;;  %v8829_v39 = vld [vmem:[%s14223_s5 + $0xa8] sm:$0xff]  }
 0x259   : > { %7180 = vmatpush3.bf16.msra.mxu1 %v8822_v44  ;;  %7293 = vmatprep.subr.bf16.mxu0 %v8823_v1  ;;  %v8831_v1 = vld [vmem:[%s14223_s5 + $0xe0] sm:$0xff]  }
 0x25a   : > { %v2211_v7 = vrot.slane %v2210_v26, 4  ;;  %v2417_v57 = vadd.f32 %v2416_v12, %v10600_v48  ;;  %v8824_v12 = vld [vmem:[%s14223_s5 + $0x70] sm:$0xff]  }
 0x25b   : > { %7181 = vmatprep.subr.bf16.mxu1 %v8824_v12 }
 0x25c   : > { %v2212_v36 = vadd.f32 %v2211_v7, %v2210_v26  ;;  %v8825_v26 = vld [vmem:[%s14223_s5 + $0xb0] sm:$0xff]   ;;  %v8827_v7 = vld [vmem:[%s14223_s5 + $0xe8] sm:$0xff]   ;;  %v2418_v44 = vrot.slane %v2417_v57, 4 }
 0x25d   : > { %7294 = vmatpush3.bf16.msra.mxu0 %v8825_v26  ;;  %7182 = vmatpush3.bf16.msra.mxu1 %v8826_v4  ;;  %v8832_v26 = vld [vmem:[%s14223_s5 + $0x60] sm:$0xff]  }
 0x25e   : > { %v2213_v11 = vrot.slane %v2212_v36, 2  ;;  %7295 = vmatprep.subr.bf16.mxu0 %v8827_v7  ;;  %7183 = vmatprep.subr.bf16.mxu1 %v8828_v60  ;;  %v8833_v4 = vld [vmem:[%s14223_s5 + $0xa0] sm:$0xff]   ;;  %v2419_v7 = vadd.f32 %v2418_v44, %v2417_v57  ;;  %v8837_v57 = vld [vmem:[%s14223_s5 + $0x98] sm:$0xff]  }
 0x25f   : > { %v8834_v60 = vld [vmem:[%s14223_s5 + $0x20] sm:$0xff]  }
 0x260   : > { %v2214_v13 = vadd.f32 %v2213_v11, %v2212_v36  ;;  %v8830_v11 = vld [vmem:[%s14223_s5 + $0x28] sm:$0xff]   ;;  %v2420_v44 = vrot.slane %v2419_v7, 2 }
 0x261   : > { %7296 = vmatpush3.bf16.msra.mxu0 %v8829_v39  ;;  %7184 = vmatpush3.bf16.msra.mxu1 %v8830_v11  ;;  %v8836_v39 = vld [vmem:[%s14223_s5 + $0x58] sm:$0xff]  }
 0x262   : > { %v2215_v36 = vrot.slane %v2214_v13, 1  ;;  %7297 = vmatprep.subr.bf16.mxu0 %v8831_v1  ;;  %7185 = vmatprep.subr.bf16.mxu1 %v8832_v26  ;;  %v8838_v11 = vld [vmem:[%s14223_s5 + $0x18] sm:$0xff]   ;;  %v8839_v1 = vld [vmem:[%s14223_s5 + $0xd0] sm:$0xff]  }
 0x264   : > { %v2216_v12 = vadd.f32 %v2215_v36, %v2214_v13  ;;  %v8835_v13 = vld [vmem:[%s14223_s5 + $0xd8] sm:$0xff]  }
 0x265   : > { %7298 = vmatpush3.bf16.msra.mxu0 %v8833_v4  ;;  %7186 = vmatpush3.bf16.msra.mxu1 %v8834_v60  ;;  %v8840_v4 = vld [vmem:[%s14223_s5 + $0x50] sm:$0xff]  }
 0x266   : > { %v10654_v36 = vmul.f32 0.00390625, %v2216_v12  ;;  %7299 = vmatprep.subr.bf16.mxu0 %v8835_v13  ;;  %7187 = vmatprep.subr.bf16.mxu1 %v8836_v39  ;;  %v8841_v60 = vld [vmem:[%s14223_s5 + $0x90] sm:$0xff]   ;;  %v2421_v13 = vadd.f32 %v2420_v44, %v2419_v7  ;;  %v8844_v44 = vld [vmem:[%s14223_s5 + $0x48] sm:$0xff]  }
 0x268   : > { %v10670_v12 = vsub.f32 %v10373_v38, %v10654_v36  ;;  %v10674_v26 = vsub.f32 %v10363_v18, %v10654_v36  ;;  %v8842_v38 = vld [vmem:[%s14223_s5 + $0x10] sm:$0xff]   ;;  %v8843_v18 = vld [vmem:[%s14223_s5 + $0xc8] sm:$0xff]   ;;  %v10690_v39 = vsub.f32 %v10377_v54, %v10654_v36  ;;  %v10726_v35 = vsub.f32 %v10402_v43, %v10654_v36 }
 0x269   : > { %7300 = vmatpush3.bf16.msra.mxu0 %v8837_v57  ;;  %7188 = vmatpush3.bf16.msra.mxu1 %v8838_v11  ;;  %v8845_v11 = vld [vmem:[%s14223_s5 + $0x88] sm:$0xff]   ;;  %v10741_v43 = vsub.f32 %v10417_v8, %v10654_v36  ;;  %v10758_v8 = vsub.f32 %v10432_v28, %v10654_v36 }
 0x26a   : > { %7301 = vmatprep.subr.bf16.mxu0 %v8839_v1  ;;  %7189 = vmatprep.subr.bf16.mxu1 %v8840_v4  ;;  %v2251_v57 = vmul.f32 %v10670_v12, %v10670_v12  ;;  %v2252_v7 = vmul.f32 %v10674_v26, %v10674_v26  ;;  %v2422_v1 = vrot.slane %v2421_v13, 1  ;;  %v8846_v54 = vld [vmem:[%s14223_s5 + $0x8] sm:$0xff]   ;;  %v10707_v4 = vsub.f32 %v10387_v55, %v10654_v36  ;;  %v8848_v55 = vld [vmem:[%s14223_s5 + $0x40] sm:$0xff]  }
 0x26c   : > { %v2283_v46 = vadd.f32 %v2252_v7, %v2251_v57  ;;  %v8850_v57 = vld [vmem:[%s14223_s5] sm:$0xff]   ;;  %v10735_v7 = vsub.f32 %v10411_v34, %v10654_v36  ;;  %v8851_v34 = vld [vmem:[%s14223_s5 + $0x178] sm:$0xff]  }
 0x26d   : > { %7302 = vmatpush3.bf16.msra.mxu0 %v8841_v60  ;;  %7190 = vmatpush3.bf16.msra.mxu1 %v8842_v38  ;;  %v8847_v60 = vld [vmem:[%s14223_s5 + $0xc0] sm:$0xff]   ;;  %v10714_v38 = vsub.f32 %v10396_v37, %v10654_v36  ;;  %v2254_v37 = vmul.f32 %v10707_v4, %v10707_v4 }
 0x26e   : > { %7303 = vmatprep.subr.bf16.mxu0 %v8843_v18  ;;  %7191 = vmatprep.subr.bf16.mxu1 %v8844_v44  ;;  %v2253_v18 = vmul.f32 %v10690_v39, %v10690_v39  ;;  %v8849_v44 = vld [vmem:[%s14223_s5 + $0x80] sm:$0xff]  }
 0x270   : > { %v2284_v17 = vadd.f32 %v2283_v46, %v2253_v18  ;;  %v10752_v18 = vsub.f32 %v10426_v22, %v10654_v36 }
 0x271   : > { %7304 = vmatpush3.bf16.msra.mxu0 %v8845_v11  ;;  %7192 = vmatpush3.bf16.msra.mxu1 %v8846_v54  ;;  %v2423_v11 = vadd.f32 %v2422_v1, %v2421_v13  ;;  %v2255_v13 = vmul.f32 %v10714_v38, %v10714_v38  ;;  %v2256_v54 = vmul.f32 %v10726_v35, %v10726_v35 }
 0x272   : > { %7305 = vmatprep.subr.bf16.mxu0 %v8847_v60  ;;  %7193 = vmatprep.subr.bf16.mxu1 %v8848_v55  ;;  %v2285_v1 = vadd.f32 %v2284_v17, %v2254_v37  ;;  %v2257_v17 = vmul.f32 %v10735_v7, %v10735_v7 }
 0x273   : > { %v10743_v46 = vmul.f32 0.00390625, %v2423_v11 }
 0x274   : > { %v2286_v60 = vadd.f32 %v2285_v1, %v2255_v13 }
 0x275   : > { %7306 = vmatpush3.bf16.msra.mxu0 %v8849_v44  ;;  %7194 = vmatpush3.bf16.msra.mxu1 %v8850_v57  ;;  %14364 = vst [vmem:[#allocation29_spill] sm:$0xff] %v10743_v46  ;;  %v2258_v44 = vmul.f32 %v10741_v43, %v10741_v43  ;;  %v10764_v11 = vsub.f32 %v10554_v58, %v10743_v46 }
 0x276   : > { %v2287_v55 = vadd.f32 %v2286_v60, %v2256_v54  ;;  %7403 = vmatprep.subr.bf16.mxu1 %v8851_v34  ;;  %v10768_v22 = vsub.f32 %v10558_v14, %v10743_v46  ;;  %v10772_v57 = vsub.f32 %v10568_v62, %v10743_v46  ;;  %v10776_v28 = vsub.f32 %v10591_v47, %v10743_v46 }
 0x277   : > { %14365 = vst [vmem:[#allocation30_spill] sm:$0xff] %v10764_v11  ;;  %v10780_v13 = vsub.f32 %v10600_v48, %v10743_v46  ;;  %v10784_v58 = vsub.f32 %v10441_v45, %v10654_v36  ;;  %v2259_v14 = vmul.f32 %v10752_v18, %v10752_v18  ;;  %v10790_v62 = vsub.f32 %v10447_v3, %v10654_v36 }
 0x278   : > { %v2288_v37 = vadd.f32 %v2287_v55, %v2257_v17  ;;  %14366 = vst [vmem:[#allocation31_spill] sm:$0xff] %v10768_v22  ;;  %14367 = vst [vmem:[#allocation32_spill] sm:$0xff] %v10772_v57  ;;  %v2260_v47 = vmul.f32 %v10758_v8, %v10758_v8  ;;  %v10796_v48 = vsub.f32 %v10456_v9, %v10654_v36 }
 0x279   : > { %14368 = vst [vmem:[#allocation33_spill] sm:$0xff] %v10776_v28  ;;  %14369 = vst [vmem:[#allocation34_spill] sm:$0xff] %v10780_v13  ;;  %v2261_v45 = vmul.f32 %v10784_v58, %v10784_v58  ;;  %v10802_v34 = vsub.f32 %v10464_v23, %v10654_v36  ;;  %v2262_v3 = vmul.f32 %v10790_v62, %v10790_v62 }
 0x27a   : > { %v2289_v1 = vadd.f32 %v2288_v37, %v2258_v44  ;;  %v10808_v55 = vsub.f32 %v10474_v21, %v10654_v36  ;;  %v2263_v9 = vmul.f32 %v10796_v48, %v10796_v48  ;;  %v10814_v37 = vsub.f32 %v10480_v0, %v10654_v36 }
 0x27b   : > { %v2264_v23 = vmul.f32 %v10802_v34, %v10802_v34 }
 0x27c   : > { %v2290_v54 = vadd.f32 %v2289_v1, %v2259_v14  ;;  %v10820_v1 = vsub.f32 %v10489_v30, %v10654_v36  ;;  %v2265_v21 = vmul.f32 %v10808_v55, %v10808_v55  ;;  %v2266_v0 = vmul.f32 %v10814_v37, %v10814_v37 }
 0x27e   : > { %v2291_v60 = vadd.f32 %v2290_v54, %v2260_v47  ;;  %v10826_v54 = vsub.f32 %v10495_v6, %v10654_v36  ;;  %v2267_v30 = vmul.f32 %v10820_v1, %v10820_v1 }
 0x280   : > { %v2292_v17 = vadd.f32 %v2291_v60, %v2261_v45  ;;  %v10832_v60 = vsub.f32 %v10507_v16, %v10654_v36  ;;  %v2268_v6 = vmul.f32 %v10826_v54, %v10826_v54 }
 0x282   : > { %v2293_v44 = vadd.f32 %v2292_v17, %v2262_v3  ;;  %v10838_v17 = vsub.f32 %v10516_v24, %v10654_v36  ;;  %v2269_v16 = vmul.f32 %v10832_v60, %v10832_v60 }
 0x284   : > { %v2294_v14 = vadd.f32 %v2293_v44, %v2263_v9  ;;  %v10844_v44 = vsub.f32 %v10522_v29, %v10654_v36  ;;  %v2270_v24 = vmul.f32 %v10838_v17, %v10838_v17 }
 0x286   : > { %v2295_v47 = vadd.f32 %v2294_v14, %v2264_v23  ;;  %v10850_v14 = vsub.f32 %v10530_v19, %v10654_v36  ;;  %v2271_v29 = vmul.f32 %v10844_v44, %v10844_v44 }
 0x288   : > { %v2296_v45 = vadd.f32 %v2295_v47, %v2265_v21  ;;  %v10856_v47 = vsub.f32 %v10535_v61, %v10654_v36  ;;  %v2272_v19 = vmul.f32 %v10850_v14, %v10850_v14 }
 0x28a   : > { %v2297_v3 = vadd.f32 %v2296_v45, %v2266_v0  ;;  %v10862_v45 = vsub.f32 %v10543_v32, %v10654_v36  ;;  %v2273_v61 = vmul.f32 %v10856_v47, %v10856_v47 }
 0x28c   : > { %v2298_v9 = vadd.f32 %v2297_v3, %v2267_v30  ;;  %v10868_v3 = vsub.f32 %v10551_v56, %v10654_v36  ;;  %v2274_v32 = vmul.f32 %v10862_v45, %v10862_v45 }
 0x28e   : > { %v2299_v23 = vadd.f32 %v2298_v9, %v2268_v6  ;;  %v10874_v9 = vsub.f32 %v10563_v15, %v10654_v36  ;;  %v2275_v56 = vmul.f32 %v10868_v3, %v10868_v3 }
 0x290   : > { %v2300_v21 = vadd.f32 %v2299_v23, %v2269_v16  ;;  %v10880_v23 = vsub.f32 %v10571_v53, %v10654_v36  ;;  %v2276_v15 = vmul.f32 %v10874_v9, %v10874_v9 }
 0x292   : > { %v2301_v0 = vadd.f32 %v2300_v21, %v2270_v24  ;;  %v10886_v21 = vsub.f32 %v10576_v59, %v10654_v36  ;;  %v2249_v59 = vsub.f32 %v10587_v42, %v10654_v36  ;;  %v8860_v42 = vld [vmem:[%s14223_s5 + $0x1f8] sm:$0xff]  }
 0x293   : > { %7515 = vmatprep.subr.bf16.mxu0 %v8860_v42 }
 0x294   : > { %v2302_v30 = vadd.f32 %v2301_v0, %v2271_v29  ;;  %v2247_v0 = vsub.f32 %v10579_v33, %v10654_v36  ;;  %v2281_v13 = vmul.f32 %v2249_v59, %v2249_v59 }
 0x296   : > { %v2303_v6 = vadd.f32 %v2302_v30, %v2272_v19  ;;  %v2277_v19 = vmul.f32 %v10880_v23, %v10880_v23  ;;  %v2248_v30 = vsub.f32 %v10583_v27, %v10654_v36 }
 0x298   : > { %v2304_v16 = vadd.f32 %v2303_v6, %v2273_v61  ;;  %v2278_v61 = vmul.f32 %v10886_v21, %v10886_v21  ;;  %v2280_v33 = vmul.f32 %v2248_v30, %v2248_v30 }
 0x29a   : > { %v2305_v24 = vadd.f32 %v2304_v16, %v2274_v32  ;;  %v2279_v32 = vmul.f32 %v2247_v0, %v2247_v0 }
 0x29c   : > { %v2306_v29 = vadd.f32 %v2305_v24, %v2275_v56  ;;  %v2250_v56 = vsub.f32 %v10596_v52, %v10654_v36 }
 0x29e   : > { %v2307_v53 = vadd.f32 %v2306_v29, %v2276_v15  ;;  %v2282_v15 = vmul.f32 %v2250_v56, %v2250_v56 }
 0x2a0   : > { %v2308_v6 = vadd.f32 %v2307_v53, %v2277_v19 }
 0x2a2   : > { %v2309_v16 = vadd.f32 %v2308_v6, %v2278_v61 }
 0x2a4   : > { %v2310_v24 = vadd.f32 %v2309_v16, %v2279_v32 }
 0x2a6   : > { %v2311_v28 = vadd.f32 %v2310_v24, %v2280_v33 }
 0x2a8   : > { %v2312_v29 = vadd.f32 %v2311_v28, %v2281_v13 }
 0x2aa   : > { %v2313_v57 = vadd.f32 %v2312_v29, %v2282_v15 }
 0x2ac   : > { %v2314_v27 = vrot.slane %v2313_v57, 4 }
 0x2ae   : > { %v2315_v22 = vadd.f32 %v2314_v27, %v2313_v57 }
 0x2b0   : > { %v2316_v11 = vrot.slane %v2315_v22, 2 }
 0x2b2   : > { %v2317_v10 = vadd.f32 %v2316_v11, %v2315_v22 }
 0x2b4   : > { %v2318_v19 = vrot.slane %v2317_v10, 1 }
 0x2b6   : > { %v2319_v53 = vadd.f32 %v2318_v19, %v2317_v10 }
 0x2b8   : > { %v2320_v61 = vmul.f32 0.00390625, %v2319_v53 }
 0x2ba   : > { %v2321_v52 = vadd.f32 1e-05, %v2320_v61 }
 0x2bc   : > { %8923 = vrsqrt.f32 %v2321_v52 }
 0x2c9   : > { %v8924_v36 = vpop.eup %8923 }
 0x2ca   : > { %v2354_v6 = vmul.f32 %v8924_v36, %v2250_v56  ;;  %v10906_v28 = vmul.f32 %v8924_v36, %v10670_v12  ;;  %v10909_v57 = vmul.f32 %v8924_v36, %v10674_v26  ;;  %v10912_v11 = vmul.f32 %v8924_v36, %v10690_v39 }
 0x2cb   : > { %v10915_v22 = vmul.f32 %v8924_v36, %v10707_v4  ;;  %v10918_v10 = vmul.f32 %v8924_v36, %v10714_v38  ;;  %v10921_v13 = vmul.f32 %v8924_v36, %v10726_v35  ;;  %v10924_v16 = vmul.f32 %v8924_v36, %v10735_v7 }
 0x2cc   : > { %v2386_v32 = vmax.f32 %v2354_v6, 0.0  ;;  %v10927_v12 = vmul.f32 %v8924_v36, %v10741_v43  ;;  %v10930_v26 = vmul.f32 %v8924_v36, %v10752_v18  ;;  %v10933_v39 = vmul.f32 %v8924_v36, %v10758_v8 }
 0x2cd   : > { %v10936_v4 = vmul.f32 %v8924_v36, %v10784_v58  ;;  %v10939_v38 = vmul.f32 %v8924_v36, %v10790_v62  ;;  %v10942_v35 = vmul.f32 %v8924_v36, %v10796_v48  ;;  %v10945_v7 = vmul.f32 %v8924_v36, %v10802_v34 }
 0x2ce   : > { %v10947_v43 = vrot.slane %v2386_v32, 7  ;;  %v10949_v56 = vrot.slane %v2386_v32, 5  ;;  %v10952_v18 = vmul.f32 %v8924_v36, %v10808_v55  ;;  %v10955_v8 = vmul.f32 %v8924_v36, %v10814_v37 }
 0x2cf   : > { %v10958_v58 = vmul.f32 %v8924_v36, %v10820_v1  ;;  %v10961_v62 = vmul.f32 %v8924_v36, %v10826_v54  ;;  %v10964_v48 = vmul.f32 %v8924_v36, %v10832_v60  ;;  %v10967_v34 = vmul.f32 %v8924_v36, %v10838_v17 }
 0x2d0   : > { %14370 = vst [vmem:[#allocation35_spill] sm:$0xff] %v10947_v43  ;;  %14371 = vst [vmem:[#allocation36_spill] sm:$0xff] %v10949_v56  ;;  %v10970_v33 = vmul.f32 %v8924_v36, %v10844_v44  ;;  %v10973_v55 = vmul.f32 %v8924_v36, %v10850_v14  ;;  %v10976_v37 = vmul.f32 %v8924_v36, %v10856_v47  ;;  %v2357_v15 = vmax.f32 %v10912_v11, 0.0 }
 0x2d1   : > { %v10979_v1 = vmul.f32 %v8924_v36, %v10862_v45  ;;  %v10982_v54 = vmul.f32 %v8924_v36, %v10868_v3  ;;  %v10985_v60 = vmul.f32 %v8924_v36, %v10874_v9  ;;  %v10988_v17 = vmul.f32 %v8924_v36, %v10880_v23 }
 0x2d2   : > { %v10991_v44 = vmul.f32 %v8924_v36, %v10886_v21  ;;  %v10993_v14 = vmul.f32 %v8924_v36, %v2247_v0  ;;  %v10995_v24 = vmul.f32 %v8924_v36, %v2248_v30  ;;  %v10997_v47 = vmul.f32 %v8924_v36, %v2249_v59 }
 0x2d3   : > { %v2355_v45 = vmax.f32 %v10906_v28, 0.0  ;;  %v14261_v3 = vmax.f32 %v10909_v57, 0.0  ;;  %v2359_v23 = vmax.f32 %v10918_v10, 0.0  ;;  %v2361_v21 = vmax.f32 %v10924_v16, 0.0 }
 0x2d4   : > { %v2363_v30 = vmax.f32 %v10930_v26, 0.0  ;;  %v2365_v27 = vmax.f32 %v10936_v4, 0.0  ;;  %v2367_v42 = vmax.f32 %v10942_v35, 0.0  ;;  %v2369_v61 = vmax.f32 %v10952_v18, 0.0 }
 0x2d5   : > { %v2371_v36 = vmax.f32 %v10958_v58, 0.0  ;;  %v2373_v32 = vmax.f32 %v10964_v48, 0.0  ;;  %v2375_v11 = vmax.f32 %v10970_v33, 0.0  ;;  %v2377_v16 = vmax.f32 %v10976_v37, 0.0 }
 0x2d6   : > { %v2379_v4 = vmax.f32 %v10982_v54, 0.0  ;;  %v2381_v18 = vmax.f32 %v10988_v17, 0.0  ;;  %v2383_v48 = vmax.f32 %v10993_v14, 0.0  ;;  %v2384_v28 = vmax.f32 %v10995_v24, 0.0 }
 0x2d7   : > { %v2385_v33 = vmax.f32 %v10997_v47, 0.0  ;;  %v11030_v6 = vrot.slane %v2355_v45, 1  ;;  %v2578_v10 = vrot.slane %v2357_v15, 1  ;;  %v11032_v37 = vrot.slane %v2359_v23, 1 }
 0x2d8   : > { %v11034_v26 = vrot.slane %v2361_v21, 1  ;;  %v11036_v54 = vrot.slane %v2363_v30, 1  ;;  %v11038_v35 = vrot.slane %v2365_v27, 1  ;;  %v11040_v17 = vrot.slane %v2367_v42, 1 }
 0x2d9   : > { %v11042_v58 = vrot.slane %v2369_v61, 1  ;;  %v11044_v14 = vrot.slane %v2371_v36, 1  ;;  %v11046_v24 = vrot.slane %v2373_v32, 1  ;;  %v11048_v47 = vrot.slane %v2375_v11, 1 }
 0x2da   : > { %v11050_v52 = vrot.slane %v2377_v16, 1  ;;  %v11052_v53 = vrot.slane %v2379_v4, 1  ;;  %v11054_v19 = vrot.slane %v2381_v18, 1  ;;  %v11056_v59 = vrot.slane %v2383_v48, 1 }
 0x2db   : > { %14372 = vst [vmem:[#allocation37_spill] sm:$0xff] %v11048_v47  ;;  %v11058_v0 = vrot.slane %v2385_v33, 1  ;;  %v2626_v29 = vrot.slane %v2355_v45, 7  ;;  %v2627_v9 = vrot.slane %v14261_v3, 7  ;;  %v2629_v63 = vrot.slane %v2357_v15, 7 }
 0x2dc   : > { %14373 = vst [vmem:[#allocation38_spill] sm:$0xff] %v11050_v52  ;;  %14374 = vst [vmem:[#allocation39_spill] sm:$0xff] %v11052_v53  ;;  %v14378_v2 = vmax.f32 %v10915_v22, 0.0  ;;  %v11064_v5 = vrot.slane %v2359_v23, 7  ;;  %v14379_v50 = vmax.f32 %v10921_v13, 0.0  ;;  %v11070_v25 = vrot.slane %v2361_v21, 7 }
 0x2dd   : > { %14375 = vst [vmem:[#allocation40_spill] sm:$0xff] %v11054_v19  ;;  %14376 = vst [vmem:[#allocation41_spill] sm:$0xff] %v11056_v59  ;;  %v14380_v31 = vmax.f32 %v10927_v12, 0.0  ;;  %v11076_v45 = vrot.slane %v2363_v30, 7  ;;  %v14381_v3 = vmax.f32 %v10933_v39, 0.0  ;;  %v11082_v40 = vrot.slane %v2365_v27, 7 }
 0x2de   : > { %14377 = vst [vmem:[#allocation42_spill] sm:$0xff] %v11058_v0  ;;  %v2630_v41 = vrot.slane %v14378_v2, 7  ;;  %v11068_v51 = vrot.slane %v14379_v50, 7  ;;  %v14382_v2 = vmax.f32 %v10939_v38, 0.0  ;;  %v11088_v50 = vrot.slane %v2367_v42, 7 }
 0x2df   : > { %v11074_v49 = vrot.slane %v14380_v31, 7  ;;  %v11080_v15 = vrot.slane %v14381_v3, 7  ;;  %v14383_v21 = vmax.f32 %v10945_v7, 0.0  ;;  %v11094_v31 = vrot.slane %v2369_v61, 7 }
 0x2e0   : > { %v11086_v23 = vrot.slane %v14382_v2, 7  ;;  %v14384_v30 = vmax.f32 %v10955_v8, 0.0  ;;  %v11100_v3 = vrot.slane %v2371_v36, 7  ;;  %v14385_v27 = vmax.f32 %v10961_v62, 0.0 }
 0x2e1   : > { %v11092_v20 = vrot.slane %v14383_v21, 7  ;;  %v11106_v2 = vrot.slane %v2373_v32, 7  ;;  %v14386_v42 = vmax.f32 %v10967_v34, 0.0  ;;  %v11112_v21 = vrot.slane %v2375_v11, 7 }
 0x2e2   : > { %v11098_v46 = vrot.slane %v14384_v30, 7  ;;  %v11104_v56 = vrot.slane %v14385_v27, 7  ;;  %v14387_v61 = vmax.f32 %v10973_v55, 0.0  ;;  %v11118_v30 = vrot.slane %v2377_v16, 7 }
 0x2e3   : > { %v11110_v0 = vrot.slane %v14386_v42, 7  ;;  %v14389_v36 = vmax.f32 %v10979_v1, 0.0  ;;  %v11124_v27 = vrot.slane %v2379_v4, 7  ;;  %v14392_v32 = vmax.f32 %v10915_v22, 0.0 }
 0x2e4   : > { %v11116_v43 = vrot.slane %v14387_v61, 7  ;;  %14388 = vst [vmem:[#allocation43_spill] sm:$0xff] %v11118_v30  ;;  %v14393_v42 = vmax.f32 %v10985_v60, 0.0  ;;  %v11132_v11 = vrot.slane %v2381_v18, 7  ;;  %v14396_v61 = vmax.f32 %v10991_v44, 0.0 }
 0x2e5   : > { %v11122_v59 = vrot.slane %v14389_v36, 7  ;;  %14391 = vst [vmem:[#allocation45_spill] sm:$0xff] %v11124_v27  ;;  %v2723_v19 = vrot.slane %v14392_v32, 5  ;;  %v11138_v16 = vrot.slane %v2383_v48, 7  ;;  %v11140_v30 = vrot.slane %v2384_v28, 7 }
 0x2e6   : > { %v11130_v53 = vrot.slane %v14393_v42, 7  ;;  %14395 = vst [vmem:[#allocation47_spill] sm:$0xff] %v11132_v11  ;;  %v11136_v52 = vrot.slane %v14396_v61, 7  ;;  %v11142_v36 = vrot.slane %v2385_v33, 7  ;;  %v14401_v4 = vmax.f32 %v10909_v57, 0.0 }
 0x2e7   : > { %14390 = vst [vmem:[#allocation44_spill] sm:$0xff] %v11122_v59  ;;  %14398 = vst [vmem:[#allocation49_spill] sm:$0xff] %v11138_v16  ;;  %v14402_v32 = vmax.f32 %v10921_v13, 0.0  ;;  %v14403_v18 = vmax.f32 %v10927_v12, 0.0  ;;  %v14404_v61 = vmax.f32 %v10933_v39, 0.0  ;;  %v14405_v48 = vmax.f32 %v10939_v38, 0.0 }
 0x2e8   : > { %14394 = vst [vmem:[#allocation46_spill] sm:$0xff] %v11130_v53  ;;  %14397 = vst [vmem:[#allocation48_spill] sm:$0xff] %v11136_v52  ;;  %v2722_v22 = vrot.slane %v14401_v4, 5  ;;  %v14406_v33 = vmax.f32 %v10945_v7, 0.0  ;;  %v2736_v4 = vrot.slane %v2384_v28, 5  ;;  %v2631_v13 = vsel %vm2625_vm12, %v2629_v63, %v2630_v41 }
 0x2e9   : > { %14399 = vst [vmem:[#allocation50_spill] sm:$0xff] %v11140_v30  ;;  %14400 = vst [vmem:[#allocation51_spill] sm:$0xff] %v11142_v36  ;;  %v11148_v27 = vrot.slane %v14402_v32, 5  ;;  %v11152_v42 = vrot.slane %v14403_v18, 5  ;;  %v11156_v11 = vrot.slane %v14404_v61, 5  ;;  %v11160_v16 = vrot.slane %v14405_v48, 5 }
 0x2ea   : > { %v11164_v57 = vrot.slane %v14406_v33, 5  ;;  %v2755_v32 = vsel %vm2625_vm12, %v2578_v10, %v2629_v63  ;;  %v2771_v12 = vsel %vm2625_vm12, %v2630_v41, %v2723_v19  ;;  %v2922_v39 = vrot.slane %v2631_v13, 2 }
 0x2eb   : > { %v2819_v18 = vrot.slane %v2771_v12, 1  ;;  %v2921_v36 = vrot.slane %v2755_v32, 2  ;;  %v2924_v61 = vrot.slane %v2771_v12, 2  ;;  %v11171_v38 = vsel %vm2625_vm12, %v11140_v30, %v2736_v4 }
 0x2ec   : > { %v2628_v48 = vsel %vm2625_vm12, %v2626_v29, %v2627_v9  ;;  %v2754_v7 = vsel %vm2625_vm12, %v11030_v6, %v2626_v29  ;;  %v2816_v28 = vrot.slane %v2755_v32, 1  ;;  %v14407_v33 = vmax.f32 %v10955_v8, 0.0 }
 0x2ed   : > { %v14408_v41 = vmax.f32 %v10961_v62, 0.0  ;;  %v2821_v19 = vrot.slane %v2754_v7, 1  ;;  %v2822_v10 = vrot.slane %v2628_v48, 1  ;;  %v2926_v12 = vrot.slane %v2754_v7, 2 }
 0x2ee   : > { %v11178_v52 = vrot.slane %v14407_v33, 5  ;;  %v2927_v53 = vrot.slane %v2628_v48, 2  ;;  %v11184_v4 = vpack.c.bf16 %v2628_v48, %v2754_v7  ;;  %v2817_v30 = vrot.slane %v2631_v13, 1 }
 0x2ef   : > { %v11182_v63 = vrot.slane %v14408_v41, 5  ;;  %v14409_v59 = vmax.f32 %v10967_v34, 0.0  ;;  %v2923_v29 = vsel %vm734_vm1, %v2921_v36, %v2922_v39  ;;  %v2925_v8 = vsel %vm734_vm1, %v2922_v39, %v2924_v61  ;;  %v8862_v34 = vld [vmem:[%s14223_s5 + $0x1b8] sm:$0xff]  }
 0x2f0   : > { %v2770_v6 = vsel %vm2625_vm12, %v2627_v9, %v2722_v22  ;;  %3866 = vmatprep.mubr.bf16.mxu0 %v11184_v4  ;;  %v2818_v62 = vsel %vm653_vm0, %v2816_v28, %v2817_v30  ;;  %v2820_v33 = vsel %vm653_vm0, %v2817_v30, %v2819_v18  ;;  %v11196_v41 = vpack.c.bf16 %v2925_v8, %v2923_v29  ;;  %v8852_v9 = vld [vmem:[%s14223_s5 + $0x138] sm:$0xff]   ;;  %v8864_v30 = vld [vmem:[%s14223_s5 + $0x1f0] sm:$0xff]  }
 0x2f1   : > { %v11188_v47 = vrot.slane %v14409_v59, 5  ;;  %v11198_v48 = vpack.c.bf16 %v2631_v13, %v2755_v32  ;;  %v11203_v59 = vpack.c.bf16 %v2820_v33, %v2818_v62  ;;  %v2823_v36 = vsel %vm653_vm0, %v2821_v19, %v2822_v10  ;;  %v8853_v28 = vld [vmem:[%s14223_s5 + $0x170] sm:$0xff]  }
 0x2f2   : > { %v2824_v39 = vrot.slane %v2770_v6, 1  ;;  %v2929_v22 = vrot.slane %v2770_v6, 2  ;;  %v14410_v13 = vmax.f32 %v10973_v55, 0.0  ;;  %3867 = vmatmul.mubr.bf16.vlgmr.msra.gmra.mxu0 %v11196_v41  ;;  %v2928_v18 = vsel %vm734_vm1, %v2926_v12, %v2927_v53 }
 0x2f3   : > { %v2634_v61 = vsel %vm2625_vm12, %v11064_v5, %v11068_v51  ;;  %v2756_v7 = vsel %vm2625_vm12, %v11032_v37, %v11064_v5  ;;  %v14411_v55 = vmax.f32 %v10979_v1, 0.0  ;;  %v14412_v29 = vmax.f32 %v10985_v60, 0.0  ;;  %3705 = vmatprep.mubr.bf16.mxu1 %v11203_v59  ;;  %3874 = vmatprep.mubr.bf16.mxu0 %v11198_v48 }
 0x2f4   : > { %v11214_v32 = vrot.slane %v14410_v13, 5  ;;  %v2825_v12 = vsel %vm653_vm0, %v2822_v10, %v2824_v39  ;;  %v2930_v5 = vsel %vm734_vm1, %v2927_v53, %v2929_v22  ;;  %v14413_v37 = vmax.f32 %v10991_v44, 0.0  ;;  %3706 = vmatmul.mubr.bf16.vlgmr.msra.gmra.mxu1 %v11198_v48  ;;  %7516 = vmatpush3.bf16.msra.mxu0 %v8862_v34  ;;  %v8866_v10 = vld [vmem:[%s14223_s5 + $0x1b0] sm:$0xff]  }
 0x2f5   : > { %v11229_v19 = vrot.slane %v14411_v55, 5  ;;  %v11233_v8 = vrot.slane %v14412_v29, 5  ;;  %v11245_v62 = vpack.c.bf16 %v2825_v12, %v2823_v36  ;;  %v2757_v60 = vsel %vm2625_vm12, %v11034_v26, %v11070_v25  ;;  %7404 = vmatpush3.bf16.msra.mxu1 %v8852_v9  ;;  %v8854_v36 = vld [vmem:[%s14223_s5 + $0x130] sm:$0xff]   ;;  %7517 = vmatprep.subr.bf16.mxu0 %v8864_v30  ;;  %v8868_v26 = vld [vmem:[%s14223_s5 + $0x1e8] sm:$0xff]  }
 0x2f6   : > { %v11241_v6 = vrot.slane %v14413_v37, 5  ;;  %v11253_v53 = vpack.c.bf16 %v2930_v5, %v2928_v18  ;;  %v2826_v44 = vrot.slane %v2756_v7, 1  ;;  %v2827_v33 = vrot.slane %v2634_v61, 1  ;;  %7405 = vmatprep.subr.bf16.mxu1 %v8853_v28  ;;  %v8855_v29 = vld [vmem:[%s14223_s5 + $0x168] sm:$0xff]  }
 0x2f7   : > { %v2637_v39 = vsel %vm2625_vm12, %v11070_v25, %v11074_v49  ;;  %3713 = vmatprep.mubr.bf16.mxu1 %v11245_v62  ;;  %v2931_v34 = vrot.slane %v2756_v7, 2  ;;  %v2932_v9 = vrot.slane %v2634_v61, 2  ;;  %v11265_v22 = vpack.c.bf16 %v2634_v61, %v2756_v7 }
 0x2f8   : > { %v2772_v25 = vsel %vm2625_vm12, %v11068_v51, %v11148_v27  ;;  %v2831_v13 = vrot.slane %v2757_v60, 1  ;;  %v11273_v30 = vsel %vm2625_vm12, %v11076_v45, %v11080_v15  ;;  %v2832_v12 = vrot.slane %v2637_v39, 1  ;;  %7518 = vmatpush3.bf16.msra.mxu0 %v8866_v10  ;;  %v8870_v51 = vld [vmem:[%s14223_s5 + $0x1a8] sm:$0xff]  }
 0x2f9   : > { %v2829_v18 = vrot.slane %v2772_v25, 1  ;;  %v2934_v55 = vrot.slane %v2772_v25, 2  ;;  %v2936_v61 = vrot.slane %v2757_v60, 2  ;;  %v2937_v7 = vrot.slane %v2637_v39, 2  ;;  %7406 = vmatpush3.bf16.msra.mxu1 %v8854_v36  ;;  %7519 = vmatprep.subr.bf16.mxu0 %v8868_v26  ;;  %v8871_v26 = vld [vmem:[%s14223_s5 + $0x1e0] sm:$0xff]  }
 0x2fa   : > { %v2773_v28 = vsel %vm2625_vm12, %v11074_v49, %v11152_v42  ;;  %v11285_v5 = vpack.c.bf16 %v2637_v39, %v2757_v60  ;;  %v2828_v37 = vsel %vm653_vm0, %v2826_v44, %v2827_v33  ;;  %v2758_v25 = vsel %vm2625_vm12, %v11036_v54, %v11076_v45  ;;  %v8856_v49 = vld [vmem:[%s14223_s5 + $0x128] sm:$0xff]   ;;  %3875 = vmatmul.mubr.bf16.gmra.mxu0 %v11253_v53  ;;  %v8857_v39 = vld [vmem:[%s14223_s5 + $0x160] sm:$0xff]  }
 0x2fb   : > { %v2830_v42 = vsel %vm653_vm0, %v2827_v33, %v2829_v18  ;;  %v2933_v10 = vsel %vm734_vm1, %v2931_v34, %v2932_v9  ;;  %v2837_v60 = vrot.slane %v11273_v30, 1  ;;  %v2942_v44 = vrot.slane %v11273_v30, 2  ;;  %3882 = vmatprep.mubr.bf16.mxu0 %v11265_v22  ;;  %7407 = vmatprep.subr.bf16.mxu1 %v8855_v29 }
 0x2fc   : > { %14414 = vst [vmem:[#allocation52_spill] sm:$0xff] %v11285_v5  ;;  %v2935_v54 = vsel %vm734_vm1, %v2932_v9, %v2934_v55  ;;  %v2834_v45 = vrot.slane %v2773_v28, 1  ;;  %v2939_v36 = vrot.slane %v2773_v28, 2  ;;  %v11307_v33 = vsel %vm2625_vm12, %v11082_v40, %v11086_v23  ;;  %3714 = vmatmul.mubr.bf16.gmra.mxu1 %v11184_v4  ;;  %7520 = vmatpush3.bf16.msra.mxu0 %v8870_v51  ;;  %v8872_v55 = vld [vmem:[%s14223_s5 + $0x1a0] sm:$0xff]  }
 0x2fd   : > { %v2836_v34 = vrot.slane %v2758_v25, 1  ;;  %v2833_v18 = vsel %vm653_vm0, %v2831_v13, %v2832_v12  ;;  %v2938_v27 = vsel %vm734_vm1, %v2936_v61, %v2937_v7  ;;  %v2774_v9 = vsel %vm2625_vm12, %v11080_v15, %v11156_v11  ;;  %3721 = vmatprep.mubr.bf16.mxu1 %v11203_v59  ;;  %7408 = vmatpush3.bf16.msra.mxu1 %v8856_v49  ;;  %v8858_v15 = vld [vmem:[%s14223_s5 + $0x120] sm:$0xff]   ;;  %v8873_v11 = vld [vmem:[%s14223_s5 + $0x1d8] sm:$0xff]  }
 0x2fe   : > { %v2941_v29 = vrot.slane %v2758_v25, 2  ;;  %v2835_v28 = vsel %vm653_vm0, %v2832_v12, %v2834_v45  ;;  %v2940_v4 = vsel %vm734_vm1, %v2937_v7, %v2939_v36  ;;  %v2759_v13 = vsel %vm2625_vm12, %v11038_v35, %v11082_v40  ;;  %7409 = vmatprep.subr.bf16.mxu1 %v8857_v39  ;;  %7521 = vmatprep.subr.bf16.mxu0 %v8871_v26  ;;  %v8875_v39 = vld [vmem:[%s14223_s5 + $0x198] sm:$0xff]  }
 0x2ff   : > { %v11333_v61 = vpack.c.bf16 %v2830_v42, %v2828_v37  ;;  %v11335_v51 = vpack.c.bf16 %v2935_v54, %v2933_v10  ;;  %v11338_v12 = vpack.c.bf16 %v11273_v30, %v2758_v25  ;;  %v2842_v7 = vrot.slane %v11307_v33, 1  ;;  %v8859_v37 = vld [vmem:[%s14223_s5 + $0x158] sm:$0xff]  }
 0x300   : > { %v2947_v40 = vrot.slane %v11307_v33, 2  ;;  %v2839_v35 = vrot.slane %v2774_v9, 1  ;;  %v2944_v49 = vrot.slane %v2774_v9, 2  ;;  %v11345_v45 = vsel %vm2625_vm12, %v11088_v50, %v11092_v20  ;;  %7522 = vmatpush3.bf16.msra.mxu0 %v8872_v55  ;;  %v8861_v26 = vld [vmem:[%s14223_s5 + $0x118] sm:$0xff]  }
 0x301   : > { %14415 = vst [vmem:[#allocation53_spill] sm:$0xff] %v11338_v12  ;;  %v11350_v42 = vpack.c.bf16 %v2835_v28, %v2833_v18  ;;  %v11352_v30 = vpack.c.bf16 %v2940_v4, %v2938_v27  ;;  %v2841_v25 = vrot.slane %v2759_v13, 1  ;;  %v2775_v10 = vsel %vm2625_vm12, %v11086_v23, %v11160_v16  ;;  %7410 = vmatpush3.bf16.msra.mxu1 %v8858_v15  ;;  %v8878_v15 = vld [vmem:[%s14223_s5 + $0x190] sm:$0xff]  }
 0x302   : > { %v2946_v54 = vrot.slane %v2759_v13, 2  ;;  %v2838_v36 = vsel %vm653_vm0, %v2836_v34, %v2837_v60  ;;  %v2840_v9 = vsel %vm653_vm0, %v2837_v60, %v2839_v35  ;;  %v2760_v27 = vsel %vm2625_vm12, %v11040_v17, %v11088_v50  ;;  %7523 = vmatprep.subr.bf16.mxu0 %v8873_v11  ;;  %3883 = vmatmul.mubr.bf16.gmra.mxu0 %v11196_v41  ;;  %v8863_v17 = vld [vmem:[%s14223_s5 + $0x150] sm:$0xff]  }
 0x303   : > { %14416 = vst [vmem:[#allocation54_spill] sm:$0xff] %v11352_v30  ;;  %v11370_v23 = vpack.c.bf16 %v11307_v33, %v2759_v13  ;;  %v2943_v16 = vsel %vm734_vm1, %v2941_v29, %v2942_v44  ;;  %v2847_v34 = vrot.slane %v11345_v45, 1  ;;  %v2952_v60 = vrot.slane %v11345_v45, 2  ;;  %3890 = vmatprep.mubr.bf16.mxu0 %v11285_v5  ;;  %7411 = vmatprep.subr.bf16.mxu1 %v8859_v37  ;;  %v8877_v29 = vld [vmem:[%s14223_s5 + $0x1d0] sm:$0xff]  }
 0x304   : > { %v2945_v50 = vsel %vm734_vm1, %v2942_v44, %v2944_v49  ;;  %v2844_v18 = vrot.slane %v2775_v10, 1  ;;  %v2949_v55 = vrot.slane %v2775_v10, 2  ;;  %v11383_v33 = vsel %vm2625_vm12, %v11094_v31, %v11098_v46  ;;  %3722 = vmatmul.mubr.bf16.gmra.mxu1 %v11198_v48  ;;  %7524 = vmatpush3.bf16.msra.mxu0 %v8875_v39 }
 0x305   : > { %14417 = vst [vmem:[#allocation55_spill] sm:$0xff] %v11370_v23  ;;  %v11389_v28 = vpack.c.bf16 %v2840_v9, %v2838_v36  ;;  %v2846_v4 = vrot.slane %v2760_v27, 1  ;;  %v2843_v13 = vsel %vm653_vm0, %v2841_v25, %v2842_v7  ;;  %v2776_v44 = vsel %vm2625_vm12, %v11092_v20, %v11164_v57  ;;  %3729 = vmatprep.mubr.bf16.mxu1 %v11333_v61  ;;  %v8865_v25 = vld [vmem:[%s14223_s5 + $0x110] sm:$0xff]   ;;  %v8879_v20 = vld [vmem:[%s14223_s5 + $0x1c8] sm:$0xff]  }
 0x306   : > { %v2951_v11 = vrot.slane %v2760_v27, 2  ;;  %v2845_v35 = vsel %vm653_vm0, %v2842_v7, %v2844_v18  ;;  %v2948_v49 = vsel %vm734_vm1, %v2946_v54, %v2947_v40  ;;  %v2950_v37 = vsel %vm734_vm1, %v2947_v40, %v2949_v55  ;;  %7412 = vmatpush3.bf16.msra.mxu1 %v8861_v26  ;;  %7525 = vmatprep.subr.bf16.mxu0 %v8877_v29 }
 0x307   : > { %14418 = vst [vmem:[#allocation56_spill] sm:$0xff] %v11389_v28  ;;  %v11408_v57 = vpack.c.bf16 %v2945_v50, %v2943_v16  ;;  %v11411_v10 = vpack.c.bf16 %v11345_v45, %v2760_v27  ;;  %v11416_v7 = vsel %vm2625_vm12, %v11042_v58, %v11094_v31  ;;  %v2852_v40 = vrot.slane %v11383_v33, 1  ;;  %7413 = vmatprep.subr.bf16.mxu1 %v8863_v17  ;;  %v8867_v45 = vld [vmem:[%s14223_s5 + $0x148] sm:$0xff]  }
 0x308   : > { %v11419_v39 = vpack.c.bf16 %v2845_v35, %v2843_v13  ;;  %v2849_v54 = vrot.slane %v2776_v44, 1  ;;  %v2954_v36 = vrot.slane %v2776_v44, 2  ;;  %v11424_v9 = vsel %vm2625_vm12, %v11100_v3, %v11104_v56  ;;  %7526 = vmatpush3.bf16.msra.mxu0 %v8878_v15  ;;  %v8880_v16 = vld [vmem:[%s14223_s5 + $0x188] sm:$0xff]   ;;  %v8881_v15 = vld [vmem:[%s14223_s5 + $0x1c0] sm:$0xff]  }
 0x309   : > { %14419 = vst [vmem:[#allocation57_spill] sm:$0xff] %v11408_v57  ;;  %v11429_v27 = vpack.c.bf16 %v2950_v37, %v2948_v49  ;;  %v2848_v58 = vsel %vm653_vm0, %v2846_v4, %v2847_v34  ;;  %v11435_v31 = vsel %vm2625_vm12, %v11044_v14, %v11100_v3  ;;  %v11440_v26 = vsel %vm2625_vm12, %v11098_v46, %v11178_v52  ;;  %v8869_v14 = vld [vmem:[%s14223_s5 + $0x108] sm:$0xff]  }
 0x30a   : > { %14420 = vst [vmem:[#allocation58_spill] sm:$0xff] %v11419_v39  ;;  %v2851_v17 = vrot.slane %v11416_v7, 1  ;;  %v2850_v50 = vsel %vm653_vm0, %v2847_v34, %v2849_v54  ;;  %v2953_v18 = vsel %vm734_vm1, %v2951_v11, %v2952_v60  ;;  %v2955_v55 = vsel %vm734_vm1, %v2952_v60, %v2954_v36  ;;  %7414 = vmatpush3.bf16.msra.mxu1 %v8865_v25  ;;  %v8874_v60 = vld [vmem:[%s14223_s5 + $0x140] sm:$0xff]  }
 0x30b   : > { %14421 = vst [vmem:[#allocation59_spill] sm:$0xff] %v11429_v27  ;;  %7527 = vmatprep.subr.bf16.mxu0 %v8879_v20  ;;  %3891 = vmatmul.mubr.bf16.gmra.mxu0 %v11335_v51  ;;  %v11455_v46 = vpack.c.bf16 %v11383_v33, %v11416_v7  ;;  %v2856_v52 = vrot.slane %v11435_v31, 1  ;;  %v2857_v3 = vrot.slane %v11424_v9, 1  ;;  %v2962_v34 = vrot.slane %v11424_v9, 2  ;;  %v8882_v25 = vld [vmem:[%s14223_s5 + $0x180] sm:$0xff]  }
 0x30c   : > { %3898 = vmatprep.mubr.bf16.mxu0 %v11338_v12  ;;  %v11464_v29 = vpack.c.bf16 %v2850_v50, %v2848_v58  ;;  %v2961_v4 = vrot.slane %v11435_v31, 2  ;;  %v2854_v13 = vrot.slane %v11440_v26, 1  ;;  %v2655_v44 = vsel %vm2625_vm12, %v11106_v2, %v11110_v0  ;;  %7415 = vmatprep.subr.bf16.mxu1 %v8867_v45 }
 0x30d   : > { %3730 = vmatmul.mubr.bf16.gmra.mxu1 %v11265_v22  ;;  %v11476_v35 = vpack.c.bf16 %v2955_v55, %v2953_v18  ;;  %v2763_v49 = vsel %vm2625_vm12, %v11046_v24, %v11106_v2  ;;  %v2778_v37 = vsel %vm2625_vm12, %v11104_v56, %v11182_v63  ;;  %7528 = vmatpush3.bf16.msra.mxu0 %v8880_v16  ;;  %v2862_v36 = vrot.slane %v2655_v44, 1  ;;  %v8876_v56 = vld [vmem:[%s14223_s5 + $0x100] sm:$0xff]   ;;  %v11507_v18 = vld [vmem:[%s14223_s5 + $0x238] sm:$0xff]  }
 0x30e   : > { %3737 = vmatprep.mubr.bf16.mxu1 %v11350_v42  ;;  %v11489_v20 = vsel %vm653_vm0, %v2851_v17, %v2852_v40  ;;  %v11492_v54 = vsel %vm653_vm0, %v2852_v40, %v2854_v13  ;;  %v2967_v45 = vrot.slane %v2655_v44, 2  ;;  %7416 = vmatpush3.bf16.msra.mxu1 %v8869_v14  ;;  %v2861_v24 = vrot.slane %v2763_v49, 1  ;;  %v14422_v55 = vld [vmem:[#allocation37_spill] sm:$0xff] }
 0x30f   : > { %v2966_v2 = vrot.slane %v2763_v49, 2  ;;  %v11497_v63 = vpack.c.bf16 %v2655_v44, %v2763_v49  ;;  %v2858_v58 = vsel %vm653_vm0, %v2856_v52, %v2857_v3  ;;  %7417 = vmatprep.subr.bf16.mxu1 %v8874_v60  ;;  %v2859_v16 = vrot.slane %v2778_v37, 1  ;;  %7529 = vmatprep.subr.bf16.mxu0 %v8881_v15 }
 0x310   : > { %v2963_v17 = vsel %vm734_vm1, %v2961_v4, %v2962_v34  ;;  %v2964_v50 = vrot.slane %v2778_v37, 2  ;;  %v2658_v40 = vsel %vm2625_vm12, %v11112_v21, %v11116_v43  ;;  %v2764_v14 = vsel %vm2625_vm12, %v14422_v55, %v11112_v21 }
 0x311   : > { %v2867_v52 = vrot.slane %v2658_v40, 1  ;;  %v2972_v60 = vrot.slane %v2658_v40, 2  ;;  %v2779_v4 = vsel %vm2625_vm12, %v11110_v0, %v11188_v47  ;;  %7530 = vmatpush3.bf16.msra.mxu0 %v8882_v25  ;;  %v2860_v13 = vsel %vm653_vm0, %v2857_v3, %v2859_v16  ;;  %v14424_v25 = vld [vmem:[#allocation43_spill] sm:$0xff] }
 0x312   : > { %v2965_v44 = vsel %vm734_vm1, %v2962_v34, %v2964_v50  ;;  %v2866_v15 = vrot.slane %v2764_v14, 1  ;;  %v2971_v49 = vrot.slane %v2764_v14, 2  ;;  %7418 = vmatpush3.bf16.msra.mxu1 %v8876_v56  ;;  %v11518_v37 = vpack.c.bf16 %v2860_v13, %v2858_v58  ;;  %v14423_v34 = vld [vmem:[#allocation44_spill] sm:$0xff]  ;;  %v14425_v58 = vld [vmem:[#allocation38_spill] sm:$0xff] }
 0x313   : > { %3899 = vmatmul.mubr.bf16.gmra.mxu0 %v11352_v30  ;;  %v11520_v11 = vpack.c.bf16 %v2965_v44, %v2963_v17  ;;  %v11522_v21 = vpack.c.bf16 %v2658_v40, %v2764_v14  ;;  %v2863_v55 = vsel %vm653_vm0, %v2861_v24, %v2862_v36  ;;  %v2864_v0 = vrot.slane %v2779_v4, 1  ;;  %7907 = vmatprep.subr.bf16.mxu1 %v11507_v18 }
 0x314   : > { %3906 = vmatprep.mubr.bf16.mxu0 %v11370_v23  ;;  %v2968_v47 = vsel %vm734_vm1, %v2966_v2, %v2967_v45  ;;  %v2969_v3 = vrot.slane %v2779_v4, 2  ;;  %v2661_v56 = vsel %vm2625_vm12, %v14424_v25, %v14423_v34  ;;  %v2765_v16 = vsel %vm2625_vm12, %v14425_v58, %v14424_v25 }
 0x315   : > { %3738 = vmatmul.mubr.bf16.gmra.mxu1 %v11285_v5  ;;  %v2872_v17 = vrot.slane %v2661_v56, 1  ;;  %v2977_v24 = vrot.slane %v2661_v56, 2  ;;  %v2780_v50 = vsel %vm2625_vm12, %v11116_v43, %v11214_v32  ;;  %v2865_v2 = vsel %vm653_vm0, %v2862_v36, %v2864_v0  ;;  %v14426_v32 = vld [vmem:[#allocation46_spill] sm:$0xff] }
 0x316   : > { %3745 = vmatprep.mubr.bf16.mxu1 %v11389_v28  ;;  %v2970_v40 = vsel %vm734_vm1, %v2967_v45, %v2969_v3  ;;  %v2871_v14 = vrot.slane %v2765_v16, 1  ;;  %v2976_v4 = vrot.slane %v2765_v16, 2  ;;  %v11541_v13 = vpack.c.bf16 %v2865_v2, %v2863_v55  ;;  %v14427_v28 = vld [vmem:[#allocation45_spill] sm:$0xff]  ;;  %v14428_v45 = vld [vmem:[#allocation39_spill] sm:$0xff] }
 0x317   : > { %v11543_v44 = vpack.c.bf16 %v2970_v40, %v2968_v47  ;;  %v11545_v1 = vpack.c.bf16 %v2661_v56, %v2765_v16  ;;  %v2868_v25 = vsel %vm653_vm0, %v2866_v15, %v2867_v52  ;;  %v2869_v58 = vrot.slane %v2780_v50, 1 }
 0x318   : > { %v2973_v30 = vsel %vm734_vm1, %v2971_v49, %v2972_v60  ;;  %v2974_v43 = vrot.slane %v2780_v50, 2  ;;  %v2664_v36 = vsel %vm2625_vm12, %v14427_v28, %v14426_v32  ;;  %v2766_v0 = vsel %vm2625_vm12, %v14428_v45, %v14427_v28 }
 0x319   : > { %v2877_v55 = vrot.slane %v2664_v36, 1  ;;  %v2982_v3 = vrot.slane %v2664_v36, 2  ;;  %v2781_v47 = vsel %vm2625_vm12, %v14423_v34, %v11229_v19  ;;  %v2870_v15 = vsel %vm653_vm0, %v2867_v52, %v2869_v58  ;;  %v14429_v34 = vld [vmem:[#allocation48_spill] sm:$0xff] }
 0x31a   : > { %v2975_v56 = vsel %vm734_vm1, %v2972_v60, %v2974_v43  ;;  %v2876_v49 = vrot.slane %v2766_v0, 1  ;;  %v2981_v16 = vrot.slane %v2766_v0, 2  ;;  %v11561_v50 = vpack.c.bf16 %v2870_v15, %v2868_v25  ;;  %v14430_v60 = vld [vmem:[#allocation47_spill] sm:$0xff]  ;;  %v14431_v25 = vld [vmem:[#allocation40_spill] sm:$0xff] }
 0x31b   : > { %3907 = vmatmul.mubr.bf16.gmra.mxu0 %v11408_v57  ;;  %v11563_v2 = vpack.c.bf16 %v2975_v56, %v2973_v30  ;;  %v11565_v40 = vpack.c.bf16 %v2664_v36, %v2766_v0  ;;  %v2873_v28 = vsel %vm653_vm0, %v2871_v14, %v2872_v17  ;;  %v2874_v45 = vrot.slane %v2781_v47, 1 }
 0x31c   : > { %3914 = vmatprep.mubr.bf16.mxu0 %v11411_v10  ;;  %v2978_v19 = vsel %vm734_vm1, %v2976_v4, %v2977_v24  ;;  %v2979_v52 = vrot.slane %v2781_v47, 2  ;;  %v2667_v58 = vsel %vm2625_vm12, %v14430_v60, %v14429_v34  ;;  %v2767_v30 = vsel %vm2625_vm12, %v14431_v25, %v14430_v60 }
 0x31d   : > { %3746 = vmatmul.mubr.bf16.gmra.mxu1 %v11338_v12  ;;  %v2882_v43 = vrot.slane %v2667_v58, 1  ;;  %v2987_v36 = vrot.slane %v2667_v58, 2  ;;  %v2782_v14 = vsel %vm2625_vm12, %v14426_v32, %v11233_v8  ;;  %v2875_v4 = vsel %vm653_vm0, %v2872_v17, %v2874_v45  ;;  %v14432_v32 = vld [vmem:[#allocation50_spill] sm:$0xff] }
 0x31e   : > { %3753 = vmatprep.mubr.bf16.mxu1 %v11419_v39  ;;  %v2980_v0 = vsel %vm734_vm1, %v2977_v24, %v2979_v52  ;;  %v2881_v47 = vrot.slane %v2767_v30, 1  ;;  %v2986_v15 = vrot.slane %v2767_v30, 2  ;;  %v11583_v56 = vpack.c.bf16 %v2875_v4, %v2873_v28  ;;  %v14433_v39 = vld [vmem:[#allocation49_spill] sm:$0xff] }
 0x31f   : > { %v11585_v57 = vpack.c.bf16 %v2980_v0, %v2978_v19  ;;  %v11587_v12 = vpack.c.bf16 %v2667_v58, %v2767_v30  ;;  %v2878_v60 = vsel %vm653_vm0, %v2876_v49, %v2877_v55  ;;  %v2879_v25 = vrot.slane %v2782_v14, 1  ;;  %v14434_v24 = vld [vmem:[#allocation41_spill] sm:$0xff] }
 0x320   : > { %v2983_v5 = vsel %vm734_vm1, %v2981_v16, %v2982_v3  ;;  %v2984_v8 = vrot.slane %v2782_v14, 2  ;;  %v2670_v17 = vsel %vm2625_vm12, %v14433_v39, %v14432_v32  ;;  %v2768_v45 = vsel %vm2625_vm12, %v14434_v24, %v14433_v39 }
 0x321   : > { %v2887_v28 = vrot.slane %v2670_v17, 1  ;;  %v2992_v52 = vrot.slane %v2670_v17, 2  ;;  %v2783_v19 = vsel %vm2625_vm12, %v14429_v34, %v11241_v6  ;;  %v2880_v49 = vsel %vm653_vm0, %v2877_v55, %v2879_v25  ;;  %v14435_v34 = vld [vmem:[#allocation35_spill] sm:$0xff] }
 0x322   : > { %v2985_v58 = vsel %vm734_vm1, %v2982_v3, %v2984_v8  ;;  %v2886_v16 = vrot.slane %v2768_v45, 1  ;;  %v2991_v30 = vrot.slane %v2768_v45, 2  ;;  %v11603_v14 = vpack.c.bf16 %v2880_v49, %v2878_v60  ;;  %v14436_v3 = vld [vmem:[#allocation51_spill] sm:$0xff]  ;;  %v14437_v60 = vld [vmem:[#allocation42_spill] sm:$0xff] }
 0x323   : > { %3915 = vmatmul.mubr.bf16.gmra.mxu0 %v11429_v27  ;;  %v11605_v4 = vpack.c.bf16 %v2985_v58, %v2983_v5  ;;  %v11607_v0 = vpack.c.bf16 %v2670_v17, %v2768_v45  ;;  %v2883_v39 = vsel %vm653_vm0, %v2881_v47, %v2882_v43  ;;  %v2884_v32 = vrot.slane %v2783_v19, 1 }
 0x324   : > { %3922 = vmatprep.mubr.bf16.mxu0 %v11455_v46  ;;  %v2988_v6 = vsel %vm734_vm1, %v2986_v15, %v2987_v36  ;;  %v2989_v55 = vrot.slane %v2783_v19, 2  ;;  %v2673_v25 = vsel %vm2625_vm12, %v14436_v3, %v14435_v34  ;;  %v2769_v5 = vsel %vm2625_vm12, %v14437_v60, %v14436_v3 }
 0x325   : > { %3754 = vmatmul.mubr.bf16.gmra.mxu1 %v11370_v23  ;;  %v3029_v8 = vrot.slane %v2673_v25, 1  ;;  %v3036_v17 = vrot.slane %v2673_v25, 2  ;;  %v2888_v47 = vsel %vm653_vm0, %v2886_v16, %v2887_v28  ;;  %v2885_v24 = vsel %vm653_vm0, %v2882_v43, %v2884_v32  ;;  %v14440_v32 = vld [vmem:[#allocation36_spill] sm:$0xff] }
 0x326   : > { %3761 = vmatprep.mubr.bf16.mxu1 %v11464_v29  ;;  %v2990_v15 = vsel %vm734_vm1, %v2987_v36, %v2989_v55  ;;  %v3028_v45 = vrot.slane %v2769_v5, 1  ;;  %v3035_v19 = vrot.slane %v2769_v5, 2  ;;  %v11623_v49 = vpack.c.bf16 %v2885_v24, %v2883_v39 }
 0x327   : > { %v11625_v58 = vpack.c.bf16 %v2990_v15, %v2988_v6  ;;  %v11627_v27 = vpack.c.bf16 %v2673_v25, %v2769_v5  ;;  %v14438_v3 = vrot.slane %v11171_v38, 1  ;;  %v2993_v16 = vsel %vm734_vm1, %v2991_v30, %v2992_v52 }
 0x328   : > { %v14439_v43 = vrot.slane %v11171_v38, 2  ;;  %v2785_v39 = vsel %vm2625_vm12, %v14435_v34, %v14440_v32  ;;  %v3030_v55 = vsel %vm653_vm0, %v3028_v45, %v3029_v8  ;;  %v3037_v5 = vsel %vm734_vm1, %v3035_v19, %v3036_v17  ;;  %v14446_v45 = vld [vmem:[#allocation53_spill] sm:$0xff]  ;;  %v8890_v19 = vld [vmem:[%s14223_s5 + $0x200] sm:$0xff]  }
 0x329   : > { %v2890_v60 = vsel %vm653_vm0, %v2887_v28, %v14438_v3  ;;  %v3031_v25 = vrot.slane %v2785_v39, 1  ;;  %v2956_v28 = vrot.slane %v11416_v7, 2  ;;  %v11648_v30 = vpack.c.bf16 %v11424_v9, %v11435_v31  ;;  %v14447_v3 = vld [vmem:[#allocation58_spill] sm:$0xff] }
 0x32a   : > { %v11632_v23 = vpack.c.bf16 %v2890_v60, %v2888_v47  ;;  %v2995_v36 = vsel %vm734_vm1, %v2992_v52, %v14439_v43  ;;  %v2959_v38 = vrot.slane %v11440_v26, 2  ;;  %v3038_v52 = vrot.slane %v2785_v39, 2  ;;  %v14449_v60 = vld [vmem:[#allocation55_spill] sm:$0xff]  ;;  %v11766_v43 = vld [vmem:[%s14224_s6] ss:$0 sm:$0xff] }
 0x32b   : > { %v11641_v6 = vpack.c.bf16 %v2995_v36, %v2993_v16  ;;  %3923 = vmatmul.mubr.bf16.gmra.mxu0 %v11476_v35  ;;  %v3032_v34 = vsel %vm653_vm0, %v3029_v8, %v3031_v25  ;;  %v11656_v47 = vpack.c.bf16 %v11492_v54, %v11489_v20  ;;  %v14441_v31 = vrot.slane %v11383_v33, 2  ;;  %v8884_v33 = vld [vmem:[%s14223_s5 + $0x230] sm:$0xff]   ;;  %v8885_v54 = vld [vmem:[%s14223_s5 + $0x228] sm:$0xff]  }
 0x32c   : > { %3930 = vmatprep.mubr.bf16.mxu0 %v11648_v30  ;;  %v11658_v24 = vpack.c.bf16 %v3032_v34, %v3030_v55  ;;  %v3039_v7 = vsel %vm734_vm1, %v3036_v17, %v3038_v52  ;;  %v8889_v17 = vld [vmem:[%s14223_s5 + $0x208] sm:$0xff]  }
 0x32d   : > { %3762 = vmatmul.mubr.bf16.gmra.mxu1 %v11411_v10  ;;  %v11662_v9 = vpack.c.bf16 %v3039_v7, %v3037_v5  ;;  %v2958_v26 = vsel %vm734_vm1, %v2956_v28, %v14441_v31  ;;  %v14442_v8 = vmov %v14441_v31  ;;  %v14450_v16 = vld [vmem:[#allocation59_spill] sm:$0xff] }
 0x32e   : > { %3769 = vmatprep.mubr.bf16.mxu1 %v11656_v47  ;;  %v2960_v15 = vsel %vm734_vm1, %v14442_v8, %v2959_v38 }
 0x32f   : > { %v11671_v20 = vpack.c.bf16 %v2960_v15, %v2958_v26 }
 0x333   : > { %3931 = vmatmul.mubr.bf16.gmra.mxu0 %v11671_v20 }
 0x334   : > { %3938 = vmatprep.mubr.bf16.mxu0 %v11497_v63 }
 0x335   : > { %3770 = vmatmul.mubr.bf16.gmra.mxu1 %v11455_v46 }
 0x336   : > { %3777 = vmatprep.mubr.bf16.mxu1 %v11518_v37 }
 0x33b   : > { %3939 = vmatmul.mubr.bf16.gmra.mxu0 %v11520_v11 }
 0x33c   : > { %3946 = vmatprep.mubr.bf16.mxu0 %v11522_v21 }
 0x33d   : > { %3778 = vmatmul.mubr.bf16.gmra.mxu1 %v11648_v30 }
 0x33e   : > { %3785 = vmatprep.mubr.bf16.mxu1 %v11541_v13 }
 0x343   : > { %3947 = vmatmul.mubr.bf16.gmra.mxu0 %v11543_v44 }
 0x344   : > { %3954 = vmatprep.mubr.bf16.mxu0 %v11545_v1 }
 0x345   : > { %3786 = vmatmul.mubr.bf16.gmra.mxu1 %v11497_v63 }
 0x346   : > { %3793 = vmatprep.mubr.bf16.mxu1 %v11561_v50 }
 0x34b   : > { %3955 = vmatmul.mubr.bf16.gmra.mxu0 %v11563_v2 }
 0x34c   : > { %3962 = vmatprep.mubr.bf16.mxu0 %v11565_v40 }
 0x34d   : > { %3794 = vmatmul.mubr.bf16.gmra.mxu1 %v11522_v21 }
 0x34e   : > { %3801 = vmatprep.mubr.bf16.mxu1 %v11583_v56 }
 0x353   : > { %3963 = vmatmul.mubr.bf16.gmra.mxu0 %v11585_v57 }
 0x354   : > { %3970 = vmatprep.mubr.bf16.mxu0 %v11587_v12 }
 0x355   : > { %3802 = vmatmul.mubr.bf16.gmra.mxu1 %v11545_v1 }
 0x356   : > { %3809 = vmatprep.mubr.bf16.mxu1 %v11603_v14 }
 0x35b   : > { %3971 = vmatmul.mubr.bf16.gmra.mxu0 %v11605_v4 }
 0x35c   : > { %3978 = vmatprep.mubr.bf16.mxu0 %v11607_v0 }
 0x35d   : > { %3810 = vmatmul.mubr.bf16.gmra.mxu1 %v11565_v40 }
 0x35e   : > { %3817 = vmatprep.mubr.bf16.mxu1 %v11623_v49 }
 0x363   : > { %3979 = vmatmul.mubr.bf16.gmra.mxu0 %v11625_v58 }
 0x364   : > { %3986 = vmatprep.mubr.bf16.mxu0 %v11627_v27 }
 0x365   : > { %3818 = vmatmul.mubr.bf16.gmra.mxu1 %v11587_v12 }
 0x366   : > { %3825 = vmatprep.mubr.bf16.mxu1 %v11632_v23 }
 0x36b   : > { %3987 = vmatmul.mubr.bf16.gmra.mxu0 %v11641_v6 }
 0x36c   : > { %4188 = vmatprep.mubr.bf16.mxu0 %v11203_v59 }
 0x36d   : > { %3826 = vmatmul.mubr.bf16.gmra.mxu1 %v11607_v0 }
 0x36e   : > { %4027 = vmatprep.mubr.bf16.mxu1 %v11253_v53  ;;  %v14443_v53 = vld [vmem:[#allocation52_spill] sm:$0xff] }
 0x373   : > { %4189 = vmatmul.mubr.bf16.vlgmr.msra.gmra.mxu0 %v11198_v48  ;;  %v8886_v48 = vld [vmem:[%s14223_s5 + $0x220] sm:$0xff]  }
 0x374   : > { %4196 = vmatprep.mubr.bf16.mxu0 %v11333_v61 }
 0x375   : > { %4028 = vmatmul.mubr.bf16.vlgmr.msra.gmra.mxu1 %v11245_v62  ;;  %v8887_v62 = vld [vmem:[%s14223_s5 + $0x218] sm:$0xff]  }
 0x376   : > { %4035 = vmatprep.mubr.bf16.mxu1 %v11196_v41  ;;  %7908 = vmatpush3.bf16.msra.mxu1 %v11507_v18  ;;  %v14444_v18 = vld [vmem:[#allocation56_spill] sm:$0xff] }
 0x377   : > { %7909 = vmatprep.subr.bf16.mxu1 %v8884_v33 }
 0x37a   : > { %7910 = vmatpush3.bf16.msra.mxu1 %v8884_v33 }
 0x37b   : > { %4197 = vmatmul.mubr.bf16.gmra.mxu0 %v11265_v22  ;;  %7911 = vmatprep.subr.bf16.mxu1 %v8885_v54  ;;  %v8888_v22 = vld [vmem:[%s14223_s5 + $0x210] sm:$0xff]  }
 0x37c   : > { %4204 = vmatprep.mubr.bf16.mxu0 %v11350_v42 }
 0x37d   : > { %4036 = vmatmul.mubr.bf16.gmra.mxu1 %v11203_v59  ;;  %v14445_v59 = vld [vmem:[#allocation54_spill] sm:$0xff] }
 0x37e   : > { %4043 = vmatprep.mubr.bf16.mxu1 %v11335_v51  ;;  %7912 = vmatpush3.bf16.msra.mxu1 %v8885_v54 }
 0x37f   : > { %7913 = vmatprep.subr.bf16.mxu1 %v8886_v48 }
 0x382   : > { %7914 = vmatpush3.bf16.msra.mxu1 %v8886_v48 }
 0x383   : > { %4205 = vmatmul.mubr.bf16.gmra.mxu0 %v14443_v53  ;;  %7915 = vmatprep.subr.bf16.mxu1 %v8887_v62 }
 0x384   : > { %4212 = vmatprep.mubr.bf16.mxu0 %v14444_v18 }
 0x385   : > { %4044 = vmatmul.mubr.bf16.gmra.mxu1 %v11333_v61  ;;  %v14448_v61 = vld [vmem:[#allocation57_spill] sm:$0xff] }
 0x386   : > { %4051 = vmatprep.mubr.bf16.mxu1 %v14445_v59  ;;  %7916 = vmatpush3.bf16.msra.mxu1 %v8887_v62 }
 0x387   : > { %7917 = vmatprep.subr.bf16.mxu1 %v8888_v22 }
 0x38a   : > { %7918 = vmatpush3.bf16.msra.mxu1 %v8888_v22 }
 0x38b   : > { %4213 = vmatmul.mubr.bf16.gmra.mxu0 %v14446_v45  ;;  %7919 = vmatprep.subr.bf16.mxu1 %v8889_v17 }
 0x38c   : > { %4220 = vmatprep.mubr.bf16.mxu0 %v14447_v3 }
 0x38d   : > { %4052 = vmatmul.mubr.bf16.gmra.mxu1 %v11350_v42 }
 0x38e   : > { %4059 = vmatprep.mubr.bf16.mxu1 %v14448_v61  ;;  %7920 = vmatpush3.bf16.msra.mxu1 %v8889_v17 }
 0x38f   : > { %7921 = vmatprep.subr.bf16.mxu1 %v8890_v19 }
 0x392   : > { %7922 = vmatpush3.bf16.msra.mxu1 %v8890_v19 }
 0x393   : > { %4221 = vmatmul.mubr.bf16.gmra.mxu0 %v14449_v60 }
 0x394   : > { %4228 = vmatprep.mubr.bf16.mxu0 %v11464_v29 }
 0x395   : > { %4060 = vmatmul.mubr.bf16.gmra.mxu1 %v14444_v18 }
 0x396   : > { %4067 = vmatprep.mubr.bf16.mxu1 %v14450_v16 }
 0x39b   : > { %4229 = vmatmul.mubr.bf16.gmra.mxu0 %v11411_v10 }
 0x39c   : > { %4236 = vmatprep.mubr.bf16.mxu0 %v11656_v47 }
 0x39d   : > { %4068 = vmatmul.mubr.bf16.gmra.mxu1 %v14447_v3 }
 0x39e   : > { %4075 = vmatprep.mubr.bf16.mxu1 %v11476_v35 }
 0x3a3   : > { %4237 = vmatmul.mubr.bf16.gmra.mxu0 %v11455_v46 }
 0x3a4   : > { %4244 = vmatprep.mubr.bf16.mxu0 %v11518_v37 }
 0x3a5   : > { %4076 = vmatmul.mubr.bf16.gmra.mxu1 %v11464_v29 }
 0x3a6   : > { %4083 = vmatprep.mubr.bf16.mxu1 %v11671_v20 }
 0x3ab   : > { %4245 = vmatmul.mubr.bf16.gmra.mxu0 %v11648_v30 }
 0x3ac   : > { %4252 = vmatprep.mubr.bf16.mxu0 %v11541_v13 }
 0x3ad   : > { %4084 = vmatmul.mubr.bf16.gmra.mxu1 %v11656_v47 }
 0x3ae   : > { %4091 = vmatprep.mubr.bf16.mxu1 %v11520_v11 }
 0x3b2   : > { %v7307_v42 = vpop.f32.mrf.mxu0 }
 0x3b3   : > { %4253 = vmatmul.mubr.bf16.gmra.mxu0 %v11497_v63 }
 0x3b4   : > { %4260 = vmatprep.mubr.bf16.mxu0 %v11561_v50  ;;  %v7195_v10 = vpop.f32.mrf.mxu1  ;;  %v7308_v46 = vpop.f32.mrf.mxu0 }
 0x3b5   : > { %4092 = vmatmul.mubr.bf16.gmra.mxu1 %v11518_v37  ;;  %v7309_v29 = vadd.f32 %v7308_v46, %v7307_v42 }
 0x3b6   : > { %4099 = vmatprep.mubr.bf16.mxu1 %v11543_v44  ;;  %v7196_v36 = vpop.f32.mrf.mxu1  ;;  %v7310_v32 = vpop.f32.mrf.mxu0 }
 0x3b7   : > { %v7197_v39 = vadd.f32 %v7196_v36, %v7195_v10 }
 0x3b8   : > { %v7198_v55 = vpop.f32.mrf.mxu1  ;;  %v7311_v25 = vpop.f32.mrf.mxu0 }
 0x3b9   : > { %v3708_v63 = vadd.f32 %v7197_v39, %v11766_v43  ;;  %v7312_v5 = vadd.f32 %v7311_v25, %v7310_v32 }
 0x3ba   : > { %v7199_v28 = vpop.f32.mrf.mxu1  ;;  %v7313_v30 = vpop.f32.mrf.mxu0 }
 0x3bb   : > { %4261 = vmatmul.mubr.bf16.gmra.mxu0 %v11522_v21  ;;  %v7200_v37 = vadd.f32 %v7199_v28, %v7198_v55  ;;  %v11771_v38 = vadd.f32 %v7309_v29, %v3708_v63 }
 0x3bc   : > { %4268 = vmatprep.mubr.bf16.mxu0 %v11583_v56  ;;  %v7201_v52 = vpop.f32.mrf.mxu1  ;;  %v7314_v34 = vpop.f32.mrf.mxu0 }
 0x3bd   : > { %4100 = vmatmul.mubr.bf16.gmra.mxu1 %v11541_v13  ;;  %v3711_v47 = vadd.f32 %v7200_v37, %v11766_v43  ;;  %v7315_v7 = vadd.f32 %v7314_v34, %v7313_v30 }
 0x3be   : > { %4107 = vmatprep.mubr.bf16.mxu1 %v11563_v2  ;;  %v7202_v31 = vpop.f32.mrf.mxu1  ;;  %v7316_v26 = vpop.f32.mrf.mxu0 }
 0x3bf   : > { %v7203_v8 = vadd.f32 %v7202_v31, %v7201_v52  ;;  %v11776_v15 = vadd.f32 %v7312_v5, %v3711_v47 }
 0x3c0   : > { %v7204_v21 = vpop.f32.mrf.mxu1  ;;  %v7317_v33 = vpop.f32.mrf.mxu0 }
 0x3c1   : > { %v3716_v54 = vadd.f32 %v7203_v8, %v11766_v43  ;;  %v7318_v48 = vadd.f32 %v7317_v33, %v7316_v26 }
 0x3c2   : > { %v7205_v62 = vpop.f32.mrf.mxu1  ;;  %v7319_v53 = vpop.f32.mrf.mxu0 }
 0x3c3   : > { %4269 = vmatmul.mubr.bf16.gmra.mxu0 %v11545_v1  ;;  %v7206_v13 = vadd.f32 %v7205_v62, %v7204_v21  ;;  %v11781_v22 = vadd.f32 %v7315_v7, %v3716_v54 }
 0x3c4   : > { %4276 = vmatprep.mubr.bf16.mxu0 %v11603_v14  ;;  %v7207_v18 = vpop.f32.mrf.mxu1  ;;  %v7320_v17 = vpop.f32.mrf.mxu0 }
 0x3c5   : > { %4108 = vmatmul.mubr.bf16.gmra.mxu1 %v11561_v50  ;;  %v3719_v45 = vadd.f32 %v7206_v13, %v11766_v43  ;;  %v7321_v19 = vadd.f32 %v7320_v17, %v7319_v53 }
 0x3c6   : > { %4115 = vmatprep.mubr.bf16.mxu1 %v11585_v57  ;;  %v7208_v3 = vpop.f32.mrf.mxu1  ;;  %v7322_v60 = vpop.f32.mrf.mxu0 }
 0x3c7   : > { %v7209_v42 = vadd.f32 %v7208_v3, %v7207_v18  ;;  %v11786_v10 = vadd.f32 %v7318_v48, %v3719_v45 }
 0x3c8   : > { %v7210_v1 = vpop.f32.mrf.mxu1  ;;  %v7323_v46 = vpop.f32.mrf.mxu0 }
 0x3c9   : > { %v3724_v29 = vadd.f32 %v7209_v42, %v11766_v43  ;;  %v7324_v36 = vadd.f32 %v7323_v46, %v7322_v60 }
 0x3ca   : > { %v7211_v32 = vpop.f32.mrf.mxu1 }
 0x3cb   : > { %v7325_v39 = vpop.f32.mrf.mxu0  ;;  %4277 = vmatmul.mubr.bf16.gmra.mxu0 %v11565_v40  ;;  %v7212_v50 = vadd.f32 %v7211_v32, %v7210_v1  ;;  %v11791_v55 = vadd.f32 %v7321_v19, %v3724_v29 }
 0x3cc   : > { %4284 = vmatprep.mubr.bf16.mxu0 %v11623_v49 }
 0x3cd   : > { %v7213_v25 = vpop.f32.mrf.mxu1  ;;  %4116 = vmatmul.mubr.bf16.gmra.mxu1 %v11583_v56  ;;  %v7326_v63 = vpop.f32.mrf.mxu0  ;;  %v3727_v5 = vadd.f32 %v7212_v50, %v11766_v43 }
 0x3ce   : > { %v7327_v28 = vadd.f32 %v7326_v63, %v7325_v39  ;;  %4123 = vmatprep.mubr.bf16.mxu1 %v11605_v4 }
 0x3cf   : > { %v7214_v30 = vpop.f32.mrf.mxu1  ;;  %v7328_v37 = vpop.f32.mrf.mxu0  ;;  %v11796_v34 = vadd.f32 %v7324_v36, %v3727_v5 }
 0x3d0   : > { %v7215_v52 = vadd.f32 %v7214_v30, %v7213_v25 }
 0x3d1   : > { %v7216_v40 = vpop.f32.mrf.mxu1  ;;  %v7329_v47 = vpop.f32.mrf.mxu0 }
 0x3d2   : > { %v3732_v7 = vadd.f32 %v7215_v52, %v11766_v43  ;;  %v7330_v31 = vadd.f32 %v7329_v47, %v7328_v37 }
 0x3d3   : > { %v7217_v26 = vpop.f32.mrf.mxu1  ;;  %v7331_v8 = vpop.f32.mrf.mxu0  ;;  %4285 = vmatmul.mubr.bf16.gmra.mxu0 %v11587_v12 }
 0x3d4   : > { %v7218_v56 = vadd.f32 %v7217_v26, %v7216_v40  ;;  %4292 = vmatprep.mubr.bf16.mxu0 %v11632_v23  ;;  %v11801_v21 = vadd.f32 %v7327_v28, %v3732_v7 }
 0x3d5   : > { %v7219_v33 = vpop.f32.mrf.mxu1  ;;  %4124 = vmatmul.mubr.bf16.gmra.mxu1 %v11603_v14  ;;  %v7332_v54 = vpop.f32.mrf.mxu0 }
 0x3d6   : > { %v3735_v48 = vadd.f32 %v7218_v56, %v11766_v43  ;;  %v7333_v62 = vadd.f32 %v7332_v54, %v7331_v8  ;;  %4131 = vmatprep.mubr.bf16.mxu1 %v11625_v58 }
 0x3d7   : > { %v7220_v53 = vpop.f32.mrf.mxu1  ;;  %v7334_v13 = vpop.f32.mrf.mxu0 }
 0x3d8   : > { %v7221_v18 = vadd.f32 %v7220_v53, %v7219_v33  ;;  %v11806_v17 = vadd.f32 %v7330_v31, %v3735_v48 }
 0x3d9   : > { %v7222_v12 = vpop.f32.mrf.mxu1  ;;  %v7335_v45 = vpop.f32.mrf.mxu0 }
 0x3da   : > { %v3740_v19 = vadd.f32 %v7221_v18, %v11766_v43  ;;  %v7336_v29 = vadd.f32 %v7335_v45, %v7334_v13 }
 0x3db   : > { %v7223_v3 = vpop.f32.mrf.mxu1  ;;  %v7337_v60 = vpop.f32.mrf.mxu0  ;;  %4293 = vmatmul.mubr.bf16.gmra.mxu0 %v11607_v0 }
 0x3dc   : > { %v7224_v14 = vadd.f32 %v7223_v3, %v7222_v12  ;;  %4300 = vmatprep.mubr.bf16.mxu0 %v11658_v24  ;;  %v11811_v42 = vadd.f32 %v7333_v62, %v3740_v19 }
 0x3dd   : > { %v7225_v1 = vpop.f32.mrf.mxu1  ;;  %4132 = vmatmul.mubr.bf16.gmra.mxu1 %v11623_v49  ;;  %v7338_v46 = vpop.f32.mrf.mxu0 }
 0x3de   : > { %v3743_v36 = vadd.f32 %v7224_v14, %v11766_v43  ;;  %v7339_v32 = vadd.f32 %v7338_v46, %v7337_v60  ;;  %4139 = vmatprep.mubr.bf16.mxu1 %v11641_v6 }
 0x3df   : > { %v7226_v39 = vpop.f32.mrf.mxu1  ;;  %v7340_v50 = vpop.f32.mrf.mxu0 }
 0x3e0   : > { %v7227_v25 = vadd.f32 %v7226_v39, %v7225_v1  ;;  %v11816_v63 = vadd.f32 %v7336_v29, %v3743_v36 }
 0x3e1   : > { %v7228_v5 = vpop.f32.mrf.mxu1  ;;  %v7341_v28 = vpop.f32.mrf.mxu0 }
 0x3e2   : > { %v3748_v30 = vadd.f32 %v7227_v25, %v11766_v43  ;;  %v7342_v31 = vadd.f32 %v7341_v28, %v7340_v50 }
 0x3e3   : > { %v7229_v37 = vpop.f32.mrf.mxu1  ;;  %v7343_v52 = vpop.f32.mrf.mxu0  ;;  %4301 = vmatmul.mubr.bf16.gmra.mxu0 %v11627_v27 }
 0x3e4   : > { %v7230_v49 = vadd.f32 %v7229_v37, %v7228_v5  ;;  %4308 = vmatprep.mubr.bf16.mxu0 %v11632_v23  ;;  %v11821_v40 = vadd.f32 %v7339_v32, %v3748_v30 }
 0x3e5   : > { %v7231_v47 = vpop.f32.mrf.mxu1  ;;  %4140 = vmatmul.mubr.bf16.gmra.mxu1 %v11632_v23  ;;  %v7344_v7 = vpop.f32.mrf.mxu0 }
 0x3e6   : > { %v3751_v26 = vadd.f32 %v7230_v49, %v11766_v43  ;;  %v7345_v8 = vadd.f32 %v7344_v7, %v7343_v52  ;;  %4147 = vmatprep.mubr.bf16.mxu1 %v11662_v9 }
 0x3e7   : > { %v7232_v56 = vpop.f32.mrf.mxu1  ;;  %v7346_v33 = vpop.f32.mrf.mxu0 }
 0x3e8   : > { %v7233_v54 = vadd.f32 %v7232_v56, %v7231_v47  ;;  %v11826_v48 = vadd.f32 %v7342_v31, %v3751_v26 }
 0x3e9   : > { %v7234_v27 = vpop.f32.mrf.mxu1  ;;  %v7347_v62 = vpop.f32.mrf.mxu0 }
 0x3ea   : > { %v3756_v53 = vadd.f32 %v7233_v54, %v11766_v43  ;;  %v7348_v3 = vadd.f32 %v7347_v62, %v7346_v33 }
 0x3eb   : > { %v7235_v13 = vpop.f32.mrf.mxu1  ;;  %v7349_v18 = vpop.f32.mrf.mxu0  ;;  %4309 = vmatmul.mubr.bf16.gmra.mxu0 %v11607_v0 }
 0x3ec   : > { %v7236_v23 = vadd.f32 %v7235_v13, %v7234_v27  ;;  %v11830_v12 = vadd.f32 %v7345_v8, %v3756_v53 }
 0x3ed   : > { %v7237_v45 = vpop.f32.mrf.mxu1  ;;  %4148 = vmatmul.mubr.bf16.gmra.mxu1 %v11658_v24  ;;  %v7350_v19 = vpop.f32.mrf.mxu0 }
 0x3ee   : > { %v3759_v60 = vadd.f32 %v7236_v23, %v11766_v43  ;;  %v7351_v14 = vadd.f32 %v7350_v19, %v7349_v18  ;;  %7923 = vmatprep.mubr.bf16.mxu1 %v11196_v41 }
 0x3ef   : > { %v7238_v1 = vpop.f32.mrf.mxu1  ;;  %v7352_v46 = vpop.f32.mrf.mxu0 }
 0x3f0   : > { %v7239_v29 = vadd.f32 %v7238_v1, %v7237_v45  ;;  %v11835_v36 = vadd.f32 %v7348_v3, %v3759_v60 }
 0x3f1   : > { %v7240_v32 = vpop.f32.mrf.mxu1  ;;  %v7353_v0 = vpop.f32.mrf.mxu0 }
 0x3f2   : > { %v3764_v39 = vadd.f32 %v7239_v29, %v11766_v43  ;;  %v7354_v37 = vadd.f32 %v7353_v0, %v7352_v46 }
 0x3f3   : > { %v7241_v50 = vpop.f32.mrf.mxu1  ;;  %v7355_v25 = vpop.f32.mrf.mxu0 }
 0x3f4   : > { %v7242_v5 = vadd.f32 %v7241_v50, %v7240_v32  ;;  %v11838_v24 = vadd.f32 %v7351_v14, %v3764_v39 }
 0x3f5   : > { %v7243_v28 = vpop.f32.mrf.mxu1  ;;  %7924 = vmatmul.mubr.bf16.vlgmr.msra.gmra.mxu1 %v11335_v51  ;;  %v7356_v30 = vpop.f32.mrf.mxu0 }
 0x3f6   : > { %v3767_v41 = vadd.f32 %v7242_v5, %v11766_v43  ;;  %v7357_v52 = vadd.f32 %v7356_v30, %v7355_v25  ;;  %7927 = vmatprep.mubr.bf16.mxu1 %v14445_v59 }
 0x3f7   : > { %v7244_v49 = vpop.f32.mrf.mxu1  ;;  %v7358_v47 = vpop.f32.mrf.mxu0 }
 0x3f8   : > { %v7245_v7 = vadd.f32 %v7244_v49, %v7243_v28  ;;  %v11843_v31 = vadd.f32 %v7354_v37, %v3767_v41 }
 0x3f9   : > { %v7246_v26 = vpop.f32.mrf.mxu1  ;;  %v7359_v8 = vpop.f32.mrf.mxu0 }
 0x3fa   : > { %v3772_v56 = vadd.f32 %v7245_v7, %v11766_v43  ;;  %v7360_v13 = vadd.f32 %v7359_v8, %v7358_v47 }
 0x3fb   : > { %v7247_v33 = vpop.f32.mrf.mxu1  ;;  %v7361_v54 = vpop.f32.mrf.mxu0 }
 0x3fc   : > { %v7248_v27 = vadd.f32 %v7247_v33, %v7246_v26  ;;  %v11846_v51 = vadd.f32 %v7357_v52, %v3772_v56 }
 0x3fd   : > { %v7249_v62 = vpop.f32.mrf.mxu1  ;;  %7928 = vmatmul.mubr.bf16.gmra.mxu1 %v14448_v61  ;;  %v7362_v53 = vpop.f32.mrf.mxu0 }
 0x3fe   : > { %v3775_v59 = vadd.f32 %v7248_v27, %v11766_v43  ;;  %v7363_v18 = vadd.f32 %v7362_v53, %v7361_v54  ;;  %7931 = vmatprep.mubr.bf16.mxu1 %v14450_v16 }
 0x3ff   : > { %v7250_v23 = vpop.f32.mrf.mxu1  ;;  %v7364_v45 = vpop.f32.mrf.mxu0 }
 0x400   : > { %v7251_v19 = vadd.f32 %v7250_v23, %v7249_v62  ;;  %v11851_v3 = vadd.f32 %v7360_v13, %v3775_v59 }
 0x401   : > { %v7252_v60 = vpop.f32.mrf.mxu1  ;;  %v7365_v14 = vpop.f32.mrf.mxu0 }
 0x402   : > { %v3780_v1 = vadd.f32 %v7251_v19, %v11766_v43  ;;  %v7366_v50 = vadd.f32 %v7365_v14, %v7364_v45 }
 0x403   : > { %v7253_v46 = vpop.f32.mrf.mxu1  ;;  %v7367_v29 = vpop.f32.mrf.mxu0 }
 0x404   : > { %v7254_v32 = vadd.f32 %v7253_v46, %v7252_v60  ;;  %v11854_v61 = vadd.f32 %v7363_v18, %v3780_v1 }
 0x405   : > { %v7255_v0 = vpop.f32.mrf.mxu1  ;;  %7932 = vmatmul.mubr.bf16.gmra.mxu1 %v11476_v35  ;;  %v7368_v39 = vpop.f32.mrf.mxu0 }
 0x406   : > { %v3783_v16 = vadd.f32 %v7254_v32, %v11766_v43  ;;  %v7369_v25 = vadd.f32 %v7368_v39, %v7367_v29  ;;  %7935 = vmatprep.mubr.bf16.mxu1 %v11671_v20 }
 0x407   : > { %v7256_v5 = vpop.f32.mrf.mxu1  ;;  %v7370_v28 = vpop.f32.mrf.mxu0 }
 0x408   : > { %v7257_v30 = vadd.f32 %v7256_v5, %v7255_v0  ;;  %v11859_v37 = vadd.f32 %v7366_v50, %v3783_v16 }
 0x409   : > { %v7258_v41 = vpop.f32.mrf.mxu1  ;;  %v7371_v52 = vpop.f32.mrf.mxu0 }
 0x40a   : > { %v3788_v49 = vadd.f32 %v7257_v30, %v11766_v43  ;;  %v7372_v33 = vadd.f32 %v7371_v52, %v7370_v28 }
 0x40b   : > { %v7259_v47 = vpop.f32.mrf.mxu1  ;;  %v7373_v7 = vpop.f32.mrf.mxu0 }
 0x40c   : > { %v7260_v26 = vadd.f32 %v7259_v47, %v7258_v41  ;;  %v11862_v35 = vadd.f32 %v7369_v25, %v3788_v49 }
 0x40d   : > { %v7261_v8 = vpop.f32.mrf.mxu1  ;;  %7936 = vmatmul.mubr.bf16.gmra.mxu1 %v11520_v11  ;;  %v7374_v56 = vpop.f32.mrf.mxu0 }
 0x40e   : > { %v3791_v20 = vadd.f32 %v7260_v26, %v11766_v43  ;;  %v7375_v54 = vadd.f32 %v7374_v56, %v7373_v7  ;;  %7939 = vmatprep.mubr.bf16.mxu1 %v11543_v44 }
 0x40f   : > { %v7262_v27 = vpop.f32.mrf.mxu1  ;;  %v7376_v62 = vpop.f32.mrf.mxu0 }
 0x410   : > { %v7263_v53 = vadd.f32 %v7262_v27, %v7261_v8  ;;  %v11867_v13 = vadd.f32 %v7372_v33, %v3791_v20 }
 0x411   : > { %v7264_v59 = vpop.f32.mrf.mxu1  ;;  %v7377_v18 = vpop.f32.mrf.mxu0 }
 0x412   : > { %v3796_v23 = vadd.f32 %v7263_v53, %v11766_v43  ;;  %v7378_v46 = vadd.f32 %v7377_v18, %v7376_v62 }
 0x413   : > { %v7265_v45 = vpop.f32.mrf.mxu1  ;;  %v7379_v19 = vpop.f32.mrf.mxu0 }
 0x414   : > { %v7266_v60 = vadd.f32 %v7265_v45, %v7264_v59  ;;  %v11870_v11 = vadd.f32 %v7375_v54, %v3796_v23 }
 0x415   : > { %v7267_v14 = vpop.f32.mrf.mxu1  ;;  %7940 = vmatmul.mubr.bf16.gmra.mxu1 %v11563_v2  ;;  %v7380_v1 = vpop.f32.mrf.mxu0 }
 0x416   : > { %v3799_v44 = vadd.f32 %v7266_v60, %v11766_v43  ;;  %v7381_v29 = vadd.f32 %v7380_v1, %v7379_v19  ;;  %7943 = vmatprep.mubr.bf16.mxu1 %v11585_v57 }
 0x417   : > { %v7268_v32 = vpop.f32.mrf.mxu1  ;;  %v7382_v0 = vpop.f32.mrf.mxu0 }
 0x418   : > { %v7269_v39 = vadd.f32 %v7268_v32, %v7267_v14  ;;  %v11875_v50 = vadd.f32 %v7378_v46, %v3799_v44 }
 0x419   : > { %v7270_v16 = vpop.f32.mrf.mxu1  ;;  %v7383_v25 = vpop.f32.mrf.mxu0 }
 0x41a   : > { %v3804_v5 = vadd.f32 %v7269_v39, %v11766_v43  ;;  %v7384_v47 = vadd.f32 %v7383_v25, %v7382_v0 }
 0x41b   : > { %v7271_v28 = vpop.f32.mrf.mxu1  ;;  %v7385_v30 = vpop.f32.mrf.mxu0 }
 0x41c   : > { %v7272_v41 = vadd.f32 %v7271_v28, %v7270_v16  ;;  %v11878_v2 = vadd.f32 %v7381_v29, %v3804_v5 }
 0x41d   : > { %v7273_v52 = vpop.f32.mrf.mxu1  ;;  %7944 = vmatmul.mubr.bf16.gmra.mxu1 %v11605_v4  ;;  %v7386_v49 = vpop.f32.mrf.mxu0 }
 0x41e   : > { %v3807_v57 = vadd.f32 %v7272_v41, %v11766_v43  ;;  %v7387_v7 = vadd.f32 %v7386_v49, %v7385_v30  ;;  %7947 = vmatprep.mubr.bf16.mxu1 %v11625_v58 }
 0x41f   : > { %v7274_v26 = vpop.f32.mrf.mxu1  ;;  %v7388_v8 = vpop.f32.mrf.mxu0 }
 0x420   : > { %v7275_v56 = vadd.f32 %v7274_v26, %v7273_v52  ;;  %v11883_v33 = vadd.f32 %v7384_v47, %v3807_v57 }
 0x421   : > { %v7276_v20 = vpop.f32.mrf.mxu1  ;;  %v7389_v54 = vpop.f32.mrf.mxu0 }
 0x422   : > { %v3812_v27 = vadd.f32 %v7275_v56, %v11766_v43  ;;  %v7390_v45 = vadd.f32 %v7389_v54, %v7388_v8 }
 0x423   : > { %v7277_v62 = vpop.f32.mrf.mxu1  ;;  %v7391_v53 = vpop.f32.mrf.mxu0 }
 0x424   : > { %v7278_v59 = vadd.f32 %v7277_v62, %v7276_v20  ;;  %v11886_v4 = vadd.f32 %v7387_v7, %v3812_v27 }
 0x425   : > { %v7279_v18 = vpop.f32.mrf.mxu1  ;;  %7948 = vmatmul.mubr.bf16.gmra.mxu1 %v11641_v6  ;;  %v7392_v23 = vpop.f32.mrf.mxu0 }
 0x426   : > { %v3815_v58 = vadd.f32 %v7278_v59, %v11766_v43  ;;  %v7393_v19 = vadd.f32 %v7392_v23, %v7391_v53  ;;  %7951 = vmatprep.mubr.bf16.mxu1 %v11662_v9 }
 0x427   : > { %v7280_v60 = vpop.f32.mrf.mxu1  ;;  %v7394_v14 = vpop.f32.mrf.mxu0 }
 0x428   : > { %v7281_v1 = vadd.f32 %v7280_v60, %v7279_v18  ;;  %v11891_v46 = vadd.f32 %v7390_v45, %v3815_v58 }
 0x429   : > { %v7282_v44 = vpop.f32.mrf.mxu1  ;;  %v7395_v29 = vpop.f32.mrf.mxu0 }
 0x42a   : > { %v3820_v32 = vadd.f32 %v7281_v1, %v11766_v43  ;;  %v7396_v30 = vadd.f32 %v7395_v29, %v7394_v14 }
 0x42b   : > { %v7283_v0 = vpop.f32.mrf.mxu1  ;;  %v7397_v39 = vpop.f32.mrf.mxu0 }
 0x42c   : > { %v7284_v16 = vadd.f32 %v7283_v0, %v7282_v44  ;;  %v11894_v25 = vadd.f32 %v7393_v19, %v3820_v32 }
 0x42d   : > { %v7285_v5 = vpop.f32.mrf.mxu1  ;;  %7952 = vmatmul.mubr.bf16.gmra.mxu1 %v11641_v6  ;;  %v7398_v28 = vpop.f32.mrf.mxu0 }
 0x42e   : > { %v3823_v9 = vadd.f32 %v7284_v16, %v11766_v43  ;;  %v7399_v41 = vadd.f32 %v7398_v28, %v7397_v39 }
 0x42f   : > { %v7286_v52 = vpop.f32.mrf.mxu1  ;;  %v7400_v49 = vpop.f32.mrf.mxu0 }
 0x430   : > { %v7287_v47 = vadd.f32 %v7286_v52, %v7285_v5  ;;  %v11898_v57 = vadd.f32 %v7396_v30, %v3823_v9 }
 0x431   : > { %v7288_v7 = vpop.f32.mrf.mxu1  ;;  %v7401_v26 = vpop.f32.mrf.mxu0 }
 0x432   : > { %v3828_v8 = vadd.f32 %v7287_v47, %v11766_v43  ;;  %v7402_v53 = vadd.f32 %v7401_v26, %v7400_v49 }
 0x433   : > { %v7289_v56 = vpop.f32.mrf.mxu1  ;;  %v7531_v20 = vpop.f32.mrf.mxu0 }
 0x434   : > { %v7290_v54 = vadd.f32 %v7289_v56, %v7288_v7  ;;  %v11901_v27 = vadd.f32 %v7399_v41, %v3828_v8 }
 0x435   : > { %v7419_v6 = vpop.f32.mrf.mxu1  ;;  %v7532_v62 = vpop.f32.mrf.mxu0 }
 0x436   : > { %v3831_v59 = vadd.f32 %v7290_v54, %v11766_v43  ;;  %v7533_v18 = vadd.f32 %v7532_v62, %v7531_v20 }
 0x437   : > { %v7420_v23 = vpop.f32.mrf.mxu1  ;;  %v11904_v45 = vpop.f32.mrf.mxu0 }
 0x438   : > { %v7421_v58 = vadd.f32 %v7420_v23, %v7419_v6  ;;  %v11906_v19 = vadd.f32 %v7402_v53, %v3831_v59 }
 0x439   : > { %v7422_v60 = vpop.f32.mrf.mxu1  ;;  %v11908_v14 = vpop.f32.mrf.mxu0 }
 0x43a   : > { %v4030_v1 = vadd.f32 %v7421_v58, %v11771_v38 }
 0x43b   : > { %v7423_v44 = vpop.f32.mrf.mxu1  ;;  %v11911_v29 = vpop.f32.mrf.mxu0 }
 0x43c   : > { %v7424_v32 = vadd.f32 %v7423_v44, %v7422_v60  ;;  %v11913_v0 = vadd.f32 %v7533_v18, %v4030_v1 }
 0x43d   : > { %v7425_v39 = vpop.f32.mrf.mxu1  ;;  %v11915_v43 = vpop.f32.mrf.mxu0 }
 0x43e   : > { %v11918_v16 = vadd.f32 %v7424_v32, %v11776_v15 }
 0x43f   : > { %v7426_v5 = vpop.f32.mrf.mxu1  ;;  %v11920_v28 = vpop.f32.mrf.mxu0 }
 0x440   : > { %v7427_v30 = vadd.f32 %v7426_v5, %v7425_v39 }
 0x441   : > { %v7428_v9 = vpop.f32.mrf.mxu1  ;;  %v11922_v41 = vpop.f32.mrf.mxu0 }
 0x442   : > { %v11925_v38 = vadd.f32 %v7427_v30, %v11781_v22 }
 0x443   : > { %v7429_v52 = vpop.f32.mrf.mxu1  ;;  %v11927_v49 = vpop.f32.mrf.mxu0 }
 0x444   : > { %v7430_v47 = vadd.f32 %v7429_v52, %v7428_v9 }
 0x445   : > { %v7431_v7 = vpop.f32.mrf.mxu1  ;;  %v11929_v26 = vpop.f32.mrf.mxu0 }
 0x446   : > { %v11932_v15 = vadd.f32 %v7430_v47, %v11786_v10 }
 0x447   : > { %v7432_v8 = vpop.f32.mrf.mxu1  ;;  %v11934_v56 = vpop.f32.mrf.mxu0 }
 0x448   : > { %v7433_v20 = vadd.f32 %v7432_v8, %v7431_v7 }
 0x449   : > { %v7434_v54 = vpop.f32.mrf.mxu1  ;;  %v11936_v6 = vpop.f32.mrf.mxu0 }
 0x44a   : > { %v11939_v22 = vadd.f32 %v7433_v20, %v11791_v55 }
 0x44b   : > { %v7435_v62 = vpop.f32.mrf.mxu1  ;;  %v11941_v53 = vpop.f32.mrf.mxu0 }
 0x44c   : > { %v7436_v59 = vadd.f32 %v7435_v62, %v7434_v54 }
 0x44d   : > { %v7437_v18 = vpop.f32.mrf.mxu1  ;;  %v11943_v23 = vpop.f32.mrf.mxu0 }
 0x44e   : > { %v11946_v10 = vadd.f32 %v7436_v59, %v11796_v34 }
 0x44f   : > { %v7438_v58 = vpop.f32.mrf.mxu1  ;;  %v11948_v60 = vpop.f32.mrf.mxu0 }
 0x450   : > { %v7439_v1 = vadd.f32 %v7438_v58, %v7437_v18 }
 0x451   : > { %v7440_v44 = vpop.f32.mrf.mxu1  ;;  %v11950_v32 = vpop.f32.mrf.mxu0 }
 0x452   : > { %v11953_v55 = vadd.f32 %v7439_v1, %v11801_v21 }
 0x453   : > { %v7441_v39 = vpop.f32.mrf.mxu1  ;;  %v11955_v5 = vpop.f32.mrf.mxu0 }
 0x454   : > { %v7442_v30 = vadd.f32 %v7441_v39, %v7440_v44 }
 0x455   : > { %v7443_v9 = vpop.f32.mrf.mxu1  ;;  %v11957_v52 = vpop.f32.mrf.mxu0 }
 0x456   : > { %v11960_v34 = vadd.f32 %v7442_v30, %v11806_v17 }
 0x457   : > { %v7444_v47 = vpop.f32.mrf.mxu1  ;;  %v11962_v7 = vpop.f32.mrf.mxu0 }
 0x458   : > { %v7445_v8 = vadd.f32 %v7444_v47, %v7443_v9 }
 0x459   : > { %v7446_v20 = vpop.f32.mrf.mxu1  ;;  %v11964_v54 = vpop.f32.mrf.mxu0 }
 0x45a   : > { %v11967_v21 = vadd.f32 %v7445_v8, %v11811_v42 }
 0x45b   : > { %v7447_v62 = vpop.f32.mrf.mxu1  ;;  %v11969_v59 = vpop.f32.mrf.mxu0 }
 0x45c   : > { %14451 = vst [vmem:[#allocation37_spill] sm:$0xff] %v11967_v21  ;;  %14452 = vst [vmem:[#allocation44_spill] sm:$0xff] %v11969_v59  ;;  %v7448_v18 = vadd.f32 %v7447_v62, %v7446_v20 }
 0x45d   : > { %v7449_v58 = vpop.f32.mrf.mxu1  ;;  %v11971_v1 = vpop.f32.mrf.mxu0 }
 0x45e   : > { %v11974_v17 = vadd.f32 %v7448_v18, %v11816_v63 }
 0x45f   : > { %v7450_v44 = vpop.f32.mrf.mxu1  ;;  %v11976_v39 = vpop.f32.mrf.mxu0 }
 0x460   : > { %14453 = vst [vmem:[#allocation43_spill] sm:$0xff] %v11974_v17  ;;  %14454 = vst [vmem:[#allocation38_spill] sm:$0xff] %v11976_v39  ;;  %v7451_v30 = vadd.f32 %v7450_v44, %v7449_v58 }
 0x461   : > { %v7452_v9 = vpop.f32.mrf.mxu1  ;;  %v11978_v47 = vpop.f32.mrf.mxu0 }
 0x462   : > { %v11981_v42 = vadd.f32 %v7451_v30, %v11821_v40 }
 0x463   : > { %v7453_v8 = vpop.f32.mrf.mxu1  ;;  %v11983_v21 = vpop.f32.mrf.mxu0 }
 0x464   : > { %14455 = vst [vmem:[#allocation46_spill] sm:$0xff] %v11981_v42  ;;  %14456 = vst [vmem:[#allocation45_spill] sm:$0xff] %v11983_v21  ;;  %v7454_v20 = vadd.f32 %v7453_v8, %v7452_v9 }
 0x465   : > { %v7455_v62 = vpop.f32.mrf.mxu1  ;;  %v11985_v59 = vpop.f32.mrf.mxu0 }
 0x466   : > { %v11988_v63 = vadd.f32 %v7454_v20, %v11826_v48 }
 0x467   : > { %v7456_v18 = vpop.f32.mrf.mxu1  ;;  %v11990_v17 = vpop.f32.mrf.mxu0 }
 0x468   : > { %14457 = vst [vmem:[#allocation39_spill] sm:$0xff] %v11988_v63  ;;  %14458 = vst [vmem:[#allocation48_spill] sm:$0xff] %v11990_v17  ;;  %v7457_v58 = vadd.f32 %v7456_v18, %v7455_v62 }
 0x469   : > { %v7458_v44 = vpop.f32.mrf.mxu1  ;;  %v11992_v39 = vpop.f32.mrf.mxu0 }
 0x46a   : > { %v11995_v40 = vadd.f32 %v7457_v58, %v11830_v12 }
 0x46b   : > { %v7459_v30 = vpop.f32.mrf.mxu1  ;;  %v11997_v42 = vpop.f32.mrf.mxu0 }
 0x46c   : > { %14459 = vst [vmem:[#allocation47_spill] sm:$0xff] %v11995_v40  ;;  %14460 = vst [vmem:[#allocation40_spill] sm:$0xff] %v11997_v42  ;;  %v7460_v9 = vadd.f32 %v7459_v30, %v7458_v44 }
 0x46d   : > { %v7461_v8 = vpop.f32.mrf.mxu1  ;;  %v11999_v21 = vpop.f32.mrf.mxu0 }
 0x46e   : > { %v12002_v48 = vadd.f32 %v7460_v9, %v11835_v36 }
 0x46f   : > { %v7462_v20 = vpop.f32.mrf.mxu1  ;;  %v12004_v63 = vpop.f32.mrf.mxu0 }
 0x470   : > { %14461 = vst [vmem:[#allocation50_spill] sm:$0xff] %v12002_v48  ;;  %14462 = vst [vmem:[#allocation49_spill] sm:$0xff] %v12004_v63  ;;  %v7463_v62 = vadd.f32 %v7462_v20, %v7461_v8 }
 0x471   : > { %v7464_v18 = vpop.f32.mrf.mxu1  ;;  %v12006_v17 = vpop.f32.mrf.mxu0 }
 0x472   : > { %14463 = vst [vmem:[#allocation41_spill] sm:$0xff] %v12006_v17  ;;  %v12009_v12 = vadd.f32 %v7463_v62, %v11838_v24 }
 0x473   : > { %v7465_v58 = vpop.f32.mrf.mxu1  ;;  %v12011_v42 = vpop.f32.mrf.mxu0 }
 0x474   : > { %v7466_v40 = vadd.f32 %v7465_v58, %v7464_v18  ;;  %14464 = vst [vmem:[#allocation35_spill] sm:$0xff] %v12011_v42 }
 0x475   : > { %v7467_v44 = vpop.f32.mrf.mxu1  ;;  %v12016_v48 = vpop.f32.mrf.mxu0 }
 0x476   : > { %v12014_v30 = vadd.f32 %v7466_v40, %v11843_v31 }
 0x477   : > { %v7468_v36 = vpop.f32.mrf.mxu1  ;;  %v12021_v24 = vpop.f32.mrf.mxu0 }
 0x478   : > { %14465 = vst [vmem:[#allocation51_spill] sm:$0xff] %v12014_v30  ;;  %v7469_v9 = vadd.f32 %v7468_v36, %v7467_v44 }
 0x479   : > { %v7470_v63 = vpop.f32.mrf.mxu1  ;;  %v12026_v31 = vpop.f32.mrf.mxu0 }
 0x47a   : > { %v12019_v8 = vadd.f32 %v7469_v9, %v11846_v51 }
 0x47b   : > { %v7471_v20 = vpop.f32.mrf.mxu1  ;;  %v12031_v51 = vpop.f32.mrf.mxu0 }
 0x47c   : > { %14466 = vst [vmem:[#allocation42_spill] sm:$0xff] %v12019_v8  ;;  %v7472_v17 = vadd.f32 %v7471_v20, %v7470_v63 }
 0x47d   : > { %v7473_v62 = vpop.f32.mrf.mxu1 }
 0x47e   : > { %v12024_v18 = vadd.f32 %v7472_v17, %v11851_v3  ;;  %v12036_v3 = vpop.f32.mrf.mxu0 }
 0x47f   : > { %v7474_v58 = vpop.f32.mrf.mxu1 }
 0x480   : > { %14467 = vst [vmem:[#allocation36_spill] sm:$0xff] %v12024_v18  ;;  %v7475_v42 = vadd.f32 %v7474_v58, %v7473_v62 }
 0x481   : > { %v7476_v40 = vpop.f32.mrf.mxu1 }
 0x482   : > { %v12029_v44 = vadd.f32 %v7475_v42, %v11854_v61  ;;  %v12041_v61 = vpop.f32.mrf.mxu0 }
 0x483   : > { %v7477_v36 = vpop.f32.mrf.mxu1 }
 0x484   : > { %14468 = vst [vmem:[#allocation52_spill] sm:$0xff] %v12029_v44  ;;  %v7478_v30 = vadd.f32 %v7477_v36, %v7476_v40 }
 0x485   : > { %v7479_v9 = vpop.f32.mrf.mxu1 }
 0x486   : > { %v12034_v63 = vadd.f32 %v7478_v30, %v11859_v37  ;;  %v12046_v37 = vpop.f32.mrf.mxu0 }
 0x487   : > { %v7480_v20 = vpop.f32.mrf.mxu1 }
 0x488   : > { %14469 = vst [vmem:[#allocation56_spill] sm:$0xff] %v12034_v63  ;;  %v7481_v8 = vadd.f32 %v7480_v20, %v7479_v9 }
 0x489   : > { %v7482_v17 = vpop.f32.mrf.mxu1 }
 0x48a   : > { %v12039_v62 = vadd.f32 %v7481_v8, %v11862_v35  ;;  %v12051_v35 = vpop.f32.mrf.mxu0 }
 0x48b   : > { %v7483_v58 = vpop.f32.mrf.mxu1 }
 0x48c   : > { %14470 = vst [vmem:[#allocation54_spill] sm:$0xff] %v12039_v62  ;;  %v7484_v18 = vadd.f32 %v7483_v58, %v7482_v17 }
 0x48d   : > { %v7485_v42 = vpop.f32.mrf.mxu1 }
 0x48e   : > { %v12044_v40 = vadd.f32 %v7484_v18, %v11867_v13  ;;  %v12056_v13 = vpop.f32.mrf.mxu0 }
 0x48f   : > { %v7486_v36 = vpop.f32.mrf.mxu1 }
 0x490   : > { %14471 = vst [vmem:[#allocation53_spill] sm:$0xff] %v12044_v40  ;;  %v7487_v44 = vadd.f32 %v7486_v36, %v7485_v42 }
 0x491   : > { %v7488_v30 = vpop.f32.mrf.mxu1 }
 0x492   : > { %v12049_v9 = vadd.f32 %v7487_v44, %v11870_v11  ;;  %v12061_v11 = vpop.f32.mrf.mxu0 }
 0x493   : > { %v7489_v20 = vpop.f32.mrf.mxu1 }
 0x494   : > { %14472 = vst [vmem:[#allocation58_spill] sm:$0xff] %v12049_v9  ;;  %v7490_v63 = vadd.f32 %v7489_v20, %v7488_v30 }
 0x495   : > { %v7491_v8 = vpop.f32.mrf.mxu1 }
 0x496   : > { %v12054_v17 = vadd.f32 %v7490_v63, %v11875_v50  ;;  %v12066_v50 = vpop.f32.mrf.mxu0 }
 0x497   : > { %v7492_v58 = vpop.f32.mrf.mxu1 }
 0x498   : > { %14473 = vst [vmem:[#allocation57_spill] sm:$0xff] %v12054_v17  ;;  %v7493_v62 = vadd.f32 %v7492_v58, %v7491_v8 }
 0x499   : > { %v7494_v18 = vpop.f32.mrf.mxu1 }
 0x49a   : > { %v12059_v42 = vadd.f32 %v7493_v62, %v11878_v2  ;;  %v12071_v2 = vpop.f32.mrf.mxu0 }
 0x49b   : > { %v7495_v36 = vpop.f32.mrf.mxu1 }
 0x49c   : > { %14474 = vst [vmem:[#allocation55_spill] sm:$0xff] %v12059_v42  ;;  %v7496_v40 = vadd.f32 %v7495_v36, %v7494_v18 }
 0x49d   : > { %v7497_v44 = vpop.f32.mrf.mxu1 }
 0x49e   : > { %v12064_v30 = vadd.f32 %v7496_v40, %v11883_v33  ;;  %v12076_v33 = vpop.f32.mrf.mxu0 }
 0x49f   : > { %v7498_v20 = vpop.f32.mrf.mxu1 }
 0x4a0   : > { %14475 = vst [vmem:[#allocation59_spill] sm:$0xff] %v12064_v30  ;;  %v7499_v9 = vadd.f32 %v7498_v20, %v7497_v44 }
 0x4a1   : > { %v7500_v63 = vpop.f32.mrf.mxu1 }
 0x4a2   : > { %v12069_v8 = vadd.f32 %v7499_v9, %v11886_v4  ;;  %v12081_v4 = vpop.f32.mrf.mxu0 }
 0x4a3   : > { %v7501_v58 = vpop.f32.mrf.mxu1 }
 0x4a4   : > { %14476 = vst [vmem:[#allocation60_spill] sm:$0xff] %v12069_v8  ;;  %v7502_v17 = vadd.f32 %v7501_v58, %v7500_v63 }
 0x4a5   : > { %v7503_v62 = vpop.f32.mrf.mxu1 }
 0x4a6   : > { %v12074_v18 = vadd.f32 %v7502_v17, %v11891_v46  ;;  %v12086_v46 = vpop.f32.mrf.mxu0 }
 0x4a7   : > { %v7504_v36 = vpop.f32.mrf.mxu1 }
 0x4a8   : > { %14477 = vst [vmem:[#allocation61_spill] sm:$0xff] %v12074_v18  ;;  %v7505_v42 = vadd.f32 %v7504_v36, %v7503_v62 }
 0x4a9   : > { %v7506_v40 = vpop.f32.mrf.mxu1 }
 0x4aa   : > { %v12079_v44 = vadd.f32 %v7505_v42, %v11894_v25  ;;  %v12091_v25 = vpop.f32.mrf.mxu0 }
 0x4ab   : > { %v7507_v20 = vpop.f32.mrf.mxu1 }
 0x4ac   : > { %v7508_v30 = vadd.f32 %v7507_v20, %v7506_v40 }
 0x4ad   : > { %v7509_v9 = vpop.f32.mrf.mxu1 }
 0x4ae   : > { %v12084_v63 = vadd.f32 %v7508_v30, %v11898_v57  ;;  %v7536_v57 = vadd.f32 %v11908_v14, %v11904_v45  ;;  %v12098_v30 = vpop.f32.mrf.mxu0 }
 0x4af   : > { %v7510_v58 = vpop.f32.mrf.mxu1 }
 0x4b0   : > { %v7511_v8 = vadd.f32 %v7510_v58, %v7509_v9  ;;  %v7539_v58 = vadd.f32 %v11915_v43, %v11911_v29  ;;  %v12111_v45 = vpop.f32.mrf.mxu0 }
 0x4b1   : > { %v7512_v17 = vpop.f32.mrf.mxu1 }
 0x4b2   : > { %v12089_v62 = vadd.f32 %v7511_v8, %v11901_v27  ;;  %v4194_v27 = vadd.f32 %v7536_v57, %v11918_v16  ;;  %v12126_v57 = vpop.f32.mrf.mxu0 }
 0x4b3   : > { %v7513_v36 = vpop.f32.mrf.mxu1 }
 0x4b4   : > { %v7514_v18 = vadd.f32 %v7513_v36, %v7512_v17  ;;  %v7542_v17 = vadd.f32 %v11922_v41, %v11920_v28  ;;  %v4199_v36 = vadd.f32 %v7539_v58, %v11925_v38 }
 0x4b5   : > { %v7925_v42 = vpop.f32.mrf.mxu1 }
 0x4b6   : > { %v12094_v40 = vadd.f32 %v7514_v18, %v11906_v19  ;;  %v12115_v29 = vadd.f32 %v7925_v42, %v4199_v36  ;;  %v4202_v43 = vadd.f32 %v7542_v17, %v11932_v15 }
 0x4b7   : > { %v4351_v20 = vpop.f32.mrf.mxu1 }
 0x4b8   : > { %14478 = vst [vmem:[#allocation62_spill] sm:$0xff] %v12094_v40  ;;  %v12107_v19 = vadd.f32 %v4351_v20, %v11913_v0  ;;  %v7545_v40 = vadd.f32 %v11929_v26, %v11927_v49  ;;  %v7548_v0 = vadd.f32 %v11936_v6, %v11934_v56  ;;  %v7551_v26 = vadd.f32 %v11943_v23, %v11941_v53 }
 0x4b9   : > { %v7926_v9 = vpop.f32.mrf.mxu1  ;;  %v7554_v56 = vadd.f32 %v11950_v32, %v11948_v60  ;;  %v7557_v53 = vadd.f32 %v11957_v52, %v11955_v5  ;;  %v7560_v60 = vadd.f32 %v11964_v54, %v11962_v7  ;;  %v14480_v5 = vld [vmem:[#allocation44_spill] sm:$0xff]  ;;  %v14482_v7 = vld [vmem:[#allocation38_spill] sm:$0xff] }
 0x4ba   : > { %v12122_v41 = vadd.f32 %v7926_v9, %v4202_v43  ;;  %v4207_v20 = vadd.f32 %v7545_v40, %v11939_v22  ;;  %v4210_v58 = vadd.f32 %v7548_v0, %v11946_v10  ;;  %v4215_v6 = vadd.f32 %v7551_v26, %v11953_v55  ;;  %v12140_v9 = vpop.f32.mrf.mxu0  ;;  %v14479_v43 = vld [vmem:[#allocation37_spill] sm:$0xff] }
 0x4bb   : > { %v4354_v8 = vpop.f32.mrf.mxu1  ;;  %v4218_v10 = vadd.f32 %v7554_v56, %v11960_v34  ;;  %v7563_v52 = vadd.f32 %v11971_v1, %v14480_v5  ;;  %v7566_v54 = vadd.f32 %v11978_v47, %v14482_v7  ;;  %v14484_v1 = vld [vmem:[#allocation45_spill] sm:$0xff]  ;;  %v14486_v47 = vld [vmem:[#allocation48_spill] sm:$0xff]  ;;  %v14487_v5 = vld [vmem:[#allocation47_spill] sm:$0xff] }
 0x4bc   : > { %v12109_v18 = vadd.f32 %v4354_v8, %v4194_v27  ;;  %v14489_v7 = vld [vmem:[#allocation50_spill] sm:$0xff] }
 0x4bd   : > { %v7929_v14 = vpop.f32.mrf.mxu1 }
 0x4be   : > { %v4478_v16 = vadd.f32 %v12109_v18, %v12107_v19  ;;  %v12144_v23 = vadd.f32 %v7929_v14, %v4215_v6 }
 0x4bf   : > { %v4367_v28 = vpop.f32.mrf.mxu1 }
 0x4c0   : > { %v4479_v38 = vadd.f32 %v4478_v16, %v12115_v29  ;;  %v12130_v15 = vadd.f32 %v4367_v28, %v4207_v20  ;;  %v4223_v16 = vadd.f32 %v7557_v53, %v14479_v43  ;;  %v12154_v28 = vpop.f32.mrf.mxu0 }
 0x4c1   : > { %v7930_v49 = vpop.f32.mrf.mxu1 }
 0x4c2   : > { %v4480_v42 = vadd.f32 %v4479_v38, %v12122_v41  ;;  %v12150_v32 = vadd.f32 %v7930_v49, %v4218_v10  ;;  %v14481_v38 = vld [vmem:[#allocation43_spill] sm:$0xff]  ;;  %v14483_v49 = vld [vmem:[#allocation46_spill] sm:$0xff]  ;;  %v12168_v56 = vpop.f32.mrf.mxu0 }
 0x4c3   : > { %v4370_v27 = vpop.f32.mrf.mxu1  ;;  %v4226_v20 = vadd.f32 %v7560_v60, %v14481_v38  ;;  %v14485_v10 = vld [vmem:[#allocation39_spill] sm:$0xff] }
 0x4c4   : > { %v4481_v22 = vadd.f32 %v4480_v42, %v12130_v15  ;;  %v12138_v40 = vadd.f32 %v4370_v27, %v4210_v58  ;;  %v4231_v42 = vadd.f32 %v7563_v52, %v14483_v49 }
 0x4c5   : > { %v7933_v8 = vpop.f32.mrf.mxu1 }
 0x4c6   : > { %v4482_v17 = vadd.f32 %v4481_v22, %v12138_v40  ;;  %v7569_v22 = vadd.f32 %v11985_v59, %v14484_v1  ;;  %v12172_v53 = vadd.f32 %v7933_v8, %v4231_v42  ;;  %v14488_v59 = vld [vmem:[#allocation40_spill] sm:$0xff] }
 0x4c7   : > { %v4383_v36 = vpop.f32.mrf.mxu1  ;;  %v7575_v8 = vadd.f32 %v11999_v21, %v14488_v59  ;;  %v14492_v21 = vld [vmem:[#allocation35_spill] sm:$0xff] }
 0x4c8   : > { %v4483_v55 = vadd.f32 %v4482_v17, %v12144_v23  ;;  %v12158_v14 = vadd.f32 %v4383_v36, %v4223_v16  ;;  %v4234_v17 = vadd.f32 %v7566_v54, %v14485_v10  ;;  %v4239_v52 = vadd.f32 %v7569_v22, %v14487_v5 }
 0x4c9   : > { %v7934_v0 = vpop.f32.mrf.mxu1 }
 0x4ca   : > { %v4484_v34 = vadd.f32 %v4483_v55, %v12150_v32  ;;  %v7572_v55 = vadd.f32 %v11992_v39, %v14486_v47  ;;  %v12178_v43 = vadd.f32 %v7934_v0, %v4234_v17  ;;  %v14490_v39 = vld [vmem:[#allocation49_spill] sm:$0xff]  ;;  %v14493_v47 = vld [vmem:[#allocation51_spill] sm:$0xff] }
 0x4cb   : > { %v4386_v26 = vpop.f32.mrf.mxu1  ;;  %v14491_v0 = vld [vmem:[#allocation41_spill] sm:$0xff] }
 0x4cc   : > { %v4485_v58 = vadd.f32 %v4484_v34, %v12158_v14  ;;  %v12166_v27 = vadd.f32 %v4386_v26, %v4226_v20  ;;  %v12182_v34 = vpop.f32.mrf.mxu0  ;;  %v4242_v54 = vadd.f32 %v7572_v55, %v14489_v7  ;;  %v7578_v42 = vadd.f32 %v14491_v0, %v14490_v39  ;;  %v14495_v39 = vld [vmem:[#allocation36_spill] sm:$0xff] }
 0x4cd   : > { %v7937_v6 = vpop.f32.mrf.mxu1 }
 0x4ce   : > { %v4486_v36 = vadd.f32 %v4485_v58, %v12166_v27  ;;  %v4247_v58 = vadd.f32 %v7575_v8, %v12009_v12  ;;  %v12196_v10 = vpop.f32.mrf.mxu0  ;;  %v4250_v55 = vadd.f32 %v7578_v42, %v14493_v47  ;;  %v7584_v12 = vadd.f32 %v12026_v31, %v12021_v24  ;;  %v14494_v8 = vld [vmem:[#allocation42_spill] sm:$0xff]  ;;  %v14496_v31 = vld [vmem:[#allocation52_spill] sm:$0xff] }
 0x4cf   : > { %v4399_v60 = vpop.f32.mrf.mxu1  ;;  %v7590_v24 = vadd.f32 %v12046_v37, %v12041_v61  ;;  %v14497_v47 = vld [vmem:[#allocation56_spill] sm:$0xff]  ;;  %v7596_v61 = vadd.f32 %v12066_v50, %v12061_v11  ;;  %v7602_v11 = vadd.f32 %v12086_v46, %v12081_v4  ;;  %v14500_v50 = vld [vmem:[#allocation58_spill] sm:$0xff]  ;;  %v7608_v4 = vadd.f32 %v12126_v57, %v12111_v45 }
 0x4d0   : > { %v4487_v16 = vadd.f32 %v4486_v36, %v12172_v53  ;;  %v12186_v20 = vadd.f32 %v4399_v60, %v4239_v52  ;;  %v7581_v36 = vadd.f32 %v12016_v48, %v14492_v21  ;;  %v12200_v60 = vadd.f32 %v7937_v6, %v4247_v58  ;;  %v7616_v7 = vpop.f32.mrf.mxu0  ;;  %v14504_v57 = vld [vmem:[#allocation60_spill] sm:$0xff] }
 0x4d1   : > { %v7938_v38 = vpop.f32.mrf.mxu1  ;;  %v7587_v48 = vadd.f32 %v12036_v3, %v12031_v51  ;;  %v4258_v0 = vadd.f32 %v7584_v12, %v14495_v39  ;;  %v7593_v51 = vadd.f32 %v12056_v13, %v12051_v35  ;;  %v7599_v35 = vadd.f32 %v12076_v33, %v12071_v2 }
 0x4d2   : > { %v4488_v26 = vadd.f32 %v4487_v16, %v12178_v43  ;;  %v12206_v52 = vadd.f32 %v7938_v38, %v4250_v55  ;;  %v7618_v21 = vpop.f32.mrf.mxu0  ;;  %v4266_v55 = vadd.f32 %v7590_v24, %v14497_v47  ;;  %v7605_v2 = vadd.f32 %v12098_v30, %v12091_v25 }
 0x4d3   : > { %v4402_v49 = vpop.f32.mrf.mxu1  ;;  %v4263_v38 = vadd.f32 %v7587_v48, %v14496_v31  ;;  %v7611_v25 = vadd.f32 %v12154_v28, %v12140_v9  ;;  %v7614_v45 = vadd.f32 %v12182_v34, %v12168_v56 }
 0x4d4   : > { %v4489_v1 = vadd.f32 %v4488_v26, %v12186_v20  ;;  %v12194_v22 = vadd.f32 %v4402_v49, %v4242_v54  ;;  %v4255_v26 = vadd.f32 %v7581_v36, %v14494_v8 }
 0x4d5   : > { %v7941_v17 = vpop.f32.mrf.mxu1 }
 0x4d6   : > { %v4490_v16 = vadd.f32 %v4489_v1, %v12194_v22  ;;  %v12224_v3 = vadd.f32 %v7941_v17, %v4263_v38 }
 0x4d7   : > { %v4415_v5 = vpop.f32.mrf.mxu1 }
 0x4d8   : > { %v4491_v59 = vadd.f32 %v4490_v16, %v12200_v60  ;;  %v12212_v6 = vadd.f32 %v4415_v5, %v4255_v26  ;;  %v7619_v26 = vpop.f32.mrf.mxu0 }
 0x4d9   : > { %v7942_v54 = vpop.f32.mrf.mxu1 }
 0x4da   : > { %v4492_v49 = vadd.f32 %v4491_v59, %v12206_v52  ;;  %v12230_v37 = vadd.f32 %v7942_v54, %v4266_v55  ;;  %v14498_v59 = vld [vmem:[#allocation54_spill] sm:$0xff]  ;;  %v4279_v54 = vadd.f32 %v7599_v35, %v14500_v50  ;;  %v7621_v31 = vpop.f32.mrf.mxu0  ;;  %v7617_v50 = vadd.f32 %v7616_v7, %v12196_v10 }
 0x4db   : > { %v4418_v42 = vpop.f32.mrf.mxu1  ;;  %v4271_v8 = vadd.f32 %v7593_v51, %v14498_v59 }
 0x4dc   : > { %v4493_v58 = vadd.f32 %v4492_v49, %v12212_v6  ;;  %v12220_v1 = vadd.f32 %v4418_v42, %v4258_v0  ;;  %v14499_v49 = vld [vmem:[#allocation53_spill] sm:$0xff] }
 0x4dd   : > { %v7945_v36 = vpop.f32.mrf.mxu1  ;;  %v4274_v39 = vadd.f32 %v7596_v61, %v14499_v49 }
 0x4de   : > { %v4494_v16 = vadd.f32 %v4493_v58, %v12220_v1  ;;  %v12248_v33 = vadd.f32 %v7945_v36, %v4279_v54  ;;  %v14501_v58 = vld [vmem:[#allocation57_spill] sm:$0xff] }
 0x4df   : > { %v4431_v5 = vpop.f32.mrf.mxu1  ;;  %v4282_v51 = vadd.f32 %v7602_v11, %v14501_v58  ;;  %v7620_v58 = vadd.f32 %v7619_v26, %v7618_v21 }
 0x4e0   : > { %v4495_v12 = vadd.f32 %v4494_v16, %v12224_v3  ;;  %v12236_v13 = vadd.f32 %v4431_v5, %v4271_v8  ;;  %v14502_v5 = vld [vmem:[#allocation55_spill] sm:$0xff] }
 0x4e1   : > { %v7946_v48 = vpop.f32.mrf.mxu1  ;;  %v4287_v61 = vadd.f32 %v7605_v2, %v14502_v5  ;;  %v14503_v8 = vld [vmem:[#allocation59_spill] sm:$0xff] }
 0x4e2   : > { %v4496_v17 = vadd.f32 %v4495_v12, %v12230_v37  ;;  %v12254_v46 = vadd.f32 %v7946_v48, %v4282_v51  ;;  %v7622_v12 = vpop.f32.mrf.mxu0  ;;  %v4290_v35 = vadd.f32 %v7608_v4, %v14503_v8  ;;  %v4295_v48 = vadd.f32 %v7611_v25, %v14504_v57 }
 0x4e3   : > { %v4434_v0 = vpop.f32.mrf.mxu1  ;;  %v7623_v34 = vadd.f32 %v7622_v12, %v7621_v31 }
 0x4e4   : > { %v4497_v42 = vadd.f32 %v4496_v17, %v12236_v13  ;;  %v12244_v24 = vadd.f32 %v4434_v0, %v4274_v39  ;;  %v7624_v0 = vpop.f32.mrf.mxu0 }
 0x4e5   : > { %v7949_v38 = vpop.f32.mrf.mxu1  ;;  %v4311_v10 = vadd.f32 %v7623_v34, %v12089_v62 }
 0x4e6   : > { %v4498_v47 = vadd.f32 %v4497_v42, %v12244_v24  ;;  %v4456_v54 = vadd.f32 %v7949_v38, %v4295_v48  ;;  %v14505_v42 = vld [vmem:[#allocation61_spill] sm:$0xff]  ;;  %v7625_v4 = vpop.f32.mrf.mxu0 }
 0x4e7   : > { %v4447_v55 = vpop.f32.mrf.mxu1  ;;  %v4298_v9 = vadd.f32 %v7614_v45, %v14505_v42 }
 0x4e8   : > { %v4499_v16 = vadd.f32 %v4498_v47, %v12248_v33  ;;  %v4448_v30 = vadd.f32 %v4447_v55, %v4287_v61  ;;  %v4303_v55 = vadd.f32 %v7617_v50, %v12079_v44  ;;  %v4306_v61 = vadd.f32 %v7620_v58, %v12084_v63 }
 0x4e9   : > { %v7950_v59 = vpop.f32.mrf.mxu1 }
 0x4ea   : > { %v4500_v36 = vadd.f32 %v4499_v16, %v12254_v46  ;;  %v4459_v51 = vadd.f32 %v7950_v59, %v4298_v9 }
 0x4eb   : > { %v4450_v17 = vpop.f32.mrf.mxu1 }
 0x4ec   : > { %v4501_v49 = vadd.f32 %v4500_v36, %v4448_v30  ;;  %v4451_v39 = vadd.f32 %v4450_v17, %v4290_v35  ;;  %v7626_v36 = vadd.f32 %v7625_v4, %v7624_v0  ;;  %v14506_v35 = vld [vmem:[#allocation62_spill] sm:$0xff] }
 0x4ed   : > { %v7953_v11 = vpop.f32.mrf.mxu1 }
 0x4ee   : > { %v4502_v28 = vadd.f32 %v4501_v49, %v4451_v39  ;;  %v4472_v8 = vadd.f32 %v7953_v11, %v4311_v10  ;;  %v4314_v21 = vadd.f32 %v7626_v36, %v14506_v35 }
 0x4ef   : > { %v4463_v2 = vpop.f32.mrf.mxu1 }
 0x4f0   : > { %v4503_v47 = vadd.f32 %v4502_v28, %v4456_v54  ;;  %v4464_v16 = vadd.f32 %v4463_v2, %v4303_v55 }
 0x4f1   : > { %v7954_v56 = vpop.f32.mrf.mxu1 }
 0x4f2   : > { %v4504_v5 = vadd.f32 %v4503_v47, %v4459_v51  ;;  %v4475_v59 = vadd.f32 %v7954_v56, %v4314_v21 }
 0x4f3   : > { %v4466_v25 = vpop.f32.mrf.mxu1 }
 0x4f4   : > { %v4505_v7 = vadd.f32 %v4504_v5, %v4464_v16  ;;  %v4467_v38 = vadd.f32 %v4466_v25, %v4306_v61 }
 0x4f6   : > { %v4506_v26 = vadd.f32 %v4505_v7, %v4467_v38 }
 0x4f8   : > { %v4507_v17 = vadd.f32 %v4506_v26, %v4472_v8 }
 0x4fa   : > { %v4508_v44 = vadd.f32 %v4507_v17, %v4475_v59 }
 0x4fc   : > { %v4509_v45 = vrot.slane %v4508_v44, 4 }
 0x4fe   : > { %v4510_v57 = vadd.f32 %v4509_v45, %v4508_v44 }
 0x500   : > { %v4511_v31 = vrot.slane %v4510_v57, 2 }
 0x502   : > { %v4512_v12 = vadd.f32 %v4511_v31, %v4510_v57 }
 0x504   : > { %v4513_v48 = vrot.slane %v4512_v12, 1 }
 0x506   : > { %v4514_v49 = vadd.f32 %v4513_v48, %v4512_v12 }
 0x508   : > { %v4515_v63 = vmul.f32 0.00390625, %v4514_v49 }
 0x50a   : > { %v12272_v0 = vsub.f32 %v12158_v14, %v4515_v63  ;;  %v12275_v62 = vsub.f32 %v12166_v27, %v4515_v63  ;;  %v12278_v11 = vsub.f32 %v12172_v53, %v4515_v63  ;;  %v12281_v50 = vsub.f32 %v12178_v43, %v4515_v63 }
 0x50b   : > { %v12284_v42 = vsub.f32 %v12186_v20, %v4515_v63  ;;  %v12287_v9 = vsub.f32 %v12194_v22, %v4515_v63  ;;  %v12290_v28 = vsub.f32 %v12200_v60, %v4515_v63  ;;  %v12293_v14 = vsub.f32 %v12206_v52, %v4515_v63 }
 0x50c   : > { %v12296_v27 = vsub.f32 %v12212_v6, %v4515_v63  ;;  %v12299_v53 = vsub.f32 %v12220_v1, %v4515_v63  ;;  %v12302_v43 = vsub.f32 %v12224_v3, %v4515_v63  ;;  %v12305_v20 = vsub.f32 %v12230_v37, %v4515_v63 }
 0x50d   : > { %v12308_v22 = vsub.f32 %v12236_v13, %v4515_v63  ;;  %v12311_v60 = vsub.f32 %v12244_v24, %v4515_v63  ;;  %v12314_v52 = vsub.f32 %v12248_v33, %v4515_v63  ;;  %v12317_v6 = vsub.f32 %v12254_v46, %v4515_v63 }
 0x50e   : > { %v12319_v1 = vsub.f32 %v4448_v30, %v4515_v63  ;;  %v12321_v2 = vsub.f32 %v4451_v39, %v4515_v63  ;;  %v12323_v3 = vsub.f32 %v4456_v54, %v4515_v63  ;;  %v12325_v37 = vsub.f32 %v4459_v51, %v4515_v63 }
 0x50f   : > { %v12327_v58 = vsub.f32 %v4464_v16, %v4515_v63  ;;  %v12329_v13 = vsub.f32 %v4467_v38, %v4515_v63  ;;  %v12331_v24 = vsub.f32 %v4472_v8, %v4515_v63  ;;  %v12333_v47 = vsub.f32 %v4475_v59, %v4515_v63 }
 0x510   : > { %v12336_v33 = vsub.f32 %v12107_v19, %v4515_v63  ;;  %v12339_v46 = vsub.f32 %v12109_v18, %v4515_v63  ;;  %v12342_v30 = vsub.f32 %v12115_v29, %v4515_v63  ;;  %v12349_v51 = vsub.f32 %v12122_v41, %v4515_v63 }
 0x511   : > { %v12352_v55 = vsub.f32 %v12130_v15, %v4515_v63  ;;  %v12357_v4 = vsub.f32 %v12138_v40, %v4515_v63  ;;  %v12362_v34 = vsub.f32 %v12144_v23, %v4515_v63  ;;  %v12367_v15 = vsub.f32 %v12150_v32, %v4515_v63 }
 0x512   : > { %v4548_v39 = vmul.f32 %v12336_v33, %v12336_v33  ;;  %v4549_v54 = vmul.f32 %v12339_v46, %v12339_v46  ;;  %v4550_v19 = vmul.f32 %v12342_v30, %v12342_v30  ;;  %v4551_v29 = vmul.f32 %v12349_v51, %v12349_v51 }
 0x513   : > { %v4552_v41 = vmul.f32 %v12352_v55, %v12352_v55  ;;  %v4553_v5 = vmul.f32 %v12357_v4, %v12357_v4  ;;  %v4554_v40 = vmul.f32 %v12362_v34, %v12362_v34  ;;  %v4555_v36 = vmul.f32 %v12367_v15, %v12367_v15 }
 0x514   : > { %v4580_v18 = vadd.f32 %v4549_v54, %v4548_v39  ;;  %v4556_v10 = vmul.f32 %v12272_v0, %v12272_v0  ;;  %v4557_v32 = vmul.f32 %v12275_v62, %v12275_v62  ;;  %v4558_v8 = vmul.f32 %v12278_v11, %v12278_v11 }
 0x515   : > { %v4559_v21 = vmul.f32 %v12281_v50, %v12281_v50  ;;  %v4560_v59 = vmul.f32 %v12284_v42, %v12284_v42  ;;  %v4561_v44 = vmul.f32 %v12287_v9, %v12287_v9  ;;  %v4562_v57 = vmul.f32 %v12290_v28, %v12290_v28 }
 0x516   : > { %v4581_v56 = vadd.f32 %v4580_v18, %v4550_v19  ;;  %v4563_v12 = vmul.f32 %v12293_v14, %v12293_v14  ;;  %v4564_v49 = vmul.f32 %v12296_v27, %v12296_v27  ;;  %v4565_v39 = vmul.f32 %v12299_v53, %v12299_v53 }
 0x517   : > { %v4566_v19 = vmul.f32 %v12302_v43, %v12302_v43 }
 0x518   : > { %v4582_v16 = vadd.f32 %v4581_v56, %v4551_v29  ;;  %v4567_v29 = vmul.f32 %v12305_v20, %v12305_v20 }
 0x51a   : > { %v4583_v61 = vadd.f32 %v4582_v16, %v4552_v41  ;;  %v4568_v41 = vmul.f32 %v12308_v22, %v12308_v22 }
 0x51c   : > { %v4584_v25 = vadd.f32 %v4583_v61, %v4553_v5  ;;  %v4569_v5 = vmul.f32 %v12311_v60, %v12311_v60 }
 0x51e   : > { %v4585_v23 = vadd.f32 %v4584_v25, %v4554_v40  ;;  %v4570_v40 = vmul.f32 %v12314_v52, %v12314_v52 }
 0x520   : > { %v4586_v7 = vadd.f32 %v4585_v23, %v4555_v36  ;;  %v4571_v36 = vmul.f32 %v12317_v6, %v12317_v6 }
 0x522   : > { %v4587_v38 = vadd.f32 %v4586_v7, %v4556_v10  ;;  %v4572_v10 = vmul.f32 %v12319_v1, %v12319_v1 }
 0x524   : > { %v4588_v35 = vadd.f32 %v4587_v38, %v4557_v32  ;;  %v4573_v32 = vmul.f32 %v12321_v2, %v12321_v2 }
 0x526   : > { %v4589_v26 = vadd.f32 %v4588_v35, %v4558_v8  ;;  %v4574_v8 = vmul.f32 %v12323_v3, %v12323_v3 }
 0x528   : > { %v4590_v17 = vadd.f32 %v4589_v26, %v4559_v21  ;;  %v4575_v21 = vmul.f32 %v12325_v37, %v12325_v37 }
 0x52a   : > { %v4591_v45 = vadd.f32 %v4590_v17, %v4560_v59  ;;  %v4576_v59 = vmul.f32 %v12327_v58, %v12327_v58 }
 0x52c   : > { %v4592_v31 = vadd.f32 %v4591_v45, %v4561_v44  ;;  %v4577_v44 = vmul.f32 %v12329_v13, %v12329_v13 }
 0x52e   : > { %v4593_v48 = vadd.f32 %v4592_v31, %v4562_v57  ;;  %v4578_v57 = vmul.f32 %v12331_v24, %v12331_v24 }
 0x530   : > { %v4594_v63 = vadd.f32 %v4593_v48, %v4563_v12  ;;  %v4579_v12 = vmul.f32 %v12333_v47, %v12333_v47 }
 0x532   : > { %v4595_v54 = vadd.f32 %v4594_v63, %v4564_v49 }
 0x534   : > { %v4596_v18 = vadd.f32 %v4595_v54, %v4565_v39 }
 0x536   : > { %v4597_v56 = vadd.f32 %v4596_v18, %v4566_v19  ;;  %v8891_v18 = vld [vmem:[%s14226_s8 + $0x78] sm:$0xff]  }
 0x537   : > { %8003 = vmatprep.subr.bf16.mxu0 %v8891_v18 }
 0x538   : > { %v4598_v16 = vadd.f32 %v4597_v56, %v4567_v29  ;;  %8004 = vmatpush3.bf16.msra.mxu0 %v8891_v18 }
 0x53a   : > { %v4599_v61 = vadd.f32 %v4598_v16, %v4568_v41  ;;  %v8892_v41 = vld [vmem:[%s14226_s8 + $0x70] sm:$0xff]   ;;  %v8893_v16 = vld [vmem:[%s14226_s8 + $0x68] sm:$0xff]  }
 0x53b   : > { %8005 = vmatprep.subr.bf16.mxu0 %v8892_v41 }
 0x53c   : > { %v4600_v25 = vadd.f32 %v4599_v61, %v4569_v5  ;;  %v8897_v5 = vld [vmem:[%s14226_s8 + $0x38] sm:$0xff]   ;;  %8006 = vmatpush3.bf16.msra.mxu0 %v8892_v41 }
 0x53d   : > { %7955 = vmatprep.subr.bf16.mxu1 %v8897_v5  ;;  %8007 = vmatprep.subr.bf16.mxu0 %v8893_v16 }
 0x53e   : > { %v4601_v23 = vadd.f32 %v4600_v25, %v4570_v40  ;;  %v8899_v40 = vld [vmem:[%s14226_s8 + $0x30] sm:$0xff]   ;;  %v8894_v25 = vld [vmem:[%s14226_s8 + $0x60] sm:$0xff]   ;;  %7956 = vmatpush3.bf16.msra.mxu1 %v8897_v5 }
 0x53f   : > { %7957 = vmatprep.subr.bf16.mxu1 %v8899_v40 }
 0x540   : > { %v4602_v7 = vadd.f32 %v4601_v23, %v4571_v36  ;;  %v8900_v36 = vld [vmem:[%s14226_s8 + $0x28] sm:$0xff]   ;;  %8008 = vmatpush3.bf16.msra.mxu0 %v8893_v16 }
 0x541   : > { %8009 = vmatprep.subr.bf16.mxu0 %v8894_v25 }
 0x542   : > { %v4603_v38 = vadd.f32 %v4602_v7, %v4572_v10  ;;  %v8895_v10 = vld [vmem:[%s14226_s8 + $0x58] sm:$0xff]   ;;  %7958 = vmatpush3.bf16.msra.mxu1 %v8899_v40  ;;  %v8901_v7 = vld [vmem:[%s14226_s8 + $0x20] sm:$0xff]  }
 0x543   : > { %7959 = vmatprep.subr.bf16.mxu1 %v8900_v36 }
 0x544   : > { %v4604_v35 = vadd.f32 %v4603_v38, %v4573_v32  ;;  %8010 = vmatpush3.bf16.msra.mxu0 %v8894_v25  ;;  %v8896_v32 = vld [vmem:[%s14226_s8 + $0x50] sm:$0xff]   ;;  %v8902_v38 = vld [vmem:[%s14226_s8 + $0x18] sm:$0xff]  }
 0x545   : > { %8011 = vmatprep.subr.bf16.mxu0 %v8895_v10 }
 0x546   : > { %v4605_v26 = vadd.f32 %v4604_v35, %v4574_v8  ;;  %7960 = vmatpush3.bf16.msra.mxu1 %v8900_v36  ;;  %v8898_v8 = vld [vmem:[%s14226_s8 + $0x48] sm:$0xff]   ;;  %v8904_v35 = vld [vmem:[%s14226_s8 + $0x10] sm:$0xff]  }
 0x547   : > { %7961 = vmatprep.subr.bf16.mxu1 %v8901_v7 }
 0x548   : > { %v4606_v17 = vadd.f32 %v4605_v26, %v4575_v21  ;;  %8012 = vmatpush3.bf16.msra.mxu0 %v8895_v10  ;;  %v8903_v21 = vld [vmem:[%s14226_s8 + $0x40] sm:$0xff]   ;;  %v8905_v26 = vld [vmem:[%s14226_s8 + $0x8] sm:$0xff]  }
 0x549   : > { %8013 = vmatprep.subr.bf16.mxu0 %v8896_v32 }
 0x54a   : > { %v4607_v45 = vadd.f32 %v4606_v17, %v4576_v59  ;;  %7962 = vmatpush3.bf16.msra.mxu1 %v8901_v7 }
 0x54b   : > { %7963 = vmatprep.subr.bf16.mxu1 %v8902_v38 }
 0x54c   : > { %v4608_v31 = vadd.f32 %v4607_v45, %v4577_v44  ;;  %8014 = vmatpush3.bf16.msra.mxu0 %v8896_v32  ;;  %v8906_v45 = vld [vmem:[%s14226_s8] sm:$0xff]  }
 0x54d   : > { %8015 = vmatprep.subr.bf16.mxu0 %v8898_v8 }
 0x54e   : > { %v4609_v48 = vadd.f32 %v4608_v31, %v4578_v57  ;;  %7964 = vmatpush3.bf16.msra.mxu1 %v8902_v38 }
 0x54f   : > { %7965 = vmatprep.subr.bf16.mxu1 %v8904_v35 }
 0x550   : > { %v4610_v49 = vadd.f32 %v4609_v48, %v4579_v12  ;;  %8016 = vmatpush3.bf16.msra.mxu0 %v8898_v8 }
 0x551   : > { %8017 = vmatprep.subr.bf16.mxu0 %v8903_v21 }
 0x552   : > { %v4611_v63 = vrot.slane %v4610_v49, 4  ;;  %7966 = vmatpush3.bf16.msra.mxu1 %v8904_v35 }
 0x553   : > { %7967 = vmatprep.subr.bf16.mxu1 %v8905_v26 }
 0x554   : > { %v4612_v39 = vadd.f32 %v4611_v63, %v4610_v49  ;;  %8018 = vmatpush3.bf16.msra.mxu0 %v8903_v21 }
 0x556   : > { %v4613_v54 = vrot.slane %v4612_v39, 2  ;;  %7968 = vmatpush3.bf16.msra.mxu1 %v8905_v26 }
 0x557   : > { %7969 = vmatprep.subr.bf16.mxu1 %v8906_v45 }
 0x558   : > { %v4614_v19 = vadd.f32 %v4613_v54, %v4612_v39 }
 0x55a   : > { %v4615_v29 = vrot.slane %v4614_v19, 1  ;;  %7970 = vmatpush3.bf16.msra.mxu1 %v8906_v45 }
 0x55c   : > { %v4616_v56 = vadd.f32 %v4615_v29, %v4614_v19 }
 0x55e   : > { %v4617_v61 = vmul.f32 0.00390625, %v4616_v56 }
 0x560   : > { %v4618_v23 = vadd.f32 1e-05, %v4617_v61 }
 0x562   : > { %8925 = vrsqrt.f32 %v4618_v23 }
 0x56f   : > { %v12468_v59 = vpop.eup %8925 }
 0x570   : > { %v4620_v17 = vmul.f32 %v12468_v59, %v12336_v33  ;;  %v4621_v44 = vmul.f32 %v12468_v59, %v12339_v46  ;;  %v4622_v57 = vmul.f32 %v12468_v59, %v12342_v30  ;;  %v12483_v33 = vld [vmem:[%s422_s18] ss:$0 sm:$0xff]  ;;  %v4623_v46 = vmul.f32 %v12468_v59, %v12349_v51 }
 0x571   : > { %v4624_v48 = vmul.f32 %v12468_v59, %v12352_v55  ;;  %v4625_v30 = vmul.f32 %v12468_v59, %v12357_v4  ;;  %v4626_v19 = vmul.f32 %v12468_v59, %v12362_v34  ;;  %v4627_v29 = vmul.f32 %v12468_v59, %v12367_v15 }
 0x572   : > { %v4652_v31 = vmax.f32 %v4620_v17, 0.0  ;;  %v4653_v12 = vmax.f32 %v4621_v44, 0.0  ;;  %v4654_v49 = vmax.f32 %v4622_v57, 0.0  ;;  %v4655_v54 = vmax.f32 %v4623_v46, 0.0 }
 0x573   : > { %v4656_v18 = vmax.f32 %v4624_v48, 0.0  ;;  %v4657_v56 = vmax.f32 %v4625_v30, 0.0  ;;  %v4628_v16 = vmul.f32 %v12468_v59, %v12272_v0  ;;  %v4658_v34 = vmax.f32 %v4626_v19, 0.0 }
 0x574   : > { %v12490_v63 = vadd.f32 %v12483_v33, %v4652_v31  ;;  %v12493_v39 = vadd.f32 %v12483_v33, %v4653_v12  ;;  %v12500_v51 = vadd.f32 %v12483_v33, %v4654_v49  ;;  %v12507_v41 = vadd.f32 %v12483_v33, %v4655_v54 }
 0x575   : > { %v12513_v5 = vadd.f32 %v12483_v33, %v4656_v18  ;;  %v4629_v40 = vmul.f32 %v12468_v59, %v12275_v62  ;;  %v4659_v25 = vmax.f32 %v4627_v29, 0.0  ;;  %v12519_v15 = vadd.f32 %v12483_v33, %v4657_v56 }
 0x576   : > { %14507 = vst [vmem:[#allocation37_spill] sm:$0xff] %v12490_v63  ;;  %14508 = vst [vmem:[#allocation44_spill] sm:$0xff] %v12493_v39  ;;  %v4723_v55 = vadd.f32 %v12493_v39, %v12490_v63  ;;  %v4630_v23 = vmul.f32 %v12468_v59, %v12278_v11  ;;  %v4660_v10 = vmax.f32 %v4628_v16, 0.0  ;;  %v12525_v0 = vadd.f32 %v12483_v33, %v4658_v34 }
 0x577   : > { %14509 = vst [vmem:[#allocation43_spill] sm:$0xff] %v12500_v51  ;;  %14510 = vst [vmem:[#allocation38_spill] sm:$0xff] %v12507_v41  ;;  %v4631_v32 = vmul.f32 %v12468_v59, %v12281_v50  ;;  %v4661_v38 = vmax.f32 %v4629_v40, 0.0  ;;  %v12531_v62 = vadd.f32 %v12483_v33, %v4659_v25  ;;  %v4632_v35 = vmul.f32 %v12468_v59, %v12284_v42 }
 0x578   : > { %v4724_v4 = vadd.f32 %v4723_v55, %v12500_v51  ;;  %14511 = vst [vmem:[#allocation46_spill] sm:$0xff] %v12513_v5  ;;  %14512 = vst [vmem:[#allocation45_spill] sm:$0xff] %v12519_v15  ;;  %v4662_v21 = vmax.f32 %v4630_v23, 0.0  ;;  %v12537_v11 = vadd.f32 %v12483_v33, %v4660_v10  ;;  %v4633_v17 = vmul.f32 %v12468_v59, %v12287_v9 }
 0x579   : > { %14513 = vst [vmem:[#allocation39_spill] sm:$0xff] %v12525_v0  ;;  %14514 = vst [vmem:[#allocation48_spill] sm:$0xff] %v12531_v62  ;;  %v4663_v44 = vmax.f32 %v4631_v32, 0.0  ;;  %v12543_v50 = vadd.f32 %v12483_v33, %v4661_v38  ;;  %v4634_v57 = vmul.f32 %v12468_v59, %v12290_v28  ;;  %v4664_v31 = vmax.f32 %v4632_v35, 0.0 }
 0x57a   : > { %v4725_v61 = vadd.f32 %v4724_v4, %v12507_v41  ;;  %14515 = vst [vmem:[#allocation47_spill] sm:$0xff] %v12537_v11  ;;  %v12549_v42 = vadd.f32 %v12483_v33, %v4662_v21  ;;  %v4635_v46 = vmul.f32 %v12468_v59, %v12293_v14  ;;  %v4665_v48 = vmax.f32 %v4633_v17, 0.0 }
 0x57b   : > { %14516 = vst [vmem:[#allocation40_spill] sm:$0xff] %v12543_v50  ;;  %v12555_v9 = vadd.f32 %v12483_v33, %v4663_v44  ;;  %v4636_v30 = vmul.f32 %v12468_v59, %v12296_v27  ;;  %v4666_v54 = vmax.f32 %v4634_v57, 0.0  ;;  %v12561_v28 = vadd.f32 %v12483_v33, %v4664_v31 }
 0x57c   : > { %v4726_v36 = vadd.f32 %v4725_v61, %v12513_v5  ;;  %14517 = vst [vmem:[#allocation50_spill] sm:$0xff] %v12549_v42  ;;  %v4637_v18 = vmul.f32 %v12468_v59, %v12299_v53  ;;  %v4667_v55 = vmax.f32 %v4635_v46, 0.0  ;;  %v12567_v14 = vadd.f32 %v12483_v33, %v4665_v48 }
 0x57d   : > { %14518 = vst [vmem:[#allocation49_spill] sm:$0xff] %v12555_v9  ;;  %14519 = vst [vmem:[#allocation41_spill] sm:$0xff] %v12561_v28  ;;  %v4638_v56 = vmul.f32 %v12468_v59, %v12302_v43  ;;  %v4668_v4 = vmax.f32 %v4636_v30, 0.0  ;;  %v12573_v27 = vadd.f32 %v12483_v33, %v4666_v54  ;;  %v4639_v34 = vmul.f32 %v12468_v59, %v12305_v20 }
 0x57e   : > { %v4727_v7 = vadd.f32 %v4726_v36, %v12519_v15  ;;  %14520 = vst [vmem:[#allocation35_spill] sm:$0xff] %v12567_v14  ;;  %v4669_v61 = vmax.f32 %v4637_v18, 0.0  ;;  %v12579_v53 = vadd.f32 %v12483_v33, %v4667_v55  ;;  %v4640_v25 = vmul.f32 %v12468_v59, %v12308_v22 }
 0x57f   : > { %14521 = vst [vmem:[#allocation51_spill] sm:$0xff] %v12573_v27  ;;  %v4670_v36 = vmax.f32 %v4638_v56, 0.0  ;;  %v12585_v43 = vadd.f32 %v12483_v33, %v4668_v4  ;;  %v4641_v10 = vmul.f32 %v12468_v59, %v12311_v60  ;;  %v4642_v38 = vmul.f32 %v12468_v59, %v12314_v52 }
 0x580   : > { %v4728_v8 = vadd.f32 %v4727_v7, %v12525_v0  ;;  %14522 = vst [vmem:[#allocation42_spill] sm:$0xff] %v12579_v53  ;;  %v4671_v7 = vmax.f32 %v4639_v34, 0.0  ;;  %v12591_v20 = vadd.f32 %v12483_v33, %v4669_v61  ;;  %v4643_v21 = vmul.f32 %v12468_v59, %v12317_v6 }
 0x581   : > { %14523 = vst [vmem:[#allocation36_spill] sm:$0xff] %v12585_v43  ;;  %v12597_v22 = vadd.f32 %v12483_v33, %v4670_v36  ;;  %v4644_v44 = vmul.f32 %v12468_v59, %v12319_v1  ;;  %v4645_v31 = vmul.f32 %v12468_v59, %v12321_v2  ;;  %v4646_v48 = vmul.f32 %v12468_v59, %v12323_v3 }
 0x582   : > { %v4729_v26 = vadd.f32 %v4728_v8, %v12531_v62  ;;  %14524 = vst [vmem:[#allocation52_spill] sm:$0xff] %v12591_v20  ;;  %v4672_v8 = vmax.f32 %v4640_v25, 0.0  ;;  %v12603_v60 = vadd.f32 %v12483_v33, %v4671_v7  ;;  %v4647_v54 = vmul.f32 %v12468_v59, %v12325_v37 }
 0x583   : > { %14525 = vst [vmem:[#allocation56_spill] sm:$0xff] %v12597_v22  ;;  %v4648_v55 = vmul.f32 %v12468_v59, %v12327_v58  ;;  %v4649_v4 = vmul.f32 %v12468_v59, %v12329_v13  ;;  %v4650_v61 = vmul.f32 %v12468_v59, %v12331_v24  ;;  %v4651_v36 = vmul.f32 %v12468_v59, %v12333_v47 }
 0x584   : > { %v4730_v45 = vadd.f32 %v4729_v26, %v12537_v11  ;;  %v4673_v26 = vmax.f32 %v4641_v10, 0.0  ;;  %14526 = vst [vmem:[#allocation54_spill] sm:$0xff] %v12603_v60  ;;  %v12609_v52 = vadd.f32 %v12483_v33, %v4672_v8 }
 0x585   : > { %v4682_v7 = vmax.f32 %v4650_v61, 0.0 }
 0x586   : > { %v4731_v12 = vadd.f32 %v4730_v45, %v12543_v50  ;;  %v4674_v45 = vmax.f32 %v4642_v38, 0.0  ;;  %14527 = vst [vmem:[#allocation53_spill] sm:$0xff] %v12609_v52  ;;  %v12615_v6 = vadd.f32 %v12483_v33, %v4673_v26  ;;  %v4683_v38 = vmax.f32 %v4651_v36, 0.0 }
 0x587   : > { %v12663_v47 = vadd.f32 %v12483_v33, %v4682_v7 }
 0x588   : > { %v4732_v49 = vadd.f32 %v4731_v12, %v12549_v42  ;;  %v4675_v12 = vmax.f32 %v4643_v21, 0.0  ;;  %14528 = vst [vmem:[#allocation58_spill] sm:$0xff] %v12615_v6  ;;  %v12621_v1 = vadd.f32 %v12483_v33, %v4674_v45  ;;  %v12667_v21 = vadd.f32 %v12483_v33, %v4683_v38 }
 0x589   : > { %14537 = vst [vmem:[#allocation65_spill] sm:$0xff] %v12663_v47 }
 0x58a   : > { %v4733_v19 = vadd.f32 %v4732_v49, %v12555_v9  ;;  %v4676_v49 = vmax.f32 %v4644_v44, 0.0  ;;  %14529 = vst [vmem:[#allocation57_spill] sm:$0xff] %v12621_v1  ;;  %v12627_v2 = vadd.f32 %v12483_v33, %v4675_v12  ;;  %14538 = vst [vmem:[#allocation66_spill] sm:$0xff] %v12667_v21 }
 0x58c   : > { %v4734_v29 = vadd.f32 %v4733_v19, %v12561_v28  ;;  %v4677_v19 = vmax.f32 %v4645_v31, 0.0  ;;  %14530 = vst [vmem:[#allocation55_spill] sm:$0xff] %v12627_v2  ;;  %v12633_v3 = vadd.f32 %v12483_v33, %v4676_v49 }
 0x58e   : > { %v4735_v16 = vadd.f32 %v4734_v29, %v12567_v14  ;;  %v4678_v29 = vmax.f32 %v4646_v48, 0.0  ;;  %14531 = vst [vmem:[#allocation59_spill] sm:$0xff] %v12633_v3  ;;  %v12639_v37 = vadd.f32 %v12483_v33, %v4677_v19 }
 0x590   : > { %v4736_v40 = vadd.f32 %v4735_v16, %v12573_v27  ;;  %v4679_v16 = vmax.f32 %v4647_v54, 0.0  ;;  %14532 = vst [vmem:[#allocation60_spill] sm:$0xff] %v12639_v37  ;;  %v12645_v58 = vadd.f32 %v12483_v33, %v4678_v29 }
 0x592   : > { %v4737_v23 = vadd.f32 %v4736_v40, %v12579_v53  ;;  %v4680_v40 = vmax.f32 %v4648_v55, 0.0  ;;  %14533 = vst [vmem:[#allocation61_spill] sm:$0xff] %v12645_v58  ;;  %v12651_v13 = vadd.f32 %v12483_v33, %v4679_v16 }
 0x594   : > { %v4738_v32 = vadd.f32 %v4737_v23, %v12585_v43  ;;  %v4681_v23 = vmax.f32 %v4649_v4, 0.0  ;;  %14534 = vst [vmem:[#allocation62_spill] sm:$0xff] %v12651_v13  ;;  %v12702_v4 = vld [vmem:[%s14226_s8 + $0xb8] sm:$0xff]  }
 0x595   : > { %8051 = vmatprep.subr.bf16.mxu1 %v12702_v4 }
 0x596   : > { %v4739_v35 = vadd.f32 %v4738_v32, %v12591_v20  ;;  %v12655_v32 = vadd.f32 %v12483_v33, %v4680_v40  ;;  %v12659_v8 = vadd.f32 %v12483_v33, %v4681_v23 }
 0x598   : > { %v4740_v17 = vadd.f32 %v4739_v35, %v12597_v22  ;;  %14535 = vst [vmem:[#allocation63_spill] sm:$0xff] %v12655_v32  ;;  %14536 = vst [vmem:[#allocation64_spill] sm:$0xff] %v12659_v8 }
 0x59a   : > { %v4741_v57 = vadd.f32 %v4740_v17, %v12603_v60 }
 0x59c   : > { %v4742_v46 = vadd.f32 %v4741_v57, %v12609_v52 }
 0x59e   : > { %v4743_v30 = vadd.f32 %v4742_v46, %v12615_v6 }
 0x5a0   : > { %v4744_v18 = vadd.f32 %v4743_v30, %v12621_v1 }
 0x5a2   : > { %v4745_v56 = vadd.f32 %v4744_v18, %v12627_v2 }
 0x5a4   : > { %v4746_v34 = vadd.f32 %v4745_v56, %v12633_v3 }
 0x5a6   : > { %v4747_v25 = vadd.f32 %v4746_v34, %v12639_v37 }
 0x5a8   : > { %v4748_v10 = vadd.f32 %v4747_v25, %v12645_v58 }
 0x5aa   : > { %v4749_v24 = vadd.f32 %v4748_v10, %v12651_v13 }
 0x5ac   : > { %v4750_v35 = vadd.f32 %v4749_v24, %v12655_v32 }
 0x5ae   : > { %v4751_v59 = vadd.f32 %v4750_v35, %v12659_v8 }
 0x5b0   : > { %v4752_v26 = vadd.f32 %v4751_v59, %v12663_v47 }
 0x5b2   : > { %v4753_v17 = vadd.f32 %v4752_v26, %v12667_v21 }
 0x5b4   : > { %v4754_v44 = vrot.slane %v4753_v17, 4 }
 0x5b6   : > { %v4755_v45 = vadd.f32 %v4754_v44, %v4753_v17 }
 0x5b8   : > { %v4756_v57 = vrot.slane %v4755_v45, 2 }
 0x5ba   : > { %v4757_v31 = vadd.f32 %v4756_v57, %v4755_v45 }
 0x5bc   : > { %v4758_v12 = vrot.slane %v4757_v31, 1 }
 0x5be   : > { %v4759_v46 = vadd.f32 %v4758_v12, %v4757_v31 }
 0x5c0   : > { %v12671_v48 = vmul.f32 0.00390625, %v4759_v46 }
 0x5c2   : > { %v12675_v49 = vsub.f32 %v12500_v51, %v12671_v48  ;;  %v12679_v33 = vsub.f32 %v12490_v63, %v12671_v48  ;;  %v12683_v30 = vsub.f32 %v12493_v39, %v12671_v48  ;;  %v12687_v54 = vsub.f32 %v12507_v41, %v12671_v48 }
 0x5c3   : > { %v12695_v55 = vsub.f32 %v12513_v5, %v12671_v48  ;;  %v12706_v16 = vsub.f32 %v12519_v15, %v12671_v48  ;;  %v12713_v40 = vsub.f32 %v12525_v0, %v12671_v48  ;;  %v12719_v23 = vsub.f32 %v12531_v62, %v12671_v48 }
 0x5c4   : > { %v4793_v19 = vmul.f32 %v12679_v33, %v12679_v33  ;;  %v4794_v18 = vmul.f32 %v12683_v30, %v12683_v30  ;;  %v4795_v29 = vmul.f32 %v12675_v49, %v12675_v49  ;;  %v4796_v34 = vmul.f32 %v12687_v54, %v12687_v54 }
 0x5c5   : > { %v4797_v25 = vmul.f32 %v12695_v55, %v12695_v55  ;;  %v4798_v10 = vmul.f32 %v12706_v16, %v12706_v16  ;;  %v12725_v24 = vsub.f32 %v12537_v11, %v12671_v48  ;;  %v4799_v38 = vmul.f32 %v12713_v40, %v12713_v40 }
 0x5c6   : > { %v4825_v56 = vadd.f32 %v4794_v18, %v4793_v19  ;;  %v12731_v59 = vsub.f32 %v12543_v50, %v12671_v48  ;;  %v4800_v26 = vmul.f32 %v12719_v23, %v12719_v23  ;;  %v12737_v44 = vsub.f32 %v12549_v42, %v12671_v48 }
 0x5c7   : > { %v4801_v45 = vmul.f32 %v12725_v24, %v12725_v24  ;;  %v12743_v31 = vsub.f32 %v12555_v9, %v12671_v48  ;;  %v12749_v19 = vsub.f32 %v12561_v28, %v12671_v48 }
 0x5c8   : > { %v4826_v61 = vadd.f32 %v4825_v56, %v4795_v29  ;;  %v4802_v12 = vmul.f32 %v12731_v59, %v12731_v59  ;;  %v4803_v18 = vmul.f32 %v12737_v44, %v12737_v44  ;;  %v12755_v56 = vsub.f32 %v12567_v14, %v12671_v48 }
 0x5ca   : > { %v4827_v36 = vadd.f32 %v4826_v61, %v4796_v34  ;;  %v4804_v34 = vmul.f32 %v12743_v31, %v12743_v31 }
 0x5cc   : > { %v4828_v7 = vadd.f32 %v4827_v36, %v4797_v25  ;;  %v12761_v25 = vsub.f32 %v12573_v27, %v12671_v48  ;;  %v4805_v36 = vmul.f32 %v12749_v19, %v12749_v19 }
 0x5ce   : > { %v4829_v35 = vadd.f32 %v4828_v7, %v4798_v10  ;;  %v12767_v7 = vsub.f32 %v12579_v53, %v12671_v48 }
 0x5d0   : > { %v4830_v17 = vadd.f32 %v4829_v35, %v4799_v38  ;;  %v4806_v38 = vmul.f32 %v12755_v56, %v12755_v56 }
 0x5d2   : > { %v4831_v57 = vadd.f32 %v4830_v17, %v4800_v26  ;;  %v12773_v26 = vsub.f32 %v12585_v43, %v12671_v48  ;;  %v4807_v17 = vmul.f32 %v12761_v25, %v12761_v25 }
 0x5d4   : > { %v4832_v46 = vadd.f32 %v4831_v57, %v4801_v45  ;;  %v12779_v57 = vsub.f32 %v12591_v20, %v12671_v48  ;;  %v12809_v20 = vsub.f32 %v12621_v1, %v12671_v48  ;;  %v12827_v1 = vsub.f32 %v12639_v37, %v12671_v48 }
 0x5d5   : > { %v12845_v37 = vsub.f32 %v12655_v32, %v12671_v48 }
 0x5d6   : > { %v4833_v29 = vadd.f32 %v4832_v46, %v4802_v12  ;;  %v4808_v12 = vmul.f32 %v12767_v7, %v12767_v7 }
 0x5d8   : > { %v4834_v61 = vadd.f32 %v4833_v29, %v4803_v18  ;;  %v12785_v18 = vsub.f32 %v12597_v22, %v12671_v48  ;;  %v4809_v29 = vmul.f32 %v12773_v26, %v12773_v26 }
 0x5da   : > { %v4835_v10 = vadd.f32 %v4834_v61, %v4804_v34  ;;  %v12791_v61 = vsub.f32 %v12603_v60, %v12671_v48 }
 0x5dc   : > { %v4836_v35 = vadd.f32 %v4835_v10, %v4805_v36  ;;  %v4810_v36 = vmul.f32 %v12779_v57, %v12779_v57 }
 0x5de   : > { %v4837_v45 = vadd.f32 %v4836_v35, %v4806_v38  ;;  %v12797_v38 = vsub.f32 %v12609_v52, %v12671_v48  ;;  %v4811_v35 = vmul.f32 %v12785_v18, %v12785_v18  ;;  %v12815_v52 = vsub.f32 %v12627_v2, %v12671_v48 }
 0x5df   : > { %v12833_v2 = vsub.f32 %v12645_v58, %v12671_v48  ;;  %v12851_v58 = vsub.f32 %v12659_v8, %v12671_v48 }
 0x5e0   : > { %v4838_v46 = vadd.f32 %v4837_v45, %v4807_v17  ;;  %v12803_v45 = vsub.f32 %v12615_v6, %v12671_v48  ;;  %v12821_v6 = vsub.f32 %v12633_v3, %v12671_v48  ;;  %v12839_v3 = vsub.f32 %v12651_v13, %v12671_v48 }
 0x5e1   : > { %v12857_v13 = vsub.f32 %v12663_v47, %v12671_v48  ;;  %v4822_v32 = vmul.f32 %v12851_v58, %v12851_v58 }
 0x5e2   : > { %v4839_v34 = vadd.f32 %v4838_v46, %v4808_v12  ;;  %v4812_v12 = vmul.f32 %v12791_v61, %v12791_v61 }
 0x5e3   : > { %v4823_v8 = vmul.f32 %v12857_v13, %v12857_v13 }
 0x5e4   : > { %v4840_v10 = vadd.f32 %v4839_v34, %v4809_v29  ;;  %v4813_v29 = vmul.f32 %v12797_v38, %v12797_v38 }
 0x5e6   : > { %v4841_v17 = vadd.f32 %v4840_v10, %v4810_v36  ;;  %v4814_v36 = vmul.f32 %v12803_v45, %v12803_v45 }
 0x5e8   : > { %v4842_v46 = vadd.f32 %v4841_v17, %v4811_v35  ;;  %v4815_v35 = vmul.f32 %v12809_v20, %v12809_v20 }
 0x5ea   : > { %v4843_v34 = vadd.f32 %v4842_v46, %v4812_v12  ;;  %v4816_v12 = vmul.f32 %v12815_v52, %v12815_v52 }
 0x5ec   : > { %v4844_v10 = vadd.f32 %v4843_v34, %v4813_v29  ;;  %v4817_v29 = vmul.f32 %v12821_v6, %v12821_v6 }
 0x5ee   : > { %v4845_v17 = vadd.f32 %v4844_v10, %v4814_v36  ;;  %v4818_v36 = vmul.f32 %v12827_v1, %v12827_v1 }
 0x5f0   : > { %v4846_v46 = vadd.f32 %v4845_v17, %v4815_v35  ;;  %v4819_v35 = vmul.f32 %v12833_v2, %v12833_v2 }
 0x5f2   : > { %v4847_v34 = vadd.f32 %v4846_v46, %v4816_v12  ;;  %v4820_v12 = vmul.f32 %v12839_v3, %v12839_v3 }
 0x5f4   : > { %v4848_v10 = vadd.f32 %v4847_v34, %v4817_v29  ;;  %v4821_v29 = vmul.f32 %v12845_v37, %v12845_v37 }
 0x5f6   : > { %v4849_v17 = vadd.f32 %v4848_v10, %v4818_v36  ;;  %v12865_v36 = vsub.f32 %v12667_v21, %v12671_v48 }
 0x5f8   : > { %v4850_v46 = vadd.f32 %v4849_v17, %v4819_v35  ;;  %v4824_v17 = vmul.f32 %v12865_v36, %v12865_v36 }
 0x5fa   : > { %v4851_v34 = vadd.f32 %v4850_v46, %v4820_v12 }
 0x5fc   : > { %v4852_v10 = vadd.f32 %v4851_v34, %v4821_v29  ;;  %v8911_v34 = vld [vmem:[%s14226_s8 + $0x98] sm:$0xff]  }
 0x5fe   : > { %v4853_v35 = vadd.f32 %v4852_v10, %v4822_v32 }
 0x600   : > { %v4854_v47 = vadd.f32 %v4853_v35, %v4823_v8 }
 0x602   : > { %v4855_v60 = vadd.f32 %v4854_v47, %v4824_v17 }
 0x604   : > { %v4856_v43 = vrot.slane %v4855_v60, 4 }
 0x606   : > { %v4857_v22 = vadd.f32 %v4856_v43, %v4855_v60  ;;  %v8908_v60 = vld [vmem:[%s14226_s8 + $0xb0] sm:$0xff]  }
 0x608   : > { %v4858_v12 = vrot.slane %v4857_v22, 2 }
 0x60a   : > { %v4859_v46 = vadd.f32 %v4858_v12, %v4857_v22  ;;  %v8913_v12 = vld [vmem:[%s14226_s8 + $0x88] sm:$0xff]  }
 0x60c   : > { %v4860_v14 = vrot.slane %v4859_v46, 1 }
 0x60e   : > { %v4861_v53 = vadd.f32 %v4860_v14, %v4859_v46 }
 0x610   : > { %v4862_v28 = vmul.f32 0.00390625, %v4861_v53 }
 0x612   : > { %v4863_v27 = vadd.f32 1e-05, %v4862_v28 }
 0x614   : > { %8927 = vrsqrt.f32 %v4863_v27 }
 0x621   : > { %v12871_v48 = vpop.eup %8927 }
 0x622   : > { %v4865_v29 = vmul.f32 %v12871_v48, %v12679_v33  ;;  %v4866_v32 = vmul.f32 %v12871_v48, %v12683_v30  ;;  %v4867_v8 = vmul.f32 %v12871_v48, %v12675_v49  ;;  %v4868_v43 = vmul.f32 %v12871_v48, %v12687_v54  ;;  %v8909_v54 = vld [vmem:[%s14226_s8 + $0xa8] sm:$0xff]  }
 0x623   : > { %v4869_v14 = vmul.f32 %v12871_v48, %v12695_v55  ;;  %v4870_v28 = vmul.f32 %v12871_v48, %v12706_v16  ;;  %v4871_v47 = vmul.f32 %v12871_v48, %v12713_v40  ;;  %v4872_v49 = vmul.f32 %v12871_v48, %v12719_v23 }
 0x624   : > { %v12885_v27 = vpack.c.bf16 %v4866_v32, %v4865_v29  ;;  %v12887_v53 = vpack.c.bf16 %v4868_v43, %v4867_v8  ;;  %v4873_v33 = vmul.f32 %v12871_v48, %v12725_v24  ;;  %v4874_v30 = vmul.f32 %v12871_v48, %v12731_v59 }
 0x625   : > { %v12891_v22 = vpack.c.bf16 %v4870_v28, %v4869_v14  ;;  %v12912_v55 = vpack.c.bf16 %v4872_v49, %v4871_v47  ;;  %v4875_v40 = vmul.f32 %v12871_v48, %v12737_v44  ;;  %v4876_v23 = vmul.f32 %v12871_v48, %v12743_v31  ;;  %v8912_v44 = vld [vmem:[%s14226_s8 + $0x90] sm:$0xff]  }
 0x626   : > { %7971 = vmatprep.mubr.bf16.mxu1 %v12885_v27  ;;  %8019 = vmatprep.mubr.bf16.mxu0 %v12885_v27  ;;  %v12914_v16 = vpack.c.bf16 %v4874_v30, %v4873_v33  ;;  %v4877_v24 = vmul.f32 %v12871_v48, %v12749_v19  ;;  %v4878_v59 = vmul.f32 %v12871_v48, %v12755_v56 }
 0x627   : > { %7972 = vmatmul.mubr.bf16.vlgmr.msra.gmra.mxu1 %v12887_v53  ;;  %8020 = vmatmul.mubr.bf16.vlgmr.msra.gmra.mxu0 %v12887_v53  ;;  %v12934_v10 = vpack.c.bf16 %v4876_v23, %v4875_v40  ;;  %v4879_v31 = vmul.f32 %v12871_v48, %v12761_v25  ;;  %v4880_v19 = vmul.f32 %v12871_v48, %v12767_v7  ;;  %v8914_v25 = vld [vmem:[%s14226_s8 + $0x80] sm:$0xff]  }
 0x628   : > { %7975 = vmatprep.mubr.bf16.mxu1 %v12891_v22  ;;  %8023 = vmatprep.mubr.bf16.mxu0 %v12891_v22  ;;  %v12936_v35 = vpack.c.bf16 %v4878_v59, %v4877_v24  ;;  %v4881_v56 = vmul.f32 %v12871_v48, %v12773_v26  ;;  %v4882_v17 = vmul.f32 %v12871_v48, %v12779_v57 }
 0x629   : > { %8052 = vmatpush3.bf16.msra.mxu1 %v12702_v4  ;;  %v8910_v4 = vld [vmem:[%s14226_s8 + $0xa0] sm:$0xff]   ;;  %v4904_v46 = vpack.c.bf16 %v4880_v19, %v4879_v31  ;;  %v4883_v7 = vmul.f32 %v12871_v48, %v12785_v18  ;;  %v4884_v26 = vmul.f32 %v12871_v48, %v12791_v61  ;;  %v4885_v57 = vmul.f32 %v12871_v48, %v12797_v38 }
 0x62a   : > { %8053 = vmatprep.subr.bf16.mxu1 %v8908_v60  ;;  %v4905_v29 = vpack.c.bf16 %v4882_v17, %v4881_v56  ;;  %v4886_v32 = vmul.f32 %v12871_v48, %v12803_v45  ;;  %v4887_v18 = vmul.f32 %v12871_v48, %v12809_v20  ;;  %v4888_v61 = vmul.f32 %v12871_v48, %v12815_v52 }
 0x62b   : > { %v4906_v8 = vpack.c.bf16 %v4884_v26, %v4883_v7  ;;  %v4889_v38 = vmul.f32 %v12871_v48, %v12821_v6  ;;  %v4890_v45 = vmul.f32 %v12871_v48, %v12827_v1  ;;  %v4892_v20 = vmul.f32 %v12871_v48, %v12839_v3  ;;  %v12997_v3 = vld [vmem:[%s14227_s9] ss:$0 sm:$0xff] }
 0x62c   : > { %v4907_v43 = vpack.c.bf16 %v4886_v32, %v4885_v57  ;;  %v4908_v14 = vpack.c.bf16 %v4888_v61, %v4887_v18  ;;  %v4893_v52 = vmul.f32 %v12871_v48, %v12845_v37  ;;  %v4894_v6 = vmul.f32 %v12871_v48, %v12851_v58 }
 0x62d   : > { %8054 = vmatpush3.bf16.msra.mxu1 %v8908_v60  ;;  %v4909_v28 = vpack.c.bf16 %v4890_v45, %v4889_v38  ;;  %v4891_v60 = vmul.f32 %v12871_v48, %v12833_v2  ;;  %v4895_v49 = vmul.f32 %v12871_v48, %v12857_v13  ;;  %v4896_v2 = vmul.f32 %v12871_v48, %v12865_v36  ;;  %v13003_v36 = vld [vmem:[%s14227_s9 + $0x1] ss:$0 sm:$0xff] }
 0x62e   : > { %8055 = vmatprep.subr.bf16.mxu1 %v8909_v54  ;;  %v4911_v1 = vpack.c.bf16 %v4894_v6, %v4893_v52 }
 0x62f   : > { %7976 = vmatmul.mubr.bf16.gmra.mxu1 %v12912_v55  ;;  %8024 = vmatmul.mubr.bf16.gmra.mxu0 %v12912_v55  ;;  %v4910_v47 = vpack.c.bf16 %v4892_v20, %v4891_v60  ;;  %v4912_v33 = vpack.c.bf16 %v4896_v2, %v4895_v49 }
 0x630   : > { %7979 = vmatprep.mubr.bf16.mxu1 %v12914_v16  ;;  %8027 = vmatprep.mubr.bf16.mxu0 %v12914_v16 }
 0x631   : > { %8056 = vmatpush3.bf16.msra.mxu1 %v8909_v54 }
 0x632   : > { %8057 = vmatprep.subr.bf16.mxu1 %v8910_v4 }
 0x635   : > { %8058 = vmatpush3.bf16.msra.mxu1 %v8910_v4 }
 0x636   : > { %8059 = vmatprep.subr.bf16.mxu1 %v8911_v34 }
 0x637   : > { %7980 = vmatmul.mubr.bf16.gmra.mxu1 %v12934_v10  ;;  %8028 = vmatmul.mubr.bf16.gmra.mxu0 %v12934_v10 }
 0x638   : > { %7983 = vmatprep.mubr.bf16.mxu1 %v12936_v35  ;;  %8031 = vmatprep.mubr.bf16.mxu0 %v12936_v35 }
 0x639   : > { %8060 = vmatpush3.bf16.msra.mxu1 %v8911_v34 }
 0x63a   : > { %8061 = vmatprep.subr.bf16.mxu1 %v8912_v44 }
 0x63d   : > { %8062 = vmatpush3.bf16.msra.mxu1 %v8912_v44 }
 0x63e   : > { %8063 = vmatprep.subr.bf16.mxu1 %v8913_v12 }
 0x63f   : > { %7984 = vmatmul.mubr.bf16.gmra.mxu1 %v4904_v46  ;;  %8032 = vmatmul.mubr.bf16.gmra.mxu0 %v4904_v46 }
 0x640   : > { %7987 = vmatprep.mubr.bf16.mxu1 %v4905_v29  ;;  %8035 = vmatprep.mubr.bf16.mxu0 %v4905_v29 }
 0x641   : > { %8064 = vmatpush3.bf16.msra.mxu1 %v8913_v12 }
 0x642   : > { %8065 = vmatprep.subr.bf16.mxu1 %v8914_v25 }
 0x645   : > { %8066 = vmatpush3.bf16.msra.mxu1 %v8914_v25 }
 0x647   : > { %7988 = vmatmul.mubr.bf16.gmra.mxu1 %v4906_v8  ;;  %8036 = vmatmul.mubr.bf16.gmra.mxu0 %v4906_v8 }
 0x648   : > { %7991 = vmatprep.mubr.bf16.mxu1 %v4907_v43  ;;  %8039 = vmatprep.mubr.bf16.mxu0 %v4907_v43 }
 0x64f   : > { %7992 = vmatmul.mubr.bf16.gmra.mxu1 %v4908_v14  ;;  %8040 = vmatmul.mubr.bf16.gmra.mxu0 %v4908_v14 }
 0x650   : > { %7995 = vmatprep.mubr.bf16.mxu1 %v4909_v28  ;;  %8043 = vmatprep.mubr.bf16.mxu0 %v4909_v28 }
 0x657   : > { %7996 = vmatmul.mubr.bf16.gmra.mxu1 %v4910_v47  ;;  %8044 = vmatmul.mubr.bf16.gmra.mxu0 %v4910_v47 }
 0x658   : > { %7999 = vmatprep.mubr.bf16.mxu1 %v4911_v1  ;;  %8047 = vmatprep.mubr.bf16.mxu0 %v4911_v1 }
 0x65f   : > { %8000 = vmatmul.mubr.bf16.gmra.mxu1 %v4912_v33  ;;  %8048 = vmatmul.mubr.bf16.gmra.mxu0 %v4912_v33 }
 0x660   : > { %8067 = vmatprep.mubr.bf16.mxu1 %v12885_v27 }
 0x667   : > { %8068 = vmatmul.mubr.bf16.vlgmr.msra.gmra.mxu1 %v12887_v53 }
 0x668   : > { %8071 = vmatprep.mubr.bf16.mxu1 %v12891_v22 }
 0x66f   : > { %8072 = vmatmul.mubr.bf16.gmra.mxu1 %v12912_v55 }
 0x670   : > { %8075 = vmatprep.mubr.bf16.mxu1 %v12914_v16 }
 0x677   : > { %8076 = vmatmul.mubr.bf16.gmra.mxu1 %v12934_v10 }
 0x678   : > { %8079 = vmatprep.mubr.bf16.mxu1 %v12936_v35 }
 0x67f   : > { %8080 = vmatmul.mubr.bf16.gmra.mxu1 %v4904_v46 }
 0x680   : > { %8083 = vmatprep.mubr.bf16.mxu1 %v4905_v29 }
 0x687   : > { %8084 = vmatmul.mubr.bf16.gmra.mxu1 %v4906_v8 }
 0x688   : > { %8087 = vmatprep.mubr.bf16.mxu1 %v4907_v43 }
 0x68f   : > { %8088 = vmatmul.mubr.bf16.gmra.mxu1 %v4908_v14 }
 0x690   : > { %8091 = vmatprep.mubr.bf16.mxu1 %v4909_v28 }
 0x697   : > { %8092 = vmatmul.mubr.bf16.gmra.mxu1 %v4910_v47 }
 0x698   : > { %8095 = vmatprep.mubr.bf16.mxu1 %v4911_v1 }
 0x69f   : > { %8096 = vmatmul.mubr.bf16.gmra.mxu1 %v4912_v33 }
 0x6e7   : > { %v7973_v37 = vpop.f32.mrf.mxu1  ;;  %v8021_v58 = vpop.f32.mrf.mxu0 }
 0x6e8   : > { %v5027_v13 = vadd.f32 %v7973_v37, %v12997_v3  ;;  %v13008_v30 = vadd.f32 %v8021_v58, %v13003_v36 }
 0x6e9   : > { %v5018_v48 = vpop.f32.mrf.mxu1  ;;  %v13005_v27 = vpop.f32.mrf.mxu0 }
 0x6ea   : > { %v5019_v40 = vadd.f32 %v12997_v3, %v5018_v48 }
 0x6eb   : > { %v7974_v53 = vpop.f32.mrf.mxu1  ;;  %v8022_v22 = vpop.f32.mrf.mxu0 }
 0x6ec   : > { %v5030_v54 = vadd.f32 %v7974_v53, %v12997_v3  ;;  %v13012_v55 = vadd.f32 %v8022_v22, %v13003_v36 }
 0x6ed   : > { %v5021_v16 = vpop.f32.mrf.mxu1  ;;  %v13014_v4 = vpop.f32.mrf.mxu0 }
 0x6ee   : > { %v13017_v23 = vpack.c.bf16 %v5030_v54, %v5027_v13  ;;  %v5022_v59 = vadd.f32 %v12997_v3, %v5021_v16 }
 0x6ef   : > { %v7977_v34 = vpop.f32.mrf.mxu1  ;;  %v8025_v10 = vpop.f32.mrf.mxu0 }
 0x6f0   : > { %v13022_v35 = vpack.c.bf16 %v5022_v59, %v5019_v40  ;;  %v5043_v44 = vadd.f32 %v7977_v34, %v12997_v3  ;;  %v13030_v46 = vadd.f32 %v8025_v10, %v13003_v36 }
 0x6f1   : > { %v5034_v31 = vpop.f32.mrf.mxu1  ;;  %v13025_v19 = vpop.f32.mrf.mxu0 }
 0x6f2   : > { %v5035_v56 = vadd.f32 %v12997_v3, %v5034_v31  ;;  %7739 = vmatprep.mubr.bf16.mxu0 %v13022_v35 }
 0x6f3   : > { %v7978_v17 = vpop.f32.mrf.mxu1  ;;  %v8026_v12 = vpop.f32.mrf.mxu0 }
 0x6f4   : > { %v5046_v29 = vadd.f32 %v7978_v17, %v12997_v3  ;;  %v13034_v25 = vadd.f32 %v8026_v12, %v13003_v36 }
 0x6f5   : > { %v5037_v7 = vpop.f32.mrf.mxu1  ;;  %v13036_v26 = vpop.f32.mrf.mxu0 }
 0x6f6   : > { %v13038_v57 = vpack.c.bf16 %v5046_v29, %v5043_v44  ;;  %v5038_v8 = vadd.f32 %v12997_v3, %v5037_v7 }
 0x6f7   : > { %v7981_v43 = vpop.f32.mrf.mxu1  ;;  %v13043_v18 = vpop.f32.mrf.mxu0 }
 0x6f8   : > { %v13045_v61 = vpack.c.bf16 %v5038_v8, %v5035_v56  ;;  %v5059_v38 = vadd.f32 %v7981_v43, %v12997_v3 }
 0x6f9   : > { %v5050_v45 = vpop.f32.mrf.mxu1  ;;  %v13048_v14 = vpop.f32.mrf.mxu0 }
 0x6fa   : > { %v5051_v28 = vadd.f32 %v12997_v3, %v5050_v45 }
 0x6fb   : > { %v7982_v60 = vpop.f32.mrf.mxu1  ;;  %v13051_v20 = vpop.f32.mrf.mxu0 }
 0x6fc   : > { %v5062_v52 = vadd.f32 %v7982_v60, %v12997_v3 }
 0x6fd   : > { %v5053_v6 = vpop.f32.mrf.mxu1  ;;  %v13054_v47 = vpop.f32.mrf.mxu0 }
 0x6fe   : > { %v13056_v1 = vpack.c.bf16 %v5062_v52, %v5059_v38  ;;  %v5054_v49 = vadd.f32 %v12997_v3, %v5053_v6 }
 0x6ff   : > { %v7985_v2 = vpop.f32.mrf.mxu1  ;;  %v13059_v33 = vpop.f32.mrf.mxu0 }
 0x700   : > { %v13061_v37 = vpack.c.bf16 %v5054_v49, %v5051_v28  ;;  %v5075_v58 = vadd.f32 %v7985_v2, %v12997_v3 }
 0x701   : > { %v5066_v13 = vpop.f32.mrf.mxu1  ;;  %v13064_v48 = vpop.f32.mrf.mxu0 }
 0x702   : > { %v5067_v53 = vadd.f32 %v12997_v3, %v5066_v13 }
 0x703   : > { %v7986_v22 = vpop.f32.mrf.mxu1  ;;  %v8034_v54 = vpop.f32.mrf.mxu0 }
 0x704   : > { %v5078_v16 = vadd.f32 %v7986_v22, %v12997_v3  ;;  %v5312_v15 = vadd.f32 %v8034_v54, %v13003_v36 }
 0x705   : > { %v5069_v40 = vpop.f32.mrf.mxu1  ;;  %v13068_v59 = vpop.f32.mrf.mxu0 }
 0x706   : > { %v13070_v34 = vpack.c.bf16 %v5078_v16, %v5075_v58  ;;  %v5070_v10 = vadd.f32 %v12997_v3, %v5069_v40 }
 0x707   : > { %v7989_v44 = vpop.f32.mrf.mxu1  ;;  %v8037_v31 = vpop.f32.mrf.mxu0 }
 0x708   : > { %v13073_v56 = vpack.c.bf16 %v5070_v10, %v5067_v53  ;;  %v5091_v17 = vadd.f32 %v7989_v44, %v12997_v3  ;;  %v13078_v38 = vadd.f32 %v8037_v31, %v13003_v36 }
 0x709   : > { %v5082_v12 = vpop.f32.mrf.mxu1  ;;  %v5316_v29 = vpop.f32.mrf.mxu0 }
 0x70a   : > { %v5083_v7 = vadd.f32 %v12997_v3, %v5082_v12  ;;  %v13085_v60 = vadd.f32 %v13003_v36, %v5316_v29 }
 0x70b   : > { %v7990_v8 = vpop.f32.mrf.mxu1  ;;  %v8038_v43 = vpop.f32.mrf.mxu0 }
 0x70c   : > { %v5094_v45 = vadd.f32 %v7990_v8, %v12997_v3  ;;  %v13082_v28 = vadd.f32 %v8038_v43, %v13003_v36 }
 0x70d   : > { %v5085_v52 = vpop.f32.mrf.mxu1  ;;  %v5319_v6 = vpop.f32.mrf.mxu0 }
 0x70e   : > { %v13087_v49 = vpack.c.bf16 %v5094_v45, %v5091_v17  ;;  %v5086_v58 = vadd.f32 %v12997_v3, %v5085_v52  ;;  %v13093_v13 = vadd.f32 %v13003_v36, %v5319_v6 }
 0x70f   : > { %v7993_v53 = vpop.f32.mrf.mxu1  ;;  %v13095_v22 = vpop.f32.mrf.mxu0 }
 0x710   : > { %v13097_v16 = vpack.c.bf16 %v5086_v58, %v5083_v7  ;;  %v5107_v10 = vadd.f32 %v7993_v53, %v12997_v3 }
 0x711   : > { %v5098_v44 = vpop.f32.mrf.mxu1  ;;  %v13102_v31 = vpop.f32.mrf.mxu0 }
 0x712   : > { %v5099_v17 = vadd.f32 %v12997_v3, %v5098_v44 }
 0x713   : > { %v7994_v12 = vpop.f32.mrf.mxu1  ;;  %v13105_v29 = vpop.f32.mrf.mxu0 }
 0x714   : > { %v5110_v8 = vadd.f32 %v7994_v12, %v12997_v3 }
 0x715   : > { %v5101_v43 = vpop.f32.mrf.mxu1  ;;  %v13108_v45 = vpop.f32.mrf.mxu0 }
 0x716   : > { %v13110_v7 = vpack.c.bf16 %v5110_v8, %v5107_v10  ;;  %v5102_v52 = vadd.f32 %v12997_v3, %v5101_v43 }
 0x717   : > { %v7997_v6 = vpop.f32.mrf.mxu1  ;;  %v8045_v58 = vpop.f32.mrf.mxu0 }
 0x718   : > { %v13113_v53 = vpack.c.bf16 %v5102_v52, %v5099_v17  ;;  %v5123_v40 = vadd.f32 %v7997_v6, %v12997_v3 }
 0x719   : > { %v5114_v24 = vpop.f32.mrf.mxu1  ;;  %v13116_v44 = vpop.f32.mrf.mxu0 }
 0x71a   : > { %v5115_v2 = vadd.f32 %v12997_v3, %v5114_v24 }
 0x71b   : > { %v7998_v32 = vpop.f32.mrf.mxu1  ;;  %v8046_v12 = vpop.f32.mrf.mxu0 }
 0x71c   : > { %v5126_v21 = vadd.f32 %v7998_v32, %v12997_v3 }
 0x71d   : > { %v5117_v50 = vpop.f32.mrf.mxu1  ;;  %v5351_v10 = vpop.f32.mrf.mxu0 }
 0x71e   : > { %v13120_v8 = vpack.c.bf16 %v5126_v21, %v5123_v40  ;;  %v5118_v43 = vadd.f32 %v12997_v3, %v5117_v50 }
 0x71f   : > { %v8001_v9 = vpop.f32.mrf.mxu1  ;;  %v8049_v17 = vpop.f32.mrf.mxu0 }
 0x720   : > { %v13123_v52 = vpack.c.bf16 %v5118_v43, %v5115_v2  ;;  %v5139_v6 = vadd.f32 %v8001_v9, %v12997_v3  ;;  %v5373_v5 = vadd.f32 %v8049_v17, %v13003_v36  ;;  %v5309_v2 = vadd.f32 %v13059_v33, %v13003_v36  ;;  %v13143_v33 = vld [vmem:[%s14227_s9 + $0x2] ss:$0 sm:$0xff] }
 0x721   : > { %v5130_v11 = vpop.f32.mrf.mxu1  ;;  %v5364_v42 = vpop.f32.mrf.mxu0 }
 0x722   : > { %v5131_v24 = vadd.f32 %v12997_v3, %v5130_v11  ;;  %v5365_v40 = vadd.f32 %v13003_v36, %v5364_v42  ;;  %v5636_v41 = vpack.c.bf16 %v5312_v15, %v5309_v2 }
 0x723   : > { %v8002_v62 = vpop.f32.mrf.mxu1  ;;  %v8050_v32 = vpop.f32.mrf.mxu0 }
 0x724   : > { %v5142_v21 = vadd.f32 %v8002_v62, %v12997_v3  ;;  %v5376_v50 = vadd.f32 %v8050_v32, %v13003_v36 }
 0x725   : > { %v5133_v9 = vpop.f32.mrf.mxu1  ;;  %v5367_v43 = vpop.f32.mrf.mxu0 }
 0x726   : > { %v13134_v0 = vpack.c.bf16 %v5142_v21, %v5139_v6  ;;  %v5644_v11 = vpack.c.bf16 %v5376_v50, %v5373_v5  ;;  %v5134_v54 = vadd.f32 %v12997_v3, %v5133_v9  ;;  %v5368_v39 = vadd.f32 %v13003_v36, %v5367_v43 }
 0x727   : > { %v8069_v17 = vpop.f32.mrf.mxu1  ;;  %v5304_v5 = vadd.f32 %v13003_v36, %v13068_v59  ;;  %v5360_v6 = vadd.f32 %v8046_v12, %v13003_v36  ;;  %v5357_v21 = vadd.f32 %v8045_v58, %v13003_v36 }
 0x728   : > { %v13138_v63 = vpack.c.bf16 %v5134_v54, %v5131_v24  ;;  %v5643_v62 = vpack.c.bf16 %v5368_v39, %v5365_v40  ;;  %7723 = vmatprep.subr.bf16.mxu0 %v5644_v11  ;;  %v13149_v15 = vadd.f32 %v8069_v17, %v13143_v33  ;;  %v5301_v24 = vadd.f32 %v13003_v36, %v13064_v48 }
 0x729   : > { %v5486_v42 = vpop.f32.mrf.mxu1  ;;  %7724 = vmatpush3.bf16.xpose.msra.mxu0 %v5636_v41  ;;  %v5642_v40 = vpack.c.bf16 %v5360_v6, %v5357_v21  ;;  %v5296_v48 = vadd.f32 %v13051_v20, %v13003_v36  ;;  %v5352_v11 = vadd.f32 %v13003_v36, %v5351_v10 }
 0x72a   : > { %7725 = vmatprep.subr.bf16.mxu0 %v5643_v62  ;;  %v13158_v41 = vadd.f32 %v13143_v33, %v5486_v42  ;;  %v5635_v50 = vpack.c.bf16 %v5304_v5, %v5301_v24  ;;  %v5293_v62 = vadd.f32 %v13043_v18, %v13003_v36  ;;  %v5349_v5 = vadd.f32 %v13003_v36, %v13116_v44 }
 0x72b   : > { %v8070_v3 = vpop.f32.mrf.mxu1  ;;  %v5288_v44 = vadd.f32 %v13003_v36, %v13054_v47 }
 0x72c   : > { %v13152_v39 = vadd.f32 %v8070_v3, %v13143_v33  ;;  %v5634_v6 = vpack.c.bf16 %v5296_v48, %v5293_v62  ;;  %v5341_v48 = vadd.f32 %v13095_v22, %v13003_v36  ;;  %v14539_v22 = vpack.c.bf16 %v13034_v25, %v13030_v46 }
 0x72d   : > { %v5489_v32 = vpop.f32.mrf.mxu1 }
 0x72e   : > { %v6415_v59 = vpack.c.bf16 %v13152_v39, %v13149_v15  ;;  %v13163_v12 = vadd.f32 %v13143_v33, %v5489_v32  ;;  %v5641_v32 = vpack.c.bf16 %v5352_v11, %v5349_v5  ;;  %v5336_v5 = vadd.f32 %v13003_v36, %v13108_v45 }
 0x72f   : > { %v8073_v2 = vpop.f32.mrf.mxu1  ;;  %v5269_v45 = vadd.f32 %v13003_v36, %v13025_v19  ;;  %v14542_v19 = vpack.c.bf16 %v13093_v13, %v13085_v60 }
 0x730   : > { %v13171_v54 = vadd.f32 %v8073_v2, %v13143_v33  ;;  %v5344_v2 = vadd.f32 %v13105_v29, %v13003_v36  ;;  %v5333_v29 = vadd.f32 %v13003_v36, %v13102_v31 }
 0x731   : > { %v5502_v43 = vpop.f32.mrf.mxu1  ;;  %7726 = vmatpush3.bf16.xpose.msra.mxu0 %v5635_v50 }
 0x732   : > { %7727 = vmatprep.subr.bf16.mxu0 %v5642_v40  ;;  %v13181_v3 = vadd.f32 %v13143_v33, %v5502_v43  ;;  %v5285_v40 = vadd.f32 %v13003_v36, %v13048_v14  ;;  %v5640_v62 = vpack.c.bf16 %v5344_v2, %v5341_v48 }
 0x733   : > { %v8074_v58 = vpop.f32.mrf.mxu1 }
 0x734   : > { %v13174_v17 = vadd.f32 %v8074_v58, %v13143_v33  ;;  %v5633_v58 = vpack.c.bf16 %v5288_v44, %v5285_v40  ;;  %v5272_v44 = vadd.f32 %v13003_v36, %v13036_v26  ;;  %v14541_v26 = vpack.c.bf16 %v13012_v55, %v13008_v30 }
 0x735   : > { %v5505_v42 = vpop.f32.mrf.mxu1 }
 0x736   : > { %v6417_v20 = vpack.c.bf16 %v13174_v17, %v13171_v54  ;;  %v13186_v10 = vadd.f32 %v13143_v33, %v5505_v42  ;;  %v5631_v31 = vpack.c.bf16 %v5272_v44, %v5269_v45  ;;  %v14543_v54 = vpack.c.bf16 %v13163_v12, %v13158_v41 }
 0x737   : > { %v13188_v24 = vpop.f32.mrf.mxu1 }
 0x738   : > { %v6416_v18 = vpack.c.bf16 %v13186_v10, %v13181_v3 }
 0x739   : > { %v13192_v21 = vpop.f32.mrf.mxu1  ;;  %7728 = vmatpush3.bf16.xpose.msra.mxu0 %v5634_v6 }
 0x73a   : > { %7729 = vmatprep.subr.bf16.mxu0 %v5641_v32  ;;  %v5639_v32 = vpack.c.bf16 %v5336_v5, %v5333_v29 }
 0x73b   : > { %v13196_v50 = vpop.f32.mrf.mxu1 }
 0x73d   : > { %v13202_v43 = vpop.f32.mrf.mxu1 }
 0x73f   : > { %v8081_v11 = vpop.f32.mrf.mxu1 }
 0x740   : > { %v5543_v13 = vadd.f32 %v8081_v11, %v13143_v33 }
 0x741   : > { %v5534_v42 = vpop.f32.mrf.mxu1  ;;  %7730 = vmatpush3.bf16.xpose.msra.mxu0 %v5633_v58 }
 0x742   : > { %7731 = vmatprep.subr.bf16.mxu0 %v5640_v62  ;;  %v14540_v62 = vpack.c.bf16 %v13082_v28, %v13078_v38  ;;  %v5253_v38 = vadd.f32 %v13003_v36, %v13005_v27 }
 0x743   : > { %v8082_v47 = vpop.f32.mrf.mxu1 }
 0x745   : > { %v5537_v6 = vpop.f32.mrf.mxu1 }
 0x747   : > { %v13210_v14 = vpop.f32.mrf.mxu1 }
 0x749   : > { %v13212_v9 = vpop.f32.mrf.mxu1  ;;  %7732 = vmatpush3.bf16.xpose.msra.mxu0 %v14539_v22 }
 0x74a   : > { %7733 = vmatprep.subr.bf16.mxu0 %v5639_v32  ;;  %v5256_v32 = vadd.f32 %v13003_v36, %v13014_v4 }
 0x74b   : > { %v13219_v2 = vpop.f32.mrf.mxu1 }
 0x74c   : > { %v5629_v44 = vpack.c.bf16 %v5256_v32, %v5253_v38  ;;  %v5538_v32 = vadd.f32 %v13143_v33, %v5537_v6 }
 0x74d   : > { %v13223_v40 = vpop.f32.mrf.mxu1 }
 0x74f   : > { %v8089_v48 = vpop.f32.mrf.mxu1 }
 0x751   : > { %v5566_v58 = vpop.f32.mrf.mxu1  ;;  %7734 = vmatpush3.bf16.xpose.msra.mxu0 %v5631_v31 }
 0x752   : > { %7735 = vmatprep.subr.bf16.mxu0 %v14540_v62  ;;  %v5546_v62 = vadd.f32 %v8082_v47, %v13143_v33  ;;  %v5535_v47 = vadd.f32 %v13143_v33, %v5534_v42 }
 0x753   : > { %v8090_v46 = vpop.f32.mrf.mxu1 }
 0x754   : > { %v6421_v27 = vpack.c.bf16 %v5546_v62, %v5543_v13 }
 0x755   : > { %v5569_v25 = vpop.f32.mrf.mxu1 }
 0x757   : > { %v8093_v5 = vpop.f32.mrf.mxu1 }
 0x758   : > { %v5591_v11 = vadd.f32 %v8093_v5, %v13143_v33  ;;  %v5578_v5 = vadd.f32 %v8090_v46, %v13143_v33 }
 0x759   : > { %v5582_v29 = vpop.f32.mrf.mxu1  ;;  %7736 = vmatpush3.bf16.xpose.msra.mxu0 %v14541_v26 }
 0x75a   : > { %7737 = vmatprep.subr.bf16.mxu0 %v14542_v19 }
 0x75b   : > { %v8094_v22 = vpop.f32.mrf.mxu1 }
 0x75c   : > { %v5594_v38 = vadd.f32 %v8094_v22, %v13143_v33  ;;  %v5527_v22 = vadd.f32 %v13188_v24, %v13143_v33  ;;  %v5575_v24 = vadd.f32 %v8089_v48, %v13143_v33 }
 0x75d   : > { %v5585_v28 = vpop.f32.mrf.mxu1 }
 0x75e   : > { %v6427_v62 = vpack.c.bf16 %v5594_v38, %v5591_v11  ;;  %v5586_v6 = vadd.f32 %v13143_v33, %v5585_v28  ;;  %v6425_v28 = vpack.c.bf16 %v5578_v5, %v5575_v24 }
 0x75f   : > { %v8097_v45 = vpop.f32.mrf.mxu1 }
 0x760   : > { %v5607_v55 = vadd.f32 %v8097_v45, %v13143_v33  ;;  %v5530_v45 = vadd.f32 %v13196_v50, %v13143_v33  ;;  %v5519_v50 = vadd.f32 %v13143_v33, %v13192_v21  ;;  %v5559_v21 = vadd.f32 %v13210_v14, %v13143_v33 }
 0x761   : > { %v5598_v31 = vpop.f32.mrf.mxu1  ;;  %7738 = vmatpush3.bf16.xpose.msra.mxu0 %v5629_v44 }
 0x762   : > { %v5599_v4 = vadd.f32 %v13143_v33, %v5598_v31  ;;  %v6420_v31 = vpack.c.bf16 %v5538_v32, %v5535_v47  ;;  %v6419_v42 = vpack.c.bf16 %v5530_v45, %v5527_v22 }
 0x763   : > { %v8098_v30 = vpop.f32.mrf.mxu1 }
 0x764   : > { %v5610_v60 = vadd.f32 %v8098_v30, %v13143_v33  ;;  %v5522_v30 = vadd.f32 %v13143_v33, %v13202_v43  ;;  %v5567_v43 = vadd.f32 %v13143_v33, %v5566_v58  ;;  %v5554_v58 = vadd.f32 %v13143_v33, %v13223_v40 }
 0x765   : > { %v5601_v26 = vpop.f32.mrf.mxu1 }
 0x766   : > { %v6429_v19 = vpack.c.bf16 %v5610_v60, %v5607_v55  ;;  %v5602_v36 = vadd.f32 %v13143_v33, %v5601_v26  ;;  %v5570_v60 = vadd.f32 %v13143_v33, %v5569_v25 }
 0x768   : > { %v6428_v44 = vpack.c.bf16 %v5602_v36, %v5599_v4  ;;  %7740 = vmatmul.mubr.bf16.vlgmr.msra.gmra.mxu0 %v13022_v35  ;;  %7771 = vmatprep.subr.bf16.mxu1 %v6429_v19  ;;  %v5583_v35 = vadd.f32 %v13143_v33, %v5582_v29  ;;  %v6418_v29 = vpack.c.bf16 %v5522_v30, %v5519_v50 }
 0x769   : > { %7741 = vmatprep.mubr.bf16.mxu0 %v13017_v23  ;;  %7772 = vmatpush3.bf16.msra.mxu1 %v6421_v27  ;;  %v6424_v46 = vpack.c.bf16 %v5570_v60, %v5567_v43 }
 0x76a   : > { %7773 = vmatprep.subr.bf16.mxu1 %v6428_v44  ;;  %v6426_v55 = vpack.c.bf16 %v5586_v6, %v5583_v35 }
 0x76d   : > { %7774 = vmatpush3.bf16.msra.mxu1 %v6420_v31 }
 0x76e   : > { %7775 = vmatprep.subr.bf16.mxu1 %v6427_v62 }
 0x770   : > { %7742 = vmatmul.mubr.bf16.gmra.mxu0 %v13017_v23  ;;  %v5562_v23 = vadd.f32 %v13219_v2, %v13143_v33 }
 0x771   : > { %7743 = vmatprep.mubr.bf16.mxu0 %v13045_v61  ;;  %7776 = vmatpush3.bf16.msra.mxu1 %v6419_v42 }
 0x772   : > { %7777 = vmatprep.subr.bf16.mxu1 %v6426_v55  ;;  %v6423_v48 = vpack.c.bf16 %v5562_v23, %v5559_v21 }
 0x775   : > { %7778 = vmatpush3.bf16.msra.mxu1 %v6418_v29 }
 0x776   : > { %7779 = vmatprep.subr.bf16.mxu1 %v6425_v28 }
 0x778   : > { %7744 = vmatmul.mubr.bf16.gmra.mxu0 %v13045_v61  ;;  %v5551_v61 = vadd.f32 %v13143_v33, %v13212_v9 }
 0x779   : > { %7745 = vmatprep.mubr.bf16.mxu0 %v13038_v57  ;;  %7780 = vmatpush3.bf16.msra.mxu1 %v6417_v20 }
 0x77a   : > { %7781 = vmatprep.subr.bf16.mxu1 %v6424_v46  ;;  %v6422_v2 = vpack.c.bf16 %v5554_v58, %v5551_v61 }
 0x77d   : > { %7782 = vmatpush3.bf16.msra.mxu1 %v6416_v18 }
 0x77e   : > { %7783 = vmatprep.subr.bf16.mxu1 %v6423_v48 }
 0x780   : > { %7746 = vmatmul.mubr.bf16.gmra.mxu0 %v13038_v57 }
 0x781   : > { %7747 = vmatprep.mubr.bf16.mxu0 %v13061_v37  ;;  %7784 = vmatpush3.bf16.msra.mxu1 %v6415_v59 }
 0x782   : > { %7785 = vmatprep.subr.bf16.mxu1 %v6422_v2 }
 0x785   : > { %7786 = vmatpush3.bf16.msra.mxu1 %v14543_v54 }
 0x788   : > { %7748 = vmatmul.mubr.bf16.gmra.mxu0 %v13061_v37 }
 0x789   : > { %7749 = vmatprep.mubr.bf16.mxu0 %v13056_v1 }
 0x790   : > { %7750 = vmatmul.mubr.bf16.gmra.mxu0 %v13056_v1 }
 0x791   : > { %7751 = vmatprep.mubr.bf16.mxu0 %v13073_v56 }
 0x798   : > { %7752 = vmatmul.mubr.bf16.gmra.mxu0 %v13073_v56 }
 0x799   : > { %7753 = vmatprep.mubr.bf16.mxu0 %v13070_v34 }
 0x7a0   : > { %7754 = vmatmul.mubr.bf16.gmra.mxu0 %v13070_v34 }
 0x7a1   : > { %7755 = vmatprep.mubr.bf16.mxu0 %v13097_v16 }
 0x7a8   : > { %7756 = vmatmul.mubr.bf16.gmra.mxu0 %v13097_v16 }
 0x7a9   : > { %7757 = vmatprep.mubr.bf16.mxu0 %v13087_v49 }
 0x7b0   : > { %7758 = vmatmul.mubr.bf16.gmra.mxu0 %v13087_v49 }
 0x7b1   : > { %7759 = vmatprep.mubr.bf16.mxu0 %v13113_v53 }
 0x7b8   : > { %7760 = vmatmul.mubr.bf16.gmra.mxu0 %v13113_v53 }
 0x7b9   : > { %7761 = vmatprep.mubr.bf16.mxu0 %v13110_v7 }
 0x7c0   : > { %7762 = vmatmul.mubr.bf16.gmra.mxu0 %v13110_v7 }
 0x7c1   : > { %7763 = vmatprep.mubr.bf16.mxu0 %v13123_v52 }
 0x7c8   : > { %7764 = vmatmul.mubr.bf16.gmra.mxu0 %v13123_v52 }
 0x7c9   : > { %7765 = vmatprep.mubr.bf16.mxu0 %v13120_v8 }
 0x7d0   : > { %7766 = vmatmul.mubr.bf16.gmra.mxu0 %v13120_v8 }
 0x7d1   : > { %7767 = vmatprep.mubr.bf16.mxu0 %v13138_v63 }
 0x7d8   : > { %7768 = vmatmul.mubr.bf16.gmra.mxu0 %v13138_v63 }
 0x7d9   : > { %7769 = vmatprep.mubr.bf16.mxu0 %v13134_v0 }
 0x7e0   : > { %7770 = vmatmul.mubr.bf16.gmra.mxu0 %v13134_v0 }
 0x828   : > { %v5679_v57 = vpop.f32.mrf.mxu0 }
 0x829   : > { %v13313_v37 = vmul.f32 0.35355338, %v5679_v57 }
 0x82a   : > { %v5681_v1 = vpop.f32.mrf.mxu0 }
 0x82b   : > { %v13315_v34 = vmul.f32 0.35355338, %v5681_v1 }
 0x82c   : > { %v5683_v56 = vpop.f32.mrf.mxu0 }
 0x82d   : > { %v5902_v49 = vmax.f32 %v13313_v37, %v13315_v34  ;;  %v13319_v7 = vmul.f32 0.35355338, %v5683_v56 }
 0x82e   : > { %v5685_v16 = vpop.f32.mrf.mxu0 }
 0x82f   : > { %v13321_v53 = vmul.f32 0.35355338, %v5685_v16  ;;  %5903 = vmax.xlane.f32.xlu0 %v5902_v49 }
 0x830   : > { %v5689_v63 = vpop.f32.mrf.mxu0 }
 0x831   : > { %v5905_v0 = vmax.f32 %v13319_v7, %v13321_v53  ;;  %v13325_v52 = vmul.f32 0.35355338, %v5689_v63 }
 0x832   : > { %v5691_v8 = vpop.f32.mrf.mxu0 }
 0x833   : > { %v13327_v33 = vmul.f32 0.35355338, %v5691_v8  ;;  %5906 = vmax.xlane.f32.xlu1 %v5905_v0 }
 0x834   : > { %v5693_v15 = vpop.f32.mrf.mxu0 }
 0x835   : > { %v5908_v39 = vmax.f32 %v13325_v52, %v13327_v33  ;;  %v13331_v59 = vmul.f32 0.35355338, %v5693_v15 }
 0x836   : > { %v5695_v41 = vpop.f32.mrf.mxu0 }
 0x837   : > { %v13333_v12 = vmul.f32 0.35355338, %v5695_v41  ;;  %5909 = vmax.xlane.f32.xlu0 %v5908_v39 }
 0x838   : > { %v5699_v9 = vpop.f32.mrf.mxu0 }
 0x839   : > { %v5911_v17 = vmax.f32 %v13331_v59, %v13333_v12  ;;  %v13337_v20 = vmul.f32 0.35355338, %v5699_v9 }
 0x83a   : > { %v5701_v3 = vpop.f32.mrf.mxu0 }
 0x83b   : > { %v13339_v10 = vmul.f32 0.35355338, %v5701_v3  ;;  %5912 = vmax.xlane.f32.xlu0 %v5911_v17 }
 0x83c   : > { %v5703_v18 = vpop.f32.mrf.mxu0 }
 0x83d   : > { %v5914_v14 = vmax.f32 %v13337_v20, %v13339_v10  ;;  %v13343_v25 = vmul.f32 0.35355338, %v5703_v18 }
 0x83e   : > { %v5705_v40 = vpop.f32.mrf.mxu0 }
 0x83f   : > { %v13345_v13 = vmul.f32 0.35355338, %v5705_v40  ;;  %5915 = vmax.xlane.f32.xlu1 %v5914_v14 }
 0x840   : > { %v5709_v26 = vpop.f32.mrf.mxu0 }
 0x841   : > { %v5917_v4 = vmax.f32 %v13343_v25, %v13345_v13  ;;  %v13349_v36 = vmul.f32 0.35355338, %v5709_v26 }
 0x842   : > { %v5711_v19 = vpop.f32.mrf.mxu0 }
 0x843   : > { %v13351_v27 = vmul.f32 0.35355338, %v5711_v19  ;;  %5918 = vmax.xlane.f32.xlu0 %v5917_v4 }
 0x844   : > { %v5713_v32 = vpop.f32.mrf.mxu0 }
 0x845   : > { %v5920_v38 = vmax.f32 %v13349_v36, %v13351_v27  ;;  %v13355_v47 = vmul.f32 0.35355338, %v5713_v32 }
 0x846   : > { %v5715_v44 = vpop.f32.mrf.mxu0 }
 0x847   : > { %v13357_v11 = vmul.f32 0.35355338, %v5715_v44  ;;  %5921 = vmax.xlane.f32.xlu1 %v5920_v38 }
 0x848   : > { %v5719_v45 = vpop.f32.mrf.mxu0 }
 0x849   : > { %v5923_v31 = vmax.f32 %v13355_v47, %v13357_v11  ;;  %v13361_v6 = vmul.f32 0.35355338, %v5719_v45 }
 0x84a   : > { %v5721_v62 = vpop.f32.mrf.mxu0 }
 0x84b   : > { %v13363_v22 = vmul.f32 0.35355338, %v5721_v62  ;;  %5924 = vmax.xlane.f32.xlu0 %v5923_v31 }
 0x84c   : > { %v5723_v35 = vpop.f32.mrf.mxu0 }
 0x84d   : > { %v5926_v42 = vmax.f32 %v13361_v6, %v13363_v22  ;;  %v13367_v5 = vmul.f32 0.35355338, %v5723_v35 }
 0x84e   : > { %v5725_v30 = vpop.f32.mrf.mxu0 }
 0x84f   : > { %v13369_v55 = vmul.f32 0.35355338, %v5725_v30  ;;  %5927 = vmax.xlane.f32.xlu1 %v5926_v42 }
 0x850   : > { %v5729_v50 = vpop.f32.mrf.mxu0 }
 0x851   : > { %v5929_v24 = vmax.f32 %v13367_v5, %v13369_v55  ;;  %v13373_v28 = vmul.f32 0.35355338, %v5729_v50 }
 0x852   : > { %v5731_v29 = vpop.f32.mrf.mxu0 }
 0x853   : > { %v13375_v60 = vmul.f32 0.35355338, %v5731_v29  ;;  %5930 = vmax.xlane.f32.xlu0 %v5929_v24 }
 0x854   : > { %v5733_v43 = vpop.f32.mrf.mxu0 }
 0x855   : > { %v5932_v23 = vmax.f32 %v13373_v28, %v13375_v60  ;;  %v13379_v21 = vmul.f32 0.35355338, %v5733_v43 }
 0x856   : > { %v5735_v46 = vpop.f32.mrf.mxu0 }
 0x857   : > { %v13381_v48 = vmul.f32 0.35355338, %v5735_v46  ;;  %5933 = vmax.xlane.f32.xlu1 %v5932_v23 }
 0x858   : > { %v5739_v58 = vpop.f32.mrf.mxu0 }
 0x859   : > { %v5935_v61 = vmax.f32 %v13379_v21, %v13381_v48  ;;  %v13385_v54 = vmul.f32 0.35355338, %v5739_v58 }
 0x85a   : > { %v5741_v2 = vpop.f32.mrf.mxu0 }
 0x85b   : > { %v13387_v57 = vmul.f32 0.35355338, %v5741_v2  ;;  %5936 = vmax.xlane.f32.xlu0 %v5935_v61 }
 0x85c   : > { %v5743_v1 = vpop.f32.mrf.mxu0 }
 0x85d   : > { %v5938_v56 = vmax.f32 %v13385_v54, %v13387_v57  ;;  %v13391_v16 = vmul.f32 0.35355338, %v5743_v1 }
 0x85e   : > { %v5745_v49 = vpop.f32.mrf.mxu0 }
 0x85f   : > { %v13393_v63 = vmul.f32 0.35355338, %v5745_v49  ;;  %5939 = vmax.xlane.f32.xlu1 %v5938_v56 }
 0x860   : > { %v5749_v0 = vpop.f32.mrf.mxu0 }
 0x861   : > { %v5941_v8 = vmax.f32 %v13391_v16, %v13393_v63  ;;  %v13397_v39 = vmul.f32 0.35355338, %v5749_v0 }
 0x862   : > { %v5751_v15 = vpop.f32.mrf.mxu0 }
 0x863   : > { %v13399_v41 = vmul.f32 0.35355338, %v5751_v15  ;;  %5942 = vmax.xlane.f32.xlu0 %v5941_v8 }
 0x864   : > { %v5753_v9 = vpop.f32.mrf.mxu0 }
 0x865   : > { %v5944_v17 = vmax.f32 %v13397_v39, %v13399_v41  ;;  %v13403_v18 = vmul.f32 0.35355338, %v5753_v9 }
 0x866   : > { %v5755_v3 = vpop.f32.mrf.mxu0 }
 0x867   : > { %v13405_v14 = vmul.f32 0.35355338, %v5755_v3  ;;  %5945 = vmax.xlane.f32.xlu1 %v5944_v17 }
 0x868   : > { %v5759_v40 = vpop.f32.mrf.mxu0 }
 0x869   : > { %v5947_v26 = vmax.f32 %v13403_v18, %v13405_v14  ;;  %v13409_v19 = vmul.f32 0.35355338, %v5759_v40 }
 0x86a   : > { %v5761_v4 = vpop.f32.mrf.mxu0 }
 0x86b   : > { %v13411_v32 = vmul.f32 0.35355338, %v5761_v4  ;;  %5948 = vmax.xlane.f32.xlu0 %v5947_v26 }
 0x86c   : > { %v5763_v38 = vpop.f32.mrf.mxu0 }
 0x86d   : > { %v5950_v44 = vmax.f32 %v13409_v19, %v13411_v32  ;;  %v13415_v31 = vmul.f32 0.35355338, %v5763_v38 }
 0x86e   : > { %v5765_v45 = vpop.f32.mrf.mxu0 }
 0x86f   : > { %v13417_v62 = vmul.f32 0.35355338, %v5765_v45  ;;  %5951 = vmax.xlane.f32.xlu1 %v5950_v44 }
 0x870   : > { %v5769_v35 = vpop.f32.mrf.mxu0 }
 0x871   : > { %v5953_v42 = vmax.f32 %v13415_v31, %v13417_v62  ;;  %v13421_v50 = vmul.f32 0.35355338, %v5769_v35 }
 0x872   : > { %v5771_v30 = vpop.f32.mrf.mxu0 }
 0x873   : > { %v13423_v24 = vmul.f32 0.35355338, %v5771_v30  ;;  %5954 = vmax.xlane.f32.xlu0 %v5953_v42 }
 0x874   : > { %v5773_v29 = vpop.f32.mrf.mxu0 }
 0x875   : > { %v5956_v43 = vmax.f32 %v13421_v50, %v13423_v24  ;;  %v13427_v46 = vmul.f32 0.35355338, %v5773_v29 }
 0x876   : > { %v5775_v23 = vpop.f32.mrf.mxu0 }
 0x877   : > { %v13429_v58 = vmul.f32 0.35355338, %v5775_v23  ;;  %5957 = vmax.xlane.f32.xlu1 %v5956_v43 }
 0x878   : > { %v5779_v61 = vpop.f32.mrf.mxu0 }
 0x879   : > { %v5959_v2 = vmax.f32 %v13427_v46, %v13429_v58  ;;  %v13433_v56 = vmul.f32 0.35355338, %v5779_v61 }
 0x87a   : > { %v5781_v1 = vpop.f32.mrf.mxu0 }
 0x87b   : > { %v13435_v49 = vmul.f32 0.35355338, %v5781_v1  ;;  %5960 = vmax.xlane.f32.xlu0 %v5959_v2 }
 0x87c   : > { %v5783_v0 = vpop.f32.mrf.mxu0 }
 0x87d   : > { %v5962_v8 = vmax.f32 %v13433_v56, %v13435_v49  ;;  %v13439_v9 = vmul.f32 0.35355338, %v5783_v0 }
 0x87e   : > { %v5785_v15 = vpop.f32.mrf.mxu0 }
 0x87f   : > { %v13441_v17 = vmul.f32 0.35355338, %v5785_v15  ;;  %5963 = vmax.xlane.f32.xlu1 %v5962_v8 }
 0x880   : > { %v5789_v3 = vpop.f32.mrf.mxu0 }
 0x881   : > { %v5965_v40 = vmax.f32 %v13439_v9, %v13441_v17  ;;  %v13445_v4 = vmul.f32 0.35355338, %v5789_v3 }
 0x882   : > { %v5791_v26 = vpop.f32.mrf.mxu0 }
 0x883   : > { %v13447_v38 = vmul.f32 0.35355338, %v5791_v26  ;;  %5966 = vmax.xlane.f32.xlu0 %v5965_v40 }
 0x884   : > { %v5793_v44 = vpop.f32.mrf.mxu0 }
 0x885   : > { %v5968_v45 = vmax.f32 %v13445_v4, %v13447_v38  ;;  %v13451_v42 = vmul.f32 0.35355338, %v5793_v44 }
 0x886   : > { %v5795_v35 = vpop.f32.mrf.mxu0 }
 0x887   : > { %14544 = vst [vmem:[#allocation67_spill] sm:$0xff] %v13451_v42  ;;  %v13453_v30 = vmul.f32 0.35355338, %v5795_v35  ;;  %5969 = vmax.xlane.f32.xlu1 %v5968_v45 }
 0x888   : > { %v5799_v43 = vpop.f32.mrf.mxu0 }
 0x889   : > { %14545 = vst [vmem:[#allocation68_spill] sm:$0xff] %v13453_v30  ;;  %v5971_v29 = vmax.f32 %v13451_v42, %v13453_v30 }
 0x88a   : > { %v5801_v23 = vpop.f32.mrf.mxu0 }
 0x88b   : > { %5972 = vmax.xlane.f32.xlu0 %v5971_v29 }
 0x88c   : > { %v13457_v61 = vpop.f32.mrf.mxu0 }
 0x88e   : > { %v5805_v2 = vpop.f32.mrf.mxu0 }
 0x890   : > { %v13459_v0 = vpop.f32.mrf.mxu0 }
 0x892   : > { %v13463_v44 = vpop.f32.mrf.mxu0 }
 0x894   : > { %v13467_v42 = vpop.f32.mrf.mxu0 }
 0x8b8   : > { %v5904_v1 = vpop.xlane.xlu0 %5903 }
 0x8b9   : > { %v5998_v8 = vsub.f32 %v13313_v37, %v5904_v1  ;;  %v5999_v15 = vsub.f32 %v13315_v34, %v5904_v1 }
 0x8bb   : > { %v6062_v3 = vmul.f32 1.442695, %v5998_v8  ;;  %v6064_v40 = vmul.f32 1.442695, %v5999_v15 }
 0x8bc   : > { %v5907_v26 = vpop.xlane.xlu1 %5906 }
 0x8bd   : > { %8929 = vpow2.f32 %v6062_v3  ;;  %v6000_v45 = vsub.f32 %v13319_v7, %v5907_v26  ;;  %v6001_v35 = vsub.f32 %v13321_v53, %v5907_v26  ;;  %v13471_v3 = vpop.f32.mrf.mxu0 }
 0x8be   : > { %8931 = vpow2.f32 %v6064_v40 }
 0x8bf   : > { %v6066_v29 = vmul.f32 1.442695, %v6000_v45  ;;  %v6068_v51 = vmul.f32 1.442695, %v6001_v35  ;;  %v13475_v35 = vpop.f32.mrf.mxu0 }
 0x8c0   : > { %v5910_v30 = vpop.xlane.xlu0 %5909 }
 0x8c1   : > { %8933 = vpow2.f32 %v6066_v29  ;;  %v6002_v37 = vsub.f32 %v13325_v52, %v5910_v30  ;;  %v6003_v34 = vsub.f32 %v13327_v33, %v5910_v30 }
 0x8c2   : > { %8935 = vpow2.f32 %v6068_v51 }
 0x8c3   : > { %v6070_v1 = vmul.f32 1.442695, %v6002_v37  ;;  %v6072_v8 = vmul.f32 1.442695, %v6003_v34  ;;  %v13483_v37 = vmul.f32 0.35355338, %v5801_v23 }
 0x8c4   : > { %v5913_v15 = vpop.xlane.xlu0 %5912 }
 0x8c5   : > { %8937 = vpow2.f32 %v6070_v1  ;;  %v6004_v7 = vsub.f32 %v13331_v59, %v5913_v15  ;;  %v6005_v53 = vsub.f32 %v13333_v12, %v5913_v15  ;;  %v5821_v1 = vpop.f32.mrf.mxu0  ;;  %v13491_v15 = vmul.f32 0.35355338, %v5799_v43 }
 0x8c6   : > { %8939 = vpow2.f32 %v6072_v8 }
 0x8c7   : > { %v6074_v40 = vmul.f32 1.442695, %v6004_v7  ;;  %v6076_v26 = vmul.f32 1.442695, %v6005_v53 }
 0x8c8   : > { %v5916_v45 = vpop.xlane.xlu1 %5915 }
 0x8c9   : > { %8941 = vpow2.f32 %v6074_v40  ;;  %v6006_v52 = vsub.f32 %v13337_v20, %v5916_v45  ;;  %v6007_v51 = vsub.f32 %v13339_v10, %v5916_v45  ;;  %v5974_v40 = vmax.f32 %v13491_v15, %v13483_v37 }
 0x8ca   : > { %v13479_v33 = vpop.eup %8929  ;;  %8943 = vpow2.f32 %v6076_v26  ;;  %v13497_v26 = vmul.f32 0.35355338, %v5805_v2 }
 0x8cb   : > { %v13481_v30 = vpop.eup %8931  ;;  %v6078_v29 = vmul.f32 1.442695, %v6006_v52  ;;  %v6080_v59 = vmul.f32 1.442695, %v6007_v51 }
 0x8cc   : > { %v5919_v12 = vpop.xlane.xlu0 %5918  ;;  %v6190_v34 = vadd.f32 %v13481_v30, %v13479_v33 }
 0x8cd   : > { %8945 = vpow2.f32 %v6078_v29  ;;  %v6008_v8 = vsub.f32 %v13343_v25, %v5919_v12  ;;  %v6009_v20 = vsub.f32 %v13345_v13, %v5919_v12  ;;  %v13501_v13 = vpop.f32.mrf.mxu0  ;;  %v13508_v29 = vmul.f32 0.35355338, %v13457_v61 }
 0x8ce   : > { %v13489_v10 = vpop.eup %8933  ;;  %8947 = vpow2.f32 %v6080_v59  ;;  %6191 = vadd.xlane.f32.xlu1 %v6190_v34 }
 0x8cf   : > { %v13493_v7 = vpop.eup %8935  ;;  %v6082_v23 = vmul.f32 1.442695, %v6008_v8  ;;  %v6084_v53 = vmul.f32 1.442695, %v6009_v20  ;;  %v5977_v34 = vmax.f32 %v13508_v29, %v13497_v26  ;;  %v13515_v8 = vmul.f32 0.35355338, %v13463_v44  ;;  %v5825_v20 = vpop.f32.mrf.mxu0 }
 0x8d0   : > { %v5922_v45 = vpop.xlane.xlu1 %5921  ;;  %v6193_v25 = vadd.f32 %v13493_v7, %v13489_v10 }
 0x8d1   : > { %8949 = vpow2.f32 %v6082_v23  ;;  %v6010_v43 = vsub.f32 %v13349_v36, %v5922_v45  ;;  %v6011_v52 = vsub.f32 %v13351_v27, %v5922_v45 }
 0x8d2   : > { %v13505_v51 = vpop.eup %8937  ;;  %8951 = vpow2.f32 %v6084_v53  ;;  %6194 = vadd.xlane.f32.xlu0 %v6193_v25  ;;  %5975 = vmax.xlane.f32.xlu1 %v5974_v40  ;;  %v13524_v40 = vmul.f32 0.35355338, %v13459_v0 }
 0x8d3   : > { %v13510_v2 = vpop.eup %8939  ;;  %v6086_v59 = vmul.f32 1.442695, %v6010_v43  ;;  %v6088_v12 = vmul.f32 1.442695, %v6011_v52  ;;  %v13531_v52 = vmul.f32 0.35355338, %v13471_v3 }
 0x8d4   : > { %v5925_v36 = vpop.xlane.xlu0 %5924  ;;  %v6196_v27 = vadd.f32 %v13510_v2, %v13505_v51  ;;  %v5980_v43 = vmax.f32 %v13524_v40, %v13515_v8 }
 0x8d5   : > { %8953 = vpow2.f32 %v6086_v59  ;;  %v6012_v61 = vsub.f32 %v13355_v47, %v5925_v36  ;;  %v6013_v23 = vsub.f32 %v13357_v11, %v5925_v36  ;;  %v5829_v59 = vpop.f32.mrf.mxu0  ;;  %v13540_v36 = vmul.f32 0.35355338, %v13467_v42 }
 0x8d6   : > { %v13521_v53 = vpop.eup %8941  ;;  %8955 = vpow2.f32 %v6088_v12  ;;  %6197 = vadd.xlane.f32.xlu1 %v6196_v27  ;;  %5978 = vmax.xlane.f32.xlu0 %v5977_v34 }
 0x8d7   : > { %v13526_v44 = vpop.eup %8943  ;;  %v6090_v45 = vmul.f32 1.442695, %v6012_v61  ;;  %v6092_v25 = vmul.f32 1.442695, %v6013_v23  ;;  %v5983_v23 = vmax.f32 %v13540_v36, %v13531_v52 }
 0x8d8   : > { %v5928_v47 = vpop.xlane.xlu1 %5927  ;;  %v6199_v11 = vadd.f32 %v13526_v44, %v13521_v53 }
 0x8d9   : > { %8957 = vpow2.f32 %v6090_v45  ;;  %v6014_v0 = vsub.f32 %v13361_v6, %v5928_v47  ;;  %v6015_v12 = vsub.f32 %v13363_v22, %v5928_v47  ;;  %v13546_v45 = vmul.f32 0.35355338, %v5821_v1  ;;  %v5831_v47 = vpop.f32.mrf.mxu0 }
 0x8da   : > { %v13537_v34 = vpop.eup %8945  ;;  %8959 = vpow2.f32 %v6092_v25  ;;  %6200 = vadd.xlane.f32.xlu0 %v6199_v11  ;;  %5981 = vmax.xlane.f32.xlu1 %v5980_v43  ;;  %v13555_v11 = vmul.f32 0.35355338, %v13475_v35 }
 0x8db   : > { %14546 = vst [vmem:[#allocation69_spill] sm:$0xff] %v13537_v34  ;;  %v13542_v3 = vpop.eup %8947  ;;  %v6094_v27 = vmul.f32 1.442695, %v6014_v0  ;;  %v6096_v61 = vmul.f32 1.442695, %v6015_v12 }
 0x8dc   : > { %v5931_v6 = vpop.xlane.xlu0 %5930  ;;  %v6202_v22 = vadd.f32 %v13542_v3, %v13537_v34  ;;  %v5986_v34 = vmax.f32 %v13555_v11, %v13546_v45 }
 0x8dd   : > { %8961 = vpow2.f32 %v6094_v27  ;;  %v6016_v42 = vsub.f32 %v13367_v5, %v5931_v6  ;;  %v6017_v25 = vsub.f32 %v13369_v55, %v5931_v6  ;;  %v13561_v27 = vmul.f32 0.35355338, %v5825_v20  ;;  %v5833_v6 = vpop.f32.mrf.mxu0 }
 0x8de   : > { %v13552_v43 = vpop.eup %8949  ;;  %8963 = vpow2.f32 %v6096_v61  ;;  %6203 = vadd.xlane.f32.xlu1 %v6202_v22  ;;  %5984 = vmax.xlane.f32.xlu0 %v5983_v23  ;;  %v13570_v22 = vmul.f32 0.35355338, %v13501_v13 }
 0x8df   : > { %14547 = vst [vmem:[#allocation70_spill] sm:$0xff] %v13552_v43  ;;  %v13557_v1 = vpop.eup %8951  ;;  %v6098_v0 = vmul.f32 1.442695, %v6016_v42  ;;  %v6100_v12 = vmul.f32 1.442695, %v6017_v25 }
 0x8e0   : > { %v5934_v5 = vpop.xlane.xlu1 %5933  ;;  %v6205_v55 = vadd.f32 %v13557_v1, %v13552_v43  ;;  %v5989_v43 = vmax.f32 %v13570_v22, %v13561_v27 }
 0x8e1   : > { %8965 = vpow2.f32 %v6098_v0  ;;  %v6018_v35 = vsub.f32 %v13373_v28, %v5934_v5  ;;  %v6019_v61 = vsub.f32 %v13375_v60, %v5934_v5  ;;  %v13576_v0 = vmul.f32 0.35355338, %v5831_v47  ;;  %v5835_v5 = vpop.f32.mrf.mxu0 }
 0x8e2   : > { %v13567_v23 = vpop.eup %8953  ;;  %8967 = vpow2.f32 %v6100_v12  ;;  %6206 = vadd.xlane.f32.xlu0 %v6205_v55  ;;  %5987 = vmax.xlane.f32.xlu1 %v5986_v34  ;;  %v13584_v55 = vmul.f32 0.35355338, %v5829_v59 }
 0x8e3   : > { %14548 = vst [vmem:[#allocation71_spill] sm:$0xff] %v13567_v23  ;;  %v13572_v20 = vpop.eup %8955  ;;  %v6102_v42 = vmul.f32 1.442695, %v6018_v35  ;;  %v6104_v25 = vmul.f32 1.442695, %v6019_v61 }
 0x8e4   : > { %14549 = vst [vmem:[#allocation72_spill] sm:$0xff] %v13572_v20  ;;  %v5937_v28 = vpop.xlane.xlu0 %5936  ;;  %v6208_v60 = vadd.f32 %v13572_v20, %v13567_v23  ;;  %v5992_v23 = vmax.f32 %v13584_v55, %v13576_v0  ;;  %v13590_v20 = vmul.f32 0.35355338, %v5835_v5 }
 0x8e5   : > { %8969 = vpow2.f32 %v6102_v42  ;;  %v6020_v13 = vsub.f32 %v13379_v21, %v5937_v28  ;;  %v6021_v12 = vsub.f32 %v13381_v48, %v5937_v28 }
 0x8e6   : > { %v13582_v34 = vpop.eup %8957  ;;  %8971 = vpow2.f32 %v6104_v25  ;;  %6209 = vadd.xlane.f32.xlu1 %v6208_v60  ;;  %5990 = vmax.xlane.f32.xlu0 %v5989_v43  ;;  %v13598_v43 = vmul.f32 0.35355338, %v5833_v6 }
 0x8e7   : > { %v13586_v35 = vpop.eup %8959  ;;  %v6106_v47 = vmul.f32 1.442695, %v6020_v13  ;;  %v6108_v61 = vmul.f32 1.442695, %v6021_v12 }
 0x8e8   : > { %v5940_v42 = vpop.xlane.xlu1 %5939  ;;  %v6211_v21 = vadd.f32 %v13586_v35, %v13582_v34  ;;  %v5995_v13 = vmax.f32 %v13598_v43, %v13590_v20 }
 0x8e9   : > { %8973 = vpow2.f32 %v6106_v47  ;;  %v6022_v48 = vsub.f32 %v13385_v54, %v5940_v42  ;;  %v6023_v59 = vsub.f32 %v13387_v57, %v5940_v42 }
 0x8ea   : > { %v13596_v25 = vpop.eup %8961  ;;  %8975 = vpow2.f32 %v6108_v61  ;;  %6212 = vadd.xlane.f32.xlu0 %v6211_v21  ;;  %5993 = vmax.xlane.f32.xlu1 %v5992_v23 }
 0x8eb   : > { %v13600_v28 = vpop.eup %8963  ;;  %v6110_v60 = vmul.f32 1.442695, %v6022_v48  ;;  %v6112_v5 = vmul.f32 1.442695, %v6023_v59 }
 0x8ec   : > { %v5943_v12 = vpop.xlane.xlu0 %5942  ;;  %v6214_v54 = vadd.f32 %v13600_v28, %v13596_v25 }
 0x8ed   : > { %8977 = vpow2.f32 %v6110_v60  ;;  %v6024_v57 = vsub.f32 %v13391_v16, %v5943_v12  ;;  %v6025_v6 = vsub.f32 %v13393_v63, %v5943_v12 }
 0x8ee   : > { %v13608_v47 = vpop.eup %8965  ;;  %8979 = vpow2.f32 %v6112_v5  ;;  %6215 = vadd.xlane.f32.xlu1 %v6214_v54  ;;  %5996 = vmax.xlane.f32.xlu0 %v5995_v13 }
 0x8ef   : > { %v13610_v23 = vpop.eup %8967  ;;  %v6114_v61 = vmul.f32 1.442695, %v6024_v57  ;;  %v6116_v42 = vmul.f32 1.442695, %v6025_v6 }
 0x8f0   : > { %v5946_v21 = vpop.xlane.xlu1 %5945  ;;  %v6217_v48 = vadd.f32 %v13610_v23, %v13608_v47 }
 0x8f1   : > { %8981 = vpow2.f32 %v6114_v61  ;;  %v6026_v59 = vsub.f32 %v13397_v39, %v5946_v21  ;;  %v6027_v16 = vsub.f32 %v13399_v41, %v5946_v21 }
 0x8f2   : > { %v13616_v60 = vpop.eup %8969  ;;  %8983 = vpow2.f32 %v6116_v42  ;;  %6218 = vadd.xlane.f32.xlu0 %v6217_v48 }
 0x8f3   : > { %v13618_v63 = vpop.eup %8971  ;;  %v6118_v5 = vmul.f32 1.442695, %v6026_v59  ;;  %v6120_v13 = vmul.f32 1.442695, %v6027_v16 }
 0x8f4   : > { %v5949_v12 = vpop.xlane.xlu0 %5948  ;;  %v6220_v54 = vadd.f32 %v13618_v63, %v13616_v60 }
 0x8f5   : > { %8985 = vpow2.f32 %v6118_v5  ;;  %v6028_v57 = vsub.f32 %v13403_v18, %v5949_v12  ;;  %v6029_v6 = vsub.f32 %v13405_v14, %v5949_v12 }
 0x8f6   : > { %v13624_v39 = vpop.eup %8973  ;;  %8987 = vpow2.f32 %v6120_v13  ;;  %6221 = vadd.xlane.f32.xlu1 %v6220_v54 }
 0x8f7   : > { %v13626_v41 = vpop.eup %8975  ;;  %v6122_v61 = vmul.f32 1.442695, %v6028_v57  ;;  %v6124_v42 = vmul.f32 1.442695, %v6029_v6 }
 0x8f8   : > { %v5952_v21 = vpop.xlane.xlu1 %5951  ;;  %v6223_v48 = vadd.f32 %v13626_v41, %v13624_v39 }
 0x8f9   : > { %8989 = vpow2.f32 %v6122_v61  ;;  %v6030_v59 = vsub.f32 %v13409_v19, %v5952_v21  ;;  %v6031_v16 = vsub.f32 %v13411_v32, %v5952_v21 }
 0x8fa   : > { %v13632_v18 = vpop.eup %8977  ;;  %8991 = vpow2.f32 %v6124_v42  ;;  %6224 = vadd.xlane.f32.xlu0 %v6223_v48 }
 0x8fb   : > { %v13634_v14 = vpop.eup %8979  ;;  %v6126_v5 = vmul.f32 1.442695, %v6030_v59  ;;  %v6128_v13 = vmul.f32 1.442695, %v6031_v16 }
 0x8fc   : > { %v5955_v12 = vpop.xlane.xlu0 %5954  ;;  %v6226_v54 = vadd.f32 %v13634_v14, %v13632_v18 }
 0x8fd   : > { %8993 = vpow2.f32 %v6126_v5  ;;  %v6032_v57 = vsub.f32 %v13415_v31, %v5955_v12  ;;  %v6033_v6 = vsub.f32 %v13417_v62, %v5955_v12 }
 0x8fe   : > { %v13640_v19 = vpop.eup %8981  ;;  %8995 = vpow2.f32 %v6128_v13  ;;  %6227 = vadd.xlane.f32.xlu1 %v6226_v54 }
 0x8ff   : > { %v13642_v32 = vpop.eup %8983  ;;  %v6130_v61 = vmul.f32 1.442695, %v6032_v57  ;;  %v6132_v42 = vmul.f32 1.442695, %v6033_v6 }
 0x900   : > { %v5958_v21 = vpop.xlane.xlu1 %5957  ;;  %v6229_v48 = vadd.f32 %v13642_v32, %v13640_v19 }
 0x901   : > { %8997 = vpow2.f32 %v6130_v61  ;;  %v6034_v59 = vsub.f32 %v13421_v50, %v5958_v21  ;;  %v6035_v16 = vsub.f32 %v13423_v24, %v5958_v21 }
 0x902   : > { %v13648_v31 = vpop.eup %8985  ;;  %8999 = vpow2.f32 %v6132_v42  ;;  %6230 = vadd.xlane.f32.xlu0 %v6229_v48 }
 0x903   : > { %v13650_v62 = vpop.eup %8987  ;;  %v6134_v5 = vmul.f32 1.442695, %v6034_v59  ;;  %v6136_v13 = vmul.f32 1.442695, %v6035_v16 }
 0x904   : > { %v5961_v12 = vpop.xlane.xlu0 %5960  ;;  %v6232_v54 = vadd.f32 %v13650_v62, %v13648_v31 }
 0x905   : > { %9001 = vpow2.f32 %v6134_v5  ;;  %v6036_v57 = vsub.f32 %v13427_v46, %v5961_v12  ;;  %v6037_v6 = vsub.f32 %v13429_v58, %v5961_v12 }
 0x906   : > { %v13656_v50 = vpop.eup %8989  ;;  %9003 = vpow2.f32 %v6136_v13  ;;  %6233 = vadd.xlane.f32.xlu1 %v6232_v54 }
 0x907   : > { %v13658_v24 = vpop.eup %8991  ;;  %v6138_v61 = vmul.f32 1.442695, %v6036_v57  ;;  %v6140_v42 = vmul.f32 1.442695, %v6037_v6 }
 0x908   : > { %v5964_v21 = vpop.xlane.xlu1 %5963  ;;  %v6235_v48 = vadd.f32 %v13658_v24, %v13656_v50 }
 0x909   : > { %9005 = vpow2.f32 %v6138_v61  ;;  %v6038_v59 = vsub.f32 %v13433_v56, %v5964_v21  ;;  %v6039_v16 = vsub.f32 %v13435_v49, %v5964_v21 }
 0x90a   : > { %v13664_v46 = vpop.eup %8993  ;;  %9007 = vpow2.f32 %v6140_v42  ;;  %6236 = vadd.xlane.f32.xlu0 %v6235_v48 }
 0x90b   : > { %14550 = vst [vmem:[#allocation73_spill] sm:$0xff] %v13664_v46  ;;  %v13666_v58 = vpop.eup %8995  ;;  %v6142_v5 = vmul.f32 1.442695, %v6038_v59  ;;  %v6144_v13 = vmul.f32 1.442695, %v6039_v16 }
 0x90c   : > { %v5967_v12 = vpop.xlane.xlu0 %5966  ;;  %v6238_v54 = vadd.f32 %v13666_v58, %v13664_v46 }
 0x90d   : > { %9009 = vpow2.f32 %v6142_v5  ;;  %v6040_v57 = vsub.f32 %v13439_v9, %v5967_v12  ;;  %v6041_v6 = vsub.f32 %v13441_v17, %v5967_v12 }
 0x90e   : > { %v13672_v56 = vpop.eup %8997  ;;  %9011 = vpow2.f32 %v6144_v13  ;;  %6239 = vadd.xlane.f32.xlu1 %v6238_v54 }
 0x90f   : > { %v13674_v49 = vpop.eup %8999  ;;  %v6146_v61 = vmul.f32 1.442695, %v6040_v57  ;;  %v6148_v42 = vmul.f32 1.442695, %v6041_v6  ;;  %v14552_v57 = vld [vmem:[#allocation67_spill] sm:$0xff] }
 0x910   : > { %v5970_v21 = vpop.xlane.xlu1 %5969  ;;  %v6241_v48 = vadd.f32 %v13674_v49, %v13672_v56 }
 0x911   : > { %9013 = vpow2.f32 %v6146_v61  ;;  %v6042_v59 = vsub.f32 %v13445_v4, %v5970_v21  ;;  %v6043_v16 = vsub.f32 %v13447_v38, %v5970_v21  ;;  %v14553_v61 = vld [vmem:[#allocation68_spill] sm:$0xff] }
 0x912   : > { %v13680_v9 = vpop.eup %9001  ;;  %9015 = vpow2.f32 %v6148_v42  ;;  %6242 = vadd.xlane.f32.xlu0 %v6241_v48 }
 0x913   : > { %14551 = vst [vmem:[#allocation74_spill] sm:$0xff] %v13680_v9  ;;  %v13682_v17 = vpop.eup %9003  ;;  %v6150_v5 = vmul.f32 1.442695, %v6042_v59  ;;  %v6152_v13 = vmul.f32 1.442695, %v6043_v16 }
 0x914   : > { %v5973_v12 = vpop.xlane.xlu0 %5972  ;;  %v6244_v54 = vadd.f32 %v13682_v17, %v13680_v9 }
 0x915   : > { %9017 = vpow2.f32 %v6150_v5  ;;  %v6044_v6 = vsub.f32 %v14552_v57, %v5973_v12  ;;  %v6045_v46 = vsub.f32 %v14553_v61, %v5973_v12 }
 0x916   : > { %v13688_v4 = vpop.eup %9005  ;;  %9019 = vpow2.f32 %v6152_v13  ;;  %6245 = vadd.xlane.f32.xlu1 %v6244_v54 }
 0x917   : > { %v13690_v38 = vpop.eup %9007  ;;  %v6154_v42 = vmul.f32 1.442695, %v6044_v6  ;;  %v6156_v21 = vmul.f32 1.442695, %v6045_v46 }
 0x918   : > { %v6247_v48 = vadd.f32 %v13690_v38, %v13688_v4 }
 0x919   : > { %9021 = vpow2.f32 %v6154_v42 }
 0x91a   : > { %v13694_v59 = vpop.eup %9009  ;;  %9023 = vpow2.f32 %v6156_v21  ;;  %6248 = vadd.xlane.f32.xlu0 %v6247_v48 }
 0x91b   : > { %14554 = vst [vmem:[#allocation67_spill] sm:$0xff] %v13694_v59  ;;  %v13696_v16 = vpop.eup %9011 }
 0x91c   : > { %14555 = vst [vmem:[#allocation68_spill] sm:$0xff] %v13696_v16  ;;  %v6250_v5 = vadd.f32 %v13696_v16, %v13694_v59 }
 0x91e   : > { %v13700_v12 = vpop.eup %9013  ;;  %6251 = vadd.xlane.f32.xlu1 %v6250_v5 }
 0x91f   : > { %14556 = vst [vmem:[#allocation75_spill] sm:$0xff] %v13700_v12  ;;  %v13702_v13 = vpop.eup %9015 }
 0x920   : > { %14557 = vst [vmem:[#allocation76_spill] sm:$0xff] %v13702_v13  ;;  %v6253_v46 = vadd.f32 %v13702_v13, %v13700_v12 }
 0x922   : > { %v13706_v54 = vpop.eup %9017  ;;  %6254 = vadd.xlane.f32.xlu0 %v6253_v46 }
 0x923   : > { %14558 = vst [vmem:[#allocation77_spill] sm:$0xff] %v13706_v54  ;;  %v13708_v57 = vpop.eup %9019 }
 0x924   : > { %14559 = vst [vmem:[#allocation78_spill] sm:$0xff] %v13708_v57  ;;  %v6256_v6 = vadd.f32 %v13708_v57, %v13706_v54 }
 0x926   : > { %v13712_v61 = vpop.eup %9021  ;;  %6257 = vadd.xlane.f32.xlu1 %v6256_v6 }
 0x927   : > { %14560 = vst [vmem:[#allocation79_spill] sm:$0xff] %v13712_v61  ;;  %v13714_v42 = vpop.eup %9023 }
 0x928   : > { %14561 = vst [vmem:[#allocation80_spill] sm:$0xff] %v13714_v42  ;;  %v6259_v21 = vadd.f32 %v13714_v42, %v13712_v61 }
 0x92a   : > { %6260 = vadd.xlane.f32.xlu0 %v6259_v21 }
 0x957   : > { %v6192_v48 = vpop.xlane.xlu1 %6191 }
 0x958   : > { %9025 = vrcp.f32 %v6192_v48 }
 0x95b   : > { %v6195_v5 = vpop.xlane.xlu0 %6194  ;;  %v5976_v59 = vpop.xlane.xlu1 %5975 }
 0x95c   : > { %9027 = vrcp.f32 %v6195_v5  ;;  %v6046_v46 = vsub.f32 %v13491_v15, %v5976_v59  ;;  %v6047_v12 = vsub.f32 %v13483_v37, %v5976_v59 }
 0x95e   : > { %v6158_v13 = vmul.f32 1.442695, %v6046_v46  ;;  %v6160_v54 = vmul.f32 1.442695, %v6047_v12 }
 0x95f   : > { %v6198_v57 = vpop.xlane.xlu1 %6197  ;;  %v5979_v16 = vpop.xlane.xlu0 %5978 }
 0x960   : > { %9029 = vpow2.f32 %v6158_v13  ;;  %v6048_v6 = vsub.f32 %v13508_v29, %v5979_v16  ;;  %v6049_v9 = vsub.f32 %v13497_v26, %v5979_v16 }
 0x961   : > { %9031 = vpow2.f32 %v6160_v54 }
 0x962   : > { %v6162_v21 = vmul.f32 1.442695, %v6048_v6  ;;  %v6164_v61 = vmul.f32 1.442695, %v6049_v9  ;;  %9033 = vrcp.f32 %v6198_v57 }
 0x963   : > { %v6201_v48 = vpop.xlane.xlu0 %6200  ;;  %v5982_v42 = vpop.xlane.xlu1 %5981 }
 0x964   : > { %9035 = vpow2.f32 %v6162_v21  ;;  %v6050_v15 = vsub.f32 %v13524_v40, %v5982_v42  ;;  %v6051_v37 = vsub.f32 %v13515_v8, %v5982_v42 }
 0x965   : > { %9037 = vpow2.f32 %v6164_v61  ;;  %v9026_v13 = vpop.eup %9025 }
 0x966   : > { %9039 = vrcp.f32 %v6201_v48  ;;  %v6166_v59 = vmul.f32 1.442695, %v6050_v15  ;;  %v6168_v12 = vmul.f32 1.442695, %v6051_v37  ;;  %v6287_v54 = vmul.f32 %v9026_v13, %v13479_v33 }
 0x967   : > { %v6204_v5 = vpop.xlane.xlu1 %6203  ;;  %v5985_v29 = vpop.xlane.xlu0 %5984  ;;  %v6288_v46 = vmul.f32 %v9026_v13, %v13481_v30 }
 0x968   : > { %9041 = vpow2.f32 %v6166_v59  ;;  %v6052_v26 = vsub.f32 %v13540_v36, %v5985_v29  ;;  %v6053_v9 = vsub.f32 %v13531_v52, %v5985_v29 }
 0x969   : > { %v9028_v16 = vpop.eup %9027  ;;  %9043 = vpow2.f32 %v6168_v12 }
 0x96a   : > { %v6290_v40 = vmul.f32 %v9028_v16, %v13489_v10  ;;  %v6170_v57 = vmul.f32 1.442695, %v6052_v26  ;;  %v6172_v8 = vmul.f32 1.442695, %v6053_v9  ;;  %9045 = vrcp.f32 %v6204_v5 }
 0x96b   : > { %v6207_v61 = vpop.xlane.xlu0 %6206  ;;  %v5988_v42 = vpop.xlane.xlu1 %5987  ;;  %v6291_v6 = vmul.f32 %v9028_v16, %v13493_v7 }
 0x96c   : > { %v6382_v21 = vpack.c.bf16 %v6290_v40, %v6287_v54  ;;  %9047 = vpow2.f32 %v6170_v57  ;;  %v6054_v36 = vsub.f32 %v13555_v11, %v5988_v42  ;;  %v6055_v52 = vsub.f32 %v13546_v45, %v5988_v42 }
 0x96d   : > { %v13732_v48 = vpop.eup %9029  ;;  %9049 = vpow2.f32 %v6172_v8  ;;  %v6383_v33 = vpack.c.bf16 %v6291_v6, %v6288_v46 }
 0x96e   : > { %v13734_v10 = vpop.eup %9031  ;;  %9051 = vrcp.f32 %v6207_v61  ;;  %v6174_v15 = vmul.f32 1.442695, %v6054_v36  ;;  %v6176_v37 = vmul.f32 1.442695, %v6055_v52 }
 0x96f   : > { %6462 = vmatprep.mubr.bf16.mxu1 %v6383_v33  ;;  %v6210_v59 = vpop.xlane.xlu1 %6209  ;;  %v5991_v30 = vpop.xlane.xlu0 %5990  ;;  %v6262_v7 = vadd.f32 %v13734_v10, %v13732_v48 }
 0x970   : > { %v9034_v12 = vpop.eup %9033  ;;  %9053 = vpow2.f32 %v6174_v15  ;;  %6463 = vmatmul.mubr.bf16.vlgmr.msra.gmra.mxu1 %v6382_v21  ;;  %v6056_v45 = vsub.f32 %v13570_v22, %v5991_v30  ;;  %v6057_v11 = vsub.f32 %v13561_v27, %v5991_v30 }
 0x971   : > { %v13740_v13 = vpop.eup %9035  ;;  %9055 = vpow2.f32 %v6176_v37  ;;  %6263 = vadd.xlane.f32.xlu1 %v6262_v7  ;;  %v6294_v57 = vmul.f32 %v9034_v12, %v13510_v2  ;;  %v6293_v42 = vmul.f32 %v9034_v12, %v13505_v51 }
 0x972   : > { %v13742_v5 = vpop.eup %9037  ;;  %v6178_v29 = vmul.f32 1.442695, %v6056_v45  ;;  %v6180_v26 = vmul.f32 1.442695, %v6057_v11  ;;  %9057 = vrcp.f32 %v6210_v59 }
 0x973   : > { %v9040_v9 = vpop.eup %9039  ;;  %v6213_v16 = vpop.xlane.xlu0 %6212  ;;  %v6265_v40 = vadd.f32 %v13742_v5, %v13740_v13 }
 0x974   : > { %v5994_v54 = vpop.xlane.xlu1 %5993  ;;  %9059 = vpow2.f32 %v6178_v29  ;;  %v6297_v8 = vmul.f32 %v9040_v9, %v13526_v44  ;;  %v6296_v46 = vmul.f32 %v9040_v9, %v13521_v53 }
 0x975   : > { %v6058_v27 = vsub.f32 %v13584_v55, %v5994_v54  ;;  %v6059_v22 = vsub.f32 %v13576_v0, %v5994_v54  ;;  %v13750_v61 = vpop.eup %9041  ;;  %9061 = vpow2.f32 %v6180_v26  ;;  %6266 = vadd.xlane.f32.xlu0 %v6265_v40  ;;  %v14563_v26 = vld [vmem:[#allocation70_spill] sm:$0xff] }
 0x976   : > { %v13754_v6 = vpop.eup %9043  ;;  %9063 = vrcp.f32 %v6213_v16  ;;  %v6385_v36 = vpack.c.bf16 %v6297_v8, %v6294_v57  ;;  %v6384_v52 = vpack.c.bf16 %v6296_v46, %v6293_v42 }
 0x977   : > { %v6182_v21 = vmul.f32 1.442695, %v6058_v27  ;;  %v6184_v2 = vmul.f32 1.442695, %v6059_v22  ;;  %v5997_v55 = vpop.xlane.xlu0 %5996  ;;  %v6268_v0 = vadd.f32 %v13754_v6, %v13750_v61  ;;  %v9046_v44 = vpop.eup %9045 }
 0x978   : > { %6470 = vmatprep.mubr.bf16.mxu1 %v6385_v36  ;;  %v6216_v33 = vpop.xlane.xlu1 %6215  ;;  %v6060_v15 = vsub.f32 %v13598_v43, %v5997_v55  ;;  %v6061_v51 = vsub.f32 %v13590_v20, %v5997_v55  ;;  %v6300_v11 = vmul.f32 %v9046_v44, %v13542_v3  ;;  %v14562_v43 = vld [vmem:[#allocation69_spill] sm:$0xff]  ;;  %v14565_v55 = vld [vmem:[#allocation71_spill] sm:$0xff] }
 0x979   : > { %9065 = vpow2.f32 %v6182_v21  ;;  %v13760_v53 = vpop.eup %9047  ;;  %6471 = vmatmul.mubr.bf16.gmra.mxu1 %v6384_v52  ;;  %6269 = vadd.xlane.f32.xlu1 %v6268_v0  ;;  %v6299_v29 = vmul.f32 %v9046_v44, %v14562_v43 }
 0x97a   : > { %9067 = vpow2.f32 %v6184_v2  ;;  %v13762_v37 = vpop.eup %9049  ;;  %v6186_v59 = vmul.f32 1.442695, %v6060_v15  ;;  %v6188_v30 = vmul.f32 1.442695, %v6061_v51  ;;  %v14564_v2 = vld [vmem:[#allocation72_spill] sm:$0xff] }
 0x97b   : > { %v9052_v7 = vpop.eup %9051  ;;  %9069 = vrcp.f32 %v6216_v33  ;;  %v6219_v12 = vpop.xlane.xlu0 %6218  ;;  %v6271_v45 = vadd.f32 %v13762_v37, %v13760_v53 }
 0x97c   : > { %9071 = vpow2.f32 %v6186_v59  ;;  %v6303_v20 = vmul.f32 %v9052_v7, %v13557_v1  ;;  %v6302_v9 = vmul.f32 %v9052_v7, %v14563_v26 }
 0x97d   : > { %v13770_v16 = vpop.eup %9053  ;;  %9073 = vpow2.f32 %v6188_v30  ;;  %6272 = vadd.xlane.f32.xlu0 %v6271_v45 }
 0x97e   : > { %v13772_v54 = vpop.eup %9055  ;;  %9075 = vrcp.f32 %v6219_v12  ;;  %v6387_v40 = vpack.c.bf16 %v6303_v20, %v6300_v11  ;;  %v6386_v57 = vpack.c.bf16 %v6302_v9, %v6299_v29 }
 0x97f   : > { %v6222_v27 = vpop.xlane.xlu1 %6221  ;;  %v6274_v3 = vadd.f32 %v13772_v54, %v13770_v16  ;;  %v9058_v22 = vpop.eup %9057 }
 0x980   : > { %6478 = vmatprep.mubr.bf16.mxu1 %v6387_v40  ;;  %9077 = vrcp.f32 %v6222_v27  ;;  %v6306_v36 = vmul.f32 %v9058_v22, %v14564_v2  ;;  %v6305_v0 = vmul.f32 %v9058_v22, %v14565_v55 }
 0x981   : > { %v13776_v1 = vpop.eup %9059  ;;  %6479 = vmatmul.mubr.bf16.gmra.mxu1 %v6386_v57  ;;  %6275 = vadd.xlane.f32.xlu1 %v6274_v3 }
 0x982   : > { %v13778_v8 = vpop.eup %9061 }
 0x983   : > { %v9064_v42 = vpop.eup %9063  ;;  %v6225_v46 = vpop.xlane.xlu0 %6224  ;;  %v6277_v21 = vadd.f32 %v13778_v8, %v13776_v1 }
 0x984   : > { %9079 = vrcp.f32 %v6225_v46  ;;  %v6309_v52 = vmul.f32 %v9064_v42, %v13586_v35  ;;  %v6308_v44 = vmul.f32 %v9064_v42, %v13582_v34 }
 0x985   : > { %6278 = vadd.xlane.f32.xlu0 %v6277_v21 }
 0x986   : > { %v13786_v33 = vpop.eup %9065  ;;  %v6389_v51 = vpack.c.bf16 %v6309_v52, %v6306_v36  ;;  %v6388_v59 = vpack.c.bf16 %v6308_v44, %v6305_v0 }
 0x987   : > { %v13788_v15 = vpop.eup %9067  ;;  %v6228_v30 = vpop.xlane.xlu1 %6227 }
 0x988   : > { %v6280_v7 = vadd.f32 %v13788_v15, %v13786_v33  ;;  %v9070_v12 = vpop.eup %9069  ;;  %6486 = vmatprep.mubr.bf16.mxu1 %v6389_v51  ;;  %9081 = vrcp.f32 %v6228_v30 }
 0x989   : > { %v13792_v45 = vpop.eup %9071  ;;  %6487 = vmatmul.mubr.bf16.gmra.mxu1 %v6388_v59  ;;  %v6312_v43 = vmul.f32 %v9070_v12, %v13600_v28  ;;  %v6311_v26 = vmul.f32 %v9070_v12, %v13596_v25 }
 0x98a   : > { %6281 = vadd.xlane.f32.xlu1 %v6280_v7  ;;  %v13794_v35 = vpop.eup %9073 }
 0x98b   : > { %v9076_v34 = vpop.eup %9075  ;;  %v6231_v11 = vpop.xlane.xlu0 %6230  ;;  %v6283_v20 = vadd.f32 %v13794_v35, %v13792_v45 }
 0x98c   : > { %9083 = vrcp.f32 %v6231_v11  ;;  %v6315_v29 = vmul.f32 %v9076_v34, %v13610_v23  ;;  %v6314_v9 = vmul.f32 %v9076_v34, %v13608_v47 }
 0x98d   : > { %6284 = vadd.xlane.f32.xlu0 %v6283_v20  ;;  %v9078_v27 = vpop.eup %9077 }
 0x98e   : > { %v6391_v40 = vpack.c.bf16 %v6315_v29, %v6312_v43  ;;  %v6390_v57 = vpack.c.bf16 %v6314_v9, %v6311_v26  ;;  %v6318_v42 = vmul.f32 %v9078_v27, %v13618_v63  ;;  %v6317_v25 = vmul.f32 %v9078_v27, %v13616_v60  ;;  %v8918_v9 = vld [vmem:[%s14228_s10 + $0x20] sm:$0xff]  }
 0x98f   : > { %v6234_v3 = vpop.xlane.xlu1 %6233 }
 0x990   : > { %6494 = vmatprep.mubr.bf16.mxu1 %v6391_v40  ;;  %9085 = vrcp.f32 %v6234_v3 }
 0x991   : > { %v9080_v22 = vpop.eup %9079  ;;  %6495 = vmatmul.mubr.bf16.gmra.mxu1 %v6390_v57  ;;  %v14566_v57 = vld [vmem:[#allocation73_spill] sm:$0xff] }
 0x992   : > { %v6321_v28 = vmul.f32 %v9080_v22, %v13626_v41  ;;  %v6320_v46 = vmul.f32 %v9080_v22, %v13624_v39 }
 0x993   : > { %v6237_v23 = vpop.xlane.xlu0 %6236 }
 0x994   : > { %9087 = vrcp.f32 %v6237_v23  ;;  %v6393_v47 = vpack.c.bf16 %v6321_v28, %v6318_v42  ;;  %v6392_v21 = vpack.c.bf16 %v6320_v46, %v6317_v25  ;;  %v14567_v25 = vld [vmem:[#allocation74_spill] sm:$0xff] }
 0x995   : > { %v9082_v2 = vpop.eup %9081 }
 0x996   : > { %6502 = vmatprep.mubr.bf16.mxu1 %v6393_v47  ;;  %v6324_v55 = vmul.f32 %v9082_v2, %v13634_v14  ;;  %v6323_v39 = vmul.f32 %v9082_v2, %v13632_v18  ;;  %v8916_v18 = vld [vmem:[%s14228_s10 + $0x30] sm:$0xff]  }
 0x997   : > { %v6240_v36 = vpop.xlane.xlu1 %6239 }
 0x998   : > { %9089 = vrcp.f32 %v6240_v36 }
 0x999   : > { %v9084_v52 = vpop.eup %9083  ;;  %6503 = vmatmul.mubr.bf16.gmra.mxu1 %v6392_v21  ;;  %v8919_v21 = vld [vmem:[%s14228_s10 + $0x18] sm:$0xff]  }
 0x99a   : > { %v6327_v63 = vmul.f32 %v9084_v52, %v13642_v32  ;;  %v6326_v41 = vmul.f32 %v9084_v52, %v13640_v19  ;;  %v8915_v19 = vld [vmem:[%s14228_s10 + $0x38] sm:$0xff]  }
 0x99b   : > { %v6243_v0 = vpop.xlane.xlu0 %6242  ;;  %8099 = vmatprep.subr.bf16.mxu0 %v8915_v19 }
 0x99c   : > { %9091 = vrcp.f32 %v6243_v0  ;;  %v6395_v60 = vpack.c.bf16 %v6327_v63, %v6324_v55  ;;  %v6394_v44 = vpack.c.bf16 %v6326_v41, %v6323_v39  ;;  %8100 = vmatpush3.bf16.msra.mxu0 %v8915_v19  ;;  %v14569_v63 = vld [vmem:[#allocation76_spill] sm:$0xff]  ;;  %v14570_v0 = vld [vmem:[#allocation75_spill] sm:$0xff] }
 0x99d   : > { %v9086_v51 = vpop.eup %9085  ;;  %8101 = vmatprep.subr.bf16.mxu0 %v8916_v18 }
 0x99e   : > { %6510 = vmatprep.mubr.bf16.mxu1 %v6395_v60  ;;  %v6330_v7 = vmul.f32 %v9086_v51, %v13650_v62  ;;  %v6329_v34 = vmul.f32 %v9086_v51, %v13648_v31  ;;  %v8917_v31 = vld [vmem:[%s14228_s10 + $0x28] sm:$0xff]  }
 0x99f   : > { %v6246_v59 = vpop.xlane.xlu1 %6245  ;;  %v14571_v60 = vld [vmem:[#allocation67_spill] sm:$0xff] }
 0x9a0   : > { %9093 = vrcp.f32 %v6246_v59  ;;  %8102 = vmatpush3.bf16.msra.mxu0 %v8916_v18  ;;  %v8921_v59 = vld [vmem:[%s14228_s10 + $0x8] sm:$0xff]   ;;  %v14573_v18 = vld [vmem:[#allocation80_spill] sm:$0xff] }
 0x9a1   : > { %v9088_v30 = vpop.eup %9087  ;;  %6511 = vmatmul.mubr.bf16.gmra.mxu1 %v6394_v44  ;;  %8103 = vmatprep.subr.bf16.mxu0 %v8917_v31 }
 0x9a2   : > { %v6333_v14 = vmul.f32 %v9088_v30, %v13658_v24  ;;  %v6332_v32 = vmul.f32 %v9088_v30, %v13656_v50 }
 0x9a3   : > { %v6249_v12 = vpop.xlane.xlu0 %6248 }
 0x9a4   : > { %9095 = vrcp.f32 %v6249_v12  ;;  %v6397_v11 = vpack.c.bf16 %v6333_v14, %v6330_v7  ;;  %v6396_v20 = vpack.c.bf16 %v6332_v32, %v6329_v34  ;;  %8104 = vmatpush3.bf16.msra.mxu0 %v8917_v31  ;;  %v14572_v32 = vld [vmem:[#allocation78_spill] sm:$0xff]  ;;  %v14574_v34 = vld [vmem:[#allocation79_spill] sm:$0xff] }
 0x9a5   : > { %v9090_v62 = vpop.eup %9089  ;;  %8105 = vmatprep.subr.bf16.mxu0 %v8918_v9 }
 0x9a6   : > { %6518 = vmatprep.mubr.bf16.mxu1 %v6397_v11  ;;  %v6336_v43 = vmul.f32 %v9090_v62, %v13666_v58  ;;  %v6335_v27 = vmul.f32 %v9090_v62, %v14566_v57  ;;  %v14575_v62 = vld [vmem:[#allocation77_spill] sm:$0xff] }
 0x9a7   : > { %v6252_v50 = vpop.xlane.xlu1 %6251 }
 0x9a8   : > { %9097 = vrcp.f32 %v6252_v50  ;;  %8106 = vmatpush3.bf16.msra.mxu0 %v8918_v9 }
 0x9a9   : > { %v9092_v24 = vpop.eup %9091  ;;  %6519 = vmatmul.mubr.bf16.gmra.mxu1 %v6396_v20  ;;  %8107 = vmatprep.subr.bf16.mxu0 %v8919_v21  ;;  %v8922_v20 = vld [vmem:[%s14228_s10] sm:$0xff]  }
 0x9aa   : > { %v6339_v29 = vmul.f32 %v9092_v24, %v13674_v49  ;;  %v6338_v26 = vmul.f32 %v9092_v24, %v13672_v56 }
 0x9ab   : > { %v6255_v40 = vpop.xlane.xlu0 %6254 }
 0x9ac   : > { %9099 = vrcp.f32 %v6255_v40  ;;  %v6399_v3 = vpack.c.bf16 %v6339_v29, %v6336_v43  ;;  %v6398_v22 = vpack.c.bf16 %v6338_v26, %v6335_v27  ;;  %8108 = vmatpush3.bf16.msra.mxu0 %v8919_v21 }
 0x9ad   : > { %v9094_v58 = vpop.eup %9093 }
 0x9ae   : > { %6526 = vmatprep.mubr.bf16.mxu1 %v6399_v3  ;;  %v6342_v42 = vmul.f32 %v9094_v58, %v13682_v17  ;;  %v6341_v47 = vmul.f32 %v9094_v58, %v14567_v25  ;;  %v8920_v17 = vld [vmem:[%s14228_s10 + $0x10] sm:$0xff]  }
 0x9af   : > { %v6258_v56 = vpop.xlane.xlu1 %6257  ;;  %8109 = vmatprep.subr.bf16.mxu0 %v8920_v17 }
 0x9b0   : > { %9101 = vrcp.f32 %v6258_v56  ;;  %8110 = vmatpush3.bf16.msra.mxu0 %v8920_v17 }
 0x9b1   : > { %v9096_v49 = vpop.eup %9095  ;;  %6527 = vmatmul.mubr.bf16.gmra.mxu1 %v6398_v22  ;;  %8111 = vmatprep.subr.bf16.mxu0 %v8921_v59 }
 0x9b2   : > { %v6345_v28 = vmul.f32 %v9096_v49, %v13690_v38  ;;  %v6344_v46 = vmul.f32 %v9096_v49, %v13688_v4  ;;  %v14568_v4 = vld [vmem:[#allocation68_spill] sm:$0xff] }
 0x9b3   : > { %v6261_v23 = vpop.xlane.xlu0 %6260 }
 0x9b4   : > { %9103 = vrcp.f32 %v6261_v23  ;;  %v6401_v2 = vpack.c.bf16 %v6345_v28, %v6342_v42  ;;  %v6400_v36 = vpack.c.bf16 %v6344_v46, %v6341_v47  ;;  %8112 = vmatpush3.bf16.msra.mxu0 %v8921_v59 }
 0x9b5   : > { %v9098_v52 = vpop.eup %9097  ;;  %8113 = vmatprep.subr.bf16.mxu0 %v8922_v20 }
 0x9b6   : > { %6534 = vmatprep.mubr.bf16.mxu1 %v6401_v2  ;;  %v6348_v38 = vmul.f32 %v9098_v52, %v14568_v4  ;;  %v6347_v44 = vmul.f32 %v9098_v52, %v14571_v60 }
 0x9b8   : > { %8114 = vmatpush3.bf16.msra.mxu0 %v8922_v20 }
 0x9b9   : > { %v9100_v55 = vpop.eup %9099  ;;  %6535 = vmatmul.mubr.bf16.gmra.mxu1 %v6400_v36 }
 0x9ba   : > { %v6351_v41 = vmul.f32 %v9100_v55, %v14569_v63  ;;  %v6350_v39 = vmul.f32 %v9100_v55, %v14570_v0 }
 0x9bc   : > { %v6403_v51 = vpack.c.bf16 %v6351_v41, %v6348_v38  ;;  %v6402_v30 = vpack.c.bf16 %v6350_v39, %v6347_v44 }
 0x9bd   : > { %v9102_v7 = vpop.eup %9101 }
 0x9be   : > { %6542 = vmatprep.mubr.bf16.mxu1 %v6403_v51  ;;  %v6354_v19 = vmul.f32 %v9102_v7, %v14572_v32  ;;  %v6353_v50 = vmul.f32 %v9102_v7, %v14575_v62 }
 0x9c1   : > { %v9104_v14 = vpop.eup %9103  ;;  %6543 = vmatmul.mubr.bf16.gmra.mxu1 %v6402_v30 }
 0x9c2   : > { %v6357_v12 = vmul.f32 %v9104_v14, %v14573_v18  ;;  %v6356_v11 = vmul.f32 %v9104_v14, %v14574_v34 }
 0x9c4   : > { %v6405_v24 = vpack.c.bf16 %v6357_v12, %v6354_v19  ;;  %v6404_v43 = vpack.c.bf16 %v6356_v11, %v6353_v50 }
 0x9c6   : > { %6550 = vmatprep.mubr.bf16.mxu1 %v6405_v24 }
 0x9c9   : > { %6551 = vmatmul.mubr.bf16.gmra.mxu1 %v6404_v43 }
 0x9fa   : > { %v6264_v29 = vpop.xlane.xlu1 %6263 }
 0x9fb   : > { %9105 = vrcp.f32 %v6264_v29 }
 0x9fe   : > { %v6267_v26 = vpop.xlane.xlu0 %6266 }
 0x9ff   : > { %9107 = vrcp.f32 %v6267_v26 }
 0xa02   : > { %v6270_v31 = vpop.xlane.xlu1 %6269 }
 0xa03   : > { %9109 = vrcp.f32 %v6270_v31 }
 0xa06   : > { %v6273_v9 = vpop.xlane.xlu0 %6272 }
 0xa07   : > { %9111 = vrcp.f32 %v6273_v9 }
 0xa08   : > { %v9106_v40 = vpop.eup %9105 }
 0xa09   : > { %v6360_v3 = vmul.f32 %v9106_v40, %v13734_v10  ;;  %v6359_v58 = vmul.f32 %v9106_v40, %v13732_v48 }
 0xa0a   : > { %v6276_v57 = vpop.xlane.xlu1 %6275 }
 0xa0b   : > { %9113 = vrcp.f32 %v6276_v57  ;;  %v14576_v57 = vld [vmem:[#allocation29_spill] sm:$0xff] }
 0xa0c   : > { %v9108_v27 = vpop.eup %9107 }
 0xa0d   : > { %v6363_v22 = vmul.f32 %v9108_v27, %v13742_v5  ;;  %v6362_v56 = vmul.f32 %v9108_v27, %v13740_v13  ;;  %v14577_v27 = vld [vmem:[#allocation2_spill] sm:$0xff] }
 0xa0e   : > { %v6279_v49 = vpop.xlane.xlu0 %6278 }
 0xa0f   : > { %9115 = vrcp.f32 %v6279_v49  ;;  %v6407_v42 = vpack.c.bf16 %v6363_v22, %v6360_v3  ;;  %v6406_v28 = vpack.c.bf16 %v6362_v56, %v6359_v58  ;;  %v13872_v3 = vsub.f32 %v14577_v27, %v14576_v57  ;;  %v14578_v22 = vld [vmem:[#allocation12_spill] sm:$0xff] }
 0xa10   : > { %v9110_v46 = vpop.eup %9109  ;;  %v13876_v58 = vsub.f32 %v14578_v22, %v14576_v57 }
 0xa11   : > { %6558 = vmatprep.mubr.bf16.mxu1 %v6407_v42  ;;  %v6366_v47 = vmul.f32 %v9110_v46, %v13754_v6  ;;  %v6365_v5 = vmul.f32 %v9110_v46, %v13750_v61  ;;  %v2457_v42 = vmul.f32 %v13872_v3, %v13872_v3 }
 0xa12   : > { %6559 = vmatmul.mubr.bf16.gmra.mxu1 %v6406_v28  ;;  %v2458_v28 = vmul.f32 %v13876_v58, %v13876_v58 }
 0xa13   : > { %v6282_v23 = vpop.xlane.xlu1 %6281 }
 0xa14   : > { %v9112_v25 = vpop.eup %9111  ;;  %9117 = vrcp.f32 %v6282_v23 }
 0xa15   : > { %v6369_v10 = vmul.f32 %v9112_v25, %v13762_v37  ;;  %v6368_v48 = vmul.f32 %v9112_v25, %v13760_v53 }
 0xa16   : > { %v6285_v21 = vpop.xlane.xlu0 %6284 }
 0xa17   : > { %9119 = vrcp.f32 %v6285_v21  ;;  %v6409_v13 = vpack.c.bf16 %v6369_v10, %v6366_v47  ;;  %v6408_v2 = vpack.c.bf16 %v6368_v48, %v6365_v5  ;;  %v14579_v47 = vld [vmem:[#allocation3_spill] sm:$0xff]  ;;  %v2489_v21 = vadd.f32 %v2458_v28, %v2457_v42 }
 0xa18   : > { %v9114_v36 = vpop.eup %9113  ;;  %v13884_v10 = vsub.f32 %v14579_v47, %v14576_v57 }
 0xa19   : > { %6566 = vmatprep.mubr.bf16.mxu1 %v6409_v13  ;;  %v6372_v55 = vmul.f32 %v9114_v36, %v13772_v54  ;;  %v6371_v6 = vmul.f32 %v9114_v36, %v13770_v16 }
 0xa1a   : > { %6567 = vmatmul.mubr.bf16.gmra.mxu1 %v6408_v2  ;;  %v14580_v2 = vld [vmem:[#allocation13_spill] sm:$0xff] }
 0xa1b   : > { %v13888_v36 = vsub.f32 %v14580_v2, %v14576_v57  ;;  %v14588_v2 = vld [vmem:[#allocation19_spill] sm:$0xff] }
 0xa1c   : > { %v9116_v52 = vpop.eup %9115 }
 0xa1d   : > { %v6375_v17 = vmul.f32 %v9116_v52, %v13778_v8  ;;  %v6374_v37 = vmul.f32 %v9116_v52, %v13776_v1  ;;  %v2459_v52 = vmul.f32 %v13884_v10, %v13884_v10 }
 0xa1f   : > { %v6411_v4 = vpack.c.bf16 %v6375_v17, %v6372_v55  ;;  %v6410_v61 = vpack.c.bf16 %v6374_v37, %v6371_v6  ;;  %v2490_v17 = vadd.f32 %v2489_v21, %v2459_v52  ;;  %v13936_v52 = vsub.f32 %v14588_v2, %v14576_v57 }
 0xa21   : > { %6574 = vmatprep.mubr.bf16.mxu1 %v6411_v4  ;;  %v9118_v53 = vpop.eup %9117 }
 0xa22   : > { %6575 = vmatmul.mubr.bf16.gmra.mxu1 %v6410_v61  ;;  %v6378_v63 = vmul.f32 %v9118_v53, %v13788_v15  ;;  %v6377_v0 = vmul.f32 %v9118_v53, %v13786_v33  ;;  %v14581_v61 = vld [vmem:[#allocation4_spill] sm:$0xff] }
 0xa23   : > { %v13894_v53 = vsub.f32 %v14581_v61, %v14576_v57 }
 0xa24   : > { %v9120_v38 = vpop.eup %9119 }
 0xa25   : > { %v6381_v41 = vmul.f32 %v9120_v38, %v13794_v35  ;;  %v6380_v54 = vmul.f32 %v9120_v38, %v13792_v45  ;;  %v2460_v38 = vmul.f32 %v13888_v36, %v13888_v36 }
 0xa27   : > { %v6413_v39 = vpack.c.bf16 %v6381_v41, %v6378_v63  ;;  %v6412_v8 = vpack.c.bf16 %v6380_v54, %v6377_v0  ;;  %v2491_v0 = vadd.f32 %v2490_v17, %v2460_v38  ;;  %v14589_v38 = vld [vmem:[#allocation8_spill] sm:$0xff] }
 0xa29   : > { %6582 = vmatprep.mubr.bf16.mxu1 %v6413_v39  ;;  %v14582_v39 = vld [vmem:[#allocation15_spill] sm:$0xff] }
 0xa2a   : > { %6583 = vmatmul.mubr.bf16.gmra.mxu1 %v6412_v8  ;;  %v13900_v8 = vsub.f32 %v14582_v39, %v14576_v57 }
 0xa30   : > { %v7787_v16 = vpop.f32.mrf.mxu1 }
 0xa32   : > { %v7788_v1 = vpop.f32.mrf.mxu1 }
 0xa33   : > { %v7789_v51 = vadd.f32 %v7788_v1, %v7787_v16  ;;  %v2461_v16 = vmul.f32 %v13894_v53, %v13894_v53 }
 0xa34   : > { %v7790_v60 = vpop.f32.mrf.mxu1 }
 0xa36   : > { %v7791_v44 = vpop.f32.mrf.mxu1 }
 0xa37   : > { %v7792_v59 = vadd.f32 %v7791_v44, %v7790_v60  ;;  %v2492_v60 = vadd.f32 %v2491_v0, %v2461_v16 }
 0xa39   : > { %v6591_v30 = vpack.c.bf16 %v7792_v59, %v7789_v51  ;;  %v7793_v7 = vpop.f32.mrf.mxu1 }
 0xa3b   : > { %v7794_v14 = vpop.f32.mrf.mxu1  ;;  %8115 = vmatprep.mubr.bf16.mxu0 %v6591_v30  ;;  %v14583_v30 = vld [vmem:[#allocation5_spill] sm:$0xff] }
 0xa3c   : > { %v7795_v32 = vadd.f32 %v7794_v14, %v7793_v7  ;;  %v13906_v7 = vsub.f32 %v14583_v30, %v14576_v57  ;;  %v2462_v14 = vmul.f32 %v13900_v8, %v13900_v8 }
 0xa3d   : > { %v7796_v15 = vpop.f32.mrf.mxu1 }
 0xa3f   : > { %v7797_v35 = vpop.f32.mrf.mxu1 }
 0xa40   : > { %v7798_v33 = vadd.f32 %v7797_v35, %v7796_v15 }
 0xa41   : > { %v7799_v19 = vpop.f32.mrf.mxu1 }
 0xa42   : > { %v6592_v45 = vpack.c.bf16 %v7798_v33, %v7795_v32  ;;  %v2493_v32 = vadd.f32 %v2492_v60, %v2462_v14 }
 0xa43   : > { %v7800_v18 = vpop.f32.mrf.mxu1 }
 0xa44   : > { %8116 = vmatmul.mubr.bf16.vlgmr.msra.gmra.mxu0 %v6592_v45  ;;  %v7801_v11 = vadd.f32 %v7800_v18, %v7799_v19  ;;  %v14584_v19 = vld [vmem:[#allocation17_spill] sm:$0xff]  ;;  %v2463_v18 = vmul.f32 %v13906_v7, %v13906_v7 }
 0xa45   : > { %v7802_v12 = vpop.f32.mrf.mxu1  ;;  %v13912_v45 = vsub.f32 %v14584_v19, %v14576_v57 }
 0xa47   : > { %v7803_v34 = vpop.f32.mrf.mxu1 }
 0xa48   : > { %v7804_v20 = vadd.f32 %v7803_v34, %v7802_v12  ;;  %v2494_v34 = vadd.f32 %v2493_v32, %v2463_v18 }
 0xa49   : > { %v7805_v62 = vpop.f32.mrf.mxu1 }
 0xa4a   : > { %v6593_v50 = vpack.c.bf16 %v7804_v20, %v7801_v11 }
 0xa4b   : > { %v7806_v24 = vpop.f32.mrf.mxu1 }
 0xa4c   : > { %8119 = vmatprep.mubr.bf16.mxu0 %v6593_v50  ;;  %v7807_v26 = vadd.f32 %v7806_v24, %v7805_v62  ;;  %v14585_v50 = vld [vmem:[#allocation6_spill] sm:$0xff] }
 0xa4d   : > { %v7808_v43 = vpop.f32.mrf.mxu1  ;;  %v13918_v24 = vsub.f32 %v14585_v50, %v14576_v57 }
 0xa4f   : > { %v7809_v29 = vpop.f32.mrf.mxu1  ;;  %v2465_v22 = vmul.f32 %v13918_v24, %v13918_v24 }
 0xa50   : > { %v7810_v31 = vadd.f32 %v7809_v29, %v7808_v43  ;;  %v2464_v43 = vmul.f32 %v13912_v45, %v13912_v45 }
 0xa51   : > { %v7811_v9 = vpop.f32.mrf.mxu1 }
 0xa52   : > { %v6594_v40 = vpack.c.bf16 %v7810_v31, %v7807_v26  ;;  %v2495_v31 = vadd.f32 %v2494_v34, %v2464_v43 }
 0xa53   : > { %v7812_v56 = vpop.f32.mrf.mxu1 }
 0xa54   : > { %8120 = vmatmul.mubr.bf16.gmra.mxu0 %v6594_v40  ;;  %v7813_v23 = vadd.f32 %v7812_v56, %v7811_v9  ;;  %v14586_v40 = vld [vmem:[#allocation18_spill] sm:$0xff] }
 0xa55   : > { %v7814_v49 = vpop.f32.mrf.mxu1  ;;  %v13924_v27 = vsub.f32 %v14586_v40, %v14576_v57 }
 0xa57   : > { %v7815_v46 = vpop.f32.mrf.mxu1  ;;  %v2466_v47 = vmul.f32 %v13924_v27, %v13924_v27 }
 0xa58   : > { %v7816_v25 = vadd.f32 %v7815_v46, %v7814_v49  ;;  %v2496_v49 = vadd.f32 %v2495_v31, %v2465_v22 }
 0xa59   : > { %v7817_v5 = vpop.f32.mrf.mxu1 }
 0xa5a   : > { %v6595_v48 = vpack.c.bf16 %v7816_v25, %v7813_v23  ;;  %v14587_v23 = vld [vmem:[#allocation7_spill] sm:$0xff]  ;;  %v2497_v21 = vadd.f32 %v2496_v49, %v2466_v47 }
 0xa5b   : > { %v7818_v13 = vpop.f32.mrf.mxu1  ;;  %v13930_v25 = vsub.f32 %v14587_v23, %v14576_v57  ;;  %v14595_v47 = vld [vmem:[#allocation11_spill] sm:$0xff] }
 0xa5c   : > { %8123 = vmatprep.mubr.bf16.mxu0 %v6595_v48  ;;  %v7819_v37 = vadd.f32 %v7818_v13, %v7817_v5 }
 0xa5d   : > { %v7820_v55 = vpop.f32.mrf.mxu1 }
 0xa5f   : > { %v7821_v6 = vpop.f32.mrf.mxu1 }
 0xa60   : > { %v7822_v4 = vadd.f32 %v7821_v6, %v7820_v55  ;;  %v2467_v55 = vmul.f32 %v13930_v25, %v13930_v25 }
 0xa61   : > { %v7823_v63 = vpop.f32.mrf.mxu1 }
 0xa62   : > { %v6596_v41 = vpack.c.bf16 %v7822_v4, %v7819_v37  ;;  %v2498_v6 = vadd.f32 %v2497_v21, %v2467_v55 }
 0xa63   : > { %v7824_v54 = vpop.f32.mrf.mxu1 }
 0xa64   : > { %8124 = vmatmul.mubr.bf16.gmra.mxu0 %v6596_v41  ;;  %v7825_v51 = vadd.f32 %v7824_v54, %v7823_v63  ;;  %v13942_v63 = vsub.f32 %v14589_v38, %v14576_v57  ;;  %v2468_v41 = vmul.f32 %v13936_v52, %v13936_v52  ;;  %v14598_v38 = vld [vmem:[#allocation25_spill] sm:$0xff] }
 0xa65   : > { %v7826_v1 = vpop.f32.mrf.mxu1 }
 0xa66   : > { %v2499_v39 = vadd.f32 %v2498_v6, %v2468_v41  ;;  %v14597_v6 = vld [vmem:[#allocation16_spill] sm:$0xff]  ;;  %v13996_v41 = vsub.f32 %v14598_v38, %v14576_v57 }
 0xa67   : > { %v7827_v44 = vpop.f32.mrf.mxu1 }
 0xa68   : > { %v7828_v59 = vadd.f32 %v7827_v44, %v7826_v1  ;;  %v14590_v1 = vld [vmem:[#allocation20_spill] sm:$0xff]  ;;  %v2469_v44 = vmul.f32 %v13942_v63, %v13942_v63 }
 0xa69   : > { %v7829_v15 = vpop.f32.mrf.mxu1  ;;  %v13948_v60 = vsub.f32 %v14590_v1, %v14576_v57  ;;  %v2478_v1 = vmul.f32 %v13996_v41, %v13996_v41 }
 0xa6a   : > { %v6597_v35 = vpack.c.bf16 %v7828_v59, %v7825_v51  ;;  %v2500_v59 = vadd.f32 %v2499_v39, %v2469_v44  ;;  %v14599_v39 = vld [vmem:[#allocation26_spill] sm:$0xff] }
 0xa6b   : > { %v7830_v33 = vpop.f32.mrf.mxu1 }
 0xa6c   : > { %8127 = vmatprep.mubr.bf16.mxu0 %v6597_v35  ;;  %v7831_v20 = vadd.f32 %v7830_v33, %v7829_v15  ;;  %v14591_v35 = vld [vmem:[#allocation9_spill] sm:$0xff]  ;;  %v2470_v33 = vmul.f32 %v13948_v60, %v13948_v60 }
 0xa6d   : > { %v7832_v12 = vpop.f32.mrf.mxu1  ;;  %v13954_v32 = vsub.f32 %v14591_v35, %v14576_v57 }
 0xa6f   : > { %v7833_v11 = vpop.f32.mrf.mxu1 }
 0xa70   : > { %v7834_v62 = vadd.f32 %v7833_v11, %v7832_v12  ;;  %v2501_v12 = vadd.f32 %v2500_v59, %v2470_v33  ;;  %v14592_v11 = vld [vmem:[#allocation21_spill] sm:$0xff] }
 0xa71   : > { %v7835_v29 = vpop.f32.mrf.mxu1 }
 0xa72   : > { %v6598_v26 = vpack.c.bf16 %v7834_v62, %v7831_v20  ;;  %v13960_v20 = vsub.f32 %v14592_v11, %v14576_v57  ;;  %v2471_v62 = vmul.f32 %v13954_v32, %v13954_v32 }
 0xa73   : > { %v7836_v9 = vpop.f32.mrf.mxu1 }
 0xa74   : > { %8128 = vmatmul.mubr.bf16.gmra.mxu0 %v6598_v26  ;;  %v7837_v28 = vadd.f32 %v7836_v9, %v7835_v29  ;;  %v2502_v43 = vadd.f32 %v2501_v12, %v2471_v62  ;;  %v14593_v9 = vld [vmem:[#allocation10_spill] sm:$0xff]  ;;  %v2472_v22 = vmul.f32 %v13960_v20, %v13960_v20  ;;  %v14603_v62 = vld [vmem:[#allocation24_spill] sm:$0xff] }
 0xa75   : > { %v7838_v56 = vpop.f32.mrf.mxu1  ;;  %v13966_v40 = vsub.f32 %v14593_v9, %v14576_v57  ;;  %v14604_v9 = vld [vmem:[#allocation30_spill] sm:$0xff] }
 0xa76   : > { %v2503_v49 = vadd.f32 %v2502_v43, %v2472_v22  ;;  %v2484_v22 = vmul.f32 %v14604_v9, %v14604_v9 }
 0xa77   : > { %v7839_v42 = vpop.f32.mrf.mxu1 }
 0xa78   : > { %v7840_v46 = vadd.f32 %v7839_v42, %v7838_v56  ;;  %v14594_v42 = vld [vmem:[#allocation22_spill] sm:$0xff] }
 0xa79   : > { %v7841_v5 = vpop.f32.mrf.mxu1 }
 0xa7a   : > { %v6599_v48 = vpack.c.bf16 %v7840_v46, %v7837_v28  ;;  %v13972_v28 = vsub.f32 %v14594_v42, %v14576_v57  ;;  %v2473_v46 = vmul.f32 %v13966_v40, %v13966_v40 }
 0xa7b   : > { %v7842_v13 = vpop.f32.mrf.mxu1 }
 0xa7c   : > { %8131 = vmatprep.mubr.bf16.mxu0 %v6599_v48  ;;  %v7843_v4 = vadd.f32 %v7842_v13, %v7841_v5  ;;  %v2504_v23 = vadd.f32 %v2503_v49, %v2473_v46  ;;  %v13978_v5 = vsub.f32 %v14595_v47, %v14576_v57  ;;  %v2474_v48 = vmul.f32 %v13972_v28, %v13972_v28  ;;  %v14596_v13 = vld [vmem:[#allocation23_spill] sm:$0xff] }
 0xa7d   : > { %v7844_v17 = vpop.f32.mrf.mxu1  ;;  %v13984_v2 = vsub.f32 %v14596_v13, %v14576_v57  ;;  %v14605_v49 = vld [vmem:[#allocation31_spill] sm:$0xff] }
 0xa7e   : > { %v2505_v21 = vadd.f32 %v2504_v23, %v2474_v48  ;;  %v2475_v55 = vmul.f32 %v13978_v5, %v13978_v5  ;;  %v2485_v42 = vmul.f32 %v14605_v49, %v14605_v49  ;;  %v14606_v23 = vld [vmem:[#allocation32_spill] sm:$0xff]  ;;  %v14607_v48 = vld [vmem:[#allocation33_spill] sm:$0xff] }
 0xa7f   : > { %v7845_v37 = vpop.f32.mrf.mxu1 }
 0xa80   : > { %v7846_v61 = vadd.f32 %v7845_v37, %v7844_v17  ;;  %v2506_v17 = vadd.f32 %v2505_v21, %v2475_v55  ;;  %v13990_v37 = vsub.f32 %v14597_v6, %v14576_v57  ;;  %v2487_v21 = vmul.f32 %v14607_v48, %v14607_v48  ;;  %v14608_v55 = vld [vmem:[#allocation34_spill] sm:$0xff] }
 0xa81   : > { %v7847_v0 = vpop.f32.mrf.mxu1 }
 0xa82   : > { %v6600_v54 = vpack.c.bf16 %v7846_v61, %v7843_v4  ;;  %v2476_v4 = vmul.f32 %v13984_v2, %v13984_v2 }
 0xa83   : > { %v7848_v16 = vpop.f32.mrf.mxu1 }
 0xa84   : > { %8132 = vmatmul.mubr.bf16.gmra.mxu0 %v6600_v54  ;;  %v7849_v14 = vadd.f32 %v7848_v16, %v7847_v0  ;;  %v2507_v61 = vadd.f32 %v2506_v17, %v2476_v4  ;;  %v2477_v0 = vmul.f32 %v13990_v37, %v13990_v37  ;;  %v14002_v16 = vsub.f32 %v14599_v39, %v14576_v57 }
 0xa85   : > { %v7850_v51 = vpop.f32.mrf.mxu1  ;;  %v2488_v17 = vmul.f32 %v14608_v55, %v14608_v55 }
 0xa86   : > { %v2508_v54 = vadd.f32 %v2507_v61, %v2477_v0 }
 0xa87   : > { %v7851_v30 = vpop.f32.mrf.mxu1 }
 0xa88   : > { %v7852_v15 = vadd.f32 %v7851_v30, %v7850_v51  ;;  %v2509_v44 = vadd.f32 %v2508_v54, %v2478_v1  ;;  %v14600_v51 = vld [vmem:[#allocation27_spill] sm:$0xff]  ;;  %v2479_v30 = vmul.f32 %v14002_v16, %v14002_v16 }
 0xa89   : > { %v7853_v19 = vpop.f32.mrf.mxu1  ;;  %v14008_v59 = vsub.f32 %v14600_v51, %v14576_v57 }
 0xa8a   : > { %v6601_v18 = vpack.c.bf16 %v7852_v15, %v7849_v14  ;;  %v2510_v14 = vadd.f32 %v2509_v44, %v2479_v30  ;;  %v14601_v15 = vld [vmem:[#allocation14_spill] sm:$0xff] }
 0xa8b   : > { %v7854_v34 = vpop.f32.mrf.mxu1  ;;  %v14014_v35 = vsub.f32 %v14601_v15, %v14576_v57  ;;  %v2480_v33 = vmul.f32 %v14008_v59, %v14008_v59 }
 0xa8c   : > { %8135 = vmatprep.mubr.bf16.mxu0 %v6601_v18  ;;  %v7855_v26 = vadd.f32 %v7854_v34, %v7853_v19  ;;  %v14602_v18 = vld [vmem:[#allocation28_spill] sm:$0xff] }
 0xa8d   : > { %v7856_v50 = vpop.f32.mrf.mxu1  ;;  %v2511_v19 = vadd.f32 %v2510_v14, %v2480_v33  ;;  %v14020_v12 = vsub.f32 %v14602_v18, %v14576_v57  ;;  %v2481_v34 = vmul.f32 %v14014_v35, %v14014_v35 }
 0xa8f   : > { %v7857_v29 = vpop.f32.mrf.mxu1  ;;  %v2512_v11 = vadd.f32 %v2511_v19, %v2481_v34  ;;  %v2482_v43 = vmul.f32 %v14020_v12, %v14020_v12 }
 0xa90   : > { %v7858_v31 = vadd.f32 %v7857_v29, %v7856_v50  ;;  %v14026_v50 = vsub.f32 %v14603_v62, %v14576_v57  ;;  %v2486_v57 = vmul.f32 %v14606_v23, %v14606_v23 }
 0xa91   : > { %v2513_v29 = vadd.f32 %v2512_v11, %v2482_v43 }
 0xa92   : > { %v6602_v56 = vpack.c.bf16 %v7858_v31, %v7855_v26  ;;  %v2483_v26 = vmul.f32 %v14026_v50, %v14026_v50 }
 0xa94   : > { %8136 = vmatmul.mubr.bf16.gmra.mxu0 %v6602_v56  ;;  %v2514_v31 = vadd.f32 %v2513_v29, %v2483_v26 }
 0xa96   : > { %v2515_v56 = vadd.f32 %v2514_v31, %v2484_v22 }
 0xa98   : > { %v2516_v46 = vadd.f32 %v2515_v56, %v2485_v42 }
 0xa9a   : > { %v2517_v47 = vadd.f32 %v2516_v46, %v2486_v57 }
 0xa9c   : > { %v2518_v13 = vadd.f32 %v2517_v47, %v2487_v21 }
 0xa9e   : > { %v2519_v4 = vadd.f32 %v2518_v13, %v2488_v17 }
 0xaa0   : > { %v2520_v0 = vrot.slane %v2519_v4, 4 }
 0xaa2   : > { %v2521_v51 = vadd.f32 %v2520_v0, %v2519_v4 }
 0xaa4   : > { %v2522_v33 = vrot.slane %v2521_v51, 2 }
 0xaa6   : > { %v2523_v62 = vadd.f32 %v2522_v33, %v2521_v51 }
 0xaa8   : > { %v2524_v31 = vrot.slane %v2523_v62, 1 }
 0xaaa   : > { %v2525_v57 = vadd.f32 %v2524_v31, %v2523_v62  ;;  %v14611_v31 = vld [vmem:[#allocation38_spill] sm:$0xff] }
 0xaac   : > { %v2526_v17 = vmul.f32 0.00390625, %v2525_v57 }
 0xad2   : > { %v7859_v6 = vpop.f32.mrf.mxu1 }
 0xad4   : > { %v7860_v61 = vpop.f32.mrf.mxu1 }
 0xad5   : > { %v7861_v39 = vadd.f32 %v7860_v61, %v7859_v6 }
 0xad6   : > { %v7862_v38 = vpop.f32.mrf.mxu1 }
 0xad8   : > { %v7863_v54 = vpop.f32.mrf.mxu1 }
 0xad9   : > { %v7864_v1 = vadd.f32 %v7863_v54, %v7862_v38  ;;  %v2527_v38 = vadd.f32 1e-05, %v2526_v17  ;;  %v14045_v54 = vld [vmem:[%s14229_s11] ss:$0 sm:$0xff] }
 0xada   : > { %v7865_v44 = vpop.f32.mrf.mxu1 }
 0xadb   : > { %v6603_v30 = vpack.c.bf16 %v7864_v1, %v7861_v39  ;;  %9121 = vrsqrt.f32 %v2527_v38 }
 0xadc   : > { %v7866_v14 = vpop.f32.mrf.mxu1 }
 0xadd   : > { %8139 = vmatprep.mubr.bf16.mxu0 %v6603_v30  ;;  %v7867_v18 = vadd.f32 %v7866_v14, %v7865_v44  ;;  %v14609_v14 = vld [vmem:[#allocation43_spill] sm:$0xff] }
 0xade   : > { %v7868_v15 = vpop.f32.mrf.mxu1 }
 0xae0   : > { %v7869_v19 = vpop.f32.mrf.mxu1 }
 0xae1   : > { %v7870_v34 = vadd.f32 %v7869_v19, %v7868_v15 }
 0xae2   : > { %v7871_v11 = vpop.f32.mrf.mxu1 }
 0xae3   : > { %v6604_v43 = vpack.c.bf16 %v7870_v34, %v7867_v18 }
 0xae4   : > { %v7872_v29 = vpop.f32.mrf.mxu1 }
 0xae5   : > { %8140 = vmatmul.mubr.bf16.gmra.mxu0 %v6604_v43  ;;  %v7873_v56 = vadd.f32 %v7872_v29, %v7871_v11  ;;  %v14610_v11 = vld [vmem:[#allocation37_spill] sm:$0xff] }
 0xae6   : > { %v7874_v26 = vpop.f32.mrf.mxu1 }
 0xae8   : > { %v7875_v22 = vpop.f32.mrf.mxu1  ;;  %v14047_v39 = vpop.eup %9121 }
 0xae9   : > { %v7876_v42 = vadd.f32 %v7875_v22, %v7874_v26  ;;  %v2531_v30 = vmul.f32 %v14047_v39, %v13884_v10  ;;  %v2529_v34 = vmul.f32 %v14047_v39, %v13872_v3  ;;  %v2532_v26 = vmul.f32 %v14047_v39, %v13888_v36  ;;  %v14612_v3 = vld [vmem:[#allocation44_spill] sm:$0xff] }
 0xaea   : > { %v7877_v46 = vpop.f32.mrf.mxu1  ;;  %v2535_v17 = vmul.f32 %v14047_v39, %v13906_v7  ;;  %v2536_v7 = vmul.f32 %v14047_v39, %v13912_v45 }
 0xaeb   : > { %v6605_v47 = vpack.c.bf16 %v7876_v42, %v7873_v56 }
 0xaec   : > { %v7878_v21 = vpop.f32.mrf.mxu1 }
 0xaed   : > { %8143 = vmatprep.mubr.bf16.mxu0 %v6605_v47  ;;  %v7879_v4 = vadd.f32 %v7878_v21, %v7877_v46  ;;  %v2530_v46 = vmul.f32 %v14047_v39, %v13876_v58 }
 0xaee   : > { %v7880_v13 = vpop.f32.mrf.mxu1 }
 0xaf0   : > { %v7881_v6 = vpop.f32.mrf.mxu1 }
 0xaf1   : > { %v7882_v61 = vadd.f32 %v7881_v6, %v7880_v13  ;;  %v14613_v6 = vld [vmem:[#allocation39_spill] sm:$0xff] }
 0xaf3   : > { %v6606_v0 = vpack.c.bf16 %v7882_v61, %v7879_v4 }
 0xaf5   : > { %8144 = vmatmul.mubr.bf16.gmra.mxu0 %v6606_v0  ;;  %v2533_v0 = vmul.f32 %v14047_v39, %v13894_v53  ;;  %v14616_v53 = vld [vmem:[#allocation45_spill] sm:$0xff] }
 0xb04   : > { %v8117_v1 = vpop.f32.mrf.mxu0 }
 0xb05   : > { %v6721_v44 = vadd.f32 %v8117_v1, %v14045_v54  ;;  %v14614_v1 = vld [vmem:[#allocation46_spill] sm:$0xff] }
 0xb06   : > { %v6712_v51 = vpop.f32.mrf.mxu0 }
 0xb07   : > { %v6841_v15 = vadd.f32 %v6721_v44, %v14609_v14  ;;  %v6713_v33 = vadd.f32 %v14045_v54, %v6712_v51 }
 0xb08   : > { %v8118_v19 = vpop.f32.mrf.mxu0 }
 0xb09   : > { %v6873_v18 = vadd.f32 %v6841_v15, %v2531_v30  ;;  %v6839_v10 = vadd.f32 %v6713_v33, %v14610_v11  ;;  %v6724_v62 = vadd.f32 %v8118_v19, %v14045_v54  ;;  %v14615_v15 = vld [vmem:[#allocation48_spill] sm:$0xff] }
 0xb0a   : > { %v6715_v43 = vpop.f32.mrf.mxu0 }
 0xb0b   : > { %6905 = vst [vmem:[%s14058_s14 + $0x10] sm:$0xff] %v6873_v18  ;;  %v6871_v29 = vadd.f32 %v6839_v10, %v2529_v34  ;;  %v6842_v22 = vadd.f32 %v6724_v62, %v14611_v31  ;;  %v6716_v56 = vadd.f32 %v14045_v54, %v6715_v43  ;;  %v2534_v34 = vmul.f32 %v14047_v39, %v13900_v8 }
 0xb0d   : > { %6903 = vst [vmem:[%s14058_s14] sm:$0xff] %v6871_v29  ;;  %v6874_v42 = vadd.f32 %v6842_v22, %v2532_v26  ;;  %v6840_v57 = vadd.f32 %v6716_v56, %v14612_v3  ;;  %v2539_v29 = vmul.f32 %v14047_v39, %v13930_v25  ;;  %v14617_v26 = vld [vmem:[#allocation50_spill] sm:$0xff]  ;;  %v2540_v25 = vmul.f32 %v14047_v39, %v13936_v52 }
 0xb0f   : > { %6906 = vst [vmem:[%s14058_s14 + $0x18] sm:$0xff] %v6874_v42  ;;  %v6872_v47 = vadd.f32 %v6840_v57, %v2530_v46  ;;  %v2537_v42 = vmul.f32 %v14047_v39, %v13918_v24  ;;  %v14618_v46 = vld [vmem:[#allocation47_spill] sm:$0xff]  ;;  %v14620_v24 = vld [vmem:[#allocation40_spill] sm:$0xff] }
 0xb11   : > { %6904 = vst [vmem:[%s14058_s14 + $0x8] sm:$0xff] %v6872_v47 }
 0xb14   : > { %v8121_v21 = vpop.f32.mrf.mxu0 }
 0xb15   : > { %v6737_v13 = vadd.f32 %v8121_v21, %v14045_v54 }
 0xb16   : > { %v6728_v36 = vpop.f32.mrf.mxu0 }
 0xb17   : > { %v6845_v4 = vadd.f32 %v6737_v13, %v14613_v6  ;;  %v6729_v61 = vadd.f32 %v14045_v54, %v6728_v36  ;;  %v14619_v13 = vld [vmem:[#allocation49_spill] sm:$0xff] }
 0xb18   : > { %v8122_v58 = vpop.f32.mrf.mxu0 }
 0xb19   : > { %v6877_v38 = vadd.f32 %v6845_v4, %v2535_v17  ;;  %v6843_v44 = vadd.f32 %v6729_v61, %v14614_v1  ;;  %v6740_v51 = vadd.f32 %v8122_v58, %v14045_v54  ;;  %v2538_v4 = vmul.f32 %v14047_v39, %v13924_v27 }
 0xb1a   : > { %v6731_v30 = vpop.f32.mrf.mxu0  ;;  %v2543_v1 = vmul.f32 %v14047_v39, %v13954_v32  ;;  %v2544_v32 = vmul.f32 %v14047_v39, %v13960_v20 }
 0xb1b   : > { %6909 = vst [vmem:[%s14058_s14 + $0x30] sm:$0xff] %v6877_v38  ;;  %v6875_v14 = vadd.f32 %v6843_v44, %v2533_v0  ;;  %v6846_v33 = vadd.f32 %v6740_v51, %v14615_v15  ;;  %v6732_v19 = vadd.f32 %v14045_v54, %v6731_v30  ;;  %v14621_v44 = vld [vmem:[#allocation51_spill] sm:$0xff]  ;;  %v14622_v15 = vld [vmem:[#allocation41_spill] sm:$0xff] }
 0xb1d   : > { %6907 = vst [vmem:[%s14058_s14 + $0x20] sm:$0xff] %v6875_v14  ;;  %v6878_v18 = vadd.f32 %v6846_v33, %v2536_v7  ;;  %v6844_v11 = vadd.f32 %v6732_v19, %v14616_v53  ;;  %v2541_v7 = vmul.f32 %v14047_v39, %v13942_v63  ;;  %v14623_v53 = vld [vmem:[#allocation42_spill] sm:$0xff]  ;;  %v14624_v63 = vld [vmem:[#allocation35_spill] sm:$0xff] }
 0xb1f   : > { %6910 = vst [vmem:[%s14058_s14 + $0x38] sm:$0xff] %v6878_v18  ;;  %v6876_v10 = vadd.f32 %v6844_v11, %v2534_v34 }
 0xb21   : > { %6908 = vst [vmem:[%s14058_s14 + $0x28] sm:$0xff] %v6876_v10 }
 0xb24   : > { %v8125_v62 = vpop.f32.mrf.mxu0 }
 0xb25   : > { %v6753_v43 = vadd.f32 %v8125_v62, %v14045_v54 }
 0xb26   : > { %v6744_v45 = vpop.f32.mrf.mxu0 }
 0xb27   : > { %v6849_v31 = vadd.f32 %v6753_v43, %v14617_v26  ;;  %v6745_v22 = vadd.f32 %v14045_v54, %v6744_v45  ;;  %v2542_v43 = vmul.f32 %v14047_v39, %v13948_v60 }
 0xb28   : > { %v8126_v8 = vpop.f32.mrf.mxu0 }
 0xb29   : > { %v6881_v56 = vadd.f32 %v6849_v31, %v2539_v29  ;;  %v6847_v3 = vadd.f32 %v6745_v22, %v14618_v46  ;;  %v6756_v57 = vadd.f32 %v8126_v8, %v14045_v54  ;;  %v2547_v22 = vmul.f32 %v14047_v39, %v13978_v5  ;;  %v14625_v8 = vld [vmem:[#allocation56_spill] sm:$0xff] }
 0xb2a   : > { %v6747_v47 = vpop.f32.mrf.mxu0  ;;  %v2548_v5 = vmul.f32 %v14047_v39, %v13984_v2 }
 0xb2b   : > { %6913 = vst [vmem:[%s14058_s14 + $0x50] sm:$0xff] %v6881_v56  ;;  %v6879_v21 = vadd.f32 %v6847_v3, %v2537_v42  ;;  %v6850_v36 = vadd.f32 %v6756_v57, %v14619_v13  ;;  %v6748_v17 = vadd.f32 %v14045_v54, %v6747_v47  ;;  %v2545_v3 = vmul.f32 %v14047_v39, %v13966_v40  ;;  %v14626_v57 = vld [vmem:[#allocation36_spill] sm:$0xff] }
 0xb2c   : > { %v14628_v40 = vld [vmem:[#allocation52_spill] sm:$0xff] }
 0xb2d   : > { %6911 = vst [vmem:[%s14058_s14 + $0x40] sm:$0xff] %v6879_v21  ;;  %v6882_v6 = vadd.f32 %v6850_v36, %v2540_v25  ;;  %v6848_v61 = vadd.f32 %v6748_v17, %v14620_v24  ;;  %v14627_v36 = vld [vmem:[#allocation54_spill] sm:$0xff]  ;;  %v2546_v24 = vmul.f32 %v14047_v39, %v13972_v28 }
 0xb2f   : > { %6914 = vst [vmem:[%s14058_s14 + $0x58] sm:$0xff] %v6882_v6  ;;  %v6880_v58 = vadd.f32 %v6848_v61, %v2538_v4 }
 0xb31   : > { %6912 = vst [vmem:[%s14058_s14 + $0x48] sm:$0xff] %v6880_v58 }
 0xb34   : > { %v8129_v38 = vpop.f32.mrf.mxu0 }
 0xb35   : > { %v6769_v0 = vadd.f32 %v8129_v38, %v14045_v54 }
 0xb36   : > { %v6760_v52 = vpop.f32.mrf.mxu0 }
 0xb37   : > { %v6853_v51 = vadd.f32 %v6769_v0, %v14621_v44  ;;  %v6761_v30 = vadd.f32 %v14045_v54, %v6760_v52  ;;  %v2551_v52 = vmul.f32 %v14047_v39, %v14002_v16  ;;  %v2552_v16 = vmul.f32 %v14047_v39, %v14008_v59 }
 0xb38   : > { %v8130_v27 = vpop.f32.mrf.mxu0 }
 0xb39   : > { %v6885_v14 = vadd.f32 %v6853_v51, %v2543_v1  ;;  %v6851_v33 = vadd.f32 %v6761_v30, %v14622_v15  ;;  %v6772_v19 = vadd.f32 %v8130_v27, %v14045_v54  ;;  %v14629_v1 = vld [vmem:[#allocation57_spill] sm:$0xff]  ;;  %v2549_v27 = vmul.f32 %v14047_v39, %v13990_v37  ;;  %v14632_v37 = vld [vmem:[#allocation58_spill] sm:$0xff] }
 0xb3a   : > { %v6763_v18 = vpop.f32.mrf.mxu0 }
 0xb3b   : > { %6917 = vst [vmem:[%s14058_s14 + $0x70] sm:$0xff] %v6885_v14  ;;  %v6883_v34 = vadd.f32 %v6851_v33, %v2541_v7  ;;  %v6854_v11 = vadd.f32 %v6772_v19, %v14623_v53  ;;  %v6764_v10 = vadd.f32 %v14045_v54, %v6763_v18  ;;  %v14630_v14 = vld [vmem:[#allocation53_spill] sm:$0xff]  ;;  %v14631_v18 = vld [vmem:[#allocation55_spill] sm:$0xff] }
 0xb3d   : > { %6915 = vst [vmem:[%s14058_s14 + $0x60] sm:$0xff] %v6883_v34  ;;  %v6886_v62 = vadd.f32 %v6854_v11, %v2544_v32  ;;  %v6852_v45 = vadd.f32 %v6764_v10, %v14624_v63  ;;  %v2550_v11 = vmul.f32 %v14047_v39, %v13996_v41 }
 0xb3f   : > { %6918 = vst [vmem:[%s14058_s14 + $0x78] sm:$0xff] %v6886_v62  ;;  %v6884_v29 = vadd.f32 %v6852_v45, %v2542_v43  ;;  %v2555_v45 = vmul.f32 %v14047_v39, %v14026_v50  ;;  %v2556_v50 = vmul.f32 %v14047_v39, %v14604_v9 }
 0xb41   : > { %6916 = vst [vmem:[%s14058_s14 + $0x68] sm:$0xff] %v6884_v29  ;;  %v14633_v29 = vld [vmem:[#allocation61_spill] sm:$0xff] }
 0xb44   : > { %v8133_v26 = vpop.f32.mrf.mxu0 }
 0xb45   : > { %v6785_v31 = vadd.f32 %v8133_v26, %v14045_v54 }
 0xb46   : > { %v6776_v20 = vpop.f32.mrf.mxu0 }
 0xb47   : > { %v6857_v56 = vadd.f32 %v6785_v31, %v14625_v8  ;;  %v6777_v42 = vadd.f32 %v14045_v54, %v6776_v20  ;;  %v14634_v8 = vld [vmem:[#allocation59_spill] sm:$0xff] }
 0xb48   : > { %v8134_v60 = vpop.f32.mrf.mxu0 }
 0xb49   : > { %v6889_v46 = vadd.f32 %v6857_v56, %v2547_v22  ;;  %v6855_v47 = vadd.f32 %v6777_v42, %v14626_v57  ;;  %v6788_v21 = vadd.f32 %v8134_v60, %v14045_v54  ;;  %v2553_v22 = vmul.f32 %v14047_v39, %v14014_v35  ;;  %v14636_v35 = vld [vmem:[#allocation60_spill] sm:$0xff] }
 0xb4a   : > { %v6779_v25 = vpop.f32.mrf.mxu0 }
 0xb4b   : > { %6921 = vst [vmem:[%s14058_s14 + $0x90] sm:$0xff] %v6889_v46  ;;  %v6887_v13 = vadd.f32 %v6855_v47, %v2545_v3  ;;  %v6858_v17 = vadd.f32 %v6788_v21, %v14627_v36  ;;  %v6780_v6 = vadd.f32 %v14045_v54, %v6779_v25  ;;  %v14635_v3 = vld [vmem:[#allocation62_spill] sm:$0xff]  ;;  %v2554_v25 = vmul.f32 %v14047_v39, %v14020_v12 }
 0xb4d   : > { %6919 = vst [vmem:[%s14058_s14 + $0x80] sm:$0xff] %v6887_v13  ;;  %v6890_v4 = vadd.f32 %v6858_v17, %v2548_v5  ;;  %v6856_v61 = vadd.f32 %v6780_v6, %v14628_v40  ;;  %v2559_v6 = vmul.f32 %v14047_v39, %v14607_v48 }
 0xb4f   : > { %6922 = vst [vmem:[%s14058_s14 + $0x98] sm:$0xff] %v6890_v4  ;;  %v6888_v58 = vadd.f32 %v6856_v61, %v2546_v24  ;;  %v14637_v4 = vld [vmem:[#allocation65_spill] sm:$0xff] }
 0xb51   : > { %6920 = vst [vmem:[%s14058_s14 + $0x88] sm:$0xff] %v6888_v58  ;;  %v2557_v58 = vmul.f32 %v14047_v39, %v14605_v49  ;;  %v14640_v49 = vld [vmem:[#allocation64_spill] sm:$0xff] }
 0xb54   : > { %v8137_v38 = vpop.f32.mrf.mxu0 }
 0xb55   : > { %v6801_v0 = vadd.f32 %v8137_v38, %v14045_v54  ;;  %v14638_v38 = vld [vmem:[#allocation63_spill] sm:$0xff] }
 0xb56   : > { %v6792_v2 = vpop.f32.mrf.mxu0 }
 0xb57   : > { %v6861_v44 = vadd.f32 %v6801_v0, %v14629_v1  ;;  %v6793_v51 = vadd.f32 %v14045_v54, %v6792_v2  ;;  %v2560_v1 = vmul.f32 %v14047_v39, %v14608_v55 }
 0xb58   : > { %v8138_v28 = vpop.f32.mrf.mxu0 }
 0xb59   : > { %v6893_v30 = vadd.f32 %v6861_v44, %v2551_v52  ;;  %v6859_v7 = vadd.f32 %v6793_v51, %v14630_v14  ;;  %v6804_v15 = vadd.f32 %v8138_v28, %v14045_v54  ;;  %v14639_v44 = vld [vmem:[#allocation66_spill] sm:$0xff] }
 0xb5a   : > { %v6795_v33 = vpop.f32.mrf.mxu0 }
 0xb5b   : > { %6925 = vst [vmem:[%s14058_s14 + $0xb0] sm:$0xff] %v6893_v30  ;;  %v6891_v19 = vadd.f32 %v6859_v7, %v2549_v27  ;;  %v6862_v34 = vadd.f32 %v6804_v15, %v14631_v18  ;;  %v6796_v32 = vadd.f32 %v14045_v54, %v6795_v33  ;;  %v2558_v27 = vmul.f32 %v14047_v39, %v14606_v23 }
 0xb5d   : > { %6923 = vst [vmem:[%s14058_s14 + $0xa0] sm:$0xff] %v6891_v19  ;;  %v6894_v53 = vadd.f32 %v6862_v34, %v2552_v16  ;;  %v6860_v10 = vadd.f32 %v6796_v32, %v14632_v37 }
 0xb5f   : > { %6926 = vst [vmem:[%s14058_s14 + $0xb8] sm:$0xff] %v6894_v53  ;;  %v6892_v62 = vadd.f32 %v6860_v10, %v2550_v11 }
 0xb61   : > { %6924 = vst [vmem:[%s14058_s14 + $0xa8] sm:$0xff] %v6892_v62 }
 0xba5   : > { %v8141_v43 = vpop.f32.mrf.mxu0 }
 0xba6   : > { %v6817_v63 = vadd.f32 %v8141_v43, %v14045_v54 }
 0xba7   : > { %v6808_v59 = vpop.f32.mrf.mxu0 }
 0xba8   : > { %v6865_v26 = vadd.f32 %v6817_v63, %v14633_v29  ;;  %v6809_v31 = vadd.f32 %v14045_v54, %v6808_v59 }
 0xba9   : > { %v8142_v41 = vpop.f32.mrf.mxu0 }
 0xbaa   : > { %v6897_v20 = vadd.f32 %v6865_v26, %v2555_v45  ;;  %v6863_v56 = vadd.f32 %v6809_v31, %v14634_v8  ;;  %v6820_v42 = vadd.f32 %v8142_v41, %v14045_v54 }
 0xbab   : > { %v6811_v60 = vpop.f32.mrf.mxu0 }
 0xbac   : > { %6929 = vst [vmem:[%s14058_s14 + $0xd0] sm:$0xff] %v6897_v20  ;;  %v6895_v46 = vadd.f32 %v6863_v56, %v2553_v22  ;;  %v6866_v57 = vadd.f32 %v6820_v42, %v14635_v3  ;;  %v6812_v47 = vadd.f32 %v14045_v54, %v6811_v60 }
 0xbae   : > { %6927 = vst [vmem:[%s14058_s14 + $0xc0] sm:$0xff] %v6895_v46  ;;  %v6898_v21 = vadd.f32 %v6866_v57, %v2556_v50  ;;  %v6864_v13 = vadd.f32 %v6812_v47, %v14636_v35 }
 0xbb0   : > { %6930 = vst [vmem:[%s14058_s14 + $0xd8] sm:$0xff] %v6898_v21  ;;  %v6896_v5 = vadd.f32 %v6864_v13, %v2554_v25 }
 0xbb2   : > { %6928 = vst [vmem:[%s14058_s14 + $0xc8] sm:$0xff] %v6896_v5 }
 0xbb5   : > { %v8145_v36 = vpop.f32.mrf.mxu0 }
 0xbb6   : > { %v6833_v17 = vadd.f32 %v8145_v36, %v14045_v54 }
 0xbb7   : > { %v6824_v9 = vpop.f32.mrf.mxu0 }
 0xbb8   : > { %v6869_v24 = vadd.f32 %v6833_v17, %v14637_v4  ;;  %v6825_v40 = vadd.f32 %v14045_v54, %v6824_v9 }
 0xbb9   : > { %v8146_v12 = vpop.f32.mrf.mxu0 }
 0xbba   : > { %v6901_v61 = vadd.f32 %v6869_v24, %v2559_v6  ;;  %v6867_v0 = vadd.f32 %v6825_v40, %v14638_v38  ;;  %v6836_v2 = vadd.f32 %v8146_v12, %v14045_v54 }
 0xbbb   : > { %v6827_v52 = vpop.f32.mrf.mxu0 }
 0xbbc   : > { %6933 = vst [vmem:[%s14058_s14 + $0xf0] sm:$0xff] %v6901_v61  ;;  %v6899_v48 = vadd.f32 %v6867_v0, %v2557_v58  ;;  %v6870_v51 = vadd.f32 %v6836_v2, %v14639_v44  ;;  %v6828_v28 = vadd.f32 %v14045_v54, %v6827_v52 }
 0xbbe   : > { %6931 = vst [vmem:[%s14058_s14 + $0xe0] sm:$0xff] %v6899_v48  ;;  %v6902_v30 = vadd.f32 %v6870_v51, %v2560_v1  ;;  %v6868_v14 = vadd.f32 %v6828_v28, %v14640_v49 }
 0xbc0   : > { %6934 = vst [vmem:[%s14058_s14 + $0xf8] sm:$0xff] %v6902_v30  ;;  %v6900_v7 = vadd.f32 %v6868_v14, %v2558_v27 }
 0xbc2   : > { %6932 = vst [vmem:[%s14058_s14 + $0xe8] sm:$0xff] %v6900_v7 }
 0xbc3 PF: > { %s22_s21 = sadd.s32 1, %s9134_s21  }
 0xbc4   : > { %p19_p4 = scmp.ge.s32.totalorder %s22_s21, 4  }
 0xbc6   :  { %21 = sbr.rel (!%p19_p4) target bundleno = 1 (0x1), region = 105 }

</bundles_post_ra>
